<compile_context>
chip_gen: v5e
topology: v5e:2x2
jax: 0.10.0
libtpu: 0.0.40
codegen_flags: <defaults>
</compile_context>

<pallas_src>
import functools

import jax
import jax.numpy as jnp
from jax.experimental import pallas as pl
from jax.experimental.pallas import tpu as pltpu

VMEM = pltpu.MemorySpace.VMEM
_LN_EPS = 1e-5  # PyTorch nn.LayerNorm default

# Preferred tile sizes: multiples of 256 feed the 2x256^2 MXU on v6e/v7x and are
# still 128-aligned for v5e's 4x128^2 MXU.  Worst-case VMEM use with double
# buffering is ~4 MiB, well under the 32 MiB scoped default on every generation
# (and v7x's 64 MiB physical VMEM).
_TM, _TN, _TK = 256, 512, 512


def _pick_tile(dim, preferred, align):
    """Largest tile <= preferred that is a multiple of `align` and divides `dim`.

    Falls back to the full dim (always legal: a block equal to the array dim
    satisfies the (8,128) rule)."""
    if dim <= preferred:
        return dim
    t = (preferred // align) * align
    while t >= align:
        if dim % t == 0:
            return t
        t -= align
    return dim


# ----------------------------- Pallas kernels -----------------------------

def _ln_matmul_kernel(x_ref, g_ref, b_ref, w_ref, bias_ref, o_ref):
    """y = LayerNorm(x) @ W + bias.  LN in f32 on the row tile, dot in bf16."""
    x = x_ref[...]                                        # (tm, K) f32
    mu = jnp.mean(x, axis=-1, keepdims=True)
    var = jnp.mean(jnp.square(x - mu), axis=-1, keepdims=True)
    xn = (x - mu) * jax.lax.rsqrt(var + _LN_EPS) * g_ref[...] + b_ref[...]
    o_ref[...] = (
        jnp.dot(xn.astype(jnp.bfloat16), w_ref[...],
                preferred_element_type=jnp.float32)
        + bias_ref[...]
    )


def _matmul_kernel(*refs, has_res):
    """Tiled y = x @ W + bias [+ residual]; K is the innermost (arbitrary) grid axis."""
    if has_res:
        x_ref, w_ref, bias_ref, res_ref, o_ref, acc_ref = refs
    else:
        x_ref, w_ref, bias_ref, o_ref, acc_ref = refs
        res_ref = None

    @pl.when(pl.program_id(2) == 0)
    def _init():
        acc_ref[...] = jnp.zeros_like(acc_ref)

    acc_ref[...] += jnp.dot(x_ref[...].astype(jnp.bfloat16), w_ref[...],
                            preferred_element_type=jnp.float32)

    @pl.when(pl.program_id(2) == pl.num_programs(2) - 1)
    def _finalize():
        y = acc_ref[...] + bias_ref[...]
        if has_res:
            y = y + res_ref[...]
        o_ref[...] = y


def _patch_embed_kernel(x_ref, w_ref, bias_ref, g_ref, b_ref, o_ref):
    """Conv-as-im2col matmul fused with the *output-side* LayerNorm (self.ln)."""
    y = (jnp.dot(x_ref[...].astype(jnp.bfloat16), w_ref[...],
                 preferred_element_type=jnp.float32)
         + bias_ref[...])
    mu = jnp.mean(y, axis=-1, keepdims=True)
    var = jnp.mean(jnp.square(y - mu), axis=-1, keepdims=True)
    o_ref[...] = (y - mu) * jax.lax.rsqrt(var + _LN_EPS) * g_ref[...] + b_ref[...]


def _attention_kernel(q_ref, kv_ref, o_ref, *, heads, head_dim, scale):
    """One batch element per grid step; all heads handled in-kernel on the lane dim."""
    inner = heads * head_dim
    q = q_ref[0]                     # (n, inner)  f32
    kv = kv_ref[0]                   # (m, 2*inner) f32: [k | v] as in PyTorch chunk(2)
    outs = []
    for h in range(heads):           # static unroll
        lo, hi = h * head_dim, (h + 1) * head_dim
        qh = q[:, lo:hi].astype(jnp.bfloat16)
        kh = kv[:, lo:hi].astype(jnp.bfloat16)
        vh = kv[:, inner + lo:inner + hi].astype(jnp.bfloat16)
        s = jax.lax.dot_general(qh, kh, (((1,), (1,)), ((), ())),
                                preferred_element_type=jnp.float32) * scale
        s = s - jnp.max(s, axis=-1, keepdims=True)
        p = jnp.exp(s)
        p = p * pl.reciprocal(jnp.sum(p, axis=-1, keepdims=True), approx=True)
        outs.append(jnp.dot(p.astype(jnp.bfloat16), vh,
                            preferred_element_type=jnp.float32))
    # concat along lanes == rearrange '(b h) n d -> b n (h d)'
    o_ref[0] = jnp.concatenate(outs, axis=-1)


def _pool_head_kernel(x_ref, g_ref, b_ref, w_ref, bias_ref, o_ref):
    """Reduce('b n d -> b d', 'mean') -> LayerNorm -> Linear (lane-padded classes)."""
    pooled = jnp.mean(x_ref[...], axis=1)                 # (B, D)
    mu = jnp.mean(pooled, axis=-1, keepdims=True)
    var = jnp.mean(jnp.square(pooled - mu), axis=-1, keepdims=True)
    xn = (pooled - mu) * jax.lax.rsqrt(var + _LN_EPS) * g_ref[...] + b_ref[...]
    o_ref[...] = (jnp.dot(xn.astype(jnp.bfloat16), w_ref[...],
                          preferred_element_type=jnp.float32)
                  + bias_ref[...])


# ----------------------------- Pallas wrappers -----------------------------

def ln_matmul(x2, g, b, w, bias):
    """LayerNorm(x2) @ w + bias.  x2: (M,K) f32; w: (K,N) bf16; g/b:(1,K); bias:(1,N)."""
    M, K = x2.shape
    N = w.shape[1]
    tm = _pick_tile(M, _TM, 8)
    tn = _pick_tile(N, _TN, 128)
    return pl.pallas_call(
        _ln_matmul_kernel,
        out_shape=jax.ShapeDtypeStruct((M, N), jnp.float32),
        grid=(M // tm, N // tn),
        in_specs=[
            pl.BlockSpec((tm, K), lambda i, j: (i, 0)),
            pl.BlockSpec((1, K), lambda i, j: (0, 0)),
            pl.BlockSpec((1, K), lambda i, j: (0, 0)),
            pl.BlockSpec((K, tn), lambda i, j: (0, j)),
            pl.BlockSpec((1, tn), lambda i, j: (0, j)),
        ],
        out_specs=pl.BlockSpec((tm, tn), lambda i, j: (i, j)),
        compiler_params=pltpu.CompilerParams(
            dimension_semantics=("parallel", "parallel")),
    )(x2, g, b, w, bias)


def matmul(x2, w, bias, res=None):
    """x2 @ w + bias [+ res], tiled (M/tm, N/tn, K/tk) with f32 VMEM accumulator."""
    M, K = x2.shape
    N = w.shape[1]
    tm = _pick_tile(M, _TM, 8)
    tn = _pick_tile(N, _TN, 128)
    tk = _pick_tile(K, _TK, 128)
    in_specs = [
        pl.BlockSpec((tm, tk), lambda i, j, k: (i, k)),
        pl.BlockSpec((tk, tn), lambda i, j, k: (k, j)),
        pl.BlockSpec((1, tn), lambda i, j, k: (0, j)),
    ]
    args = [x2, w, bias]
    if res is not None:
        in_specs.append(pl.BlockSpec((tm, tn), lambda i, j, k: (i, j)))
        args.append(res)
    return pl.pallas_call(
        functools.partial(_matmul_kernel, has_res=res is not None),
        out_shape=jax.ShapeDtypeStruct((M, N), jnp.float32),
        grid=(M // tm, N // tn, K // tk),
        in_specs=in_specs,
        out_specs=pl.BlockSpec((tm, tn), lambda i, j, k: (i, j)),
        scratch_shapes=[pltpu.VMEM((tm, tn), jnp.float32)],
        compiler_params=pltpu.CompilerParams(
            dimension_semantics=("parallel", "parallel", "arbitrary")),
    )(*args)


def patch_embed(patches2, w, bias, g, b):
    """im2col conv projection + fused output LayerNorm.  patches2: (M, C*P*P)."""
    M, K = patches2.shape
    N = w.shape[1]
    tm = _pick_tile(M, _TM, 8)
    return pl.pallas_call(
        _patch_embed_kernel,
        out_shape=jax.ShapeDtypeStruct((M, N), jnp.float32),
        grid=(M // tm,),
        in_specs=[
            pl.BlockSpec((tm, K), lambda i: (i, 0)),
            pl.BlockSpec((K, N), lambda i: (0, 0)),
            pl.BlockSpec((1, N), lambda i: (0, 0)),
            pl.BlockSpec((1, N), lambda i: (0, 0)),
            pl.BlockSpec((1, N), lambda i: (0, 0)),
        ],
        out_specs=pl.BlockSpec((tm, N), lambda i: (i, 0)),
        compiler_params=pltpu.CompilerParams(dimension_semantics=("parallel",)),
    )(patches2, w, bias, g, b)


def attention(q, kv, heads, head_dim):
    """q: (B, n, h*d), kv: (B, m, 2*h*d) -> softmax(q k^T * d^-0.5) v, per-batch grid."""
    B, n, inner = q.shape
    m = kv.shape[1]
    scale = head_dim ** (-0.5)
    return pl.pallas_call(
        functools.partial(_attention_kernel, heads=heads, head_dim=head_dim,
                          scale=scale),
        out_shape=jax.ShapeDtypeStruct((B, n, inner), jnp.float32),
        grid=(B,),
        in_specs=[
            pl.BlockSpec((1, n, inner), lambda bi: (bi, 0, 0)),
            pl.BlockSpec((1, m, 2 * inner), lambda bi: (bi, 0, 0)),
        ],
        out_specs=pl.BlockSpec((1, n, inner), lambda bi: (bi, 0, 0)),
        compiler_params=pltpu.CompilerParams(dimension_semantics=("parallel",)),
    )(q, kv)


def pool_head(x, g, b, w, bias):
    """(B, n, D) -> mean over tokens -> LN -> Linear, output lane-padded to 128."""
    B, _, _ = x.shape
    Np = w.shape[1]
    return pl.pallas_call(
        _pool_head_kernel,
        out_shape=jax.ShapeDtypeStruct((B, Np), jnp.float32),
        in_specs=[pl.BlockSpec(memory_space=VMEM)] * 5,
        out_specs=pl.BlockSpec(memory_space=VMEM),
    )(x, g, b, w, bias)


# ----------------------------- model building blocks -----------------------------

def mlp_block(x, p):
    """Residual(LayerNorm -> Linear(d,4d) -> GELU -> Linear(4d,d))."""
    B, n, d = x.shape
    x2 = x.reshape(B * n, d)
    h = ln_matmul(x2, p["ln_g"], p["ln_b"], p["w1"], p["b1"])    # LN+W1+b1 fused
    # TODO(synk): fuse exact-erf GELU into the W1 kernel once lax.erf lowering is
    # guaranteed in Mosaic; kept as plain JAX to preserve nn.GELU() (erf) semantics.
    h = jax.nn.gelu(h, approximate=False)
    y = matmul(h, p["w2"], p["b2"], res=x2)                      # W2+b2+residual fused
    return y.reshape(B, n, d)


def cross_attention_layer_fwd(x_q, x_kv, p, heads, head_dim):
    """Residual(CrossAttention) -> Residual(mlp)."""
    B, n, qd = x_q.shape
    m = x_kv.shape[1]
    inner = heads * head_dim
    xq2 = x_q.reshape(B * n, qd)
    # q_norm / kv_norm fused into the (bias-free) q / kv projections
    q2 = ln_matmul(xq2, p["q_ln_g"], p["q_ln_b"], p["to_q"], p["zero_q"])
    kv2 = ln_matmul(x_kv.reshape(B * m, -1), p["kv_ln_g"], p["kv_ln_b"],
                    p["to_kv"], p["zero_kv"])
    o = attention(q2.reshape(B, n, inner), kv2.reshape(B, m, 2 * inner),
                  heads, head_dim)
    # to_out + bias + residual (Residual(CrossAttention)) fused
    x = matmul(o.reshape(B * n, inner), p["to_out_w"], p["to_out_b"],
               res=xq2).reshape(B, n, qd)
    return mlp_block(x, p["mlp"])


def self_attention_layer_fwd(x, p, heads, head_dim):
    """Residual(SelfAttention) -> Residual(mlp)."""
    B, n, d = x.shape
    inner = heads * head_dim
    x2 = x.reshape(B * n, d)
    # shared pre-norm fused into a single combined [q|k|v] projection
    qkv = ln_matmul(x2, p["ln_g"], p["ln_b"], p["to_qkv"],
                    p["zero_qkv"]).reshape(B, n, 3 * inner)
    q = qkv[..., :inner]
    kv = qkv[..., inner:]
    o = attention(q, kv, heads, head_dim)
    x = matmul(o.reshape(B * n, inner), p["to_out_w"], p["to_out_b"],
               res=x2).reshape(B, n, d)
    return mlp_block(x, p["mlp"])


def cnn_perceiver_forward(x, params, *, patch_size, num_classes,
                          ca_heads, ca_head_dim, sa_heads, sa_head_dim):
    """CNNPerceiver.forward with embedding='CNN', token_location='None'."""
    B, C, H, W = x.shape
    P = patch_size
    nh, nw = H // P, W // P

    # Conv2d(3, input_dim, kernel=P, stride=P) as im2col (free reshapes) + fused
    # matmul + LayerNorm; token order matches rearrange 'b c h w -> b (h w) c'.
    patches = (x.reshape(B, C, nh, P, nw, P)
                 .transpose(0, 2, 4, 1, 3, 5)
                 .reshape(B * nh * nw, C * P * P))
    tokens = patch_embed(patches, params["proj_w"], params["proj_b"],
                         params["ln_g"], params["ln_b"]).reshape(B, nh * nw, -1)

    lat = jnp.broadcast_to(params["latent"][None], (B,) + params["latent"].shape)
    lat = cross_attention_layer_fwd(lat, tokens, params["ca"], ca_heads, ca_head_dim)
    for sp in params["sa"]:
        lat = self_attention_layer_fwd(lat, sp, sa_heads, sa_head_dim)

    logits_padded = pool_head(lat, params["head_ln_g"], params["head_ln_b"],
                              params["head_w"], params["head_b"])
    return logits_padded[:, :num_classes]


# ----------------------------- parameter init -----------------------------

def init_perceiver_params(key, *, in_ch, patch, input_dim, latent_dim, num_latents,
                          num_sa_layers, ca_heads, ca_head_dim, sa_heads, sa_head_dim,
                          num_classes, mlp_ratio=4):
    keys = iter(jax.random.split(key, 256))
    nk = lambda: next(keys)
    # weights stored bf16 once (MXU operands); LN params / biases stay f32
    wgt = lambda shape: (jax.random.normal(nk(), shape, jnp.float32) * 0.02
                         ).astype(jnp.bfloat16)
    ones = lambda d: jnp.ones((1, d), jnp.float32)
    zeros = lambda d: jnp.zeros((1, d), jnp.float32)

    ca_inner = ca_heads * ca_head_dim
    sa_inner = sa_heads * sa_head_dim

    def mlp_params(dim):
        hid = dim * mlp_ratio
        return dict(ln_g=ones(dim), ln_b=zeros(dim),
                    w1=wgt((dim, hid)), b1=zeros(hid),
                    w2=wgt((hid, dim)), b2=zeros(dim))

    # head weight zero-padded to a lane-dense multiple of 128 output columns
    ncls_pad = max(128, ((num_classes + 127) // 128) * 128)
    head_w = jnp.zeros((latent_dim, ncls_pad), jnp.bfloat16)
    head_w = head_w.at[:, :num_classes].set(wgt((latent_dim, num_classes)))
    head_b = jnp.zeros((1, ncls_pad), jnp.float32)

    return dict(
        # conv weight (out, in, kh, kw) flattened to (in*kh*kw, out) in (C,P,P) order
        proj_w=wgt((in_ch * patch * patch, input_dim)),
        proj_b=zeros(input_dim),
        ln_g=ones(latent_dim), ln_b=zeros(latent_dim),
        latent=jnp.clip(
            jax.random.normal(nk(), (num_latents, latent_dim), jnp.float32) * 0.02,
            -2.0, 2.0),
        ca=dict(q_ln_g=ones(latent_dim), q_ln_b=zeros(latent_dim),
                kv_ln_g=ones(input_dim), kv_ln_b=zeros(input_dim),
                to_q=wgt((latent_dim, ca_inner)),          # bias=False
                to_kv=wgt((input_dim, 2 * ca_inner)),      # bias=False
                zero_q=zeros(ca_inner), zero_kv=zeros(2 * ca_inner),
                to_out_w=wgt((ca_inner, latent_dim)), to_out_b=zeros(latent_dim),
                mlp=mlp_params(latent_dim)),
        sa=[dict(ln_g=ones(latent_dim), ln_b=zeros(latent_dim),
                 to_qkv=wgt((latent_dim, 3 * sa_inner)),   # [Wq | Wkv], bias=False
                 zero_qkv=zeros(3 * sa_inner),
                 to_out_w=wgt((sa_inner, latent_dim)), to_out_b=zeros(latent_dim),
                 mlp=mlp_params(latent_dim))
            for _ in range(num_sa_layers)],
        head_ln_g=ones(latent_dim), head_ln_b=zeros(latent_dim),
        head_w=head_w, head_b=head_b,
    )


# ----------------------------- main -----------------------------

if __name__ == "__main__":
    key = jax.random.PRNGKey(0)
    k_x, k_p = jax.random.split(key)

    # Small config consistent with the module: embedding='CNN' hard-wires
    # patch_size=16 and input_dim=384, and applies LayerNorm(latent_dim) to the
    # conv output, so latent_dim must equal 384.
    B, C, H, W = 2, 3, 32, 32            # -> 2x2 = 4 patch tokens
    num_classes = 16
    ca_heads, sa_heads = 2, 2
    ca_head_dim, sa_head_dim = 32, 32
    params = init_perceiver_params(
        k_p,
        in_ch=C, patch=16, input_dim=384, latent_dim=384, num_latents=8,
        num_sa_layers=1,                  # num_blocks=1, self_attention_per_block=1
        ca_heads=ca_heads, ca_head_dim=ca_head_dim,
        sa_heads=sa_heads, sa_head_dim=sa_head_dim,
        num_classes=num_classes,
    )

    x = jax.random.normal(k_x, (B, C, H, W), jnp.float32)
    fwd = jax.jit(functools.partial(
        cnn_perceiver_forward,
        patch_size=16, num_classes=num_classes,
        ca_heads=ca_heads, ca_head_dim=ca_head_dim,
        sa_heads=sa_heads, sa_head_dim=sa_head_dim))
    y = jax.block_until_ready(fwd(x, params))
    assert y.shape == (B, num_classes), y.shape
    assert jnp.all(jnp.isfinite(y))
    print("KERNEL_OK")
</pallas_src>

<mosaic_0001>
module attributes {stable_mosaic.version = 11 : i64} {
  func.func @_ln_matmul_kernel(%arg0: i32, %arg1: i32, %arg2: memref<16x384xf32, #tpu.memory_space<vmem>>, %arg3: memref<1x384xf32, #tpu.memory_space<vmem>>, %arg4: memref<1x384xf32, #tpu.memory_space<vmem>>, %arg5: memref<384x64xbf16, #tpu.memory_space<vmem>>, %arg6: memref<1x64xf32, #tpu.memory_space<vmem>>, %arg7: memref<16x64xf32, #tpu.memory_space<vmem>>) attributes {dimension_semantics = [#tpu.dimension_semantics<parallel>, #tpu.dimension_semantics<parallel>], iteration_bounds = array<i64: 1, 1>, scalar_prefetch = 0 : i64, scratch_operands = 0 : i64, tpu.core_type = #tpu.core_type<tc>, window_params = [{transform_indices = @transform_0, window_bounds = array<i64: 16, 384>}, {pipeline_mode = #tpu.pipeline_mode<synchronous>, transform_indices = @transform_1, window_bounds = array<i64: 1, 384>}, {pipeline_mode = #tpu.pipeline_mode<synchronous>, transform_indices = @transform_2, window_bounds = array<i64: 1, 384>}, {transform_indices = @transform_3, window_bounds = array<i64: 384, 64>}, {transform_indices = @transform_4, window_bounds = array<i64: 1, 64>}, {transform_indices = @transform_5, window_bounds = array<i64: 16, 64>}]} {
    %c0 = arith.constant 0 : index
    %c0_0 = arith.constant 0 : index
    %0 = vector.load %arg2[%c0, %c0_0] : memref<16x384xf32, #tpu.memory_space<vmem>>, vector<16x384xf32>
    %cst = arith.constant dense<0.000000e+00> : vector<16xf32>
    %1 = vector.multi_reduction <add>, %0, %cst [1] : vector<16x384xf32> to vector<16xf32>
    %2 = vector.shape_cast %1 : vector<16xf32> to vector<16x1xf32>
    %cst_1 = arith.constant 3.840000e+02 : f32
    %3 = vector.broadcast %cst_1 : f32 to vector<16x1xf32>
    %4 = arith.divf %2, %3 : vector<16x1xf32>
    %5 = vector.broadcast %4 : vector<16x1xf32> to vector<16x384xf32>
    %6 = arith.subf %0, %5 : vector<16x384xf32>
    %7 = arith.mulf %6, %6 : vector<16x384xf32>
    %cst_2 = arith.constant dense<0.000000e+00> : vector<16xf32>
    %8 = vector.multi_reduction <add>, %7, %cst_2 [1] : vector<16x384xf32> to vector<16xf32>
    %9 = vector.shape_cast %8 : vector<16xf32> to vector<16x1xf32>
    %cst_3 = arith.constant 3.840000e+02 : f32
    %10 = vector.broadcast %cst_3 : f32 to vector<16x1xf32>
    %11 = arith.divf %9, %10 : vector<16x1xf32>
    %12 = vector.broadcast %4 : vector<16x1xf32> to vector<16x384xf32>
    %13 = arith.subf %0, %12 : vector<16x384xf32>
    %cst_4 = arith.constant 9.99999974E-6 : f32
    %14 = vector.broadcast %cst_4 : f32 to vector<16x1xf32>
    %15 = arith.addf %11, %14 : vector<16x1xf32>
    %16 = math.rsqrt %15 : vector<16x1xf32>
    %17 = vector.broadcast %16 : vector<16x1xf32> to vector<16x384xf32>
    %18 = arith.mulf %13, %17 : vector<16x384xf32>
    %c0_5 = arith.constant 0 : index
    %c0_6 = arith.constant 0 : index
    %19 = vector.load %arg3[%c0_5, %c0_6] : memref<1x384xf32, #tpu.memory_space<vmem>>, vector<1x384xf32>
    %20 = vector.broadcast %19 : vector<1x384xf32> to vector<16x384xf32>
    %21 = arith.mulf %18, %20 : vector<16x384xf32>
    %c0_7 = arith.constant 0 : index
    %c0_8 = arith.constant 0 : index
    %22 = vector.load %arg4[%c0_7, %c0_8] : memref<1x384xf32, #tpu.memory_space<vmem>>, vector<1x384xf32>
    %23 = vector.broadcast %22 : vector<1x384xf32> to vector<16x384xf32>
    %24 = arith.addf %21, %23 : vector<16x384xf32>
    %25 = arith.truncf %24 : vector<16x384xf32> to vector<16x384xbf16>
    %c0_9 = arith.constant 0 : index
    %c0_10 = arith.constant 0 : index
    %26 = vector.load %arg5[%c0_9, %c0_10] : memref<384x64xbf16, #tpu.memory_space<vmem>>, vector<384x64xbf16>
    %cst_11 = arith.constant dense<0.000000e+00> : vector<16x64xf32>
    %27 = tpu.matmul %25, %26, %cst_11 {dimension_numbers = #tpu.dot_dimension_numbers<[1], [0], [0], [1], [0, 0, 1, 1], [], []>} : vector<16x384xbf16>, vector<384x64xbf16>, vector<16x64xf32> -> vector<16x64xf32>
    %c0_12 = arith.constant 0 : index
    %c0_13 = arith.constant 0 : index
    %28 = vector.load %arg6[%c0_12, %c0_13] : memref<1x64xf32, #tpu.memory_space<vmem>>, vector<1x64xf32>
    %29 = vector.broadcast %28 : vector<1x64xf32> to vector<16x64xf32>
    %30 = arith.addf %27, %29 : vector<16x64xf32>
    %c0_14 = arith.constant 0 : index
    %c0_15 = arith.constant 0 : index
    %31 = vector.load %arg7[%c0_14, %c0_15] : memref<16x64xf32, #tpu.memory_space<vmem>>, vector<16x64xf32>
    tpu.vector_store %arg7[%c0_14, %c0_15], %30 {strides = array<i32>} : memref<16x64xf32, #tpu.memory_space<vmem>>, vector<16x64xf32>,
    return
  }
  func.func @transform_0(%arg0: i32, %arg1: i32) -> (i32, i32) {
    %c0_i32 = arith.constant 0 : i32
    %c0_i32_0 = arith.constant 0 : i32
    return %arg0, %c0_i32 : i32, i32
  }
  func.func @transform_1(%arg0: i32, %arg1: i32) -> (i32, i32) {
    %c0_i32 = arith.constant 0 : i32
    %c0_i32_0 = arith.constant 0 : i32
    %c0_i32_1 = arith.constant 0 : i32
    return %c0_i32, %c0_i32_0 : i32, i32
  }
  func.func @transform_2(%arg0: i32, %arg1: i32) -> (i32, i32) {
    %c0_i32 = arith.constant 0 : i32
    %c0_i32_0 = arith.constant 0 : i32
    %c0_i32_1 = arith.constant 0 : i32
    return %c0_i32, %c0_i32_0 : i32, i32
  }
  func.func @transform_3(%arg0: i32, %arg1: i32) -> (i32, i32) {
    %c0_i32 = arith.constant 0 : i32
    %c0_i32_0 = arith.constant 0 : i32
    return %c0_i32, %arg1 : i32, i32
  }
  func.func @transform_4(%arg0: i32, %arg1: i32) -> (i32, i32) {
    %c0_i32 = arith.constant 0 : i32
    %c0_i32_0 = arith.constant 0 : i32
    return %c0_i32, %arg1 : i32, i32
  }
  func.func @transform_5(%arg0: i32, %arg1: i32) -> (i32, i32) {
    %c0_i32 = arith.constant 0 : i32
    return %arg0, %arg1 : i32, i32
  }
}

module attributes {stable_mosaic.version = 11 : i64} {
  func.func @_patch_embed_kernel(%arg0: i32, %arg1: memref<8x768xf32, #tpu.memory_space<vmem>>, %arg2: memref<768x384xbf16, #tpu.memory_space<vmem>>, %arg3: memref<1x384xf32, #tpu.memory_space<vmem>>, %arg4: memref<1x384xf32, #tpu.memory_space<vmem>>, %arg5: memref<1x384xf32, #tpu.memory_space<vmem>>, %arg6: memref<8x384xf32, #tpu.memory_space<vmem>>) attributes {dimension_semantics = [#tpu.dimension_semantics<parallel>], iteration_bounds = array<i64: 1>, scalar_prefetch = 0 : i64, scratch_operands = 0 : i64, tpu.core_type = #tpu.core_type<tc>, window_params = [{transform_indices = @transform_0, window_bounds = array<i64: 8, 768>}, {pipeline_mode = #tpu.pipeline_mode<synchronous>, transform_indices = @transform_1, window_bounds = array<i64: 768, 384>}, {pipeline_mode = #tpu.pipeline_mode<synchronous>, transform_indices = @transform_2, window_bounds = array<i64: 1, 384>}, {pipeline_mode = #tpu.pipeline_mode<synchronous>, transform_indices = @transform_3, window_bounds = array<i64: 1, 384>}, {pipeline_mode = #tpu.pipeline_mode<synchronous>, transform_indices = @transform_4, window_bounds = array<i64: 1, 384>}, {transform_indices = @transform_5, window_bounds = array<i64: 8, 384>}]} {
    %c0 = arith.constant 0 : index
    %c0_0 = arith.constant 0 : index
    %0 = vector.load %arg1[%c0, %c0_0] : memref<8x768xf32, #tpu.memory_space<vmem>>, vector<8x768xf32>
    %1 = arith.truncf %0 : vector<8x768xf32> to vector<8x768xbf16>
    %c0_1 = arith.constant 0 : index
    %c0_2 = arith.constant 0 : index
    %2 = vector.load %arg2[%c0_1, %c0_2] : memref<768x384xbf16, #tpu.memory_space<vmem>>, vector<768x384xbf16>
    %cst = arith.constant dense<0.000000e+00> : vector<8x384xf32>
    %3 = tpu.matmul %1, %2, %cst {dimension_numbers = #tpu.dot_dimension_numbers<[1], [0], [0], [1], [0, 0, 1, 1], [], []>} : vector<8x768xbf16>, vector<768x384xbf16>, vector<8x384xf32> -> vector<8x384xf32>
    %c0_3 = arith.constant 0 : index
    %c0_4 = arith.constant 0 : index
    %4 = vector.load %arg3[%c0_3, %c0_4] : memref<1x384xf32, #tpu.memory_space<vmem>>, vector<1x384xf32>
    %5 = vector.broadcast %4 : vector<1x384xf32> to vector<8x384xf32>
    %6 = arith.addf %3, %5 : vector<8x384xf32>
    %cst_5 = arith.constant dense<0.000000e+00> : vector<8xf32>
    %7 = vector.multi_reduction <add>, %6, %cst_5 [1] : vector<8x384xf32> to vector<8xf32>
    %8 = vector.shape_cast %7 : vector<8xf32> to vector<8x1xf32>
    %cst_6 = arith.constant 3.840000e+02 : f32
    %9 = vector.broadcast %cst_6 : f32 to vector<8x1xf32>
    %10 = arith.divf %8, %9 : vector<8x1xf32>
    %11 = vector.broadcast %10 : vector<8x1xf32> to vector<8x384xf32>
    %12 = arith.subf %6, %11 : vector<8x384xf32>
    %13 = arith.mulf %12, %12 : vector<8x384xf32>
    %cst_7 = arith.constant dense<0.000000e+00> : vector<8xf32>
    %14 = vector.multi_reduction <add>, %13, %cst_7 [1] : vector<8x384xf32> to vector<8xf32>
    %15 = vector.shape_cast %14 : vector<8xf32> to vector<8x1xf32>
    %cst_8 = arith.constant 3.840000e+02 : f32
    %16 = vector.broadcast %cst_8 : f32 to vector<8x1xf32>
    %17 = arith.divf %15, %16 : vector<8x1xf32>
    %18 = vector.broadcast %10 : vector<8x1xf32> to vector<8x384xf32>
    %19 = arith.subf %6, %18 : vector<8x384xf32>
    %cst_9 = arith.constant 9.99999974E-6 : f32
    %20 = vector.broadcast %cst_9 : f32 to vector<8x1xf32>
    %21 = arith.addf %17, %20 : vector<8x1xf32>
    %22 = math.rsqrt %21 : vector<8x1xf32>
    %23 = vector.broadcast %22 : vector<8x1xf32> to vector<8x384xf32>
    %24 = arith.mulf %19, %23 : vector<8x384xf32>
    %c0_10 = arith.constant 0 : index
    %c0_11 = arith.constant 0 : index
    %25 = vector.load %arg4[%c0_10, %c0_11] : memref<1x384xf32, #tpu.memory_space<vmem>>, vector<1x384xf32>
    %26 = vector.broadcast %25 : vector<1x384xf32> to vector<8x384xf32>
    %27 = arith.mulf %24, %26 : vector<8x384xf32>
    %c0_12 = arith.constant 0 : index
    %c0_13 = arith.constant 0 : index
    %28 = vector.load %arg5[%c0_12, %c0_13] : memref<1x384xf32, #tpu.memory_space<vmem>>, vector<1x384xf32>
    %29 = vector.broadcast %28 : vector<1x384xf32> to vector<8x384xf32>
    %30 = arith.addf %27, %29 : vector<8x384xf32>
    %c0_14 = arith.constant 0 : index
    %c0_15 = arith.constant 0 : index
    %31 = vector.load %arg6[%c0_14, %c0_15] : memref<8x384xf32, #tpu.memory_space<vmem>>, vector<8x384xf32>
    tpu.vector_store %arg6[%c0_14, %c0_15], %30 {strides = array<i32>} : memref<8x384xf32, #tpu.memory_space<vmem>>, vector<8x384xf32>,
    return
  }
  func.func @transform_0(%arg0: i32) -> (i32, i32) {
    %c0_i32 = arith.constant 0 : i32
    %c0_i32_0 = arith.constant 0 : i32
    return %arg0, %c0_i32 : i32, i32
  }
  func.func @transform_1(%arg0: i32) -> (i32, i32) {
    %c0_i32 = arith.constant 0 : i32
    %c0_i32_0 = arith.constant 0 : i32
    %c0_i32_1 = arith.constant 0 : i32
    return %c0_i32, %c0_i32_0 : i32, i32
  }
  func.func @transform_2(%arg0: i32) -> (i32, i32) {
    %c0_i32 = arith.constant 0 : i32
    %c0_i32_0 = arith.constant 0 : i32
    %c0_i32_1 = arith.constant 0 : i32
    return %c0_i32, %c0_i32_0 : i32, i32
  }
  func.func @transform_3(%arg0: i32) -> (i32, i32) {
    %c0_i32 = arith.constant 0 : i32
    %c0_i32_0 = arith.constant 0 : i32
    %c0_i32_1 = arith.constant 0 : i32
    return %c0_i32, %c0_i32_0 : i32, i32
  }
  func.func @transform_4(%arg0: i32) -> (i32, i32) {
    %c0_i32 = arith.constant 0 : i32
    %c0_i32_0 = arith.constant 0 : i32
    %c0_i32_1 = arith.constant 0 : i32
    return %c0_i32, %c0_i32_0 : i32, i32
  }
  func.func @transform_5(%arg0: i32) -> (i32, i32) {
    %c0_i32 = arith.constant 0 : i32
    %c0_i32_0 = arith.constant 0 : i32
    return %arg0, %c0_i32 : i32, i32
  }
}

module attributes {stable_mosaic.version = 11 : i64} {
  func.func @_ln_matmul_kernel(%arg0: i32, %arg1: i32, %arg2: memref<8x384xf32, #tpu.memory_space<vmem>>, %arg3: memref<1x384xf32, #tpu.memory_space<vmem>>, %arg4: memref<1x384xf32, #tpu.memory_space<vmem>>, %arg5: memref<384x128xbf16, #tpu.memory_space<vmem>>, %arg6: memref<1x128xf32, #tpu.memory_space<vmem>>, %arg7: memref<8x128xf32, #tpu.memory_space<vmem>>) attributes {dimension_semantics = [#tpu.dimension_semantics<parallel>, #tpu.dimension_semantics<parallel>], iteration_bounds = array<i64: 1, 1>, scalar_prefetch = 0 : i64, scratch_operands = 0 : i64, tpu.core_type = #tpu.core_type<tc>, window_params = [{transform_indices = @transform_0, window_bounds = array<i64: 8, 384>}, {pipeline_mode = #tpu.pipeline_mode<synchronous>, transform_indices = @transform_1, window_bounds = array<i64: 1, 384>}, {pipeline_mode = #tpu.pipeline_mode<synchronous>, transform_indices = @transform_2, window_bounds = array<i64: 1, 384>}, {transform_indices = @transform_3, window_bounds = array<i64: 384, 128>}, {transform_indices = @transform_4, window_bounds = array<i64: 1, 128>}, {transform_indices = @transform_5, window_bounds = array<i64: 8, 128>}]} {
    %c0 = arith.constant 0 : index
    %c0_0 = arith.constant 0 : index
    %0 = vector.load %arg2[%c0, %c0_0] : memref<8x384xf32, #tpu.memory_space<vmem>>, vector<8x384xf32>
    %cst = arith.constant dense<0.000000e+00> : vector<8xf32>
    %1 = vector.multi_reduction <add>, %0, %cst [1] : vector<8x384xf32> to vector<8xf32>
    %2 = vector.shape_cast %1 : vector<8xf32> to vector<8x1xf32>
    %cst_1 = arith.constant 3.840000e+02 : f32
    %3 = vector.broadcast %cst_1 : f32 to vector<8x1xf32>
    %4 = arith.divf %2, %3 : vector<8x1xf32>
    %5 = vector.broadcast %4 : vector<8x1xf32> to vector<8x384xf32>
    %6 = arith.subf %0, %5 : vector<8x384xf32>
    %7 = arith.mulf %6, %6 : vector<8x384xf32>
    %cst_2 = arith.constant dense<0.000000e+00> : vector<8xf32>
    %8 = vector.multi_reduction <add>, %7, %cst_2 [1] : vector<8x384xf32> to vector<8xf32>
    %9 = vector.shape_cast %8 : vector<8xf32> to vector<8x1xf32>
    %cst_3 = arith.constant 3.840000e+02 : f32
    %10 = vector.broadcast %cst_3 : f32 to vector<8x1xf32>
    %11 = arith.divf %9, %10 : vector<8x1xf32>
    %12 = vector.broadcast %4 : vector<8x1xf32> to vector<8x384xf32>
    %13 = arith.subf %0, %12 : vector<8x384xf32>
    %cst_4 = arith.constant 9.99999974E-6 : f32
    %14 = vector.broadcast %cst_4 : f32 to vector<8x1xf32>
    %15 = arith.addf %11, %14 : vector<8x1xf32>
    %16 = math.rsqrt %15 : vector<8x1xf32>
    %17 = vector.broadcast %16 : vector<8x1xf32> to vector<8x384xf32>
    %18 = arith.mulf %13, %17 : vector<8x384xf32>
    %c0_5 = arith.constant 0 : index
    %c0_6 = arith.constant 0 : index
    %19 = vector.load %arg3[%c0_5, %c0_6] : memref<1x384xf32, #tpu.memory_space<vmem>>, vector<1x384xf32>
    %20 = vector.broadcast %19 : vector<1x384xf32> to vector<8x384xf32>
    %21 = arith.mulf %18, %20 : vector<8x384xf32>
    %c0_7 = arith.constant 0 : index
    %c0_8 = arith.constant 0 : index
    %22 = vector.load %arg4[%c0_7, %c0_8] : memref<1x384xf32, #tpu.memory_space<vmem>>, vector<1x384xf32>
    %23 = vector.broadcast %22 : vector<1x384xf32> to vector<8x384xf32>
    %24 = arith.addf %21, %23 : vector<8x384xf32>
    %25 = arith.truncf %24 : vector<8x384xf32> to vector<8x384xbf16>
    %c0_9 = arith.constant 0 : index
    %c0_10 = arith.constant 0 : index
    %26 = vector.load %arg5[%c0_9, %c0_10] : memref<384x128xbf16, #tpu.memory_space<vmem>>, vector<384x128xbf16>
    %cst_11 = arith.constant dense<0.000000e+00> : vector<8x128xf32>
    %27 = tpu.matmul %25, %26, %cst_11 {dimension_numbers = #tpu.dot_dimension_numbers<[1], [0], [0], [1], [0, 0, 1, 1], [], []>} : vector<8x384xbf16>, vector<384x128xbf16>, vector<8x128xf32> -> vector<8x128xf32>
    %c0_12 = arith.constant 0 : index
    %c0_13 = arith.constant 0 : index
    %28 = vector.load %arg6[%c0_12, %c0_13] : memref<1x128xf32, #tpu.memory_space<vmem>>, vector<1x128xf32>
    %29 = vector.broadcast %28 : vector<1x128xf32> to vector<8x128xf32>
    %30 = arith.addf %27, %29 : vector<8x128xf32>
    %c0_14 = arith.constant 0 : index
    %c0_15 = arith.constant 0 : index
    %31 = vector.load %arg7[%c0_14, %c0_15] : memref<8x128xf32, #tpu.memory_space<vmem>>, vector<8x128xf32>
    tpu.vector_store %arg7[%c0_14, %c0_15], %30 {strides = array<i32>} : memref<8x128xf32, #tpu.memory_space<vmem>>, vector<8x128xf32>,
    return
  }
  func.func @transform_0(%arg0: i32, %arg1: i32) -> (i32, i32) {
    %c0_i32 = arith.constant 0 : i32
    %c0_i32_0 = arith.constant 0 : i32
    return %arg0, %c0_i32 : i32, i32
  }
  func.func @transform_1(%arg0: i32, %arg1: i32) -> (i32, i32) {
    %c0_i32 = arith.constant 0 : i32
    %c0_i32_0 = arith.constant 0 : i32
    %c0_i32_1 = arith.constant 0 : i32
    return %c0_i32, %c0_i32_0 : i32, i32
  }
  func.func @transform_2(%arg0: i32, %arg1: i32) -> (i32, i32) {
    %c0_i32 = arith.constant 0 : i32
    %c0_i32_0 = arith.constant 0 : i32
    %c0_i32_1 = arith.constant 0 : i32
    return %c0_i32, %c0_i32_0 : i32, i32
  }
  func.func @transform_3(%arg0: i32, %arg1: i32) -> (i32, i32) {
    %c0_i32 = arith.constant 0 : i32
    %c0_i32_0 = arith.constant 0 : i32
    return %c0_i32, %arg1 : i32, i32
  }
  func.func @transform_4(%arg0: i32, %arg1: i32) -> (i32, i32) {
    %c0_i32 = arith.constant 0 : i32
    %c0_i32_0 = arith.constant 0 : i32
    return %c0_i32, %arg1 : i32, i32
  }
  func.func @transform_5(%arg0: i32, %arg1: i32) -> (i32, i32) {
    %c0_i32 = arith.constant 0 : i32
    return %arg0, %arg1 : i32, i32
  }
}

module attributes {stable_mosaic.version = 11 : i64} {
  func.func @_attention_kernel(%arg0: i32, %arg1: memref<1x8x64xf32, #tpu.memory_space<vmem>>, %arg2: memref<1x4x128xf32, #tpu.memory_space<vmem>>, %arg3: memref<1x8x64xf32, #tpu.memory_space<vmem>>) attributes {dimension_semantics = [#tpu.dimension_semantics<parallel>], iteration_bounds = array<i64: 2>, scalar_prefetch = 0 : i64, scratch_operands = 0 : i64, tpu.core_type = #tpu.core_type<tc>, window_params = [{transform_indices = @transform_0, window_bounds = array<i64: 1, 8, 64>}, {transform_indices = @transform_1, window_bounds = array<i64: 1, 4, 128>}, {transform_indices = @transform_2, window_bounds = array<i64: 1, 8, 64>}]} {
    %c0 = arith.constant 0 : index
    %c0_0 = arith.constant 0 : index
    %c0_1 = arith.constant 0 : index
    %0 = vector.load %arg1[%c0, %c0_0, %c0_1] : memref<1x8x64xf32, #tpu.memory_space<vmem>>, vector<1x8x64xf32>
    %1 = vector.shape_cast %0 : vector<1x8x64xf32> to vector<8x64xf32>
    %c0_2 = arith.constant 0 : index
    %c0_3 = arith.constant 0 : index
    %c0_4 = arith.constant 0 : index
    %2 = vector.load %arg2[%c0_2, %c0_3, %c0_4] : memref<1x4x128xf32, #tpu.memory_space<vmem>>, vector<1x4x128xf32>
    %3 = vector.shape_cast %2 : vector<1x4x128xf32> to vector<4x128xf32>
    %4 = vector.extract_strided_slice %1 {offsets = [0, 0], sizes = [8, 32], strides = [1, 1]} : vector<8x64xf32> to vector<8x32xf32>
    %5 = arith.truncf %4 : vector<8x32xf32> to vector<8x32xbf16>
    %6 = vector.extract_strided_slice %3 {offsets = [0, 0], sizes = [4, 32], strides = [1, 1]} : vector<4x128xf32> to vector<4x32xf32>
    %7 = arith.truncf %6 : vector<4x32xf32> to vector<4x32xbf16>
    %8 = vector.extract_strided_slice %3 {offsets = [0, 64], sizes = [4, 32], strides = [1, 1]} : vector<4x128xf32> to vector<4x32xf32>
    %9 = arith.truncf %8 : vector<4x32xf32> to vector<4x32xbf16>
    %cst = arith.constant dense<0.000000e+00> : vector<8x4xf32>
    %10 = tpu.matmul %5, %7, %cst {dimension_numbers = #tpu.dot_dimension_numbers<[1], [1], [0], [0], [0, 0, 1, 0], [], []>} : vector<8x32xbf16>, vector<4x32xbf16>, vector<8x4xf32> -> vector<8x4xf32>
    %cst_5 = arith.constant 0.176776692 : f32
    %11 = vector.broadcast %cst_5 : f32 to vector<8x4xf32>
    %12 = arith.mulf %10, %11 : vector<8x4xf32>
    %cst_6 = arith.constant dense<0xFF800000> : vector<8xf32>
    %13 = vector.multi_reduction <maximumf>, %12, %cst_6 [1] : vector<8x4xf32> to vector<8xf32>
    %14 = vector.shape_cast %13 : vector<8xf32> to vector<8x1xf32>
    %15 = vector.broadcast %14 : vector<8x1xf32> to vector<8x4xf32>
    %16 = arith.subf %12, %15 : vector<8x4xf32>
    %17 = math.exp %16 : vector<8x4xf32>
    %cst_7 = arith.constant dense<0.000000e+00> : vector<8xf32>
    %18 = vector.multi_reduction <add>, %17, %cst_7 [1] : vector<8x4xf32> to vector<8xf32>
    %19 = vector.shape_cast %18 : vector<8xf32> to vector<8x1xf32>
    %20 = tpu.reciprocal %19 {approx = true} : vector<8x1xf32> -> vector<8x1xf32>
    %21 = vector.broadcast %20 : vector<8x1xf32> to vector<8x4xf32>
    %22 = arith.mulf %17, %21 : vector<8x4xf32>
    %23 = arith.truncf %22 : vector<8x4xf32> to vector<8x4xbf16>
    %cst_8 = arith.constant dense<0.000000e+00> : vector<8x32xf32>
    %24 = tpu.matmul %23, %9, %cst_8 {dimension_numbers = #tpu.dot_dimension_numbers<[1], [0], [0], [1], [0, 0, 1, 1], [], []>} : vector<8x4xbf16>, vector<4x32xbf16>, vector<8x32xf32> -> vector<8x32xf32>
    %25 = vector.extract_strided_slice %1 {offsets = [0, 32], sizes = [8, 32], strides = [1, 1]} : vector<8x64xf32> to vector<8x32xf32>
    %26 = arith.truncf %25 : vector<8x32xf32> to vector<8x32xbf16>
    %27 = vector.extract_strided_slice %3 {offsets = [0, 32], sizes = [4, 32], strides = [1, 1]} : vector<4x128xf32> to vector<4x32xf32>
    %28 = arith.truncf %27 : vector<4x32xf32> to vector<4x32xbf16>
    %29 = vector.extract_strided_slice %3 {offsets = [0, 96], sizes = [4, 32], strides = [1, 1]} : vector<4x128xf32> to vector<4x32xf32>
    %30 = arith.truncf %29 : vector<4x32xf32> to vector<4x32xbf16>
    %cst_9 = arith.constant dense<0.000000e+00> : vector<8x4xf32>
    %31 = tpu.matmul %26, %28, %cst_9 {dimension_numbers = #tpu.dot_dimension_numbers<[1], [1], [0], [0], [0, 0, 1, 0], [], []>} : vector<8x32xbf16>, vector<4x32xbf16>, vector<8x4xf32> -> vector<8x4xf32>
    %cst_10 = arith.constant 0.176776692 : f32
    %32 = vector.broadcast %cst_10 : f32 to vector<8x4xf32>
    %33 = arith.mulf %31, %32 : vector<8x4xf32>
    %cst_11 = arith.constant dense<0xFF800000> : vector<8xf32>
    %34 = vector.multi_reduction <maximumf>, %33, %cst_11 [1] : vector<8x4xf32> to vector<8xf32>
    %35 = vector.shape_cast %34 : vector<8xf32> to vector<8x1xf32>
    %36 = vector.broadcast %35 : vector<8x1xf32> to vector<8x4xf32>
    %37 = arith.subf %33, %36 : vector<8x4xf32>
    %38 = math.exp %37 : vector<8x4xf32>
    %cst_12 = arith.constant dense<0.000000e+00> : vector<8xf32>
    %39 = vector.multi_reduction <add>, %38, %cst_12 [1] : vector<8x4xf32> to vector<8xf32>
    %40 = vector.shape_cast %39 : vector<8xf32> to vector<8x1xf32>
    %41 = tpu.reciprocal %40 {approx = true} : vector<8x1xf32> -> vector<8x1xf32>
    %42 = vector.broadcast %41 : vector<8x1xf32> to vector<8x4xf32>
    %43 = arith.mulf %38, %42 : vector<8x4xf32>
    %44 = arith.truncf %43 : vector<8x4xf32> to vector<8x4xbf16>
    %cst_13 = arith.constant dense<0.000000e+00> : vector<8x32xf32>
    %45 = tpu.matmul %44, %30, %cst_13 {dimension_numbers = #tpu.dot_dimension_numbers<[1], [0], [0], [1], [0, 0, 1, 1], [], []>} : vector<8x4xbf16>, vector<4x32xbf16>, vector<8x32xf32> -> vector<8x32xf32>
    %46 = tpu.concatenate %24, %45 in 1 : vector<8x32xf32>, vector<8x32xf32> -> vector<8x64xf32>
    %c0_14 = arith.constant 0 : index
    %c0_15 = arith.constant 0 : index
    %c0_16 = arith.constant 0 : index
    %47 = vector.load %arg3[%c0_14, %c0_15, %c0_16] : memref<1x8x64xf32, #tpu.memory_space<vmem>>, vector<1x8x64xf32>
    %48 = vector.shape_cast %47 : vector<1x8x64xf32> to vector<8x64xf32>
    %49 = vector.shape_cast %46 : vector<8x64xf32> to vector<1x8x64xf32>
    tpu.vector_store %arg3[%c0_14, %c0_15, %c0_16], %49 {strides = array<i32>} : memref<1x8x64xf32, #tpu.memory_space<vmem>>, vector<1x8x64xf32>,
    return
  }
  func.func @transform_0(%arg0: i32) -> (i32, i32, i32) {
    %c0_i32 = arith.constant 0 : i32
    %c0_i32_0 = arith.constant 0 : i32
    %c0_i32_1 = arith.constant 0 : i32
    return %arg0, %c0_i32, %c0_i32_0 : i32, i32, i32
  }
  func.func @transform_1(%arg0: i32) -> (i32, i32, i32) {
    %c0_i32 = arith.constant 0 : i32
    %c0_i32_0 = arith.constant 0 : i32
    %c0_i32_1 = arith.constant 0 : i32
    return %arg0, %c0_i32, %c0_i32_0 : i32, i32, i32
  }
  func.func @transform_2(%arg0: i32) -> (i32, i32, i32) {
    %c0_i32 = arith.constant 0 : i32
    %c0_i32_0 = arith.constant 0 : i32
    %c0_i32_1 = arith.constant 0 : i32
    return %arg0, %c0_i32, %c0_i32_0 : i32, i32, i32
  }
}

module attributes {stable_mosaic.version = 11 : i64} {
  func.func @_matmul_kernel(%arg0: i32, %arg1: i32, %arg2: i32, %arg3: memref<16x64xf32, #tpu.memory_space<vmem>>, %arg4: memref<64x384xbf16, #tpu.memory_space<vmem>>, %arg5: memref<1x384xf32, #tpu.memory_space<vmem>>, %arg6: memref<16x384xf32, #tpu.memory_space<vmem>>, %arg7: memref<16x384xf32, #tpu.memory_space<vmem>>, %arg8: memref<16x384xf32, #tpu.memory_space<vmem>>) attributes {dimension_semantics = [#tpu.dimension_semantics<parallel>, #tpu.dimension_semantics<parallel>, #tpu.dimension_semantics<arbitrary>], iteration_bounds = array<i64: 1, 1, 1>, scalar_prefetch = 0 : i64, scratch_operands = 1 : i64, tpu.core_type = #tpu.core_type<tc>, window_params = [{transform_indices = @transform_0, window_bounds = array<i64: 16, 64>}, {transform_indices = @transform_1, window_bounds = array<i64: 64, 384>}, {transform_indices = @transform_2, window_bounds = array<i64: 1, 384>}, {transform_indices = @transform_3, window_bounds = array<i64: 16, 384>}, {transform_indices = @transform_4, window_bounds = array<i64: 16, 384>}]} {
    %c0_i32 = arith.constant 0 : i32
    %0 = arith.cmpi eq, %arg2, %c0_i32 : i32
    %1 = arith.extui %0 : i1 to i32
    %c0_i32_0 = arith.constant 0 : i32
    %2 = arith.cmpi ne, %1, %c0_i32_0 : i32
    scf.if %2 {
      %cst_10 = arith.constant 0.000000e+00 : f32
      %13 = vector.broadcast %cst_10 : f32 to vector<16x384xf32>
      %c0_11 = arith.constant 0 : index
      %c0_12 = arith.constant 0 : index
      %14 = vector.load %arg8[%c0_11, %c0_12] : memref<16x384xf32, #tpu.memory_space<vmem>>, vector<16x384xf32>
      tpu.vector_store %arg8[%c0_11, %c0_12], %13 {strides = array<i32>} : memref<16x384xf32, #tpu.memory_space<vmem>>, vector<16x384xf32>,
    } else {
    }
    %c0 = arith.constant 0 : index
    %c0_1 = arith.constant 0 : index
    %3 = vector.load %arg8[%c0, %c0_1] : memref<16x384xf32, #tpu.memory_space<vmem>>, vector<16x384xf32>
    %c0_2 = arith.constant 0 : index
    %c0_3 = arith.constant 0 : index
    %4 = vector.load %arg3[%c0_2, %c0_3] : memref<16x64xf32, #tpu.memory_space<vmem>>, vector<16x64xf32>
    %5 = arith.truncf %4 : vector<16x64xf32> to vector<16x64xbf16>
    %c0_4 = arith.constant 0 : index
    %c0_5 = arith.constant 0 : index
    %6 = vector.load %arg4[%c0_4, %c0_5] : memref<64x384xbf16, #tpu.memory_space<vmem>>, vector<64x384xbf16>
    %cst = arith.constant dense<0.000000e+00> : vector<16x384xf32>
    %7 = tpu.matmul %5, %6, %cst {dimension_numbers = #tpu.dot_dimension_numbers<[1], [0], [0], [1], [0, 0, 1, 1], [], []>} : vector<16x64xbf16>, vector<64x384xbf16>, vector<16x384xf32> -> vector<16x384xf32>
    %8 = arith.addf %3, %7 : vector<16x384xf32>
    %c0_6 = arith.constant 0 : index
    %c0_7 = arith.constant 0 : index
    %9 = vector.load %arg8[%c0_6, %c0_7] : memref<16x384xf32, #tpu.memory_space<vmem>>, vector<16x384xf32>
    tpu.vector_store %arg8[%c0_6, %c0_7], %8 {strides = array<i32>} : memref<16x384xf32, #tpu.memory_space<vmem>>, vector<16x384xf32>,
    %c0_i32_8 = arith.constant 0 : i32
    %10 = arith.cmpi eq, %arg2, %c0_i32_8 : i32
    %11 = arith.extui %10 : i1 to i32
    %c0_i32_9 = arith.constant 0 : i32
    %12 = arith.cmpi ne, %11, %c0_i32_9 : i32
    scf.if %12 {
      %c0_10 = arith.constant 0 : index
      %c0_11 = arith.constant 0 : index
      %13 = vector.load %arg8[%c0_10, %c0_11] : memref<16x384xf32, #tpu.memory_space<vmem>>, vector<16x384xf32>
      %c0_12 = arith.constant 0 : index
      %c0_13 = arith.constant 0 : index
      %14 = vector.load %arg5[%c0_12, %c0_13] : memref<1x384xf32, #tpu.memory_space<vmem>>, vector<1x384xf32>
      %15 = vector.broadcast %14 : vector<1x384xf32> to vector<16x384xf32>
      %16 = arith.addf %13, %15 : vector<16x384xf32>
      %c0_14 = arith.constant 0 : index
      %c0_15 = arith.constant 0 : index
      %17 = vector.load %arg6[%c0_14, %c0_15] : memref<16x384xf32, #tpu.memory_space<vmem>>, vector<16x384xf32>
      %18 = arith.addf %16, %17 : vector<16x384xf32>
      %c0_16 = arith.constant 0 : index
      %c0_17 = arith.constant 0 : index
      %19 = vector.load %arg7[%c0_16, %c0_17] : memref<16x384xf32, #tpu.memory_space<vmem>>, vector<16x384xf32>
      tpu.vector_store %arg7[%c0_16, %c0_17], %18 {strides = array<i32>} : memref<16x384xf32, #tpu.memory_space<vmem>>, vector<16x384xf32>,
    } else {
    }
    return
  }
  func.func @transform_0(%arg0: i32, %arg1: i32, %arg2: i32) -> (i32, i32) {
    %c0_i32 = arith.constant 0 : i32
    return %arg0, %arg2 : i32, i32
  }
  func.func @transform_1(%arg0: i32, %arg1: i32, %arg2: i32) -> (i32, i32) {
    %c0_i32 = arith.constant 0 : i32
    return %arg2, %arg1 : i32, i32
  }
  func.func @transform_2(%arg0: i32, %arg1: i32, %arg2: i32) -> (i32, i32) {
    %c0_i32 = arith.constant 0 : i32
    %c0_i32_0 = arith.constant 0 : i32
    return %c0_i32, %arg1 : i32, i32
  }
  func.func @transform_3(%arg0: i32, %arg1: i32, %arg2: i32) -> (i32, i32) {
    %c0_i32 = arith.constant 0 : i32
    return %arg0, %arg1 : i32, i32
  }
  func.func @transform_4(%arg0: i32, %arg1: i32, %arg2: i32) -> (i32, i32) {
    %c0_i32 = arith.constant 0 : i32
    return %arg0, %arg1 : i32, i32
  }
}

module attributes {stable_mosaic.version = 11 : i64} {
  func.func @_ln_matmul_kernel(%arg0: i32, %arg1: i32, %arg2: memref<16x384xf32, #tpu.memory_space<vmem>>, %arg3: memref<1x384xf32, #tpu.memory_space<vmem>>, %arg4: memref<1x384xf32, #tpu.memory_space<vmem>>, %arg5: memref<384x512xbf16, #tpu.memory_space<vmem>>, %arg6: memref<1x512xf32, #tpu.memory_space<vmem>>, %arg7: memref<16x512xf32, #tpu.memory_space<vmem>>) attributes {dimension_semantics = [#tpu.dimension_semantics<parallel>, #tpu.dimension_semantics<parallel>], iteration_bounds = array<i64: 1, 3>, scalar_prefetch = 0 : i64, scratch_operands = 0 : i64, tpu.core_type = #tpu.core_type<tc>, window_params = [{transform_indices = @transform_0, window_bounds = array<i64: 16, 384>}, {pipeline_mode = #tpu.pipeline_mode<synchronous>, transform_indices = @transform_1, window_bounds = array<i64: 1, 384>}, {pipeline_mode = #tpu.pipeline_mode<synchronous>, transform_indices = @transform_2, window_bounds = array<i64: 1, 384>}, {transform_indices = @transform_3, window_bounds = array<i64: 384, 512>}, {transform_indices = @transform_4, window_bounds = array<i64: 1, 512>}, {transform_indices = @transform_5, window_bounds = array<i64: 16, 512>}]} {
    %c0 = arith.constant 0 : index
    %c0_0 = arith.constant 0 : index
    %0 = vector.load %arg2[%c0, %c0_0] : memref<16x384xf32, #tpu.memory_space<vmem>>, vector<16x384xf32>
    %cst = arith.constant dense<0.000000e+00> : vector<16xf32>
    %1 = vector.multi_reduction <add>, %0, %cst [1] : vector<16x384xf32> to vector<16xf32>
    %2 = vector.shape_cast %1 : vector<16xf32> to vector<16x1xf32>
    %cst_1 = arith.constant 3.840000e+02 : f32
    %3 = vector.broadcast %cst_1 : f32 to vector<16x1xf32>
    %4 = arith.divf %2, %3 : vector<16x1xf32>
    %5 = vector.broadcast %4 : vector<16x1xf32> to vector<16x384xf32>
    %6 = arith.subf %0, %5 : vector<16x384xf32>
    %7 = arith.mulf %6, %6 : vector<16x384xf32>
    %cst_2 = arith.constant dense<0.000000e+00> : vector<16xf32>
    %8 = vector.multi_reduction <add>, %7, %cst_2 [1] : vector<16x384xf32> to vector<16xf32>
    %9 = vector.shape_cast %8 : vector<16xf32> to vector<16x1xf32>
    %cst_3 = arith.constant 3.840000e+02 : f32
    %10 = vector.broadcast %cst_3 : f32 to vector<16x1xf32>
    %11 = arith.divf %9, %10 : vector<16x1xf32>
    %12 = vector.broadcast %4 : vector<16x1xf32> to vector<16x384xf32>
    %13 = arith.subf %0, %12 : vector<16x384xf32>
    %cst_4 = arith.constant 9.99999974E-6 : f32
    %14 = vector.broadcast %cst_4 : f32 to vector<16x1xf32>
    %15 = arith.addf %11, %14 : vector<16x1xf32>
    %16 = math.rsqrt %15 : vector<16x1xf32>
    %17 = vector.broadcast %16 : vector<16x1xf32> to vector<16x384xf32>
    %18 = arith.mulf %13, %17 : vector<16x384xf32>
    %c0_5 = arith.constant 0 : index
    %c0_6 = arith.constant 0 : index
    %19 = vector.load %arg3[%c0_5, %c0_6] : memref<1x384xf32, #tpu.memory_space<vmem>>, vector<1x384xf32>
    %20 = vector.broadcast %19 : vector<1x384xf32> to vector<16x384xf32>
    %21 = arith.mulf %18, %20 : vector<16x384xf32>
    %c0_7 = arith.constant 0 : index
    %c0_8 = arith.constant 0 : index
    %22 = vector.load %arg4[%c0_7, %c0_8] : memref<1x384xf32, #tpu.memory_space<vmem>>, vector<1x384xf32>
    %23 = vector.broadcast %22 : vector<1x384xf32> to vector<16x384xf32>
    %24 = arith.addf %21, %23 : vector<16x384xf32>
    %25 = arith.truncf %24 : vector<16x384xf32> to vector<16x384xbf16>
    %c0_9 = arith.constant 0 : index
    %c0_10 = arith.constant 0 : index
    %26 = vector.load %arg5[%c0_9, %c0_10] : memref<384x512xbf16, #tpu.memory_space<vmem>>, vector<384x512xbf16>
    %cst_11 = arith.constant dense<0.000000e+00> : vector<16x512xf32>
    %27 = tpu.matmul %25, %26, %cst_11 {dimension_numbers = #tpu.dot_dimension_numbers<[1], [0], [0], [1], [0, 0, 1, 1], [], []>} : vector<16x384xbf16>, vector<384x512xbf16>, vector<16x512xf32> -> vector<16x512xf32>
    %c0_12 = arith.constant 0 : index
    %c0_13 = arith.constant 0 : index
    %28 = vector.load %arg6[%c0_12, %c0_13] : memref<1x512xf32, #tpu.memory_space<vmem>>, vector<1x512xf32>
    %29 = vector.broadcast %28 : vector<1x512xf32> to vector<16x512xf32>
    %30 = arith.addf %27, %29 : vector<16x512xf32>
    %c0_14 = arith.constant 0 : index
    %c0_15 = arith.constant 0 : index
    %31 = vector.load %arg7[%c0_14, %c0_15] : memref<16x512xf32, #tpu.memory_space<vmem>>, vector<16x512xf32>
    tpu.vector_store %arg7[%c0_14, %c0_15], %30 {strides = array<i32>} : memref<16x512xf32, #tpu.memory_space<vmem>>, vector<16x512xf32>,
    return
  }
  func.func @transform_0(%arg0: i32, %arg1: i32) -> (i32, i32) {
    %c0_i32 = arith.constant 0 : i32
    %c0_i32_0 = arith.constant 0 : i32
    return %arg0, %c0_i32 : i32, i32
  }
  func.func @transform_1(%arg0: i32, %arg1: i32) -> (i32, i32) {
    %c0_i32 = arith.constant 0 : i32
    %c0_i32_0 = arith.constant 0 : i32
    %c0_i32_1 = arith.constant 0 : i32
    return %c0_i32, %c0_i32_0 : i32, i32
  }
  func.func @transform_2(%arg0: i32, %arg1: i32) -> (i32, i32) {
    %c0_i32 = arith.constant 0 : i32
    %c0_i32_0 = arith.constant 0 : i32
    %c0_i32_1 = arith.constant 0 : i32
    return %c0_i32, %c0_i32_0 : i32, i32
  }
  func.func @transform_3(%arg0: i32, %arg1: i32) -> (i32, i32) {
    %c0_i32 = arith.constant 0 : i32
    %c0_i32_0 = arith.constant 0 : i32
    return %c0_i32, %arg1 : i32, i32
  }
  func.func @transform_4(%arg0: i32, %arg1: i32) -> (i32, i32) {
    %c0_i32 = arith.constant 0 : i32
    %c0_i32_0 = arith.constant 0 : i32
    return %c0_i32, %arg1 : i32, i32
  }
  func.func @transform_5(%arg0: i32, %arg1: i32) -> (i32, i32) {
    %c0_i32 = arith.constant 0 : i32
    return %arg0, %arg1 : i32, i32
  }
}

module attributes {stable_mosaic.version = 11 : i64} {
  func.func @_matmul_kernel(%arg0: i32, %arg1: i32, %arg2: i32, %arg3: memref<16x512xf32, #tpu.memory_space<vmem>>, %arg4: memref<512x384xbf16, #tpu.memory_space<vmem>>, %arg5: memref<1x384xf32, #tpu.memory_space<vmem>>, %arg6: memref<16x384xf32, #tpu.memory_space<vmem>>, %arg7: memref<16x384xf32, #tpu.memory_space<vmem>>, %arg8: memref<16x384xf32, #tpu.memory_space<vmem>>) attributes {dimension_semantics = [#tpu.dimension_semantics<parallel>, #tpu.dimension_semantics<parallel>, #tpu.dimension_semantics<arbitrary>], iteration_bounds = array<i64: 1, 1, 3>, scalar_prefetch = 0 : i64, scratch_operands = 1 : i64, tpu.core_type = #tpu.core_type<tc>, window_params = [{transform_indices = @transform_0, window_bounds = array<i64: 16, 512>}, {transform_indices = @transform_1, window_bounds = array<i64: 512, 384>}, {transform_indices = @transform_2, window_bounds = array<i64: 1, 384>}, {transform_indices = @transform_3, window_bounds = array<i64: 16, 384>}, {transform_indices = @transform_4, window_bounds = array<i64: 16, 384>}]} {
    %c0_i32 = arith.constant 0 : i32
    %0 = arith.cmpi eq, %arg2, %c0_i32 : i32
    %1 = arith.extui %0 : i1 to i32
    %c0_i32_0 = arith.constant 0 : i32
    %2 = arith.cmpi ne, %1, %c0_i32_0 : i32
    scf.if %2 {
      %cst_9 = arith.constant 0.000000e+00 : f32
      %13 = vector.broadcast %cst_9 : f32 to vector<16x384xf32>
      %c0_10 = arith.constant 0 : index
      %c0_11 = arith.constant 0 : index
      %14 = vector.load %arg8[%c0_10, %c0_11] : memref<16x384xf32, #tpu.memory_space<vmem>>, vector<16x384xf32>
      tpu.vector_store %arg8[%c0_10, %c0_11], %13 {strides = array<i32>} : memref<16x384xf32, #tpu.memory_space<vmem>>, vector<16x384xf32>,
    } else {
    }
    %c0 = arith.constant 0 : index
    %c0_1 = arith.constant 0 : index
    %3 = vector.load %arg8[%c0, %c0_1] : memref<16x384xf32, #tpu.memory_space<vmem>>, vector<16x384xf32>
    %c0_2 = arith.constant 0 : index
    %c0_3 = arith.constant 0 : index
    %4 = vector.load %arg3[%c0_2, %c0_3] : memref<16x512xf32, #tpu.memory_space<vmem>>, vector<16x512xf32>
    %5 = arith.truncf %4 : vector<16x512xf32> to vector<16x512xbf16>
    %c0_4 = arith.constant 0 : index
    %c0_5 = arith.constant 0 : index
    %6 = vector.load %arg4[%c0_4, %c0_5] : memref<512x384xbf16, #tpu.memory_space<vmem>>, vector<512x384xbf16>
    %cst = arith.constant dense<0.000000e+00> : vector<16x384xf32>
    %7 = tpu.matmul %5, %6, %cst {dimension_numbers = #tpu.dot_dimension_numbers<[1], [0], [0], [1], [0, 0, 1, 1], [], []>} : vector<16x512xbf16>, vector<512x384xbf16>, vector<16x384xf32> -> vector<16x384xf32>
    %8 = arith.addf %3, %7 : vector<16x384xf32>
    %c0_6 = arith.constant 0 : index
    %c0_7 = arith.constant 0 : index
    %9 = vector.load %arg8[%c0_6, %c0_7] : memref<16x384xf32, #tpu.memory_space<vmem>>, vector<16x384xf32>
    tpu.vector_store %arg8[%c0_6, %c0_7], %8 {strides = array<i32>} : memref<16x384xf32, #tpu.memory_space<vmem>>, vector<16x384xf32>,
    %c2_i32 = arith.constant 2 : i32
    %10 = arith.cmpi eq, %arg2, %c2_i32 : i32
    %11 = arith.extui %10 : i1 to i32
    %c0_i32_8 = arith.constant 0 : i32
    %12 = arith.cmpi ne, %11, %c0_i32_8 : i32
    scf.if %12 {
      %c0_9 = arith.constant 0 : index
      %c0_10 = arith.constant 0 : index
      %13 = vector.load %arg8[%c0_9, %c0_10] : memref<16x384xf32, #tpu.memory_space<vmem>>, vector<16x384xf32>
      %c0_11 = arith.constant 0 : index
      %c0_12 = arith.constant 0 : index
      %14 = vector.load %arg5[%c0_11, %c0_12] : memref<1x384xf32, #tpu.memory_space<vmem>>, vector<1x384xf32>
      %15 = vector.broadcast %14 : vector<1x384xf32> to vector<16x384xf32>
      %16 = arith.addf %13, %15 : vector<16x384xf32>
      %c0_13 = arith.constant 0 : index
      %c0_14 = arith.constant 0 : index
      %17 = vector.load %arg6[%c0_13, %c0_14] : memref<16x384xf32, #tpu.memory_space<vmem>>, vector<16x384xf32>
      %18 = arith.addf %16, %17 : vector<16x384xf32>
      %c0_15 = arith.constant 0 : index
      %c0_16 = arith.constant 0 : index
      %19 = vector.load %arg7[%c0_15, %c0_16] : memref<16x384xf32, #tpu.memory_space<vmem>>, vector<16x384xf32>
      tpu.vector_store %arg7[%c0_15, %c0_16], %18 {strides = array<i32>} : memref<16x384xf32, #tpu.memory_space<vmem>>, vector<16x384xf32>,
    } else {
    }
    return
  }
  func.func @transform_0(%arg0: i32, %arg1: i32, %arg2: i32) -> (i32, i32) {
    %c0_i32 = arith.constant 0 : i32
    return %arg0, %arg2 : i32, i32
  }
  func.func @transform_1(%arg0: i32, %arg1: i32, %arg2: i32) -> (i32, i32) {
    %c0_i32 = arith.constant 0 : i32
    return %arg2, %arg1 : i32, i32
  }
  func.func @transform_2(%arg0: i32, %arg1: i32, %arg2: i32) -> (i32, i32) {
    %c0_i32 = arith.constant 0 : i32
    %c0_i32_0 = arith.constant 0 : i32
    return %c0_i32, %arg1 : i32, i32
  }
  func.func @transform_3(%arg0: i32, %arg1: i32, %arg2: i32) -> (i32, i32) {
    %c0_i32 = arith.constant 0 : i32
    return %arg0, %arg1 : i32, i32
  }
  func.func @transform_4(%arg0: i32, %arg1: i32, %arg2: i32) -> (i32, i32) {
    %c0_i32 = arith.constant 0 : i32
    return %arg0, %arg1 : i32, i32
  }
}

module attributes {stable_mosaic.version = 11 : i64} {
  func.func @_ln_matmul_kernel(%arg0: i32, %arg1: i32, %arg2: memref<16x384xf32, #tpu.memory_space<vmem>>, %arg3: memref<1x384xf32, #tpu.memory_space<vmem>>, %arg4: memref<1x384xf32, #tpu.memory_space<vmem>>, %arg5: memref<384x192xbf16, #tpu.memory_space<vmem>>, %arg6: memref<1x192xf32, #tpu.memory_space<vmem>>, %arg7: memref<16x192xf32, #tpu.memory_space<vmem>>) attributes {dimension_semantics = [#tpu.dimension_semantics<parallel>, #tpu.dimension_semantics<parallel>], iteration_bounds = array<i64: 1, 1>, scalar_prefetch = 0 : i64, scratch_operands = 0 : i64, tpu.core_type = #tpu.core_type<tc>, window_params = [{transform_indices = @transform_0, window_bounds = array<i64: 16, 384>}, {pipeline_mode = #tpu.pipeline_mode<synchronous>, transform_indices = @transform_1, window_bounds = array<i64: 1, 384>}, {pipeline_mode = #tpu.pipeline_mode<synchronous>, transform_indices = @transform_2, window_bounds = array<i64: 1, 384>}, {transform_indices = @transform_3, window_bounds = array<i64: 384, 192>}, {transform_indices = @transform_4, window_bounds = array<i64: 1, 192>}, {transform_indices = @transform_5, window_bounds = array<i64: 16, 192>}]} {
    %c0 = arith.constant 0 : index
    %c0_0 = arith.constant 0 : index
    %0 = vector.load %arg2[%c0, %c0_0] : memref<16x384xf32, #tpu.memory_space<vmem>>, vector<16x384xf32>
    %cst = arith.constant dense<0.000000e+00> : vector<16xf32>
    %1 = vector.multi_reduction <add>, %0, %cst [1] : vector<16x384xf32> to vector<16xf32>
    %2 = vector.shape_cast %1 : vector<16xf32> to vector<16x1xf32>
    %cst_1 = arith.constant 3.840000e+02 : f32
    %3 = vector.broadcast %cst_1 : f32 to vector<16x1xf32>
    %4 = arith.divf %2, %3 : vector<16x1xf32>
    %5 = vector.broadcast %4 : vector<16x1xf32> to vector<16x384xf32>
    %6 = arith.subf %0, %5 : vector<16x384xf32>
    %7 = arith.mulf %6, %6 : vector<16x384xf32>
    %cst_2 = arith.constant dense<0.000000e+00> : vector<16xf32>
    %8 = vector.multi_reduction <add>, %7, %cst_2 [1] : vector<16x384xf32> to vector<16xf32>
    %9 = vector.shape_cast %8 : vector<16xf32> to vector<16x1xf32>
    %cst_3 = arith.constant 3.840000e+02 : f32
    %10 = vector.broadcast %cst_3 : f32 to vector<16x1xf32>
    %11 = arith.divf %9, %10 : vector<16x1xf32>
    %12 = vector.broadcast %4 : vector<16x1xf32> to vector<16x384xf32>
    %13 = arith.subf %0, %12 : vector<16x384xf32>
    %cst_4 = arith.constant 9.99999974E-6 : f32
    %14 = vector.broadcast %cst_4 : f32 to vector<16x1xf32>
    %15 = arith.addf %11, %14 : vector<16x1xf32>
    %16 = math.rsqrt %15 : vector<16x1xf32>
    %17 = vector.broadcast %16 : vector<16x1xf32> to vector<16x384xf32>
    %18 = arith.mulf %13, %17 : vector<16x384xf32>
    %c0_5 = arith.constant 0 : index
    %c0_6 = arith.constant 0 : index
    %19 = vector.load %arg3[%c0_5, %c0_6] : memref<1x384xf32, #tpu.memory_space<vmem>>, vector<1x384xf32>
    %20 = vector.broadcast %19 : vector<1x384xf32> to vector<16x384xf32>
    %21 = arith.mulf %18, %20 : vector<16x384xf32>
    %c0_7 = arith.constant 0 : index
    %c0_8 = arith.constant 0 : index
    %22 = vector.load %arg4[%c0_7, %c0_8] : memref<1x384xf32, #tpu.memory_space<vmem>>, vector<1x384xf32>
    %23 = vector.broadcast %22 : vector<1x384xf32> to vector<16x384xf32>
    %24 = arith.addf %21, %23 : vector<16x384xf32>
    %25 = arith.truncf %24 : vector<16x384xf32> to vector<16x384xbf16>
    %c0_9 = arith.constant 0 : index
    %c0_10 = arith.constant 0 : index
    %26 = vector.load %arg5[%c0_9, %c0_10] : memref<384x192xbf16, #tpu.memory_space<vmem>>, vector<384x192xbf16>
    %cst_11 = arith.constant dense<0.000000e+00> : vector<16x192xf32>
    %27 = tpu.matmul %25, %26, %cst_11 {dimension_numbers = #tpu.dot_dimension_numbers<[1], [0], [0], [1], [0, 0, 1, 1], [], []>} : vector<16x384xbf16>, vector<384x192xbf16>, vector<16x192xf32> -> vector<16x192xf32>
    %c0_12 = arith.constant 0 : index
    %c0_13 = arith.constant 0 : index
    %28 = vector.load %arg6[%c0_12, %c0_13] : memref<1x192xf32, #tpu.memory_space<vmem>>, vector<1x192xf32>
    %29 = vector.broadcast %28 : vector<1x192xf32> to vector<16x192xf32>
    %30 = arith.addf %27, %29 : vector<16x192xf32>
    %c0_14 = arith.constant 0 : index
    %c0_15 = arith.constant 0 : index
    %31 = vector.load %arg7[%c0_14, %c0_15] : memref<16x192xf32, #tpu.memory_space<vmem>>, vector<16x192xf32>
    tpu.vector_store %arg7[%c0_14, %c0_15], %30 {strides = array<i32>} : memref<16x192xf32, #tpu.memory_space<vmem>>, vector<16x192xf32>,
    return
  }
  func.func @transform_0(%arg0: i32, %arg1: i32) -> (i32, i32) {
    %c0_i32 = arith.constant 0 : i32
    %c0_i32_0 = arith.constant 0 : i32
    return %arg0, %c0_i32 : i32, i32
  }
  func.func @transform_1(%arg0: i32, %arg1: i32) -> (i32, i32) {
    %c0_i32 = arith.constant 0 : i32
    %c0_i32_0 = arith.constant 0 : i32
    %c0_i32_1 = arith.constant 0 : i32
    return %c0_i32, %c0_i32_0 : i32, i32
  }
  func.func @transform_2(%arg0: i32, %arg1: i32) -> (i32, i32) {
    %c0_i32 = arith.constant 0 : i32
    %c0_i32_0 = arith.constant 0 : i32
    %c0_i32_1 = arith.constant 0 : i32
    return %c0_i32, %c0_i32_0 : i32, i32
  }
  func.func @transform_3(%arg0: i32, %arg1: i32) -> (i32, i32) {
    %c0_i32 = arith.constant 0 : i32
    %c0_i32_0 = arith.constant 0 : i32
    return %c0_i32, %arg1 : i32, i32
  }
  func.func @transform_4(%arg0: i32, %arg1: i32) -> (i32, i32) {
    %c0_i32 = arith.constant 0 : i32
    %c0_i32_0 = arith.constant 0 : i32
    return %c0_i32, %arg1 : i32, i32
  }
  func.func @transform_5(%arg0: i32, %arg1: i32) -> (i32, i32) {
    %c0_i32 = arith.constant 0 : i32
    return %arg0, %arg1 : i32, i32
  }
}

module attributes {stable_mosaic.version = 11 : i64} {
  func.func @_attention_kernel(%arg0: i32, %arg1: memref<1x8x64xf32, #tpu.memory_space<vmem>>, %arg2: memref<1x8x128xf32, #tpu.memory_space<vmem>>, %arg3: memref<1x8x64xf32, #tpu.memory_space<vmem>>) attributes {dimension_semantics = [#tpu.dimension_semantics<parallel>], iteration_bounds = array<i64: 2>, scalar_prefetch = 0 : i64, scratch_operands = 0 : i64, tpu.core_type = #tpu.core_type<tc>, window_params = [{transform_indices = @transform_0, window_bounds = array<i64: 1, 8, 64>}, {transform_indices = @transform_1, window_bounds = array<i64: 1, 8, 128>}, {transform_indices = @transform_2, window_bounds = array<i64: 1, 8, 64>}]} {
    %c0 = arith.constant 0 : index
    %c0_0 = arith.constant 0 : index
    %c0_1 = arith.constant 0 : index
    %0 = vector.load %arg1[%c0, %c0_0, %c0_1] : memref<1x8x64xf32, #tpu.memory_space<vmem>>, vector<1x8x64xf32>
    %1 = vector.shape_cast %0 : vector<1x8x64xf32> to vector<8x64xf32>
    %c0_2 = arith.constant 0 : index
    %c0_3 = arith.constant 0 : index
    %c0_4 = arith.constant 0 : index
    %2 = vector.load %arg2[%c0_2, %c0_3, %c0_4] : memref<1x8x128xf32, #tpu.memory_space<vmem>>, vector<1x8x128xf32>
    %3 = vector.shape_cast %2 : vector<1x8x128xf32> to vector<8x128xf32>
    %4 = vector.extract_strided_slice %1 {offsets = [0, 0], sizes = [8, 32], strides = [1, 1]} : vector<8x64xf32> to vector<8x32xf32>
    %5 = arith.truncf %4 : vector<8x32xf32> to vector<8x32xbf16>
    %6 = vector.extract_strided_slice %3 {offsets = [0, 0], sizes = [8, 32], strides = [1, 1]} : vector<8x128xf32> to vector<8x32xf32>
    %7 = arith.truncf %6 : vector<8x32xf32> to vector<8x32xbf16>
    %8 = vector.extract_strided_slice %3 {offsets = [0, 64], sizes = [8, 32], strides = [1, 1]} : vector<8x128xf32> to vector<8x32xf32>
    %9 = arith.truncf %8 : vector<8x32xf32> to vector<8x32xbf16>
    %cst = arith.constant dense<0.000000e+00> : vector<8x8xf32>
    %10 = tpu.matmul %5, %7, %cst {dimension_numbers = #tpu.dot_dimension_numbers<[1], [1], [0], [0], [0, 0, 1, 0], [], []>} : vector<8x32xbf16>, vector<8x32xbf16>, vector<8x8xf32> -> vector<8x8xf32>
    %cst_5 = arith.constant 0.176776692 : f32
    %11 = vector.broadcast %cst_5 : f32 to vector<8x8xf32>
    %12 = arith.mulf %10, %11 : vector<8x8xf32>
    %cst_6 = arith.constant dense<0xFF800000> : vector<8xf32>
    %13 = vector.multi_reduction <maximumf>, %12, %cst_6 [1] : vector<8x8xf32> to vector<8xf32>
    %14 = vector.shape_cast %13 : vector<8xf32> to vector<8x1xf32>
    %15 = vector.broadcast %14 : vector<8x1xf32> to vector<8x8xf32>
    %16 = arith.subf %12, %15 : vector<8x8xf32>
    %17 = math.exp %16 : vector<8x8xf32>
    %cst_7 = arith.constant dense<0.000000e+00> : vector<8xf32>
    %18 = vector.multi_reduction <add>, %17, %cst_7 [1] : vector<8x8xf32> to vector<8xf32>
    %19 = vector.shape_cast %18 : vector<8xf32> to vector<8x1xf32>
    %20 = tpu.reciprocal %19 {approx = true} : vector<8x1xf32> -> vector<8x1xf32>
    %21 = vector.broadcast %20 : vector<8x1xf32> to vector<8x8xf32>
    %22 = arith.mulf %17, %21 : vector<8x8xf32>
    %23 = arith.truncf %22 : vector<8x8xf32> to vector<8x8xbf16>
    %cst_8 = arith.constant dense<0.000000e+00> : vector<8x32xf32>
    %24 = tpu.matmul %23, %9, %cst_8 {dimension_numbers = #tpu.dot_dimension_numbers<[1], [0], [0], [1], [0, 0, 1, 1], [], []>} : vector<8x8xbf16>, vector<8x32xbf16>, vector<8x32xf32> -> vector<8x32xf32>
    %25 = vector.extract_strided_slice %1 {offsets = [0, 32], sizes = [8, 32], strides = [1, 1]} : vector<8x64xf32> to vector<8x32xf32>
    %26 = arith.truncf %25 : vector<8x32xf32> to vector<8x32xbf16>
    %27 = vector.extract_strided_slice %3 {offsets = [0, 32], sizes = [8, 32], strides = [1, 1]} : vector<8x128xf32> to vector<8x32xf32>
    %28 = arith.truncf %27 : vector<8x32xf32> to vector<8x32xbf16>
    %29 = vector.extract_strided_slice %3 {offsets = [0, 96], sizes = [8, 32], strides = [1, 1]} : vector<8x128xf32> to vector<8x32xf32>
    %30 = arith.truncf %29 : vector<8x32xf32> to vector<8x32xbf16>
    %cst_9 = arith.constant dense<0.000000e+00> : vector<8x8xf32>
    %31 = tpu.matmul %26, %28, %cst_9 {dimension_numbers = #tpu.dot_dimension_numbers<[1], [1], [0], [0], [0, 0, 1, 0], [], []>} : vector<8x32xbf16>, vector<8x32xbf16>, vector<8x8xf32> -> vector<8x8xf32>
    %cst_10 = arith.constant 0.176776692 : f32
    %32 = vector.broadcast %cst_10 : f32 to vector<8x8xf32>
    %33 = arith.mulf %31, %32 : vector<8x8xf32>
    %cst_11 = arith.constant dense<0xFF800000> : vector<8xf32>
    %34 = vector.multi_reduction <maximumf>, %33, %cst_11 [1] : vector<8x8xf32> to vector<8xf32>
    %35 = vector.shape_cast %34 : vector<8xf32> to vector<8x1xf32>
    %36 = vector.broadcast %35 : vector<8x1xf32> to vector<8x8xf32>
    %37 = arith.subf %33, %36 : vector<8x8xf32>
    %38 = math.exp %37 : vector<8x8xf32>
    %cst_12 = arith.constant dense<0.000000e+00> : vector<8xf32>
    %39 = vector.multi_reduction <add>, %38, %cst_12 [1] : vector<8x8xf32> to vector<8xf32>
    %40 = vector.shape_cast %39 : vector<8xf32> to vector<8x1xf32>
    %41 = tpu.reciprocal %40 {approx = true} : vector<8x1xf32> -> vector<8x1xf32>
    %42 = vector.broadcast %41 : vector<8x1xf32> to vector<8x8xf32>
    %43 = arith.mulf %38, %42 : vector<8x8xf32>
    %44 = arith.truncf %43 : vector<8x8xf32> to vector<8x8xbf16>
    %cst_13 = arith.constant dense<0.000000e+00> : vector<8x32xf32>
    %45 = tpu.matmul %44, %30, %cst_13 {dimension_numbers = #tpu.dot_dimension_numbers<[1], [0], [0], [1], [0, 0, 1, 1], [], []>} : vector<8x8xbf16>, vector<8x32xbf16>, vector<8x32xf32> -> vector<8x32xf32>
    %46 = tpu.concatenate %24, %45 in 1 : vector<8x32xf32>, vector<8x32xf32> -> vector<8x64xf32>
    %c0_14 = arith.constant 0 : index
    %c0_15 = arith.constant 0 : index
    %c0_16 = arith.constant 0 : index
    %47 = vector.load %arg3[%c0_14, %c0_15, %c0_16] : memref<1x8x64xf32, #tpu.memory_space<vmem>>, vector<1x8x64xf32>
    %48 = vector.shape_cast %47 : vector<1x8x64xf32> to vector<8x64xf32>
    %49 = vector.shape_cast %46 : vector<8x64xf32> to vector<1x8x64xf32>
    tpu.vector_store %arg3[%c0_14, %c0_15, %c0_16], %49 {strides = array<i32>} : memref<1x8x64xf32, #tpu.memory_space<vmem>>, vector<1x8x64xf32>,
    return
  }
  func.func @transform_0(%arg0: i32) -> (i32, i32, i32) {
    %c0_i32 = arith.constant 0 : i32
    %c0_i32_0 = arith.constant 0 : i32
    %c0_i32_1 = arith.constant 0 : i32
    return %arg0, %c0_i32, %c0_i32_0 : i32, i32, i32
  }
  func.func @transform_1(%arg0: i32) -> (i32, i32, i32) {
    %c0_i32 = arith.constant 0 : i32
    %c0_i32_0 = arith.constant 0 : i32
    %c0_i32_1 = arith.constant 0 : i32
    return %arg0, %c0_i32, %c0_i32_0 : i32, i32, i32
  }
  func.func @transform_2(%arg0: i32) -> (i32, i32, i32) {
    %c0_i32 = arith.constant 0 : i32
    %c0_i32_0 = arith.constant 0 : i32
    %c0_i32_1 = arith.constant 0 : i32
    return %arg0, %c0_i32, %c0_i32_0 : i32, i32, i32
  }
}

module attributes {stable_mosaic.version = 11 : i64} {
  func.func @_matmul_kernel(%arg0: i32, %arg1: i32, %arg2: i32, %arg3: memref<16x64xf32, #tpu.memory_space<vmem>>, %arg4: memref<64x384xbf16, #tpu.memory_space<vmem>>, %arg5: memref<1x384xf32, #tpu.memory_space<vmem>>, %arg6: memref<16x384xf32, #tpu.memory_space<vmem>>, %arg7: memref<16x384xf32, #tpu.memory_space<vmem>>, %arg8: memref<16x384xf32, #tpu.memory_space<vmem>>) attributes {dimension_semantics = [#tpu.dimension_semantics<parallel>, #tpu.dimension_semantics<parallel>, #tpu.dimension_semantics<arbitrary>], iteration_bounds = array<i64: 1, 1, 1>, scalar_prefetch = 0 : i64, scratch_operands = 1 : i64, tpu.core_type = #tpu.core_type<tc>, window_params = [{transform_indices = @transform_0, window_bounds = array<i64: 16, 64>}, {transform_indices = @transform_1, window_bounds = array<i64: 64, 384>}, {transform_indices = @transform_2, window_bounds = array<i64: 1, 384>}, {transform_indices = @transform_3, window_bounds = array<i64: 16, 384>}, {transform_indices = @transform_4, window_bounds = array<i64: 16, 384>}]} {
    %c0_i32 = arith.constant 0 : i32
    %0 = arith.cmpi eq, %arg2, %c0_i32 : i32
    %1 = arith.extui %0 : i1 to i32
    %c0_i32_0 = arith.constant 0 : i32
    %2 = arith.cmpi ne, %1, %c0_i32_0 : i32
    scf.if %2 {
      %cst_10 = arith.constant 0.000000e+00 : f32
      %13 = vector.broadcast %cst_10 : f32 to vector<16x384xf32>
      %c0_11 = arith.constant 0 : index
      %c0_12 = arith.constant 0 : index
      %14 = vector.load %arg8[%c0_11, %c0_12] : memref<16x384xf32, #tpu.memory_space<vmem>>, vector<16x384xf32>
      tpu.vector_store %arg8[%c0_11, %c0_12], %13 {strides = array<i32>} : memref<16x384xf32, #tpu.memory_space<vmem>>, vector<16x384xf32>,
    } else {
    }
    %c0 = arith.constant 0 : index
    %c0_1 = arith.constant 0 : index
    %3 = vector.load %arg8[%c0, %c0_1] : memref<16x384xf32, #tpu.memory_space<vmem>>, vector<16x384xf32>
    %c0_2 = arith.constant 0 : index
    %c0_3 = arith.constant 0 : index
    %4 = vector.load %arg3[%c0_2, %c0_3] : memref<16x64xf32, #tpu.memory_space<vmem>>, vector<16x64xf32>
    %5 = arith.truncf %4 : vector<16x64xf32> to vector<16x64xbf16>
    %c0_4 = arith.constant 0 : index
    %c0_5 = arith.constant 0 : index
    %6 = vector.load %arg4[%c0_4, %c0_5] : memref<64x384xbf16, #tpu.memory_space<vmem>>, vector<64x384xbf16>
    %cst = arith.constant dense<0.000000e+00> : vector<16x384xf32>
    %7 = tpu.matmul %5, %6, %cst {dimension_numbers = #tpu.dot_dimension_numbers<[1], [0], [0], [1], [0, 0, 1, 1], [], []>} : vector<16x64xbf16>, vector<64x384xbf16>, vector<16x384xf32> -> vector<16x384xf32>
    %8 = arith.addf %3, %7 : vector<16x384xf32>
    %c0_6 = arith.constant 0 : index
    %c0_7 = arith.constant 0 : index
    %9 = vector.load %arg8[%c0_6, %c0_7] : memref<16x384xf32, #tpu.memory_space<vmem>>, vector<16x384xf32>
    tpu.vector_store %arg8[%c0_6, %c0_7], %8 {strides = array<i32>} : memref<16x384xf32, #tpu.memory_space<vmem>>, vector<16x384xf32>,
    %c0_i32_8 = arith.constant 0 : i32
    %10 = arith.cmpi eq, %arg2, %c0_i32_8 : i32
    %11 = arith.extui %10 : i1 to i32
    %c0_i32_9 = arith.constant 0 : i32
    %12 = arith.cmpi ne, %11, %c0_i32_9 : i32
    scf.if %12 {
      %c0_10 = arith.constant 0 : index
      %c0_11 = arith.constant 0 : index
      %13 = vector.load %arg8[%c0_10, %c0_11] : memref<16x384xf32, #tpu.memory_space<vmem>>, vector<16x384xf32>
      %c0_12 = arith.constant 0 : index
      %c0_13 = arith.constant 0 : index
      %14 = vector.load %arg5[%c0_12, %c0_13] : memref<1x384xf32, #tpu.memory_space<vmem>>, vector<1x384xf32>
      %15 = vector.broadcast %14 : vector<1x384xf32> to vector<16x384xf32>
      %16 = arith.addf %13, %15 : vector<16x384xf32>
      %c0_14 = arith.constant 0 : index
      %c0_15 = arith.constant 0 : index
      %17 = vector.load %arg6[%c0_14, %c0_15] : memref<16x384xf32, #tpu.memory_space<vmem>>, vector<16x384xf32>
      %18 = arith.addf %16, %17 : vector<16x384xf32>
      %c0_16 = arith.constant 0 : index
      %c0_17 = arith.constant 0 : index
      %19 = vector.load %arg7[%c0_16, %c0_17] : memref<16x384xf32, #tpu.memory_space<vmem>>, vector<16x384xf32>
      tpu.vector_store %arg7[%c0_16, %c0_17], %18 {strides = array<i32>} : memref<16x384xf32, #tpu.memory_space<vmem>>, vector<16x384xf32>,
    } else {
    }
    return
  }
  func.func @transform_0(%arg0: i32, %arg1: i32, %arg2: i32) -> (i32, i32) {
    %c0_i32 = arith.constant 0 : i32
    return %arg0, %arg2 : i32, i32
  }
  func.func @transform_1(%arg0: i32, %arg1: i32, %arg2: i32) -> (i32, i32) {
    %c0_i32 = arith.constant 0 : i32
    return %arg2, %arg1 : i32, i32
  }
  func.func @transform_2(%arg0: i32, %arg1: i32, %arg2: i32) -> (i32, i32) {
    %c0_i32 = arith.constant 0 : i32
    %c0_i32_0 = arith.constant 0 : i32
    return %c0_i32, %arg1 : i32, i32
  }
  func.func @transform_3(%arg0: i32, %arg1: i32, %arg2: i32) -> (i32, i32) {
    %c0_i32 = arith.constant 0 : i32
    return %arg0, %arg1 : i32, i32
  }
  func.func @transform_4(%arg0: i32, %arg1: i32, %arg2: i32) -> (i32, i32) {
    %c0_i32 = arith.constant 0 : i32
    return %arg0, %arg1 : i32, i32
  }
}

module attributes {stable_mosaic.version = 11 : i64} {
  func.func @_ln_matmul_kernel(%arg0: i32, %arg1: i32, %arg2: memref<16x384xf32, #tpu.memory_space<vmem>>, %arg3: memref<1x384xf32, #tpu.memory_space<vmem>>, %arg4: memref<1x384xf32, #tpu.memory_space<vmem>>, %arg5: memref<384x512xbf16, #tpu.memory_space<vmem>>, %arg6: memref<1x512xf32, #tpu.memory_space<vmem>>, %arg7: memref<16x512xf32, #tpu.memory_space<vmem>>) attributes {dimension_semantics = [#tpu.dimension_semantics<parallel>, #tpu.dimension_semantics<parallel>], iteration_bounds = array<i64: 1, 3>, scalar_prefetch = 0 : i64, scratch_operands = 0 : i64, tpu.core_type = #tpu.core_type<tc>, window_params = [{transform_indices = @transform_0, window_bounds = array<i64: 16, 384>}, {pipeline_mode = #tpu.pipeline_mode<synchronous>, transform_indices = @transform_1, window_bounds = array<i64: 1, 384>}, {pipeline_mode = #tpu.pipeline_mode<synchronous>, transform_indices = @transform_2, window_bounds = array<i64: 1, 384>}, {transform_indices = @transform_3, window_bounds = array<i64: 384, 512>}, {transform_indices = @transform_4, window_bounds = array<i64: 1, 512>}, {transform_indices = @transform_5, window_bounds = array<i64: 16, 512>}]} {
    %c0 = arith.constant 0 : index
    %c0_0 = arith.constant 0 : index
    %0 = vector.load %arg2[%c0, %c0_0] : memref<16x384xf32, #tpu.memory_space<vmem>>, vector<16x384xf32>
    %cst = arith.constant dense<0.000000e+00> : vector<16xf32>
    %1 = vector.multi_reduction <add>, %0, %cst [1] : vector<16x384xf32> to vector<16xf32>
    %2 = vector.shape_cast %1 : vector<16xf32> to vector<16x1xf32>
    %cst_1 = arith.constant 3.840000e+02 : f32
    %3 = vector.broadcast %cst_1 : f32 to vector<16x1xf32>
    %4 = arith.divf %2, %3 : vector<16x1xf32>
    %5 = vector.broadcast %4 : vector<16x1xf32> to vector<16x384xf32>
    %6 = arith.subf %0, %5 : vector<16x384xf32>
    %7 = arith.mulf %6, %6 : vector<16x384xf32>
    %cst_2 = arith.constant dense<0.000000e+00> : vector<16xf32>
    %8 = vector.multi_reduction <add>, %7, %cst_2 [1] : vector<16x384xf32> to vector<16xf32>
    %9 = vector.shape_cast %8 : vector<16xf32> to vector<16x1xf32>
    %cst_3 = arith.constant 3.840000e+02 : f32
    %10 = vector.broadcast %cst_3 : f32 to vector<16x1xf32>
    %11 = arith.divf %9, %10 : vector<16x1xf32>
    %12 = vector.broadcast %4 : vector<16x1xf32> to vector<16x384xf32>
    %13 = arith.subf %0, %12 : vector<16x384xf32>
    %cst_4 = arith.constant 9.99999974E-6 : f32
    %14 = vector.broadcast %cst_4 : f32 to vector<16x1xf32>
    %15 = arith.addf %11, %14 : vector<16x1xf32>
    %16 = math.rsqrt %15 : vector<16x1xf32>
    %17 = vector.broadcast %16 : vector<16x1xf32> to vector<16x384xf32>
    %18 = arith.mulf %13, %17 : vector<16x384xf32>
    %c0_5 = arith.constant 0 : index
    %c0_6 = arith.constant 0 : index
    %19 = vector.load %arg3[%c0_5, %c0_6] : memref<1x384xf32, #tpu.memory_space<vmem>>, vector<1x384xf32>
    %20 = vector.broadcast %19 : vector<1x384xf32> to vector<16x384xf32>
    %21 = arith.mulf %18, %20 : vector<16x384xf32>
    %c0_7 = arith.constant 0 : index
    %c0_8 = arith.constant 0 : index
    %22 = vector.load %arg4[%c0_7, %c0_8] : memref<1x384xf32, #tpu.memory_space<vmem>>, vector<1x384xf32>
    %23 = vector.broadcast %22 : vector<1x384xf32> to vector<16x384xf32>
    %24 = arith.addf %21, %23 : vector<16x384xf32>
    %25 = arith.truncf %24 : vector<16x384xf32> to vector<16x384xbf16>
    %c0_9 = arith.constant 0 : index
    %c0_10 = arith.constant 0 : index
    %26 = vector.load %arg5[%c0_9, %c0_10] : memref<384x512xbf16, #tpu.memory_space<vmem>>, vector<384x512xbf16>
    %cst_11 = arith.constant dense<0.000000e+00> : vector<16x512xf32>
    %27 = tpu.matmul %25, %26, %cst_11 {dimension_numbers = #tpu.dot_dimension_numbers<[1], [0], [0], [1], [0, 0, 1, 1], [], []>} : vector<16x384xbf16>, vector<384x512xbf16>, vector<16x512xf32> -> vector<16x512xf32>
    %c0_12 = arith.constant 0 : index
    %c0_13 = arith.constant 0 : index
    %28 = vector.load %arg6[%c0_12, %c0_13] : memref<1x512xf32, #tpu.memory_space<vmem>>, vector<1x512xf32>
    %29 = vector.broadcast %28 : vector<1x512xf32> to vector<16x512xf32>
    %30 = arith.addf %27, %29 : vector<16x512xf32>
    %c0_14 = arith.constant 0 : index
    %c0_15 = arith.constant 0 : index
    %31 = vector.load %arg7[%c0_14, %c0_15] : memref<16x512xf32, #tpu.memory_space<vmem>>, vector<16x512xf32>
    tpu.vector_store %arg7[%c0_14, %c0_15], %30 {strides = array<i32>} : memref<16x512xf32, #tpu.memory_space<vmem>>, vector<16x512xf32>,
    return
  }
  func.func @transform_0(%arg0: i32, %arg1: i32) -> (i32, i32) {
    %c0_i32 = arith.constant 0 : i32
    %c0_i32_0 = arith.constant 0 : i32
    return %arg0, %c0_i32 : i32, i32
  }
  func.func @transform_1(%arg0: i32, %arg1: i32) -> (i32, i32) {
    %c0_i32 = arith.constant 0 : i32
    %c0_i32_0 = arith.constant 0 : i32
    %c0_i32_1 = arith.constant 0 : i32
    return %c0_i32, %c0_i32_0 : i32, i32
  }
  func.func @transform_2(%arg0: i32, %arg1: i32) -> (i32, i32) {
    %c0_i32 = arith.constant 0 : i32
    %c0_i32_0 = arith.constant 0 : i32
    %c0_i32_1 = arith.constant 0 : i32
    return %c0_i32, %c0_i32_0 : i32, i32
  }
  func.func @transform_3(%arg0: i32, %arg1: i32) -> (i32, i32) {
    %c0_i32 = arith.constant 0 : i32
    %c0_i32_0 = arith.constant 0 : i32
    return %c0_i32, %arg1 : i32, i32
  }
  func.func @transform_4(%arg0: i32, %arg1: i32) -> (i32, i32) {
    %c0_i32 = arith.constant 0 : i32
    %c0_i32_0 = arith.constant 0 : i32
    return %c0_i32, %arg1 : i32, i32
  }
  func.func @transform_5(%arg0: i32, %arg1: i32) -> (i32, i32) {
    %c0_i32 = arith.constant 0 : i32
    return %arg0, %arg1 : i32, i32
  }
}

module attributes {stable_mosaic.version = 11 : i64} {
  func.func @_pool_head_kernel(%arg0: memref<2x8x384xf32, #tpu.memory_space<vmem>>, %arg1: memref<1x384xf32, #tpu.memory_space<vmem>>, %arg2: memref<1x384xf32, #tpu.memory_space<vmem>>, %arg3: memref<384x128xbf16, #tpu.memory_space<vmem>>, %arg4: memref<1x128xf32, #tpu.memory_space<vmem>>, %arg5: memref<2x128xf32, #tpu.memory_space<vmem>>) attributes {dimension_semantics = [], scalar_prefetch = 0 : i64, scratch_operands = 0 : i64, tpu.core_type = #tpu.core_type<tc>} {
    %c0 = arith.constant 0 : index
    %c0_0 = arith.constant 0 : index
    %c0_1 = arith.constant 0 : index
    %0 = vector.load %arg0[%c0, %c0_0, %c0_1] : memref<2x8x384xf32, #tpu.memory_space<vmem>>, vector<2x8x384xf32>
    %cst = arith.constant dense<0.000000e+00> : vector<2x384xf32>
    %1 = vector.multi_reduction <add>, %0, %cst [1] : vector<2x8x384xf32> to vector<2x384xf32>
    %cst_2 = arith.constant 8.000000e+00 : f32
    %2 = vector.broadcast %cst_2 : f32 to vector<2x384xf32>
    %3 = arith.divf %1, %2 : vector<2x384xf32>
    %cst_3 = arith.constant dense<0.000000e+00> : vector<2xf32>
    %4 = vector.multi_reduction <add>, %3, %cst_3 [1] : vector<2x384xf32> to vector<2xf32>
    %5 = vector.shape_cast %4 : vector<2xf32> to vector<2x1xf32>
    %cst_4 = arith.constant 3.840000e+02 : f32
    %6 = vector.broadcast %cst_4 : f32 to vector<2x1xf32>
    %7 = arith.divf %5, %6 : vector<2x1xf32>
    %8 = vector.broadcast %7 : vector<2x1xf32> to vector<2x384xf32>
    %9 = arith.subf %3, %8 : vector<2x384xf32>
    %10 = arith.mulf %9, %9 : vector<2x384xf32>
    %cst_5 = arith.constant dense<0.000000e+00> : vector<2xf32>
    %11 = vector.multi_reduction <add>, %10, %cst_5 [1] : vector<2x384xf32> to vector<2xf32>
    %12 = vector.shape_cast %11 : vector<2xf32> to vector<2x1xf32>
    %cst_6 = arith.constant 3.840000e+02 : f32
    %13 = vector.broadcast %cst_6 : f32 to vector<2x1xf32>
    %14 = arith.divf %12, %13 : vector<2x1xf32>
    %15 = vector.broadcast %7 : vector<2x1xf32> to vector<2x384xf32>
    %16 = arith.subf %3, %15 : vector<2x384xf32>
    %cst_7 = arith.constant 9.99999974E-6 : f32
    %17 = vector.broadcast %cst_7 : f32 to vector<2x1xf32>
    %18 = arith.addf %14, %17 : vector<2x1xf32>
    %19 = math.rsqrt %18 : vector<2x1xf32>
    %20 = vector.broadcast %19 : vector<2x1xf32> to vector<2x384xf32>
    %21 = arith.mulf %16, %20 : vector<2x384xf32>
    %c0_8 = arith.constant 0 : index
    %c0_9 = arith.constant 0 : index
    %22 = vector.load %arg1[%c0_8, %c0_9] : memref<1x384xf32, #tpu.memory_space<vmem>>, vector<1x384xf32>
    %23 = vector.broadcast %22 : vector<1x384xf32> to vector<2x384xf32>
    %24 = arith.mulf %21, %23 : vector<2x384xf32>
    %c0_10 = arith.constant 0 : index
    %c0_11 = arith.constant 0 : index
    %25 = vector.load %arg2[%c0_10, %c0_11] : memref<1x384xf32, #tpu.memory_space<vmem>>, vector<1x384xf32>
    %26 = vector.broadcast %25 : vector<1x384xf32> to vector<2x384xf32>
    %27 = arith.addf %24, %26 : vector<2x384xf32>
    %28 = arith.truncf %27 : vector<2x384xf32> to vector<2x384xbf16>
    %c0_12 = arith.constant 0 : index
    %c0_13 = arith.constant 0 : index
    %29 = vector.load %arg3[%c0_12, %c0_13] : memref<384x128xbf16, #tpu.memory_space<vmem>>, vector<384x128xbf16>
    %cst_14 = arith.constant dense<0.000000e+00> : vector<2x128xf32>
    %30 = tpu.matmul %28, %29, %cst_14 {dimension_numbers = #tpu.dot_dimension_numbers<[1], [0], [0], [1], [0, 0, 1, 1], [], []>} : vector<2x384xbf16>, vector<384x128xbf16>, vector<2x128xf32> -> vector<2x128xf32>
    %c0_15 = arith.constant 0 : index
    %c0_16 = arith.constant 0 : index
    %31 = vector.load %arg4[%c0_15, %c0_16] : memref<1x128xf32, #tpu.memory_space<vmem>>, vector<1x128xf32>
    %32 = vector.broadcast %31 : vector<1x128xf32> to vector<2x128xf32>
    %33 = arith.addf %30, %32 : vector<2x128xf32>
    %c0_17 = arith.constant 0 : index
    %c0_18 = arith.constant 0 : index
    %34 = vector.load %arg5[%c0_17, %c0_18] : memref<2x128xf32, #tpu.memory_space<vmem>>, vector<2x128xf32>
    tpu.vector_store %arg5[%c0_17, %c0_18], %33 {strides = array<i32>} : memref<2x128xf32, #tpu.memory_space<vmem>>, vector<2x128xf32>,
    return
  }
}

module attributes {stable_mosaic.version = 11 : i64} {
  func.func @_matmul_kernel(%arg0: i32, %arg1: i32, %arg2: i32, %arg3: memref<16x512xf32, #tpu.memory_space<vmem>>, %arg4: memref<512x384xbf16, #tpu.memory_space<vmem>>, %arg5: memref<1x384xf32, #tpu.memory_space<vmem>>, %arg6: memref<16x384xf32, #tpu.memory_space<vmem>>, %arg7: memref<16x384xf32, #tpu.memory_space<vmem>>, %arg8: memref<16x384xf32, #tpu.memory_space<vmem>>) attributes {dimension_semantics = [#tpu.dimension_semantics<parallel>, #tpu.dimension_semantics<parallel>, #tpu.dimension_semantics<arbitrary>], iteration_bounds = array<i64: 1, 1, 3>, scalar_prefetch = 0 : i64, scratch_operands = 1 : i64, tpu.core_type = #tpu.core_type<tc>, window_params = [{transform_indices = @transform_0, window_bounds = array<i64: 16, 512>}, {transform_indices = @transform_1, window_bounds = array<i64: 512, 384>}, {transform_indices = @transform_2, window_bounds = array<i64: 1, 384>}, {transform_indices = @transform_3, window_bounds = array<i64: 16, 384>}, {transform_indices = @transform_4, window_bounds = array<i64: 16, 384>}]} {
    %c0_i32 = arith.constant 0 : i32
    %0 = arith.cmpi eq, %arg2, %c0_i32 : i32
    %1 = arith.extui %0 : i1 to i32
    %c0_i32_0 = arith.constant 0 : i32
    %2 = arith.cmpi ne, %1, %c0_i32_0 : i32
    scf.if %2 {
      %cst_9 = arith.constant 0.000000e+00 : f32
      %13 = vector.broadcast %cst_9 : f32 to vector<16x384xf32>
      %c0_10 = arith.constant 0 : index
      %c0_11 = arith.constant 0 : index
      %14 = vector.load %arg8[%c0_10, %c0_11] : memref<16x384xf32, #tpu.memory_space<vmem>>, vector<16x384xf32>
      tpu.vector_store %arg8[%c0_10, %c0_11], %13 {strides = array<i32>} : memref<16x384xf32, #tpu.memory_space<vmem>>, vector<16x384xf32>,
    } else {
    }
    %c0 = arith.constant 0 : index
    %c0_1 = arith.constant 0 : index
    %3 = vector.load %arg8[%c0, %c0_1] : memref<16x384xf32, #tpu.memory_space<vmem>>, vector<16x384xf32>
    %c0_2 = arith.constant 0 : index
    %c0_3 = arith.constant 0 : index
    %4 = vector.load %arg3[%c0_2, %c0_3] : memref<16x512xf32, #tpu.memory_space<vmem>>, vector<16x512xf32>
    %5 = arith.truncf %4 : vector<16x512xf32> to vector<16x512xbf16>
    %c0_4 = arith.constant 0 : index
    %c0_5 = arith.constant 0 : index
    %6 = vector.load %arg4[%c0_4, %c0_5] : memref<512x384xbf16, #tpu.memory_space<vmem>>, vector<512x384xbf16>
    %cst = arith.constant dense<0.000000e+00> : vector<16x384xf32>
    %7 = tpu.matmul %5, %6, %cst {dimension_numbers = #tpu.dot_dimension_numbers<[1], [0], [0], [1], [0, 0, 1, 1], [], []>} : vector<16x512xbf16>, vector<512x384xbf16>, vector<16x384xf32> -> vector<16x384xf32>
    %8 = arith.addf %3, %7 : vector<16x384xf32>
    %c0_6 = arith.constant 0 : index
    %c0_7 = arith.constant 0 : index
    %9 = vector.load %arg8[%c0_6, %c0_7] : memref<16x384xf32, #tpu.memory_space<vmem>>, vector<16x384xf32>
    tpu.vector_store %arg8[%c0_6, %c0_7], %8 {strides = array<i32>} : memref<16x384xf32, #tpu.memory_space<vmem>>, vector<16x384xf32>,
    %c2_i32 = arith.constant 2 : i32
    %10 = arith.cmpi eq, %arg2, %c2_i32 : i32
    %11 = arith.extui %10 : i1 to i32
    %c0_i32_8 = arith.constant 0 : i32
    %12 = arith.cmpi ne, %11, %c0_i32_8 : i32
    scf.if %12 {
      %c0_9 = arith.constant 0 : index
      %c0_10 = arith.constant 0 : index
      %13 = vector.load %arg8[%c0_9, %c0_10] : memref<16x384xf32, #tpu.memory_space<vmem>>, vector<16x384xf32>
      %c0_11 = arith.constant 0 : index
      %c0_12 = arith.constant 0 : index
      %14 = vector.load %arg5[%c0_11, %c0_12] : memref<1x384xf32, #tpu.memory_space<vmem>>, vector<1x384xf32>
      %15 = vector.broadcast %14 : vector<1x384xf32> to vector<16x384xf32>
      %16 = arith.addf %13, %15 : vector<16x384xf32>
      %c0_13 = arith.constant 0 : index
      %c0_14 = arith.constant 0 : index
      %17 = vector.load %arg6[%c0_13, %c0_14] : memref<16x384xf32, #tpu.memory_space<vmem>>, vector<16x384xf32>
      %18 = arith.addf %16, %17 : vector<16x384xf32>
      %c0_15 = arith.constant 0 : index
      %c0_16 = arith.constant 0 : index
      %19 = vector.load %arg7[%c0_15, %c0_16] : memref<16x384xf32, #tpu.memory_space<vmem>>, vector<16x384xf32>
      tpu.vector_store %arg7[%c0_15, %c0_16], %18 {strides = array<i32>} : memref<16x384xf32, #tpu.memory_space<vmem>>, vector<16x384xf32>,
    } else {
    }
    return
  }
  func.func @transform_0(%arg0: i32, %arg1: i32, %arg2: i32) -> (i32, i32) {
    %c0_i32 = arith.constant 0 : i32
    return %arg0, %arg2 : i32, i32
  }
  func.func @transform_1(%arg0: i32, %arg1: i32, %arg2: i32) -> (i32, i32) {
    %c0_i32 = arith.constant 0 : i32
    return %arg2, %arg1 : i32, i32
  }
  func.func @transform_2(%arg0: i32, %arg1: i32, %arg2: i32) -> (i32, i32) {
    %c0_i32 = arith.constant 0 : i32
    %c0_i32_0 = arith.constant 0 : i32
    return %c0_i32, %arg1 : i32, i32
  }
  func.func @transform_3(%arg0: i32, %arg1: i32, %arg2: i32) -> (i32, i32) {
    %c0_i32 = arith.constant 0 : i32
    return %arg0, %arg1 : i32, i32
  }
  func.func @transform_4(%arg0: i32, %arg1: i32, %arg2: i32) -> (i32, i32) {
    %c0_i32 = arith.constant 0 : i32
    return %arg0, %arg1 : i32, i32
  }
}

</mosaic_0001>

<bundles_post_ra>
// kernel: cnn_perceiver_forward.14
= control target key start
LH: loop header
LB: loop body
LE: loop exit
PB: predicated region body
PF: predicated region fallthrough
CT: control target
= control target key end

     0   :  { %10 = vsyncpa [#allocation3], 0  ;;  %s794_s0 = inlined_call_operand.vmem [shape: f32[16,384], index: 0, kind: input, shape index: {}]   ;;  %s795_s1 = inlined_call_operand.hbm [shape: f32[1,384], index: 1, kind: input, shape index: {}]   ;;  %s796_s2 = inlined_call_operand.hbm [shape: f32[1,384], index: 2, kind: input, shape index: {}]   ;;  %s797_s3 = inlined_call_operand.vmem [shape: bf16[384,64], index: 3, kind: input, shape index: {}]   ;;  %s798_s4 = inlined_call_operand.hbm [shape: f32[1,64], index: 4, kind: input, shape index: {}]   ;;  %s799_s5 = inlined_call_operand.vmem [shape: f32[16,64], index: 5, kind: output, shape index: {}]  }
   0x1   :  { %11 = vsyncpa [#allocation5], 0  ;;  %s30_s20 = sshll.u32 %s796_s2, 4  ;;  %s619_s21 = smov [#allocation4]   ;;  %s31_s20 = int_to_ptr.hbm [resolvable:$true] %s30_s20 }
   0x2   :  { %s32_s22 = sshll.u32 %s619_s21, 4  ;;  %s19_s25 = sshll.u32 %s795_s1, 4  ;;  %s33_s22 = int_to_ptr.vmem [resolvable:$true] %s32_s22  ;;  %s20_s25 = int_to_ptr.hbm [resolvable:$true] %s19_s25 }
   0x3   :  { %35 = dma.hbm_to_vmem [thread:$0]  %s31_s20, 48, %s33_s22, [#allocation5]  }
   0x4   :  { %s620_s26 = smov [#allocation2]   ;;  %s43_s30 = sshll.u32 %s798_s4, 4  ;;  %s44_s30 = int_to_ptr.hbm [resolvable:$true] %s43_s30 }
   0x5   :  { %s21_s27 = sshll.u32 %s620_s26, 4  ;;  %s621_s2 = smov [#allocation6]   ;;  %s22_s27 = int_to_ptr.vmem [resolvable:$true] %s21_s27 }
   0x6   :  { %24 = dma.hbm_to_vmem [thread:$0]  %s20_s25, 48, %s22_s27, [#allocation3]  }
   0x7   :  { %s45_s6 = sshll.u32 %s621_s2, 4  ;;  %s46_s6 = int_to_ptr.vmem [resolvable:$true] %s45_s6 }
   0x8   :  { %48 = dma.hbm_to_vmem [thread:$0]  %s44_s30, 16, %s46_s6, [#allocation5]  }
   0x9   :  { %615 = dma.done.wait [#allocation3], 48  }
   0xa   :  { %616 = vsyncadd [#allocation3], 4294967248 }
   0xb   :  { %617 = dma.done.wait [#allocation5], 64  }
   0xc   :  { %618 = vsyncadd [#allocation5], 4294967232  ;;  %v61_v0 = vld [vmem:[%s794_s0] sm:$0xff]  ;;  %v62_v1 = vld [vmem:[%s794_s0 + $0x8] sm:$0xff]  ;;  %v622_v10 = vmov 384.0   ;;  %vm403_vm7 = vcmask 523264  }
   0xd   :  { %v63_v2 = vld [vmem:[%s794_s0 + $0x10] sm:$0xff]  ;;  %v67_v3 = vadd.f32 %v62_v1, %v61_v0  ;;  %v64_v4 = vld [vmem:[%s794_s0 + $0x18] sm:$0xff]  ;;  %v65_v5 = vld [vmem:[%s794_s0 + $0x20] sm:$0xff]  ;;  %537 = vrcp.f32 %v622_v10 }
   0xe   :  { %v71_v7 = vadd.f32 %v65_v5, %v64_v4  ;;  %v66_v8 = vld [vmem:[%s794_s0 + $0x28] sm:$0xff]  ;;  %v515_v37 = vld [vmem:[%s797_s3 + $0x38] sm:$0xff]  ;;  %v514_v40 = vld [vmem:[%s797_s3 + $0x30] sm:$0xff] }
   0xf   :  { %v68_v6 = vadd.f32 %v67_v3, %v63_v2  ;;  %v523_v38 = vld [vmem:[%s797_s3 + $0x78] sm:$0xff]  ;;  %361 = vmatpush.bf16.msra.mxu0 %v515_v37  ;;  %v522_v41 = vld [vmem:[%s797_s3 + $0x70] sm:$0xff]  ;;  %v513_v43 = vld [vmem:[%s797_s3 + $0x28] sm:$0xff] }
  0x10   :  { %v72_v9 = vadd.f32 %v71_v7, %v66_v8  ;;  %v531_v39 = vld [vmem:[%s797_s3 + $0xb8] sm:$0xff]  ;;  %375 = vmatpush.bf16.msra.mxu1 %v523_v38  ;;  %v530_v42 = vld [vmem:[%s797_s3 + $0xb0] sm:$0xff]  ;;  %v521_v44 = vld [vmem:[%s797_s3 + $0x68] sm:$0xff] }
  0x11   :  { %69 = vadd.xlane.f32.xlu0 %v68_v6  ;;  %389 = vmatpush.bf16.msra.mxu2 %v531_v39  ;;  %v529_v45 = vld [vmem:[%s797_s3 + $0xa8] sm:$0xff]  ;;  %v512_v46 = vld [vmem:[%s797_s3 + $0x20] sm:$0xff]  ;;  %v511_v49 = vld [vmem:[%s797_s3 + $0x18] sm:$0xff] }
  0x12   :  { %v520_v47 = vld [vmem:[%s797_s3 + $0x60] sm:$0xff]  ;;  %v519_v50 = vld [vmem:[%s797_s3 + $0x58] sm:$0xff]  ;;  %v510_v52 = vld [vmem:[%s797_s3 + $0x10] sm:$0xff] }
  0x13   :  { %v538_v11 = vpop.eup %537  ;;  %362 = vmatpush.bf16.msra.mxu0 %v514_v40  ;;  %v528_v48 = vld [vmem:[%s797_s3 + $0xa0] sm:$0xff]  ;;  %v527_v51 = vld [vmem:[%s797_s3 + $0x98] sm:$0xff]  ;;  %v518_v53 = vld [vmem:[%s797_s3 + $0x50] sm:$0xff] }
  0x14   :  { %v76_v12 = vmul.f32 384.0, %v538_v11  ;;  %vm80_vm0 = vweird.f32 %v538_v11  ;;  %376 = vmatpush.bf16.msra.mxu1 %v522_v41  ;;  %v526_v54 = vld [vmem:[%s797_s3 + $0x90] sm:$0xff]  ;;  %v509_v55 = vld [vmem:[%s797_s3 + $0x8] sm:$0xff]  ;;  %v508_v59 = vld [vmem:[%s797_s3] sm:$0xff] }
  0x15   :  { %390 = vmatpush.bf16.msra.mxu2 %v530_v42  ;;  %v517_v56 = vld [vmem:[%s797_s3 + $0x48] sm:$0xff]  ;;  %v516_v60 = vld [vmem:[%s797_s3 + $0x40] sm:$0xff] }
  0x16   :  { %v77_v13 = vsub.f32 1.0, %v76_v12  ;;  %v525_v57 = vld [vmem:[%s797_s3 + $0x88] sm:$0xff]  ;;  %v524_v62 = vld [vmem:[%s797_s3 + $0x80] sm:$0xff] }
  0x17   :  { %363 = vmatpush.bf16.msra.mxu0 %v513_v43  ;;  %v134_v12 = vld [vmem:[#allocation2] sm:$0x7] }
  0x18   :  { %v78_v14 = vmul.f32 %v538_v11, %v77_v13  ;;  %377 = vmatpush.bf16.msra.mxu1 %v521_v44 }
  0x19   :  { %73 = vadd.xlane.f32.xlu0 %v72_v9  ;;  %391 = vmatpush.bf16.msra.mxu2 %v529_v45 }
  0x1a   :  { %v79_v15 = vadd.f32 %v538_v11, %v78_v14 }
  0x1b   :  { %364 = vmatpush.bf16.msra.mxu0 %v512_v46 }
  0x1c   :  { %v680_v16 = vsel %vm80_vm0, %v538_v11, %v79_v15  ;;  %378 = vmatpush.bf16.msra.mxu1 %v520_v47  ;;  %v136_v15 = vperm.slane %v134_v12, 0 }
  0x1d   :  { %392 = vmatpush.bf16.msra.mxu2 %v528_v48 }
  0x1f   :  { %365 = vmatpush.bf16.msra.mxu0 %v511_v49 }
  0x20   :  { %379 = vmatpush.bf16.msra.mxu1 %v519_v50 }
  0x21   :  { %393 = vmatpush.bf16.msra.mxu2 %v527_v51 }
  0x23   :  { %366 = vmatpush.bf16.msra.mxu0 %v510_v52 }
  0x24   :  { %380 = vmatpush.bf16.msra.mxu1 %v518_v53 }
  0x25   :  { %394 = vmatpush.bf16.msra.mxu2 %v526_v54 }
  0x27   :  { %367 = vmatpush.bf16.msra.mxu0 %v509_v55 }
  0x28   :  { %381 = vmatpush.bf16.msra.mxu1 %v517_v56 }
  0x29   :  { %395 = vmatpush.bf16.msra.mxu2 %v525_v57 }
  0x2b   :  { %368 = vmatpush.bf16.msra.mxu0 %v508_v59 }
  0x2c   :  { %382 = vmatpush.bf16.msra.mxu1 %v516_v60 }
  0x2d   :  { %396 = vmatpush.bf16.msra.mxu2 %v524_v62 }
  0x84   :  { %v70_v17 = vpop.xlane.xlu0 %69 }
  0x85   :  { %v82_v18 = vmul.f32 %v680_v16, %v70_v17  ;;  %v137_v17 = vperm.slane %v134_v12, 1 }
  0x87   :  { %v683_v19 = vsub.f32 %v61_v0, %v82_v18  ;;  %v685_v20 = vsub.f32 %v62_v1, %v82_v18  ;;  %v687_v21 = vsub.f32 %v63_v2, %v82_v18 }
  0x89   :  { %v90_v22 = vmul.f32 %v683_v19, %v683_v19  ;;  %v91_v23 = vmul.f32 %v685_v20, %v685_v20  ;;  %v92_v24 = vmul.f32 %v687_v21, %v687_v21 }
  0x8b   :  { %v96_v25 = vadd.f32 %v91_v23, %v90_v22  ;;  %v148_v22 = vld [vmem:[#allocation4] sm:$0x7] }
  0x8c   :  { %v74_v26 = vpop.xlane.xlu0 %73 }
  0x8d   :  { %v83_v27 = vmul.f32 %v680_v16, %v74_v26  ;;  %v97_v28 = vadd.f32 %v96_v25, %v92_v24  ;;  %v138_v25 = vperm.slane %v134_v12, 2 }
  0x8f   :  { %v696_v29 = vsub.f32 %v64_v4, %v83_v27  ;;  %v698_v30 = vsub.f32 %v65_v5, %v83_v27  ;;  %v700_v31 = vsub.f32 %v66_v8, %v83_v27  ;;  %98 = vadd.xlane.f32.xlu1 %v97_v28  ;;  %v150_v27 = vperm.slane %v148_v22, 0 }
  0x90   :  { %v151_v28 = vperm.slane %v148_v22, 1 }
  0x91   :  { %v93_v32 = vmul.f32 %v696_v29, %v696_v29  ;;  %v94_v33 = vmul.f32 %v698_v30, %v698_v30  ;;  %v95_v34 = vmul.f32 %v700_v31, %v700_v31 }
  0x93   :  { %v100_v35 = vadd.f32 %v94_v33, %v93_v32 }
  0x95   :  { %v101_v36 = vadd.f32 %v100_v35, %v95_v34  ;;  %v152_v35 = vperm.slane %v148_v22, 2 }
  0x97   :  { %102 = vadd.xlane.f32.xlu1 %v101_v36 }
 0x102   :  { %v99_v58 = vpop.xlane.xlu1 %98 }
 0x103   :  { %v104_v61 = vmul.f32 %v99_v58, %v680_v16 }
 0x105   :  { %v106_v63 = vadd.f32 1e-05, %v104_v61 }
 0x107   :  { %539 = vrsqrt.f32 %v106_v63  ;;  %vm114_vm2 = vweird.f32 %v106_v63 }
 0x10a   :  { %v103_v0 = vpop.xlane.xlu1 %102 }
 0x10b   :  { %v105_v1 = vmul.f32 %v103_v0, %v680_v16 }
 0x10d   :  { %v540_v2 = vpop.eup %539  ;;  %v107_v3 = vadd.f32 1e-05, %v105_v1 }
 0x10e   :  { %v109_v4 = vmul.f32 %v540_v2, %v106_v63  ;;  %vm115_vm1 = vweird.f32 %v540_v2 }
 0x10f   :  { %541 = vrsqrt.f32 %v107_v3  ;;  %vm116_vm3 = vmor %vm114_vm2, %vm115_vm1  ;;  %vm124_vm5 = vweird.f32 %v107_v3 }
 0x110   :  { %v110_v5 = vmul.f32 %v540_v2, %v109_v4 }
 0x112   :  { %v111_v6 = vmul.f32 0.5, %v110_v5 }
 0x114   :  { %v112_v7 = vsub.f32 1.5, %v111_v6 }
 0x115   :  { %v542_v8 = vpop.eup %541 }
 0x116   :  { %v113_v9 = vmul.f32 %v540_v2, %v112_v7  ;;  %v119_v10 = vmul.f32 %v542_v8, %v107_v3  ;;  %vm125_vm4 = vweird.f32 %v542_v8 }
 0x117   :  { %vm126_vm6 = vmor %vm124_vm5, %vm125_vm4 }
 0x118   :  { %v120_v11 = vmul.f32 %v542_v8, %v119_v10  ;;  %v117_v13 = vsel %vm116_vm3, %v540_v2, %v113_v9 }
 0x119   :  { %v128_v18 = vmul.f32 %v117_v13, %v683_v19  ;;  %v129_v23 = vmul.f32 %v117_v13, %v685_v20  ;;  %v130_v24 = vmul.f32 %v117_v13, %v687_v21 }
 0x11a   :  { %v121_v14 = vmul.f32 0.5, %v120_v11 }
 0x11b   :  { %v142_v33 = vmul.f32 %v136_v15, %v128_v18  ;;  %v143_v34 = vmul.f32 %v137_v17, %v129_v23  ;;  %v144_v38 = vmul.f32 %v138_v25, %v130_v24 }
 0x11c   :  { %v122_v16 = vsub.f32 1.5, %v121_v14 }
 0x11d   :  { %v156_v40 = vadd.f32 %v150_v27, %v142_v33  ;;  %v157_v41 = vadd.f32 %v151_v28, %v143_v34  ;;  %v158_v44 = vadd.f32 %v152_v35, %v144_v38 }
 0x11e   :  { %v123_v26 = vmul.f32 %v542_v8, %v122_v16 }
 0x120   :  { %v127_v32 = vsel %vm126_vm6, %v542_v8, %v123_v26 }
 0x121   :  { %v131_v36 = vmul.f32 %v127_v32, %v696_v29  ;;  %v132_v37 = vmul.f32 %v127_v32, %v698_v30  ;;  %v133_v19 = vmul.f32 %v127_v32, %v700_v31  ;;  %v536_v29 = vld [vmem:[#allocation6] ss:$0 sm:$0xff] }
 0x123   :  { %v145_v20 = vmul.f32 %v136_v15, %v131_v36  ;;  %v146_v39 = vmul.f32 %v137_v17, %v132_v37  ;;  %v147_v21 = vmul.f32 %v138_v25, %v133_v19 }
 0x125   :  { %v159_v42 = vadd.f32 %v150_v27, %v145_v20  ;;  %v160_v43 = vadd.f32 %v151_v28, %v146_v39  ;;  %v161_v45 = vadd.f32 %v152_v35, %v147_v21 }
 0x127   :  { %v162_v46 = vpack.c.bf16 %v159_v42, %v156_v40  ;;  %v163_v47 = vpack.c.bf16 %v160_v43, %v157_v41  ;;  %v164_v48 = vpack.c.bf16 %v161_v45, %v158_v44 }
 0x129   :  { %369 = vmatmul.bf16.vlgmr.msra.gmra.mxu0 %v162_v46  ;;  %383 = vmatmul.bf16.vlgmr.msra.gmra.mxu1 %v163_v47 }
 0x12a   :  { %397 = vmatmul.bf16.vlgmr.msra.gmra.mxu2 %v164_v48 }
 0x1a6   :  { %v370_v30 = vpop.f32.mrf.mxu0  ;;  %v384_v31 = vpop.f32.mrf.mxu1 }
 0x1a7   :  { %v371_v49 = vadd.f32 %v536_v29, %v370_v30 }
 0x1a9   :  { %v385_v50 = vadd.f32 %v384_v31, %v371_v49 }
 0x1ad   :  { %v398_v51 = vpop.f32.mrf.mxu2 }
 0x1ae   :  { %v399_v52 = vadd.f32 %v398_v51, %v385_v50  ;;  %v372_v53 = vpop.f32.mrf.mxu0  ;;  %v386_v55 = vpop.f32.mrf.mxu1 }
 0x1af   :  { %v373_v54 = vadd.f32 %v536_v29, %v372_v53 }
 0x1b0   :  { %404 = vst.msk [vmem:[%s799_s5] sm:$0xff] %vm403_vm7, %v399_v52 }
 0x1b1   :  { %v387_v56 = vadd.f32 %v386_v55, %v373_v54 }
 0x1b5   :  { %v400_v57 = vpop.f32.mrf.mxu2 }
 0x1b6   :  { %v401_v58 = vadd.f32 %v400_v57, %v387_v56 }
 0x1b8   :  { %405 = vst.msk [vmem:[%s799_s5 + $0x8] sm:$0xff] %vm403_vm7, %v401_v58 }
 0x1b9   :  { %410 = vsyncpa [#allocation3], 1 }
 0x1ba   :  { %411 = vsyncpa [#allocation5], 1 }

// kernel: cnn_perceiver_forward.15
= control target key start
LH: loop header
LB: loop body
LE: loop exit
PB: predicated region body
PF: predicated region fallthrough
CT: control target
= control target key end

     0   :  { %10 = vsyncpa [#allocation3], 0  ;;  %s695_s0 = inlined_call_operand.vmem [shape: f32[8,384], index: 0, kind: input, shape index: {}]   ;;  %s696_s1 = inlined_call_operand.hbm [shape: f32[1,384], index: 1, kind: input, shape index: {}]   ;;  %s697_s2 = inlined_call_operand.hbm [shape: f32[1,384], index: 2, kind: input, shape index: {}]   ;;  %s698_s3 = inlined_call_operand.hbm [shape: bf16[384,128], index: 3, kind: input, shape index: {}]   ;;  %s699_s4 = inlined_call_operand.hbm [shape: f32[1,128], index: 4, kind: input, shape index: {}]   ;;  %s700_s5 = inlined_call_operand.vmem [shape: f32[8,128], index: 5, kind: output, shape index: {}]  }
   0x1   :  { %11 = vsyncpa [#allocation5], 0  ;;  %s31_s20 = sshll.u32 %s697_s2, 4  ;;  %s32_s20 = int_to_ptr.hbm [resolvable:$true] %s31_s20 }
   0x2   :  { %12 = vsyncpa [#allocation8], 0  ;;  %s619_s21 = smov [#allocation4]   ;;  %s20_s25 = sshll.u32 %s696_s1, 4  ;;  %s21_s25 = int_to_ptr.hbm [resolvable:$true] %s20_s25 }
   0x3   :  { %s33_s22 = sshll.u32 %s619_s21, 4  ;;  %s620_s26 = smov [#allocation2]   ;;  %s34_s22 = int_to_ptr.vmem [resolvable:$true] %s33_s22 }
   0x4   :  { %36 = dma.hbm_to_vmem [thread:$0]  %s32_s20, 48, %s34_s22, [#allocation5]  }
   0x5   :  { %s22_s27 = sshll.u32 %s620_s26, 4  ;;  %s41_s30 = sshll.u32 %s698_s3, 4  ;;  %s23_s27 = int_to_ptr.vmem [resolvable:$true] %s22_s27  ;;  %s42_s30 = int_to_ptr.hbm [resolvable:$true] %s41_s30 }
   0x6   :  { %25 = dma.hbm_to_vmem [thread:$0]  %s21_s25, 48, %s23_s27, [#allocation3]  }
   0x7   :  { %s621_s2 = smov [#allocation6]   ;;  %s55_s9 = sshll.u32 %s699_s4, 4  ;;  %s56_s9 = int_to_ptr.hbm [resolvable:$true] %s55_s9 }
   0x8   :  { %s43_s6 = sshll.u32 %s621_s2, 4  ;;  %s622_s10 = smov 64   ;;  %s44_s6 = int_to_ptr.vmem [resolvable:$true] %s43_s6 }
   0x9   :  { %s623_s1 = smov 4   ;;  %s624_s11 = smov [#allocation7]  }
   0xa   :  { %49 = dma.hbm_to_vmem [thread:$0]  %s42_s30, 3072, %s44_s6, [#allocation5], %s622_s10, %s622_s10, %s623_s1  }
   0xb   :  { %s57_s12 = sshll.u32 %s624_s11, 4  ;;  %s58_s12 = int_to_ptr.vmem [resolvable:$true] %s57_s12 }
   0xc   :  { %60 = dma.hbm_to_vmem [thread:$0]  %s56_s9, 16, %s58_s12, [#allocation8]  }
   0xd   :  { %613 = dma.done.wait [#allocation3], 48  }
   0xe   :  { %614 = vsyncadd [#allocation3], 4294967248 }
   0xf   :  { %615 = dma.done.wait [#allocation5], 3120  }
  0x10   :  { %616 = vsyncadd [#allocation5], 4294964176 }
  0x11   :  { %617 = dma.done.wait [#allocation8], 16  }
  0x12   :  { %618 = vsyncadd [#allocation8], 4294967280  ;;  %v77_v0 = vld [vmem:[%s695_s0] sm:$0xff]  ;;  %v78_v1 = vld [vmem:[%s695_s0 + $0x8] sm:$0xff]  ;;  %v625_v5 = vmov 384.0  }
  0x13   :  { %v79_v2 = vld [vmem:[%s695_s0 + $0x10] sm:$0xff]  ;;  %v80_v3 = vadd.f32 %v78_v1, %v77_v0  ;;  %513 = vrcp.f32 %v625_v5  ;;  %v488_v7 = vld [vmem:[#allocation6 + $0x38] sm:$0xff]  ;;  %v487_v25 = vld [vmem:[#allocation6 + $0x30] sm:$0xff] }
  0x14   :  { %v496_v8 = vld [vmem:[#allocation6 + $0x78] sm:$0xff]  ;;  %338 = vmatpush.bf16.msra.mxu0 %v488_v7  ;;  %v495_v26 = vld [vmem:[#allocation6 + $0x70] sm:$0xff]  ;;  %v486_v28 = vld [vmem:[#allocation6 + $0x28] sm:$0xff] }
  0x15   :  { %v81_v4 = vadd.f32 %v80_v3, %v79_v2  ;;  %v504_v9 = vld [vmem:[#allocation6 + $0xb8] sm:$0xff]  ;;  %351 = vmatpush.bf16.msra.mxu1 %v496_v8  ;;  %v503_v27 = vld [vmem:[#allocation6 + $0xb0] sm:$0xff]  ;;  %v494_v29 = vld [vmem:[#allocation6 + $0x68] sm:$0xff] }
  0x16   :  { %364 = vmatpush.bf16.msra.mxu2 %v504_v9  ;;  %v502_v30 = vld [vmem:[#allocation6 + $0xa8] sm:$0xff]  ;;  %v485_v31 = vld [vmem:[#allocation6 + $0x20] sm:$0xff]  ;;  %v484_v34 = vld [vmem:[#allocation6 + $0x18] sm:$0xff] }
  0x17   :  { %82 = vadd.xlane.f32.xlu0 %v81_v4  ;;  %v493_v32 = vld [vmem:[#allocation6 + $0x60] sm:$0xff]  ;;  %v492_v35 = vld [vmem:[#allocation6 + $0x58] sm:$0xff]  ;;  %v483_v37 = vld [vmem:[#allocation6 + $0x10] sm:$0xff] }
  0x18   :  { %339 = vmatpush.bf16.msra.mxu0 %v487_v25  ;;  %v501_v33 = vld [vmem:[#allocation6 + $0xa0] sm:$0xff]  ;;  %v500_v36 = vld [vmem:[#allocation6 + $0x98] sm:$0xff]  ;;  %v491_v38 = vld [vmem:[#allocation6 + $0x50] sm:$0xff] }
  0x19   :  { %v514_v6 = vpop.eup %513  ;;  %352 = vmatpush.bf16.msra.mxu1 %v495_v26  ;;  %v499_v39 = vld [vmem:[#allocation6 + $0x90] sm:$0xff]  ;;  %v482_v40 = vld [vmem:[#allocation6 + $0x8] sm:$0xff]  ;;  %v481_v43 = vld [vmem:[#allocation6] sm:$0xff] }
  0x1a   :  { %v85_v10 = vmul.f32 384.0, %v514_v6  ;;  %vm89_vm0 = vweird.f32 %v514_v6  ;;  %365 = vmatpush.bf16.msra.mxu2 %v503_v27  ;;  %v490_v41 = vld [vmem:[#allocation6 + $0x48] sm:$0xff]  ;;  %v489_v44 = vld [vmem:[#allocation6 + $0x40] sm:$0xff]  ;;  %v117_v54 = vld [vmem:[#allocation2] sm:$0x7] }
  0x1b   :  { %v498_v42 = vld [vmem:[#allocation6 + $0x88] sm:$0xff]  ;;  %v497_v45 = vld [vmem:[#allocation6 + $0x80] sm:$0xff]  ;;  %v128_v55 = vld [vmem:[#allocation4] sm:$0x7]  ;;  %v119_v57 = vperm.slane %v117_v54, 0  ;;  %v120_v58 = vperm.slane %v117_v54, 1 }
  0x1c   :  { %v86_v11 = vsub.f32 1.0, %v85_v10  ;;  %340 = vmatpush.bf16.msra.mxu0 %v486_v28  ;;  %v121_v59 = vperm.slane %v117_v54, 2  ;;  %v130_v61 = vperm.slane %v128_v55, 0  ;;  %v131_v62 = vperm.slane %v128_v55, 1 }
  0x1d   :  { %353 = vmatpush.bf16.msra.mxu1 %v494_v29 }
  0x1e   :  { %v87_v12 = vmul.f32 %v514_v6, %v86_v11  ;;  %366 = vmatpush.bf16.msra.mxu2 %v502_v30 }
  0x20   :  { %v88_v13 = vadd.f32 %v514_v6, %v87_v12  ;;  %341 = vmatpush.bf16.msra.mxu0 %v485_v31  ;;  %v512_v12 = vld [vmem:[#allocation7] ss:$0 sm:$0xff] }
  0x21   :  { %354 = vmatpush.bf16.msra.mxu1 %v493_v32 }
  0x22   :  { %v90_v14 = vsel %vm89_vm0, %v514_v6, %v88_v13  ;;  %367 = vmatpush.bf16.msra.mxu2 %v501_v33 }
  0x24   :  { %342 = vmatpush.bf16.msra.mxu0 %v484_v34 }
  0x25   :  { %355 = vmatpush.bf16.msra.mxu1 %v492_v35 }
  0x26   :  { %368 = vmatpush.bf16.msra.mxu2 %v500_v36 }
  0x28   :  { %343 = vmatpush.bf16.msra.mxu0 %v483_v37 }
  0x29   :  { %356 = vmatpush.bf16.msra.mxu1 %v491_v38 }
  0x2a   :  { %369 = vmatpush.bf16.msra.mxu2 %v499_v39 }
  0x2c   :  { %344 = vmatpush.bf16.msra.mxu0 %v482_v40 }
  0x2d   :  { %357 = vmatpush.bf16.msra.mxu1 %v490_v41 }
  0x2e   :  { %370 = vmatpush.bf16.msra.mxu2 %v498_v42 }
  0x30   :  { %345 = vmatpush.bf16.msra.mxu0 %v481_v43 }
  0x31   :  { %358 = vmatpush.bf16.msra.mxu1 %v489_v44 }
  0x32   :  { %371 = vmatpush.bf16.msra.mxu2 %v497_v45 }
  0x8a   :  { %v83_v15 = vpop.xlane.xlu0 %82 }
  0x8b   :  { %v91_v16 = vmul.f32 %v90_v14, %v83_v15 }
  0x8d   :  { %v677_v17 = vsub.f32 %v77_v0, %v91_v16  ;;  %v679_v18 = vsub.f32 %v78_v1, %v91_v16  ;;  %v681_v19 = vsub.f32 %v79_v2, %v91_v16  ;;  %v132_v2 = vperm.slane %v128_v55, 2 }
  0x8f   :  { %v95_v20 = vmul.f32 %v677_v17, %v677_v17  ;;  %v96_v21 = vmul.f32 %v679_v18, %v679_v18  ;;  %v97_v22 = vmul.f32 %v681_v19, %v681_v19 }
  0x91   :  { %v98_v23 = vadd.f32 %v96_v21, %v95_v20 }
  0x93   :  { %v99_v24 = vadd.f32 %v98_v23, %v97_v22 }
  0x95   :  { %100 = vadd.xlane.f32.xlu0 %v99_v24 }
 0x108   :  { %v101_v46 = vpop.xlane.xlu0 %100 }
 0x109   :  { %v102_v47 = vmul.f32 %v101_v46, %v90_v14 }
 0x10b   :  { %v103_v48 = vadd.f32 1e-05, %v102_v47 }
 0x10d   :  { %515 = vrsqrt.f32 %v103_v48  ;;  %vm110_vm2 = vweird.f32 %v103_v48 }
 0x113   :  { %v516_v49 = vpop.eup %515 }
 0x114   :  { %v105_v50 = vmul.f32 %v516_v49, %v103_v48  ;;  %vm111_vm1 = vweird.f32 %v516_v49 }
 0x115   :  { %vm112_vm3 = vmor %vm110_vm2, %vm111_vm1 }
 0x116   :  { %v106_v51 = vmul.f32 %v516_v49, %v105_v50 }
 0x118   :  { %v107_v52 = vmul.f32 0.5, %v106_v51 }
 0x11a   :  { %v108_v53 = vsub.f32 1.5, %v107_v52 }
 0x11c   :  { %v109_v56 = vmul.f32 %v516_v49, %v108_v53 }
 0x11e   :  { %v113_v60 = vsel %vm112_vm3, %v516_v49, %v109_v56 }
 0x11f   :  { %v114_v63 = vmul.f32 %v113_v60, %v677_v17  ;;  %v115_v0 = vmul.f32 %v113_v60, %v679_v18  ;;  %v116_v1 = vmul.f32 %v113_v60, %v681_v19 }
 0x121   :  { %v125_v3 = vmul.f32 %v119_v57, %v114_v63  ;;  %v126_v4 = vmul.f32 %v120_v58, %v115_v0  ;;  %v127_v5 = vmul.f32 %v121_v59, %v116_v1 }
 0x123   :  { %v136_v6 = vadd.f32 %v130_v61, %v125_v3  ;;  %v137_v7 = vadd.f32 %v131_v62, %v126_v4  ;;  %v138_v8 = vadd.f32 %v132_v2, %v127_v5 }
 0x125   :  { %v139_v9 = vpack.c.bf16 %v136_v6, %v136_v6  ;;  %v140_v10 = vpack.c.bf16 %v137_v7, %v137_v7  ;;  %v141_v11 = vpack.c.bf16 %v138_v8, %v138_v8 }
 0x127   :  { %346 = vmatmul.bf16.vlgmr.msra.gmra.mxu0 %v139_v9  ;;  %359 = vmatmul.bf16.vlgmr.msra.gmra.mxu1 %v140_v10 }
 0x128   :  { %372 = vmatmul.bf16.vlgmr.msra.gmra.mxu2 %v141_v11 }
 0x1a4   :  { %v347_v13 = vpop.f32.mrf.mxu0  ;;  %v360_v14 = vpop.f32.mrf.mxu1 }
 0x1a5   :  { %v348_v15 = vadd.f32 %v512_v12, %v347_v13 }
 0x1a7   :  { %v361_v16 = vadd.f32 %v360_v14, %v348_v15 }
 0x1ab   :  { %v373_v17 = vpop.f32.mrf.mxu2 }
 0x1ac   :  { %v374_v18 = vadd.f32 %v373_v17, %v361_v16  ;;  %v349_v19 = vpop.f32.mrf.mxu0  ;;  %v362_v20 = vpop.f32.mrf.mxu1 }
 0x1ae   :  { %377 = vst [vmem:[%s700_s5] sm:$0xff] %v374_v18 }
 0x1b3   :  { %v375_v21 = vpop.f32.mrf.mxu2 }
 0x1b4   :  { %382 = vsyncpa [#allocation3], 1 }
 0x1b5   :  { %383 = vsyncpa [#allocation5], 1 }
 0x1b6   :  { %384 = vsyncpa [#allocation8], 1 }

// kernel: cnn_perceiver_forward.13
= control target key start
LH: loop header
LB: loop body
LE: loop exit
PB: predicated region body
PF: predicated region fallthrough
CT: control target
= control target key end

     0   :  { %10 = vsyncpa [#allocation3], 0  ;;  %s2299_s0 = inlined_call_operand.vmem [shape: f32[8,768], index: 0, kind: input, shape index: {}]   ;;  %s2300_s1 = inlined_call_operand.hbm [shape: bf16[768,384], index: 1, kind: input, shape index: {}]   ;;  %s2301_s2 = inlined_call_operand.hbm [shape: f32[1,384], index: 2, kind: input, shape index: {}]   ;;  %s2302_s3 = inlined_call_operand.hbm [shape: f32[1,384], index: 3, kind: input, shape index: {}]   ;;  %s2303_s4 = inlined_call_operand.hbm [shape: f32[1,384], index: 4, kind: input, shape index: {}]   ;;  %s2304_s5 = inlined_call_operand.vmem [shape: f32[8,384], index: 5, kind: output, shape index: {}]  }
   0x1   :  { %11 = vsyncpa [#allocation5], 0  ;;  %s33_s20 = sshll.u32 %s2301_s2, 4  ;;  %s34_s20 = int_to_ptr.hbm [resolvable:$true] %s33_s20 }
   0x2   :  { %12 = vsyncpa [#allocation8], 0  ;;  %s2193_s21 = smov [#allocation4]   ;;  %s19_s25 = sshll.u32 %s2300_s1, 4  ;;  %s20_s25 = int_to_ptr.hbm [resolvable:$true] %s19_s25 }
   0x3   :  { %s35_s22 = sshll.u32 %s2193_s21, 4  ;;  %s2194_s26 = smov [#allocation2]   ;;  %s36_s22 = int_to_ptr.vmem [resolvable:$true] %s35_s22 }
   0x4   :  { %38 = dma.hbm_to_vmem [thread:$0]  %s34_s20, 48, %s36_s22, [#allocation5]  }
   0x5   :  { %s21_s27 = sshll.u32 %s2194_s26, 4  ;;  %s2195_s28 = smov 192   ;;  %s22_s27 = int_to_ptr.vmem [resolvable:$true] %s21_s27 }
   0x6   :  { %s2196_s29 = smov 12   ;;  %s44_s2 = sshll.u32 %s2302_s3, 4  ;;  %s45_s2 = int_to_ptr.hbm [resolvable:$true] %s44_s2 }
   0x7   :  { %27 = dma.hbm_to_vmem [thread:$0]  %s20_s25, 18432, %s22_s27, [#allocation3], %s2195_s28, %s2195_s28, %s2196_s29  }
   0x8   :  { %s2197_s7 = smov [#allocation6]   ;;  %s55_s1 = sshll.u32 %s2303_s4, 4  ;;  %s56_s1 = int_to_ptr.hbm [resolvable:$true] %s55_s1 }
   0x9   :  { %s46_s8 = sshll.u32 %s2197_s7, 4  ;;  %s2198_s11 = smov [#allocation7]   ;;  %s47_s8 = int_to_ptr.vmem [resolvable:$true] %s46_s8 }
   0xa   :  { %49 = dma.hbm_to_vmem [thread:$0]  %s45_s2, 48, %s47_s8, [#allocation5]  }
   0xb   :  { %s57_s12 = sshll.u32 %s2198_s11, 4  ;;  %s58_s12 = int_to_ptr.vmem [resolvable:$true] %s57_s12 }
   0xc   :  { %60 = dma.hbm_to_vmem [thread:$0]  %s56_s1, 48, %s58_s12, [#allocation8]  }
   0xd   :  { %2187 = dma.done.wait [#allocation3], 18432  }
   0xe   :  { %2188 = vsyncadd [#allocation3], 4294948864 }
   0xf   :  { %2189 = dma.done.wait [#allocation5], 96  }
  0x10   :  { %2190 = vsyncadd [#allocation5], 4294967200 }
  0x11   :  { %2191 = dma.done.wait [#allocation8], 48  }
  0x12   :  { %2192 = vsyncadd [#allocation8], 4294967248  ;;  %v1446_v0 = vld [vmem:[#allocation2 + $0xa8] sm:$0xf]  ;;  %v1958_v1 = vld [vmem:[#allocation2 + $0xb0] sm:$0xf0] }
  0x13   :  { %v1542_v2 = vld [vmem:[#allocation2 + $0x168] sm:$0xf]  ;;  %v1447_v3 = vor.u32 %v1958_v1, %v1446_v0  ;;  %v1982_v4 = vld [vmem:[#allocation2 + $0x170] sm:$0xf0]  ;;  %v1434_v11 = vld [vmem:[#allocation2 + $0x90] sm:$0xf] }
  0x14   :  { %v1638_v5 = vld [vmem:[#allocation2 + $0x228] sm:$0xf]  ;;  %v2006_v6 = vld [vmem:[#allocation2 + $0x230] sm:$0xf0]  ;;  %v1543_v7 = vor.u32 %v1982_v4, %v1542_v2  ;;  %v1955_v13 = vld [vmem:[#allocation2 + $0x98] sm:$0xf0] }
  0x15   :  { %v1639_v8 = vor.u32 %v2006_v6, %v1638_v5  ;;  %v1734_v9 = vld [vmem:[#allocation2 + $0x2e8] sm:$0xf]  ;;  %v2030_v10 = vld [vmem:[#allocation2 + $0x2f0] sm:$0xf0]  ;;  %1057 = vmatpush.bf16.msra.mxu0 %v1447_v3  ;;  %v1530_v14 = vld [vmem:[#allocation2 + $0x150] sm:$0xf]  ;;  %v1435_v16 = vor.u32 %v1955_v13, %v1434_v11 }
  0x16   :  { %v1735_v12 = vor.u32 %v2030_v10, %v1734_v9  ;;  %v1979_v15 = vld [vmem:[#allocation2 + $0x158] sm:$0xf0]  ;;  %1070 = vmatpush.bf16.msra.mxu1 %v1543_v7  ;;  %v1626_v18 = vld [vmem:[#allocation2 + $0x210] sm:$0xf]  ;;  %v1422_v23 = vld [vmem:[#allocation2 + $0x78] sm:$0xf] }
  0x17   :  { %1083 = vmatpush.bf16.msra.mxu2 %v1639_v8  ;;  %v1531_v17 = vor.u32 %v1979_v15, %v1530_v14  ;;  %v2003_v19 = vld [vmem:[#allocation2 + $0x218] sm:$0xf0]  ;;  %v1722_v20 = vld [vmem:[#allocation2 + $0x2d0] sm:$0xf]  ;;  %v1952_v24 = vld [vmem:[#allocation2 + $0x80] sm:$0xf0] }
  0x18   :  { %1096 = vmatpush.bf16.msra.mxu3 %v1735_v12  ;;  %v1627_v21 = vor.u32 %v2003_v19, %v1626_v18  ;;  %v2027_v22 = vld [vmem:[#allocation2 + $0x2d8] sm:$0xf0]  ;;  %v1518_v26 = vld [vmem:[#allocation2 + $0x138] sm:$0xf]  ;;  %v1976_v27 = vld [vmem:[#allocation2 + $0x140] sm:$0xf0]  ;;  %v1423_v29 = vor.u32 %v1952_v24, %v1422_v23 }
  0x19   :  { %v1723_v25 = vor.u32 %v2027_v22, %v1722_v20  ;;  %v1614_v28 = vld [vmem:[#allocation2 + $0x1f8] sm:$0xf]  ;;  %1058 = vmatpush.bf16.msra.mxu0 %v1435_v16  ;;  %v2000_v30 = vld [vmem:[#allocation2 + $0x200] sm:$0xf0]  ;;  %v1519_v33 = vor.u32 %v1976_v27, %v1518_v26  ;;  %v1410_v35 = vld [vmem:[#allocation2 + $0x60] sm:$0xf] }
  0x1a   :  { %v1710_v31 = vld [vmem:[#allocation2 + $0x2b8] sm:$0xf]  ;;  %v2024_v32 = vld [vmem:[#allocation2 + $0x2c0] sm:$0xf0]  ;;  %1071 = vmatpush.bf16.msra.mxu1 %v1531_v17  ;;  %v1615_v34 = vor.u32 %v2000_v30, %v1614_v28  ;;  %v1949_v36 = vld [vmem:[#allocation2 + $0x68] sm:$0xf0] }
  0x1b   :  { %1084 = vmatpush.bf16.msra.mxu2 %v1627_v21  ;;  %v1506_v37 = vld [vmem:[#allocation2 + $0x120] sm:$0xf]  ;;  %v1711_v38 = vor.u32 %v2024_v32, %v1710_v31  ;;  %v1973_v39 = vld [vmem:[#allocation2 + $0x128] sm:$0xf0]  ;;  %v1411_v44 = vor.u32 %v1949_v36, %v1410_v35  ;;  %v1398_v47 = vld [vmem:[#allocation2 + $0x48] sm:$0xf] }
  0x1c   :  { %1097 = vmatpush.bf16.msra.mxu3 %v1723_v25  ;;  %v1602_v40 = vld [vmem:[#allocation2 + $0x1e0] sm:$0xf]  ;;  %v1997_v41 = vld [vmem:[#allocation2 + $0x1e8] sm:$0xf0]  ;;  %v1507_v45 = vor.u32 %v1973_v39, %v1506_v37  ;;  %v1946_v48 = vld [vmem:[#allocation2 + $0x50] sm:$0xf0] }
  0x1d   :  { %v1698_v42 = vld [vmem:[#allocation2 + $0x2a0] sm:$0xf]  ;;  %v2021_v43 = vld [vmem:[#allocation2 + $0x2a8] sm:$0xf0]  ;;  %1059 = vmatpush.bf16.msra.mxu0 %v1423_v29  ;;  %v1603_v46 = vor.u32 %v1997_v41, %v1602_v40  ;;  %v1494_v49 = vld [vmem:[#allocation2 + $0x108] sm:$0xf]  ;;  %v1399_v56 = vor.u32 %v1946_v48, %v1398_v47 }
  0x1e   :  { %1072 = vmatpush.bf16.msra.mxu1 %v1519_v33  ;;  %v1699_v50 = vor.u32 %v2021_v43, %v1698_v42  ;;  %v1970_v51 = vld [vmem:[#allocation2 + $0x110] sm:$0xf0]  ;;  %v1590_v52 = vld [vmem:[#allocation2 + $0x1c8] sm:$0xf]  ;;  %v1386_v59 = vld [vmem:[#allocation2 + $0x30] sm:$0xf] }
  0x1f   :  { %1085 = vmatpush.bf16.msra.mxu2 %v1615_v34  ;;  %v1994_v53 = vld [vmem:[#allocation2 + $0x1d0] sm:$0xf0]  ;;  %v1686_v54 = vld [vmem:[#allocation2 + $0x288] sm:$0xf]  ;;  %v1495_v57 = vor.u32 %v1970_v51, %v1494_v49  ;;  %v1943_v60 = vld [vmem:[#allocation2 + $0x38] sm:$0xf0] }
  0x20   :  { %1098 = vmatpush.bf16.msra.mxu3 %v1711_v38  ;;  %v2018_v55 = vld [vmem:[#allocation2 + $0x290] sm:$0xf0]  ;;  %v1591_v58 = vor.u32 %v1994_v53, %v1590_v52  ;;  %v1482_v61 = vld [vmem:[#allocation2 + $0xf0] sm:$0xf]  ;;  %v1967_v63 = vld [vmem:[#allocation2 + $0xf8] sm:$0xf0]  ;;  %v1387_v4 = vor.u32 %v1943_v60, %v1386_v59 }
  0x21   :  { %1060 = vmatpush.bf16.msra.mxu0 %v1411_v44  ;;  %v1687_v62 = vor.u32 %v2018_v55, %v1686_v54  ;;  %v1578_v0 = vld [vmem:[#allocation2 + $0x1b0] sm:$0xf]  ;;  %v1991_v1 = vld [vmem:[#allocation2 + $0x1b8] sm:$0xf0]  ;;  %v1483_v5 = vor.u32 %v1967_v63, %v1482_v61  ;;  %v1374_v7 = vld [vmem:[#allocation2 + $0x18] sm:$0xf] }
  0x22   :  { %1073 = vmatpush.bf16.msra.mxu1 %v1507_v45  ;;  %v1674_v2 = vld [vmem:[#allocation2 + $0x270] sm:$0xf]  ;;  %v2015_v3 = vld [vmem:[#allocation2 + $0x278] sm:$0xf0]  ;;  %v1579_v6 = vor.u32 %v1991_v1, %v1578_v0  ;;  %v1940_v8 = vld [vmem:[#allocation2 + $0x20] sm:$0xf0] }
  0x23   :  { %1086 = vmatpush.bf16.msra.mxu2 %v1603_v46  ;;  %v1470_v9 = vld [vmem:[#allocation2 + $0xd8] sm:$0xf]  ;;  %v1675_v10 = vor.u32 %v2015_v3, %v1674_v2  ;;  %v1964_v11 = vld [vmem:[#allocation2 + $0xe0] sm:$0xf0]  ;;  %v1375_v16 = vor.u32 %v1940_v8, %v1374_v7  ;;  %v1362_v17 = vld [vmem:[#allocation2] sm:$0xf] }
  0x24   :  { %1099 = vmatpush.bf16.msra.mxu3 %v1699_v50  ;;  %v1566_v12 = vld [vmem:[#allocation2 + $0x198] sm:$0xf]  ;;  %v1988_v13 = vld [vmem:[#allocation2 + $0x1a0] sm:$0xf0]  ;;  %v1937_v18 = vld [vmem:[#allocation2 + $0x8] sm:$0xf0]  ;;  %v1471_v19 = vor.u32 %v1964_v11, %v1470_v9 }
  0x25   :  { %1061 = vmatpush.bf16.msra.mxu0 %v1399_v56  ;;  %v1662_v14 = vld [vmem:[#allocation2 + $0x258] sm:$0xf]  ;;  %v2012_v15 = vld [vmem:[#allocation2 + $0x260] sm:$0xf0]  ;;  %v1567_v20 = vor.u32 %v1988_v13, %v1566_v12  ;;  %v1458_v21 = vld [vmem:[#allocation2 + $0xc0] sm:$0xf]  ;;  %v1363_v31 = vor.u32 %v1937_v18, %v1362_v17 }
  0x26   :  { %1074 = vmatpush.bf16.msra.mxu1 %v1495_v57  ;;  %v1961_v22 = vld [vmem:[#allocation2 + $0xc8] sm:$0xf0]  ;;  %v1554_v23 = vld [vmem:[#allocation2 + $0x180] sm:$0xf]  ;;  %v1663_v24 = vor.u32 %v2012_v15, %v1662_v14  ;;  %v1830_v26 = vld [vmem:[#allocation2 + $0x3a8] sm:$0xf] }
  0x27   :  { %1087 = vmatpush.bf16.msra.mxu2 %v1591_v58  ;;  %v1985_v25 = vld [vmem:[#allocation2 + $0x188] sm:$0xf0]  ;;  %v2054_v27 = vld [vmem:[#allocation2 + $0x3b0] sm:$0xf0]  ;;  %v1926_v28 = vld [vmem:[#allocation2 + $0x468] sm:$0xf]  ;;  %v1459_v35 = vor.u32 %v1961_v22, %v1458_v21 }
  0x28   :  { %1100 = vmatpush.bf16.msra.mxu3 %v1687_v62  ;;  %v2078_v29 = vld [vmem:[#allocation2 + $0x470] sm:$0xf0]  ;;  %v1957_v30 = vld [vmem:[#allocation2 + $0xac] sm:$0xf]  ;;  %v1448_v32 = vld [vmem:[#allocation2 + $0xb4] sm:$0xf0]  ;;  %v1555_v36 = vor.u32 %v1985_v25, %v1554_v23  ;;  %v1831_v39 = vor.u32 %v2054_v27, %v1830_v26 }
  0x29   :  { %1062 = vmatpush.bf16.msra.mxu0 %v1387_v4  ;;  %v1650_v33 = vld [vmem:[#allocation2 + $0x240] sm:$0xf]  ;;  %v2009_v34 = vld [vmem:[#allocation2 + $0x248] sm:$0xf0]  ;;  %v1544_v38 = vld [vmem:[#allocation2 + $0x174] sm:$0xf0]  ;;  %v1927_v40 = vor.u32 %v2078_v29, %v1926_v28  ;;  %v1451_v42 = vor.u32 %v1957_v30, %v1448_v32 }
  0x2a   :  { %1075 = vmatpush.bf16.msra.mxu1 %v1483_v5  ;;  %v1981_v37 = vld [vmem:[#allocation2 + $0x16c] sm:$0xf]  ;;  %v1818_v41 = vld [vmem:[#allocation2 + $0x390] sm:$0xf]  ;;  %v1651_v43 = vor.u32 %v2009_v34, %v1650_v33  ;;  %v2051_v44 = vld [vmem:[#allocation2 + $0x398] sm:$0xf0] }
  0x2b   :  { %1088 = vmatpush.bf16.msra.mxu2 %v1579_v6  ;;  %v1914_v45 = vld [vmem:[#allocation2 + $0x450] sm:$0xf]  ;;  %v2075_v46 = vld [vmem:[#allocation2 + $0x458] sm:$0xf0]  ;;  %v1547_v47 = vor.u32 %v1981_v37, %v1544_v38  ;;  %v1954_v48 = vld [vmem:[#allocation2 + $0x94] sm:$0xf]  ;;  %v1819_v52 = vor.u32 %v2051_v44, %v1818_v41 }
  0x2c   :  { %1101 = vmatpush.bf16.msra.mxu3 %v1675_v10  ;;  %v1436_v49 = vld [vmem:[#allocation2 + $0x9c] sm:$0xf0]  ;;  %v1978_v50 = vld [vmem:[#allocation2 + $0x154] sm:$0xf]  ;;  %v1915_v53 = vor.u32 %v2075_v46, %v1914_v45  ;;  %v1806_v54 = vld [vmem:[#allocation2 + $0x378] sm:$0xf] }
  0x2d   :  { %1063 = vmatpush.bf16.msra.mxu0 %v1375_v16  ;;  %v1532_v51 = vld [vmem:[#allocation2 + $0x15c] sm:$0xf0]  ;;  %v1439_v55 = vor.u32 %v1954_v48, %v1436_v49  ;;  %v2048_v56 = vld [vmem:[#allocation2 + $0x380] sm:$0xf0]  ;;  %v1902_v57 = vld [vmem:[#allocation2 + $0x438] sm:$0xf] }
  0x2e   :  { %1076 = vmatpush.bf16.msra.mxu1 %v1471_v19  ;;  %v2072_v58 = vld [vmem:[#allocation2 + $0x440] sm:$0xf0]  ;;  %v1535_v59 = vor.u32 %v1978_v50, %v1532_v51  ;;  %v1951_v60 = vld [vmem:[#allocation2 + $0x7c] sm:$0xf]  ;;  %v1424_v61 = vld [vmem:[#allocation2 + $0x84] sm:$0xf0]  ;;  %v1807_v1 = vor.u32 %v2048_v56, %v1806_v54 }
  0x2f   :  { %1089 = vmatpush.bf16.msra.mxu2 %v1567_v20  ;;  %v1975_v62 = vld [vmem:[#allocation2 + $0x13c] sm:$0xf]  ;;  %v1520_v63 = vld [vmem:[#allocation2 + $0x144] sm:$0xf0]  ;;  %v77_v0 = vld [vmem:[%s2299_s0] sm:$0xff]  ;;  %v1903_v2 = vor.u32 %v2072_v58, %v1902_v57  ;;  %v1427_v6 = vor.u32 %v1951_v60, %v1424_v61 }
  0x30   :  { %1102 = vmatpush.bf16.msra.mxu3 %v1663_v24  ;;  %v1794_v3 = vld [vmem:[#allocation2 + $0x360] sm:$0xf]  ;;  %v2245_v4 = vpack.c.bf16 %v77_v0, %v77_v0  ;;  %v78_v5 = vld [vmem:[%s2299_s0 + $0x8] sm:$0xff]  ;;  %v1523_v11 = vor.u32 %v1975_v62, %v1520_v63  ;;  %v1948_v12 = vld [vmem:[#allocation2 + $0x64] sm:$0xf] }
  0x31   :  { %1064 = vmatpush.bf16.msra.mxu0 %v1363_v31  ;;  %v2045_v7 = vld [vmem:[#allocation2 + $0x368] sm:$0xf0]  ;;  %v1890_v8 = vld [vmem:[#allocation2 + $0x420] sm:$0xf]  ;;  %v2250_v10 = vpack.c.bf16 %v78_v5, %v78_v5  ;;  %v1412_v13 = vld [vmem:[#allocation2 + $0x6c] sm:$0xf0] }
  0x32   :  { %1077 = vmatpush.bf16.msra.mxu1 %v1459_v35  ;;  %v2069_v9 = vld [vmem:[#allocation2 + $0x428] sm:$0xf0]  ;;  %v1972_v14 = vld [vmem:[#allocation2 + $0x124] sm:$0xf]  ;;  %v1508_v15 = vld [vmem:[#allocation2 + $0x12c] sm:$0xf0]  ;;  %v1795_v17 = vor.u32 %v2045_v7, %v1794_v3  ;;  %v1415_v21 = vor.u32 %v1948_v12, %v1412_v13 }
  0x33   :  { %1090 = vmatpush.bf16.msra.mxu2 %v1555_v36  ;;  %v79_v16 = vld [vmem:[%s2299_s0 + $0x10] sm:$0xff]  ;;  %v1891_v18 = vor.u32 %v2069_v9, %v1890_v8  ;;  %v1782_v19 = vld [vmem:[#allocation2 + $0x348] sm:$0xf]  ;;  %v1511_v25 = vor.u32 %v1972_v14, %v1508_v15  ;;  %v1945_v26 = vld [vmem:[#allocation2 + $0x4c] sm:$0xf] }
  0x34   :  { %1103 = vmatpush.bf16.msra.mxu3 %v1651_v43  ;;  %1065 = vmatmul.bf16.vlgmr.msra.gmra.mxu0 %v2245_v4  ;;  %v2257_v20 = vpack.c.bf16 %v79_v16, %v79_v16  ;;  %v2042_v22 = vld [vmem:[#allocation2 + $0x350] sm:$0xf0]  ;;  %v1878_v23 = vld [vmem:[#allocation2 + $0x408] sm:$0xf]  ;;  %v1400_v27 = vld [vmem:[#allocation2 + $0x54] sm:$0xf0] }
  0x35   :  { %1109 = vmatpush.bf16.msrb.mxu0 %v1831_v39  ;;  %1078 = vmatmul.bf16.vlgmr.msra.gmra.mxu1 %v2250_v10  ;;  %v2066_v24 = vld [vmem:[#allocation2 + $0x410] sm:$0xf0]  ;;  %v80_v28 = vld [vmem:[%s2299_s0 + $0x18] sm:$0xff]  ;;  %v1969_v29 = vld [vmem:[#allocation2 + $0x10c] sm:$0xf]  ;;  %v1783_v32 = vor.u32 %v2042_v22, %v1782_v19  ;;  %v1403_v35 = vor.u32 %v1945_v26, %v1400_v27 }
  0x36   :  { %1122 = vmatpush.bf16.msrb.mxu1 %v1927_v40  ;;  %1091 = vmatmul.bf16.vlgmr.msra.gmra.mxu2 %v2257_v20  ;;  %v1496_v30 = vld [vmem:[#allocation2 + $0x114] sm:$0xf0]  ;;  %v2263_v31 = vpack.c.bf16 %v80_v28, %v80_v28  ;;  %v1879_v33 = vor.u32 %v2066_v24, %v1878_v23  ;;  %v1770_v34 = vld [vmem:[#allocation2 + $0x330] sm:$0xf]  ;;  %v2039_v36 = vld [vmem:[#allocation2 + $0x338] sm:$0xf0] }
  0x37   :  { %1135 = vmatpush.bf16.msrb.mxu2 %v1451_v42  ;;  %v1866_v37 = vld [vmem:[#allocation2 + $0x3f0] sm:$0xf]  ;;  %v2063_v38 = vld [vmem:[#allocation2 + $0x3f8] sm:$0xf0]  ;;  %v1499_v39 = vor.u32 %v1969_v29, %v1496_v30  ;;  %v1942_v40 = vld [vmem:[#allocation2 + $0x34] sm:$0xf]  ;;  %v1771_v44 = vor.u32 %v2039_v36, %v1770_v34 }
  0x38   :  { %1148 = vmatpush.bf16.msrb.mxu3 %v1547_v47  ;;  %v1388_v41 = vld [vmem:[#allocation2 + $0x3c] sm:$0xf0]  ;;  %v1966_v42 = vld [vmem:[#allocation2 + $0xf4] sm:$0xf]  ;;  %v1867_v45 = vor.u32 %v2063_v38, %v1866_v37  ;;  %v1758_v46 = vld [vmem:[#allocation2 + $0x318] sm:$0xf] }
  0x39   :  { %1110 = vmatpush.bf16.msrb.mxu0 %v1819_v52  ;;  %1104 = vmatmul.bf16.vlgmr.msra.gmra.mxu3 %v2263_v31  ;;  %v1484_v43 = vld [vmem:[#allocation2 + $0xfc] sm:$0xf0]  ;;  %v1391_v47 = vor.u32 %v1942_v40, %v1388_v41  ;;  %v2036_v48 = vld [vmem:[#allocation2 + $0x320] sm:$0xf0]  ;;  %v1854_v49 = vld [vmem:[#allocation2 + $0x3d8] sm:$0xf] }
  0x3a   :  { %1123 = vmatpush.bf16.msrb.mxu1 %v1915_v53  ;;  %v2060_v50 = vld [vmem:[#allocation2 + $0x3e0] sm:$0xf0]  ;;  %v1487_v51 = vor.u32 %v1966_v42, %v1484_v43  ;;  %v1939_v52 = vld [vmem:[#allocation2 + $0x1c] sm:$0xf]  ;;  %v1376_v53 = vld [vmem:[#allocation2 + $0x24] sm:$0xf0]  ;;  %v1759_v56 = vor.u32 %v2036_v48, %v1758_v46 }
  0x3b   :  { %1136 = vmatpush.bf16.msrb.mxu2 %v1439_v55  ;;  %v1963_v54 = vld [vmem:[#allocation2 + $0xdc] sm:$0xf]  ;;  %v1472_v55 = vld [vmem:[#allocation2 + $0xe4] sm:$0xf0]  ;;  %v1855_v57 = vor.u32 %v2060_v50, %v1854_v49  ;;  %v1746_v58 = vld [vmem:[#allocation2 + $0x300] sm:$0xf]  ;;  %v1379_v61 = vor.u32 %v1939_v52, %v1376_v53 }
  0x3c   :  { %1149 = vmatpush.bf16.msrb.mxu3 %v1535_v59  ;;  %v2033_v59 = vld [vmem:[#allocation2 + $0x308] sm:$0xf0]  ;;  %v1842_v60 = vld [vmem:[#allocation2 + $0x3c0] sm:$0xf]  ;;  %v1936_v63 = vld [vmem:[#allocation2 + $0x4] sm:$0xf] }
  0x3d   :  { %1111 = vmatpush.bf16.msrb.mxu0 %v1807_v1  ;;  %v2057_v62 = vld [vmem:[#allocation2 + $0x3c8] sm:$0xf0]  ;;  %v1364_v0 = vld [vmem:[#allocation2 + $0xc] sm:$0xf0]  ;;  %v1475_v1 = vor.u32 %v1963_v54, %v1472_v55  ;;  %v1640_v3 = vld [vmem:[#allocation2 + $0x234] sm:$0xf0]  ;;  %v1747_v9 = vor.u32 %v2033_v59, %v1746_v58 }
  0x3e   :  { %1124 = vmatpush.bf16.msrb.mxu1 %v1903_v2  ;;  %v2005_v2 = vld [vmem:[#allocation2 + $0x22c] sm:$0xf]  ;;  %v1832_v8 = vld [vmem:[#allocation2 + $0x3b4] sm:$0xf0]  ;;  %v1960_v12 = vld [vmem:[#allocation2 + $0xc4] sm:$0xf]  ;;  %v1367_v15 = vor.u32 %v1936_v63, %v1364_v0 }
  0x3f   :  { %1137 = vmatpush.bf16.msrb.mxu2 %v1427_v6  ;;  %v2029_v5 = vld [vmem:[#allocation2 + $0x2ec] sm:$0xf]  ;;  %v1736_v6 = vld [vmem:[#allocation2 + $0x2f4] sm:$0xf0]  ;;  %v1460_v13 = vld [vmem:[#allocation2 + $0xcc] sm:$0xf0]  ;;  %v1643_v16 = vor.u32 %v2005_v2, %v1640_v3 }
  0x40   :  { %1150 = vmatpush.bf16.msrb.mxu3 %v1523_v11  ;;  %v2053_v7 = vld [vmem:[#allocation2 + $0x3ac] sm:$0xf]  ;;  %v1843_v11 = vor.u32 %v2057_v62, %v1842_v60  ;;  %v81_v14 = vld [vmem:[%s2299_s0 + $0x20] sm:$0xff]  ;;  %v2002_v23 = vld [vmem:[#allocation2 + $0x214] sm:$0xf]  ;;  %v1463_v26 = vor.u32 %v1960_v12, %v1460_v13 }
  0x41   :  { %1112 = vmatpush.bf16.msrb.mxu0 %v1795_v17  ;;  %v2077_v17 = vld [vmem:[#allocation2 + $0x46c] sm:$0xf]  ;;  %v1835_v22 = vor.u32 %v2053_v7, %v1832_v8  ;;  %v1628_v24 = vld [vmem:[#allocation2 + $0x21c] sm:$0xf0]  ;;  %v2050_v28 = vld [vmem:[#allocation2 + $0x394] sm:$0xf]  ;;  %v2272_v30 = vpack.c.bf16 %v81_v14, %v81_v14 }
  0x42   :  { %1125 = vmatpush.bf16.msrb.mxu1 %v1891_v18  ;;  %v1928_v18 = vld [vmem:[#allocation2 + $0x474] sm:$0xf0]  ;;  %v82_v19 = vld [vmem:[%s2299_s0 + $0x28] sm:$0xff]  ;;  %v1724_v27 = vld [vmem:[#allocation2 + $0x2dc] sm:$0xf0]  ;;  %v1631_v34 = vor.u32 %v2002_v23, %v1628_v24 }
  0x43   :  { %1138 = vmatpush.bf16.msrb.mxu2 %v1415_v21  ;;  %v1739_v21 = vor.u32 %v2029_v5, %v1736_v6  ;;  %v1820_v29 = vld [vmem:[#allocation2 + $0x39c] sm:$0xf0]  ;;  %v1616_v40 = vld [vmem:[#allocation2 + $0x204] sm:$0xf0]  ;;  %v2023_v41 = vld [vmem:[#allocation2 + $0x2bc] sm:$0xf] }
  0x44   :  { %1151 = vmatpush.bf16.msrb.mxu3 %v1511_v25  ;;  %v2026_v25 = vld [vmem:[#allocation2 + $0x2d4] sm:$0xf]  ;;  %v1916_v36 = vld [vmem:[#allocation2 + $0x45c] sm:$0xf0]  ;;  %v1823_v38 = vor.u32 %v2050_v28, %v1820_v29  ;;  %v1712_v42 = vld [vmem:[#allocation2 + $0x2c4] sm:$0xf0] }
  0x45   :  { %1113 = vmatpush.bf16.msrb.mxu0 %v1783_v32  ;;  %v1931_v32 = vor.u32 %v2077_v17, %v1928_v18  ;;  %v1727_v37 = vor.u32 %v2026_v25, %v1724_v27  ;;  %v2047_v43 = vld [vmem:[#allocation2 + $0x37c] sm:$0xf]  ;;  %v1904_v48 = vld [vmem:[#allocation2 + $0x444] sm:$0xf0]  ;;  %v1715_v49 = vor.u32 %v2023_v41, %v1712_v42  ;;  %v1604_v52 = vld [vmem:[#allocation2 + $0x1ec] sm:$0xf0] }
  0x46   :  { %1126 = vmatpush.bf16.msrb.mxu1 %v1879_v33  ;;  %v2274_v33 = vpack.c.bf16 %v82_v19, %v82_v19  ;;  %v2020_v53 = vld [vmem:[#allocation2 + $0x2a4] sm:$0xf]  ;;  %v1700_v54 = vld [vmem:[#allocation2 + $0x2ac] sm:$0xf0]  ;;  %v1993_v63 = vld [vmem:[#allocation2 + $0x1cc] sm:$0xf] }
  0x47   :  { %1139 = vmatpush.bf16.msrb.mxu2 %v1403_v35  ;;  %v2074_v35 = vld [vmem:[#allocation2 + $0x454] sm:$0xf]  ;;  %v2044_v55 = vld [vmem:[#allocation2 + $0x364] sm:$0xf]  ;;  %v1892_v60 = vld [vmem:[#allocation2 + $0x42c] sm:$0xf0] }
  0x48   :  { %1152 = vmatpush.bf16.msrb.mxu3 %v1499_v39  ;;  %v1999_v39 = vld [vmem:[#allocation2 + $0x1fc] sm:$0xf]  ;;  %v2068_v59 = vld [vmem:[#allocation2 + $0x424] sm:$0xf]  ;;  %v1592_v0 = vld [vmem:[#allocation2 + $0x1d4] sm:$0xf0] }
  0x49   :  { %1114 = vmatpush.bf16.msrb.mxu0 %v1771_v44  ;;  %v1808_v44 = vld [vmem:[#allocation2 + $0x384] sm:$0xf0]  ;;  %v1619_v46 = vor.u32 %v1999_v39, %v1616_v40  ;;  %v1688_v2 = vld [vmem:[#allocation2 + $0x294] sm:$0xf0]  ;;  %v2041_v3 = vld [vmem:[#allocation2 + $0x34c] sm:$0xf]  ;;  %v1895_v6 = vor.u32 %v2068_v59, %v1892_v60  ;;  %v1595_v7 = vor.u32 %v1993_v63, %v1592_v0 }
  0x4a   :  { %1127 = vmatpush.bf16.msrb.mxu1 %v1867_v45  ;;  %v1919_v45 = vor.u32 %v2074_v35, %v1916_v36  ;;  %v1811_v50 = vor.u32 %v2047_v43, %v1808_v44  ;;  %v1784_v5 = vld [vmem:[#allocation2 + $0x354] sm:$0xf0]  ;;  %v2065_v8 = vld [vmem:[#allocation2 + $0x40c] sm:$0xf]  ;;  %v1990_v13 = vld [vmem:[#allocation2 + $0x1b4] sm:$0xf] }
  0x4b   :  { %1140 = vmatpush.bf16.msrb.mxu2 %v1391_v47  ;;  %v2071_v47 = vld [vmem:[#allocation2 + $0x43c] sm:$0xf]  ;;  %v1787_v12 = vor.u32 %v2041_v3, %v1784_v5  ;;  %v1580_v14 = vld [vmem:[#allocation2 + $0x1bc] sm:$0xf0]  ;;  %v2038_v17 = vld [vmem:[#allocation2 + $0x334] sm:$0xf] }
  0x4c   :  { %1153 = vmatpush.bf16.msrb.mxu3 %v1487_v51  ;;  %v1996_v51 = vld [vmem:[#allocation2 + $0x1e4] sm:$0xf]  ;;  %v1772_v18 = vld [vmem:[#allocation2 + $0x33c] sm:$0xf0]  ;;  %v1568_v27 = vld [vmem:[#allocation2 + $0x1a4] sm:$0xf0] }
  0x4d   :  { %1115 = vmatpush.bf16.msrb.mxu0 %v1759_v56  ;;  %v1796_v56 = vld [vmem:[#allocation2 + $0x36c] sm:$0xf0]  ;;  %v1607_v58 = vor.u32 %v1996_v51, %v1604_v52  ;;  %v1868_v23 = vld [vmem:[#allocation2 + $0x3fc] sm:$0xf0]  ;;  %v1775_v25 = vor.u32 %v2038_v17, %v1772_v18  ;;  %v2011_v28 = vld [vmem:[#allocation2 + $0x25c] sm:$0xf] }
  0x4e   :  { %1128 = vmatpush.bf16.msrb.mxu1 %v1855_v57  ;;  %v1907_v57 = vor.u32 %v2071_v47, %v1904_v48  ;;  %v1799_v62 = vor.u32 %v2044_v55, %v1796_v56  ;;  %v1664_v29 = vld [vmem:[#allocation2 + $0x264] sm:$0xf0]  ;;  %v1984_v39 = vld [vmem:[#allocation2 + $0x184] sm:$0xf]  ;;  %v1556_v42 = vld [vmem:[#allocation2 + $0x18c] sm:$0xf0] }
  0x4f   :  { %1141 = vmatpush.bf16.msrb.mxu2 %v1379_v61  ;;  %v1703_v61 = vor.u32 %v2020_v53, %v1700_v54  ;;  %v1667_v40 = vor.u32 %v2011_v28, %v1664_v29  ;;  %v2008_v43 = vld [vmem:[#allocation2 + $0x244] sm:$0xf]  ;;  %v1652_v44 = vld [vmem:[#allocation2 + $0x24c] sm:$0xf0]  ;;  %v1983_v51 = vld [vmem:[#allocation2 + $0x178] sm:$0xf0]  ;;  %v1559_v52 = vor.u32 %v1984_v39, %v1556_v42 }
  0x50   :  { %1154 = vmatpush.bf16.msrb.mxu3 %v1475_v1  ;;  %v2017_v1 = vld [vmem:[#allocation2 + $0x28c] sm:$0xf]  ;;  %v1454_v47 = vld [vmem:[#allocation2 + $0xb0] sm:$0xf]  ;;  %v2056_v53 = vld [vmem:[#allocation2 + $0x3c4] sm:$0xf]  ;;  %v1655_v55 = vor.u32 %v2008_v43, %v1652_v44 }
  0x51   :  { %1116 = vmatpush.bf16.msrb.mxu0 %v1747_v9  ;;  %v1880_v9 = vld [vmem:[#allocation2 + $0x414] sm:$0xf0]  ;;  %v1844_v54 = vld [vmem:[#allocation2 + $0x3cc] sm:$0xf0]  ;;  %v2007_v60 = vld [vmem:[#allocation2 + $0x238] sm:$0xf0] }
  0x52   :  { %1129 = vmatpush.bf16.msrb.mxu1 %v1843_v11  ;;  %v1691_v11 = vor.u32 %v2017_v1, %v1688_v2  ;;  %v1883_v19 = vor.u32 %v2065_v8, %v1880_v9  ;;  %v1847_v63 = vor.u32 %v2056_v53, %v1844_v54  ;;  %v1442_v0 = vld [vmem:[#allocation2 + $0x98] sm:$0xf]  ;;  %v1956_v1 = vld [vmem:[#allocation2 + $0xa0] sm:$0xf0]  ;;  %v1977_v17 = vld [vmem:[#allocation2 + $0x148] sm:$0xf0] }
  0x53   :  { %1142 = vmatpush.bf16.msrb.mxu2 %v1367_v15  ;;  %v2014_v15 = vld [vmem:[#allocation2 + $0x274] sm:$0xf]  ;;  %v1538_v2 = vld [vmem:[#allocation2 + $0x158] sm:$0xf]  ;;  %v1980_v3 = vld [vmem:[#allocation2 + $0x160] sm:$0xf0]  ;;  %v1443_v8 = vor.u32 %v1956_v1, %v1442_v0 }
  0x54   :  { %1155 = vmatpush.bf16.msrb.mxu3 %v1463_v26  ;;  %1117 = vmatmul.bf16.vlgmr.msrb.gmra.mxu0 %v2272_v30  ;;  %v1987_v26 = vld [vmem:[#allocation2 + $0x19c] sm:$0xf]  ;;  %v2004_v9 = vld [vmem:[#allocation2 + $0x220] sm:$0xf0]  ;;  %v1950_v28 = vld [vmem:[#allocation2 + $0x70] sm:$0xf0] }
  0x55   :  { %1161 = vmatpush.bf16.msra.mxu0 %v1643_v16  ;;  %1130 = vmatmul.bf16.vlgmr.msrb.gmra.mxu1 %v2274_v33  ;;  %v1676_v16 = vld [vmem:[#allocation2 + $0x27c] sm:$0xf0]  ;;  %v1571_v36 = vor.u32 %v1987_v26, %v1568_v27  ;;  %v1418_v27 = vld [vmem:[#allocation2 + $0x68] sm:$0xf]  ;;  %v1406_v42 = vld [vmem:[#allocation2 + $0x50] sm:$0xf] }
  0x56   :  { %1174 = vmatpush.bf16.msra.mxu1 %v1739_v21  ;;  %1143 = vmatmul.bf16.vlgmr.msrb.gmra.mxu2 %v2245_v4  ;;  %v1583_v21 = vor.u32 %v1990_v13, %v1580_v14  ;;  %v1679_v24 = vor.u32 %v2014_v15, %v1676_v16  ;;  %v1539_v13 = vor.u32 %v1980_v3, %v1538_v2  ;;  %v1430_v14 = vld [vmem:[#allocation2 + $0x80] sm:$0xf]  ;;  %v1953_v15 = vld [vmem:[#allocation2 + $0x88] sm:$0xf0]  ;;  %v1514_v29 = vld [vmem:[#allocation2 + $0x128] sm:$0xf] }
  0x57   :  { %1187 = vmatpush.bf16.msra.mxu2 %v1835_v22  ;;  %1156 = vmatmul.bf16.vlgmr.msrb.gmra.mxu3 %v2250_v10  ;;  %v2062_v22 = vld [vmem:[#allocation2 + $0x3f4] sm:$0xf]  ;;  %v1526_v16 = vld [vmem:[#allocation2 + $0x140] sm:$0xf]  ;;  %v1706_v39 = vld [vmem:[#allocation2 + $0x2a8] sm:$0xf] }
  0x58   :  { %1200 = vmatpush.bf16.msra.mxu3 %v1931_v32  ;;  %v2035_v32 = vld [vmem:[#allocation2 + $0x31c] sm:$0xf]  ;;  %v1871_v35 = vor.u32 %v2062_v22, %v1868_v23  ;;  %v1431_v22 = vor.u32 %v1953_v15, %v1430_v14  ;;  %v2001_v23 = vld [vmem:[#allocation2 + $0x208] sm:$0xf0]  ;;  %v1527_v26 = vor.u32 %v1977_v17, %v1526_v16  ;;  %v1502_v44 = vld [vmem:[#allocation2 + $0x110] sm:$0xf] }
  0x59   :  { %1162 = vmatpush.bf16.msra.mxu0 %v1631_v34  ;;  %v1760_v34 = vld [vmem:[#allocation2 + $0x324] sm:$0xf0]  ;;  %v1947_v43 = vld [vmem:[#allocation2 + $0x58] sm:$0xf0]  ;;  %v1394_v54 = vld [vmem:[#allocation2 + $0x38] sm:$0xf] }
  0x5a   :  { %1175 = vmatpush.bf16.msra.mxu1 %v1727_v37  ;;  %v2059_v37 = vld [vmem:[#allocation2 + $0x3dc] sm:$0xf]  ;;  %v1763_v41 = vor.u32 %v2035_v32, %v1760_v34  ;;  %v1974_v32 = vld [vmem:[#allocation2 + $0x130] sm:$0xf0]  ;;  %v2016_v0 = vld [vmem:[#allocation2 + $0x280] sm:$0xf0] }
  0x5b   :  { %1188 = vmatpush.bf16.msra.mxu2 %v1823_v38  ;;  %v1856_v38 = vld [vmem:[#allocation2 + $0x3e4] sm:$0xf0]  ;;  %v1382_v2 = vld [vmem:[#allocation2 + $0x20] sm:$0xf]  ;;  %v1941_v3 = vld [vmem:[#allocation2 + $0x28] sm:$0xf0] }
  0x5c   :  { %1201 = vmatpush.bf16.msra.mxu3 %v1919_v45  ;;  %v2032_v45 = vld [vmem:[#allocation2 + $0x304] sm:$0xf]  ;;  %v1859_v48 = vor.u32 %v2059_v37, %v1856_v38  ;;  %v1419_v37 = vor.u32 %v1950_v28, %v1418_v27  ;;  %v1998_v38 = vld [vmem:[#allocation2 + $0x1f0] sm:$0xf0]  ;;  %v2013_v14 = vld [vmem:[#allocation2 + $0x268] sm:$0xf0] }
  0x5d   :  { %1163 = vmatpush.bf16.msra.mxu0 %v1619_v46  ;;  %v1748_v46 = vld [vmem:[#allocation2 + $0x30c] sm:$0xf0]  ;;  %v1370_v16 = vld [vmem:[#allocation2 + $0x8] sm:$0xf]  ;;  %v1938_v17 = vld [vmem:[#allocation2 + $0x10] sm:$0xf0] }
  0x5e   :  { %1176 = vmatpush.bf16.msra.mxu1 %v1715_v49  ;;  %v1959_v49 = vld [vmem:[#allocation2 + $0xb8] sm:$0xf0]  ;;  %v1751_v56 = vor.u32 %v2032_v45, %v1748_v46  ;;  %v1371_v27 = vor.u32 %v1938_v17, %v1370_v16  ;;  %v1562_v28 = vld [vmem:[#allocation2 + $0x188] sm:$0xf]  ;;  %v281_v16 = vld [vmem:[#allocation4] sm:$0x7] }
  0x5f   :  { %1189 = vmatpush.bf16.msra.mxu2 %v1811_v50  ;;  %v1550_v50 = vld [vmem:[#allocation2 + $0x170] sm:$0xf]  ;;  %v1971_v45 = vld [vmem:[#allocation2 + $0x118] sm:$0xf0]  ;;  %v283_v17 = vperm.slane %v281_v16, 0 }
  0x60   :  { %1202 = vmatpush.bf16.msra.mxu3 %v1907_v57  ;;  %v1646_v57 = vld [vmem:[#allocation2 + $0x230] sm:$0xf]  ;;  %v1551_v59 = vor.u32 %v1983_v51, %v1550_v50  ;;  %v1995_v50 = vld [vmem:[#allocation2 + $0x1d8] sm:$0xf0]  ;;  %v1503_v53 = vor.u32 %v1971_v45, %v1502_v44 }
  0x61   :  { %1164 = vmatpush.bf16.msra.mxu0 %v1607_v58  ;;  %v1455_v58 = vor.u32 %v1959_v49, %v1454_v47  ;;  %v1647_v5 = vor.u32 %v2007_v60, %v1646_v57  ;;  %v1407_v49 = vor.u32 %v1947_v43, %v1406_v42  ;;  %v1694_v51 = vld [vmem:[#allocation2 + $0x290] sm:$0xf]  ;;  %v1968_v57 = vld [vmem:[#allocation2 + $0x100] sm:$0xf0]  ;;  %v1586_v60 = vld [vmem:[#allocation2 + $0x1b8] sm:$0xf] }
  0x62   :  { %1177 = vmatpush.bf16.msra.mxu1 %v1703_v61  ;;  %v1742_v61 = vld [vmem:[#allocation2 + $0x2f0] sm:$0xf] }
  0x63   :  { %1190 = vmatpush.bf16.msra.mxu2 %v1799_v62  ;;  %v2031_v62 = vld [vmem:[#allocation2 + $0x2f8] sm:$0xf0] }
  0x64   :  { %1203 = vmatpush.bf16.msra.mxu3 %v1895_v6  ;;  %v1743_v6 = vor.u32 %v2031_v62, %v1742_v61  ;;  %v1992_v62 = vld [vmem:[#allocation2 + $0x1c0] sm:$0xf0] }
  0x65   :  { %1165 = vmatpush.bf16.msra.mxu0 %v1595_v7  ;;  %v1634_v7 = vld [vmem:[#allocation2 + $0x218] sm:$0xf] }
  0x66   :  { %1178 = vmatpush.bf16.msra.mxu1 %v1691_v11  ;;  %v1730_v11 = vld [vmem:[#allocation2 + $0x2d8] sm:$0xf]  ;;  %v1635_v18 = vor.u32 %v2004_v9, %v1634_v7  ;;  %v1587_v7 = vor.u32 %v1992_v62, %v1586_v60  ;;  %v1574_v9 = vld [vmem:[#allocation2 + $0x1a0] sm:$0xf] }
  0x67   :  { %1191 = vmatpush.bf16.msra.mxu2 %v1787_v12  ;;  %v2028_v12 = vld [vmem:[#allocation2 + $0x2e0] sm:$0xf0]  ;;  %v1778_v62 = vld [vmem:[#allocation2 + $0x338] sm:$0xf] }
  0x68   :  { %1204 = vmatpush.bf16.msra.mxu3 %v1883_v19  ;;  %v1731_v19 = vor.u32 %v2028_v12, %v1730_v11  ;;  %v1383_v11 = vor.u32 %v1941_v3, %v1382_v2  ;;  %v1989_v12 = vld [vmem:[#allocation2 + $0x1a8] sm:$0xf0]  ;;  %v1766_v2 = vld [vmem:[#allocation2 + $0x320] sm:$0xf] }
  0x69   :  { %1166 = vmatpush.bf16.msra.mxu0 %v1583_v21  ;;  %v1622_v21 = vld [vmem:[#allocation2 + $0x200] sm:$0xf]  ;;  %v2037_v3 = vld [vmem:[#allocation2 + $0x328] sm:$0xf0] }
  0x6a   :  { %1179 = vmatpush.bf16.msra.mxu1 %v1679_v24  ;;  %v1718_v24 = vld [vmem:[#allocation2 + $0x2c0] sm:$0xf]  ;;  %v1623_v34 = vor.u32 %v2001_v23, %v1622_v21  ;;  %v1838_v21 = vld [vmem:[#allocation2 + $0x3b0] sm:$0xf] }
  0x6b   :  { %1192 = vmatpush.bf16.msra.mxu2 %v1775_v25  ;;  %v2025_v25 = vld [vmem:[#allocation2 + $0x2c8] sm:$0xf0]  ;;  %v1934_v23 = vld [vmem:[#allocation2 + $0x470] sm:$0xf] }
  0x6c   :  { %1205 = vmatpush.bf16.msra.mxu3 %v1871_v35  ;;  %v1719_v35 = vor.u32 %v2025_v25, %v1718_v24  ;;  %v2079_v24 = vld [vmem:[#allocation2 + $0x478] sm:$0xf0]  ;;  %v1575_v25 = vor.u32 %v1989_v12, %v1574_v9  ;;  %v1754_v9 = vld [vmem:[#allocation2 + $0x308] sm:$0xf] }
  0x6d   :  { %1167 = vmatpush.bf16.msra.mxu0 %v1571_v36  ;;  %v1610_v36 = vld [vmem:[#allocation2 + $0x1e8] sm:$0xf] }
  0x6e   :  { %1180 = vmatpush.bf16.msra.mxu1 %v1667_v40  ;;  %v2022_v40 = vld [vmem:[#allocation2 + $0x2b0] sm:$0xf0]  ;;  %v1611_v46 = vor.u32 %v1998_v38, %v1610_v36  ;;  %v1826_v38 = vld [vmem:[#allocation2 + $0x398] sm:$0xf]  ;;  %v1850_v12 = vld [vmem:[#allocation2 + $0x3c8] sm:$0xf] }
  0x6f   :  { %1193 = vmatpush.bf16.msra.mxu2 %v1763_v41  ;;  %v1515_v41 = vor.u32 %v1974_v32, %v1514_v29  ;;  %v1707_v47 = vor.u32 %v2022_v40, %v1706_v39  ;;  %v1986_v29 = vld [vmem:[#allocation2 + $0x190] sm:$0xf0]  ;;  %v2052_v39 = vld [vmem:[#allocation2 + $0x3a0] sm:$0xf0]  ;;  %v1922_v40 = vld [vmem:[#allocation2 + $0x458] sm:$0xf] }
  0x70   :  { %1206 = vmatpush.bf16.msra.mxu3 %v1859_v48  ;;  %v1598_v48 = vld [vmem:[#allocation2 + $0x1d0] sm:$0xf]  ;;  %v2010_v36 = vld [vmem:[#allocation2 + $0x250] sm:$0xf0]  ;;  %v1563_v42 = vor.u32 %v1986_v29, %v1562_v28  ;;  %v1827_v44 = vor.u32 %v2052_v39, %v1826_v38 }
  0x71   :  { %1168 = vmatpush.bf16.msra.mxu0 %v1559_v52  ;;  %v2019_v52 = vld [vmem:[#allocation2 + $0x298] sm:$0xf0] }
  0x72   :  { %1181 = vmatpush.bf16.msra.mxu1 %v1655_v55  ;;  %v1944_v55 = vld [vmem:[#allocation2 + $0x40] sm:$0xf0] }
  0x73   :  { %1194 = vmatpush.bf16.msra.mxu2 %v1751_v56  ;;  %v1490_v56 = vld [vmem:[#allocation2 + $0xf8] sm:$0xf]  ;;  %v1395_v61 = vor.u32 %v1944_v55, %v1394_v54  ;;  %v1898_v54 = vld [vmem:[#allocation2 + $0x428] sm:$0xf]  ;;  %v2070_v55 = vld [vmem:[#allocation2 + $0x430] sm:$0xf0] }
  0x74   :  { %1207 = vmatpush.bf16.msra.mxu3 %v1847_v63  ;;  %1169 = vmatmul.bf16.vlgmr.msra.gmra.mxu0 %v2257_v20  ;;  %v1682_v63 = vld [vmem:[#allocation2 + $0x278] sm:$0xf]  ;;  %v1491_v1 = vor.u32 %v1968_v57, %v1490_v56  ;;  %v1899_v56 = vor.u32 %v2070_v55, %v1898_v54  ;;  %v1790_v57 = vld [vmem:[#allocation2 + $0x350] sm:$0xf] }
  0x75   :  { %1213 = vmatpush.bf16.msrb.mxu0 %v1455_v58  ;;  %1182 = vmatmul.bf16.vlgmr.msra.gmra.mxu1 %v2263_v31  ;;  %v1599_v58 = vor.u32 %v1995_v50, %v1598_v48  ;;  %v1910_v48 = vld [vmem:[#allocation2 + $0x440] sm:$0xf] }
  0x76   :  { %1226 = vmatpush.bf16.msrb.mxu1 %v1551_v59  ;;  %1195 = vmatmul.bf16.vlgmr.msra.gmra.mxu2 %v2272_v30  ;;  %v1695_v59 = vor.u32 %v2019_v52, %v1694_v51  ;;  %v1802_v52 = vld [vmem:[#allocation2 + $0x368] sm:$0xf] }
  0x77   :  { %1239 = vmatpush.bf16.msrb.mxu2 %v1647_v5  ;;  %1208 = vmatmul.bf16.vlgmr.msra.gmra.mxu3 %v2274_v33  ;;  %v1478_v5 = vld [vmem:[#allocation2 + $0xe0] sm:$0xf] }
  0x78   :  { %1252 = vmatpush.bf16.msrb.mxu3 %v1743_v6  ;;  %v1965_v6 = vld [vmem:[#allocation2 + $0xe8] sm:$0xf0] }
  0x79   :  { %1214 = vmatpush.bf16.msrb.mxu0 %v1443_v8  ;;  %v1683_v8 = vor.u32 %v2016_v0, %v1682_v63  ;;  %v1479_v15 = vor.u32 %v1965_v6, %v1478_v5  ;;  %v2040_v63 = vld [vmem:[#allocation2 + $0x340] sm:$0xf0]  ;;  %v1874_v0 = vld [vmem:[#allocation2 + $0x3f8] sm:$0xf]  ;;  %v1862_v5 = vld [vmem:[#allocation2 + $0x3e0] sm:$0xf] }
  0x7a   :  { %1227 = vmatpush.bf16.msrb.mxu1 %v1539_v13  ;;  %v1670_v13 = vld [vmem:[#allocation2 + $0x260] sm:$0xf]  ;;  %v2061_v6 = vld [vmem:[#allocation2 + $0x3e8] sm:$0xf0] }
  0x7b   :  { %1240 = vmatpush.bf16.msrb.mxu2 %v1635_v18  ;;  %v1466_v18 = vld [vmem:[#allocation2 + $0xc8] sm:$0xf] }
  0x7c   :  { %1253 = vmatpush.bf16.msrb.mxu3 %v1731_v19  ;;  %v1962_v19 = vld [vmem:[#allocation2 + $0xd0] sm:$0xf0] }
  0x7d   :  { %1215 = vmatpush.bf16.msrb.mxu0 %v1431_v22  ;;  %v2055_v22 = vld [vmem:[#allocation2 + $0x3b8] sm:$0xf0]  ;;  %v1467_v32 = vor.u32 %v1962_v19, %v1466_v18 }
  0x7e   :  { %1228 = vmatpush.bf16.msrb.mxu1 %v1527_v26  ;;  %v1671_v26 = vor.u32 %v2013_v14, %v1670_v13  ;;  %v2058_v13 = vld [vmem:[#allocation2 + $0x3d0] sm:$0xf0] }
  0x7f   :  { %1241 = vmatpush.bf16.msrb.mxu2 %v1623_v34  ;;  %v1839_v34 = vor.u32 %v2055_v22, %v1838_v21 }
  0x80   :  { %1254 = vmatpush.bf16.msrb.mxu3 %v1719_v35  ;;  %v1658_v35 = vld [vmem:[#allocation2 + $0x248] sm:$0xf] }
  0x81   :  { %1216 = vmatpush.bf16.msrb.mxu0 %v1419_v37  ;;  %v1935_v37 = vor.u32 %v2079_v24, %v1934_v23  ;;  %v1659_v43 = vor.u32 %v2010_v36, %v1658_v35 }
  0x82   :  { %1229 = vmatpush.bf16.msrb.mxu1 %v1515_v41  ;;  %v2076_v41 = vld [vmem:[#allocation2 + $0x460] sm:$0xf0] }
  0x83   :  { %1242 = vmatpush.bf16.msrb.mxu2 %v1611_v46  ;;  %v1923_v45 = vor.u32 %v2076_v41, %v1922_v40  ;;  %v1814_v46 = vld [vmem:[#allocation2 + $0x380] sm:$0xf] }
  0x84   :  { %1255 = vmatpush.bf16.msrb.mxu3 %v1707_v47  ;;  %v2049_v47 = vld [vmem:[#allocation2 + $0x388] sm:$0xf0] }
  0x85   :  { %1217 = vmatpush.bf16.msrb.mxu0 %v1407_v49  ;;  %v2073_v49 = vld [vmem:[#allocation2 + $0x448] sm:$0xf0]  ;;  %v1815_v50 = vor.u32 %v2049_v47, %v1814_v46 }
  0x86   :  { %1230 = vmatpush.bf16.msrb.mxu1 %v1503_v53  ;;  %v1911_v51 = vor.u32 %v2073_v49, %v1910_v48  ;;  %v2046_v53 = vld [vmem:[#allocation2 + $0x370] sm:$0xf0] }
  0x87   :  { %1243 = vmatpush.bf16.msrb.mxu2 %v1599_v58  ;;  %v2043_v58 = vld [vmem:[#allocation2 + $0x358] sm:$0xf0] }
  0x88   :  { %1256 = vmatpush.bf16.msrb.mxu3 %v1695_v59  ;;  %v2067_v59 = vld [vmem:[#allocation2 + $0x418] sm:$0xf0]  ;;  %v1791_v60 = vor.u32 %v2043_v58, %v1790_v57  ;;  %v285_v58 = vperm.slane %v281_v16, 2 }
  0x89   :  { %1218 = vmatpush.bf16.msrb.mxu0 %v1395_v61 }
  0x8a   :  { %1231 = vmatpush.bf16.msrb.mxu1 %v1491_v1  ;;  %v1779_v1 = vor.u32 %v2040_v63, %v1778_v62 }
  0x8b   :  { %1244 = vmatpush.bf16.msrb.mxu2 %v1587_v7  ;;  %v1767_v7 = vor.u32 %v2037_v3, %v1766_v2 }
  0x8c   :  { %1257 = vmatpush.bf16.msrb.mxu3 %v1683_v8  ;;  %v1863_v8 = vor.u32 %v2061_v6, %v1862_v5 }
  0x8d   :  { %1219 = vmatpush.bf16.msrb.mxu0 %v1383_v11  ;;  %v2034_v11 = vld [vmem:[#allocation2 + $0x310] sm:$0xf0] }
  0x8e   :  { %1232 = vmatpush.bf16.msrb.mxu1 %v1479_v15  ;;  %v1755_v14 = vor.u32 %v2034_v11, %v1754_v9  ;;  %v1851_v15 = vor.u32 %v2058_v13, %v1850_v12  ;;  %v2199_v12 = vmov 384.0  }
  0x8f   :  { %1245 = vmatpush.bf16.msrb.mxu2 %v1575_v25  ;;  %2087 = vrcp.f32 %v2199_v12 }
  0x90   :  { %1258 = vmatpush.bf16.msrb.mxu3 %v1671_v26 }
  0x91   :  { %1220 = vmatpush.bf16.msrb.mxu0 %v1371_v27 }
  0x92   :  { %1233 = vmatpush.bf16.msrb.mxu1 %v1467_v32 }
  0x93   :  { %1246 = vmatpush.bf16.msrb.mxu2 %v1563_v42 }
  0x94   :  { %1221 = vmatmul.bf16.vlgmr.msrb.gmra.mxu0 %v2245_v4  ;;  %1259 = vmatpush.bf16.msrb.mxu3 %v1659_v43  ;;  %v1803_v4 = vor.u32 %v2046_v53, %v1802_v52 }
  0x95   :  { %1265 = vmatpush.bf16.msra.mxu0 %v1839_v34  ;;  %1234 = vmatmul.bf16.vlgmr.msrb.gmra.mxu1 %v2250_v10  ;;  %v1886_v10 = vld [vmem:[#allocation2 + $0x410] sm:$0xf]  ;;  %v2088_v13 = vpop.eup %2087 }
  0x96   :  { %1278 = vmatpush.bf16.msra.mxu1 %v1935_v37  ;;  %1247 = vmatmul.bf16.vlgmr.msrb.gmra.mxu2 %v2257_v20  ;;  %v1887_v61 = vor.u32 %v2067_v59, %v1886_v10  ;;  %v2064_v20 = vld [vmem:[#allocation2 + $0x400] sm:$0xf0]  ;;  %v284_v37 = vperm.slane %v281_v16, 1  ;;  %vm1300_vm0 = vweird.f32 %v2088_v13 }
  0x97   :  { %1260 = vmatmul.bf16.vlgmr.msrb.gmra.mxu3 %v2263_v31  ;;  %v1875_v31 = vor.u32 %v2064_v20, %v1874_v0 }
  0x99   :  { %1266 = vmatpush.bf16.msra.mxu0 %v1827_v44 }
  0x9a   :  { %1279 = vmatpush.bf16.msra.mxu1 %v1923_v45 }
  0x9d   :  { %1267 = vmatpush.bf16.msra.mxu0 %v1815_v50 }
  0x9e   :  { %1280 = vmatpush.bf16.msra.mxu1 %v1911_v51 }
  0xa1   :  { %1268 = vmatpush.bf16.msra.mxu0 %v1803_v4 }
  0xa2   :  { %1281 = vmatpush.bf16.msra.mxu1 %v1899_v56 }
  0xa5   :  { %1269 = vmatpush.bf16.msra.mxu0 %v1791_v60 }
  0xa6   :  { %1282 = vmatpush.bf16.msra.mxu1 %v1887_v61 }
  0xa9   :  { %1270 = vmatpush.bf16.msra.mxu0 %v1779_v1 }
  0xaa   :  { %1283 = vmatpush.bf16.msra.mxu1 %v1875_v31 }
  0xad   :  { %1271 = vmatpush.bf16.msra.mxu0 %v1767_v7 }
  0xae   :  { %1284 = vmatpush.bf16.msra.mxu1 %v1863_v8 }
  0xb1   :  { %1272 = vmatpush.bf16.msra.mxu0 %v1755_v14  ;;  %v1066_v18 = vpop.f32.mrf.mxu0  ;;  %v1296_v14 = vmul.f32 384.0, %v2088_v13 }
  0xb2   :  { %1285 = vmatpush.bf16.msra.mxu1 %v1851_v15  ;;  %v1067_v19 = vadd.f32 %v1066_v18, %v283_v17  ;;  %v1079_v21 = vpop.f32.mrf.mxu1 }
  0xb3   :  { %v1297_v15 = vsub.f32 1.0, %v1296_v14 }
  0xb4   :  { %1273 = vmatmul.bf16.vlgmr.msra.gmra.mxu0 %v2272_v30  ;;  %v1080_v22 = vadd.f32 %v1079_v21, %v1067_v19 }
  0xb5   :  { %1286 = vmatmul.bf16.vlgmr.msra.gmra.mxu1 %v2274_v33  ;;  %v1298_v16 = vmul.f32 %v2088_v13, %v1297_v15 }
  0xb7   :  { %v1299_v17 = vadd.f32 %v2088_v13, %v1298_v16 }
  0xb9   :  { %v1068_v23 = vpop.f32.mrf.mxu0  ;;  %v1092_v25 = vpop.f32.mrf.mxu2  ;;  %v1301_v18 = vsel %vm1300_vm0, %v2088_v13, %v1299_v17 }
  0xba   :  { %v1081_v24 = vpop.f32.mrf.mxu1  ;;  %v1093_v26 = vadd.f32 %v1092_v25, %v1080_v22 }
  0xbc   :  { %v1105_v27 = vpop.f32.mrf.mxu3 }
  0xbd   :  { %v1106_v28 = vadd.f32 %v1105_v27, %v1093_v26 }
  0xc1   :  { %v1094_v29 = vpop.f32.mrf.mxu2 }
  0xc4   :  { %v1107_v32 = vpop.f32.mrf.mxu3 }
  0xd1   :  { %v1118_v34 = vpop.f32.mrf.mxu0 }
  0xd2   :  { %v1119_v35 = vadd.f32 %v1118_v34, %v1106_v28  ;;  %v1131_v36 = vpop.f32.mrf.mxu1 }
  0xd4   :  { %v1132_v30 = vadd.f32 %v1131_v36, %v1119_v35 }
  0xd9   :  { %v1144_v33 = vpop.f32.mrf.mxu2  ;;  %v1120_v38 = vpop.f32.mrf.mxu0 }
  0xda   :  { %v1145_v39 = vadd.f32 %v1144_v33, %v284_v37  ;;  %v1133_v40 = vpop.f32.mrf.mxu1  ;;  %v1157_v41 = vpop.f32.mrf.mxu3 }
  0xdc   :  { %v1158_v42 = vadd.f32 %v1157_v41, %v1145_v39  ;;  %v1328_v39 = vld [vmem:[#allocation6] sm:$0x7] }
  0xe1   :  { %v1146_v43 = vpop.f32.mrf.mxu2 }
  0xe2   :  { %v1159_v44 = vpop.f32.mrf.mxu3  ;;  %v1331_v43 = vperm.slane %v1328_v39, 1 }
  0xe3   :  { %v1332_v44 = vperm.slane %v1328_v39, 2 }
  0xf1   :  { %v1170_v45 = vpop.f32.mrf.mxu0 }
  0xf2   :  { %v1183_v46 = vpop.f32.mrf.mxu1  ;;  %v1171_v10 = vadd.f32 %v1170_v45, %v1158_v42  ;;  %v1330_v42 = vperm.slane %v1328_v39, 0 }
  0xf4   :  { %v1184_v62 = vadd.f32 %v1183_v46, %v1171_v10 }
  0xf9   :  { %v1196_v47 = vpop.f32.mrf.mxu2  ;;  %v1172_v48 = vpop.f32.mrf.mxu0 }
  0xfa   :  { %v1209_v49 = vpop.f32.mrf.mxu3  ;;  %v1185_v50 = vpop.f32.mrf.mxu1  ;;  %v1197_v0 = vadd.f32 %v1196_v47, %v1184_v62 }
  0xfc   :  { %v1210_v1 = vadd.f32 %v1209_v49, %v1197_v0 }
  0xfe   :  { %v1291_v7 = vadd.f32 %v1210_v1, %v1132_v30 }
 0x101   :  { %v1198_v51 = vpop.f32.mrf.mxu2 }
 0x102   :  { %v1211_v52 = vpop.f32.mrf.mxu3 }
 0x111   :  { %v1222_v53 = vpop.f32.mrf.mxu0 }
 0x112   :  { %v1235_v54 = vpop.f32.mrf.mxu1  ;;  %v1223_v59 = vadd.f32 %v1222_v53, %v285_v58 }
 0x114   :  { %v1236_v63 = vadd.f32 %v1235_v54, %v1223_v59 }
 0x119   :  { %v1224_v55 = vpop.f32.mrf.mxu0  ;;  %v1248_v56 = vpop.f32.mrf.mxu2 }
 0x11a   :  { %v1237_v4 = vpop.f32.mrf.mxu1  ;;  %v1261_v57 = vpop.f32.mrf.mxu3  ;;  %v1249_v20 = vadd.f32 %v1248_v56, %v1236_v63 }
 0x11c   :  { %v1262_v31 = vadd.f32 %v1261_v57, %v1249_v20 }
 0x121   :  { %v1250_v60 = vpop.f32.mrf.mxu2 }
 0x122   :  { %v1263_v61 = vpop.f32.mrf.mxu3 }
 0x131   :  { %v1274_v2 = vpop.f32.mrf.mxu0 }
 0x132   :  { %v1275_v3 = vadd.f32 %v1274_v2, %v1262_v31  ;;  %v1287_v5 = vpop.f32.mrf.mxu1 }
 0x134   :  { %v1288_v6 = vadd.f32 %v1287_v5, %v1275_v3 }
 0x136   :  { %v1292_v8 = vadd.f32 %v1291_v7, %v1288_v6 }
 0x138   :  { %1293 = vadd.xlane.f32.xlu0 %v1292_v8 }
 0x139   :  { %v1276_v9 = vpop.f32.mrf.mxu0 }
 0x13a   :  { %v1289_v11 = vpop.f32.mrf.mxu1 }
 0x1ab   :  { %v1294_v19 = vpop.xlane.xlu0 %1293 }
 0x1ac   :  { %v1302_v21 = vmul.f32 %v1301_v18, %v1294_v19 }
 0x1ae   :  { %v1303_v22 = vsub.f32 %v1132_v30, %v1302_v21  ;;  %v1304_v23 = vsub.f32 %v1210_v1, %v1302_v21  ;;  %v1305_v24 = vsub.f32 %v1288_v6, %v1302_v21  ;;  %v1339_v30 = vld [vmem:[#allocation7] sm:$0x7] }
 0x1af   :  { %v1341_v45 = vperm.slane %v1339_v30, 0  ;;  %v1342_v46 = vperm.slane %v1339_v30, 1  ;;  %v1343_v48 = vperm.slane %v1339_v30, 2 }
 0x1b0   :  { %v1306_v25 = vmul.f32 %v1303_v22, %v1303_v22  ;;  %v1307_v26 = vmul.f32 %v1304_v23, %v1304_v23  ;;  %v1308_v27 = vmul.f32 %v1305_v24, %v1305_v24 }
 0x1b2   :  { %v1309_v28 = vadd.f32 %v1307_v26, %v1306_v25 }
 0x1b4   :  { %v1310_v29 = vadd.f32 %v1309_v28, %v1308_v27 }
 0x1b6   :  { %1311 = vadd.xlane.f32.xlu0 %v1310_v29 }
 0x229   :  { %v1312_v32 = vpop.xlane.xlu0 %1311 }
 0x22a   :  { %v1313_v34 = vmul.f32 %v1312_v32, %v1301_v18 }
 0x22c   :  { %v1314_v35 = vadd.f32 1e-05, %v1313_v34 }
 0x22e   :  { %2089 = vrsqrt.f32 %v1314_v35  ;;  %vm1321_vm2 = vweird.f32 %v1314_v35 }
 0x234   :  { %v2090_v36 = vpop.eup %2089 }
 0x235   :  { %v1316_v37 = vmul.f32 %v2090_v36, %v1314_v35  ;;  %vm1322_vm1 = vweird.f32 %v2090_v36 }
 0x236   :  { %vm1323_vm3 = vmor %vm1321_vm2, %vm1322_vm1 }
 0x237   :  { %v1317_v33 = vmul.f32 %v2090_v36, %v1316_v37 }
 0x239   :  { %v1318_v38 = vmul.f32 0.5, %v1317_v33 }
 0x23b   :  { %v1319_v40 = vsub.f32 1.5, %v1318_v38 }
 0x23d   :  { %v1320_v41 = vmul.f32 %v2090_v36, %v1319_v40 }
 0x23f   :  { %v1324_v47 = vsel %vm1323_vm3, %v2090_v36, %v1320_v41 }
 0x240   :  { %v1325_v49 = vmul.f32 %v1324_v47, %v1303_v22  ;;  %v1326_v50 = vmul.f32 %v1324_v47, %v1304_v23  ;;  %v1327_v51 = vmul.f32 %v1324_v47, %v1305_v24 }
 0x242   :  { %v1336_v52 = vmul.f32 %v1330_v42, %v1325_v49  ;;  %v1337_v53 = vmul.f32 %v1331_v43, %v1326_v50  ;;  %v1338_v54 = vmul.f32 %v1332_v44, %v1327_v51 }
 0x244   :  { %v1347_v55 = vadd.f32 %v1341_v45, %v1336_v52  ;;  %v1348_v4 = vadd.f32 %v1342_v46, %v1337_v53  ;;  %v1349_v56 = vadd.f32 %v1343_v48, %v1338_v54 }
 0x246   :  { %1350 = vst [vmem:[%s2304_s5] sm:$0xff] %v1347_v55 }
 0x247   :  { %1351 = vst [vmem:[%s2304_s5 + $0x8] sm:$0xff] %v1348_v4 }
 0x248   :  { %1352 = vst [vmem:[%s2304_s5 + $0x10] sm:$0xff] %v1349_v56 }
 0x249   :  { %1357 = vsyncpa [#allocation3], 1 }
 0x24a   :  { %1358 = vsyncpa [#allocation5], 1 }
 0x24b   :  { %1359 = vsyncpa [#allocation8], 1 }

// kernel: cnn_perceiver_forward.16
= control target key start
LH: loop header
LB: loop body
LE: loop exit
PB: predicated region body
PF: predicated region fallthrough
CT: control target
= control target key end

     0   :  { %s407_s9 = smov 0   ;;  %s446_s0 = inlined_call_operand.vmem [shape: f32[2,8,64], index: 0, kind: input, shape index: {}]   ;;  %s447_s1 = inlined_call_operand.vmem [shape: f32[2,4,128], index: 1, kind: input, shape index: {}]   ;;  %s448_s2 = inlined_call_operand.vmem [shape: f32[2,8,64], index: 2, kind: output, shape index: {}]  }
   0x1 LB: > { %s348_s10 = sadd.s32 4294967295, %s387_s9   ;;  %p352_p0 = scmp.ge.s32.totalorder %s387_s9, 1  ;;  %s387_s9 = sphi %s407_s9, %s12_s9  }
   0x2   : > { %p120_p1 = scmp.lt.s32.totalorder %s387_s9, 3 }
   0x4   : > { %p121_p2 = pnand %p352_p0, %p120_p1 }
   0x5   : > { %p144_p3 = scmp.lt.s32.totalorder (!%p121_p2), %s348_s10, 1  ;;  %s389_s19 = smov (!%p121_p2), 96  }
   0x6   : > { %124 = sbr.rel (%p121_p2) target bundleno = 756 (0x2f4), region = 28  ;;  %s390_s20 = smov (!%p121_p2), 64  }
   0x7   : > { %s391_s21 = smov (!%p121_p2), 32  }
   0xb   : > { %s450_s10 = smov (!%p144_p3, %s348_s10), 1  ;;  %vm161_vm0 = vcmask 261120   ;;  %vm182_vm1 = vcmask 31744   ;;  %vm201_vm2 = vcmask 1041408   ;;  %vm281_vm3 = vcmask 523264  }
   0xc   : > { %s354_s11 = sshll.u32 %s450_s10, 2  ;;  %s353_s12 = sshll.u32 %s450_s10, 3 }
   0xd   : > { %s151_s15 = scalar_lea.vmem %s447_s1, %s354_s11  ;;  %s147_s18 = scalar_lea.vmem %s446_s0, %s353_s12 }
   0xe   : > { %v158_v0 = vld [vmem:[%s151_s15] sm:$0xf]  ;;  %s155_s24 = scalar_lea.vmem %s448_s2, %s353_s12 }
   0xf   : > { %v160_v1 = vpack.c.bf16 %v158_v0, %v158_v0  ;;  %v157_v2 = vld [vmem:[%s147_s18] sm:$0xff] }
  0x10   : > { %v159_v3 = vpack.c.bf16 %v157_v2, %v157_v2 }
  0x11   : > { %221 = vrot.lane.b32.xlu0 %v160_v1, %s389_s19  ;;  %v166_v4 = vsel %vm161_vm0, %v160_v1, 0 }
  0x12   : > { %175 = vmatpush.bf16.xpose.msra.mxu0 %v166_v4 }
  0x19   : > { %219 = vrot.lane.b32.xlu0 %v159_v3, %s389_s19  ;;  %356 = vmatmul.msk.bf16.vlgmr.msra.gmra.mxu0 %vm161_vm0, %v159_v3 }
  0x83   : > { %v222_v5 = vpop.permute.xlu0 %221 }
  0x84   : > { %v227_v6 = vsel %vm161_vm0, %v222_v5, 0 }
  0x85   : > { %236 = vmatpush.bf16.xpose.msra.mxu2 %v227_v6 }
  0x8b   : > { %v220_v7 = vpop.permute.xlu0 %219 }
  0x8c   : > { %358 = vmatmul.msk.bf16.vlgmr.msra.gmra.mxu2 %vm161_vm0, %v220_v7 }
  0x96   : > { %v177_v8 = vpop.f32.mrf.mxu0 }
  0x97   : > { %v181_v13 = vmul.f32 0.17677669, %v177_v8 }
  0x99   : > { %v183_v15 = vsel %vm182_vm1, %v181_v13, -inf }
  0x9e   : > { %v179_v9 = vpop.f32.mrf.mxu0 }
 0x10f   : > { %v238_v10 = vpop.f32.mrf.mxu2 }
 0x110   : > { %v242_v11 = vmul.f32 0.17677669, %v238_v10 }
 0x112   : > { %v243_v12 = vsel %vm182_vm1, %v242_v11, -inf }
 0x113   : > { %244 = vmax.xlane.f32.xlu1 %v243_v12 }
 0x117   : > { %v240_v14 = vpop.f32.mrf.mxu2 }
 0x11b   : > { %184 = vmax.xlane.f32.xlu1 %v183_v15 }
 0x134   : > { %196 = vrot.lane.b32.xlu1 %v160_v1, %s390_s20 }
 0x186   : > { %v245_v16 = vpop.xlane.xlu1 %244 }
 0x187   : > { %v246_v17 = vsub.f32 %v242_v11, %v245_v16 }
 0x189   : > { %v247_v18 = vmul.f32 1.442695, %v246_v17 }
 0x18b   : > { %373 = vpow2.f32 %v247_v18 }
 0x18e   : > { %v185_v19 = vpop.xlane.xlu1 %184 }
 0x18f   : > { %v186_v20 = vsub.f32 %v181_v13, %v185_v19 }
 0x191   : > { %v374_v21 = vpop.eup %373  ;;  %v187_v22 = vmul.f32 1.442695, %v186_v20 }
 0x192   : > { %v249_v23 = vsel %vm182_vm1, %v374_v21, 0.0 }
 0x193   : > { %375 = vpow2.f32 %v187_v22  ;;  %250 = vadd.xlane.f32.xlu2 %v249_v23 }
 0x199   : > { %v376_v24 = vpop.eup %375 }
 0x19a   : > { %v189_v25 = vsel %vm182_vm1, %v376_v24, 0.0 }
 0x19b   : > { %190 = vadd.xlane.f32.xlu0 %v189_v25 }
 0x1a6   : > { %v197_v26 = vpop.permute.xlu1 %196 }
 0x1a7   : > { %v203_v27 = vsel %vm201_vm2, %v197_v26, 0 }
 0x1a8   : > { %212 = vmatpush.bf16.msra.mxu1 %v203_v27 }
 0x1ab   : > { %255 = vrot.lane.b32.xlu2 %v160_v1, %s391_s21 }
 0x206   : > { %v251_v28 = vpop.xlane.xlu2 %250 }
 0x207   : > { %377 = vrcp.f32 %v251_v28 }
 0x20d   : > { %v378_v29 = vpop.eup %377 }
 0x20e   : > { %v256_v30 = vpop.permute.xlu2 %255  ;;  %v191_v31 = vpop.xlane.xlu0 %190  ;;  %v253_v32 = vmul.f32 %v378_v29, %v374_v21 }
 0x20f   : > { %379 = vrcp.f32 %v191_v31  ;;  %v261_v33 = vsel %vm201_vm2, %v256_v30, 0 }
 0x210   : > { %270 = vmatpush.bf16.msra.mxu3 %v261_v33  ;;  %v254_v34 = vpack.c.bf16 %v253_v32, %v253_v32 }
 0x213   : > { %359 = vmatmul.msk.bf16.vlgmr.msra.gmra.mxu3 %vm182_vm1, %v254_v34 }
 0x215   : > { %v380_v35 = vpop.eup %379 }
 0x216   : > { %v193_v36 = vmul.f32 %v380_v35, %v376_v24 }
 0x218   : > { %v194_v37 = vpack.c.bf16 %v193_v36, %v193_v36 }
 0x21a   : > { %357 = vmatmul.msk.bf16.vlgmr.msra.gmra.mxu1 %vm182_vm1, %v194_v37 }
 0x296   : > { %v272_v38 = vpop.f32.mrf.mxu3 }
 0x297   : > { %277 = vrot.lane.b32.xlu2 %v272_v38, %s391_s21  ;;  %v214_v39 = vpop.f32.mrf.mxu1 }
 0x29e   : > { %v274_v40 = vpop.f32.mrf.mxu3 }
 0x29f   : > { %v216_v41 = vpop.f32.mrf.mxu1 }
 0x2f1   : > { %v278_v42 = vpop.permute.xlu2 %277 }
 0x2f2   : > { %v280_v43 = vsel %vm161_vm0, %v214_v39, %v278_v42 }
 0x2f3   : > { %282 = vst.msk [vmem:[%s155_s24] sm:$0xff] %vm281_vm3, %v280_v43 }
 0x2f4 PF: > { %s12_s9 = sadd.s32 1, %s387_s9  }
 0x2f5   : > { %p9_p4 = scmp.ge.s32.totalorder %s12_s9, 4  }
 0x2f7   :  { %11 = sbr.rel (!%p9_p4) target bundleno = 1 (0x1), region = 61 }

// kernel: cnn_perceiver_forward.17
= control target key start
LH: loop header
LB: loop body
LE: loop exit
PB: predicated region body
PF: predicated region fallthrough
CT: control target
= control target key end

     0   :  { %9 = vsyncpa [#allocation4], 0  ;;  %s448_s0 = inlined_call_operand.vmem [shape: f32[16,64], index: 0, kind: input, shape index: {}]   ;;  %s449_s1 = inlined_call_operand.hbm [shape: bf16[64,384], index: 1, kind: input, shape index: {}]   ;;  %s450_s2 = inlined_call_operand.hbm [shape: f32[1,384], index: 2, kind: input, shape index: {}]   ;;  %s451_s3 = inlined_call_operand.vmem [shape: f32[16,384], index: 3, kind: input, shape index: {}]   ;;  %s452_s4 = inlined_call_operand.vmem [shape: f32[16,384], index: 4, kind: output, shape index: {}]  }
   0x1   :  { %s17_s17 = sshll.u32 %s449_s1, 4  ;;  %s18_s17 = int_to_ptr.hbm [resolvable:$true] %s17_s17 }
   0x2   :  { %10 = vsyncpa [#allocation6], 0  ;;  %s371_s18 = smov [#allocation3]   ;;  %s31_s22 = sshll.u32 %s450_s2, 4  ;;  %s32_s22 = int_to_ptr.hbm [resolvable:$true] %s31_s22 }
   0x3   :  { %s19_s19 = sshll.u32 %s371_s18, 4  ;;  %s372_s23 = smov 192   ;;  %s20_s19 = int_to_ptr.vmem [resolvable:$true] %s19_s19 }
   0x4   :  { %s373_s24 = smov 12   ;;  %s374_s25 = smov [#allocation5]  }
   0x5   :  { %25 = dma.hbm_to_vmem [thread:$0]  %s18_s17, 1536, %s20_s19, [#allocation4], %s372_s23, %s372_s23, %s373_s24  }
   0x6   :  { %s33_s26 = sshll.u32 %s374_s25, 4  ;;  %s34_s26 = int_to_ptr.vmem [resolvable:$true] %s33_s26 }
   0x7   :  { %36 = dma.hbm_to_vmem [thread:$0]  %s32_s22, 48, %s34_s26, [#allocation6]  }
   0x8   :  { %367 = dma.done.wait [#allocation4], 1536  }
   0x9   :  { %368 = vsyncadd [#allocation4], 4294965760 }
   0xa   :  { %369 = dma.done.wait [#allocation6], 48  }
   0xb   :  { %370 = vsyncadd [#allocation6], 4294967248  ;;  %v290_v0 = vld [vmem:[#allocation3 + $0x48] sm:$0xf]  ;;  %v313_v1 = vld [vmem:[#allocation3 + $0x50] sm:$0xf0] }
   0xc   :  { %v312_v2 = vld [vmem:[#allocation3 + $0x4c] sm:$0xf]  ;;  %v291_v3 = vor.u32 %v313_v1, %v290_v0  ;;  %v292_v4 = vld [vmem:[#allocation3 + $0x54] sm:$0xf0]  ;;  %v298_v5 = vld [vmem:[#allocation3 + $0x50] sm:$0xf] }
   0xd   :  { %v314_v6 = vld [vmem:[#allocation3 + $0x58] sm:$0xf0]  ;;  %v295_v7 = vor.u32 %v312_v2, %v292_v4  ;;  %v278_v9 = vld [vmem:[#allocation3 + $0x30] sm:$0xf]  ;;  %v309_v11 = vld [vmem:[#allocation3 + $0x34] sm:$0xf] }
   0xe   :  { %v299_v8 = vor.u32 %v314_v6, %v298_v5  ;;  %v310_v10 = vld [vmem:[#allocation3 + $0x38] sm:$0xf0]  ;;  %155 = vmatpush.bf16.msra.mxu0 %v291_v3  ;;  %v280_v13 = vld [vmem:[#allocation3 + $0x3c] sm:$0xf0]  ;;  %v286_v14 = vld [vmem:[#allocation3 + $0x38] sm:$0xf] }
   0xf   :  { %v279_v12 = vor.u32 %v310_v10, %v278_v9  ;;  %v311_v15 = vld [vmem:[#allocation3 + $0x40] sm:$0xf0]  ;;  %169 = vmatpush.bf16.msra.mxu1 %v295_v7  ;;  %v283_v16 = vor.u32 %v309_v11, %v280_v13  ;;  %v266_v18 = vld [vmem:[#allocation3 + $0x18] sm:$0xf]  ;;  %v306_v20 = vld [vmem:[#allocation3 + $0x1c] sm:$0xf] }
  0x10   :  { %183 = vmatpush.bf16.msra.mxu2 %v299_v8  ;;  %v287_v17 = vor.u32 %v311_v15, %v286_v14  ;;  %v307_v19 = vld [vmem:[#allocation3 + $0x20] sm:$0xf0]  ;;  %v268_v21 = vld [vmem:[#allocation3 + $0x24] sm:$0xf0]  ;;  %v274_v22 = vld [vmem:[#allocation3 + $0x20] sm:$0xf] }
  0x11   :  { %v308_v23 = vld [vmem:[#allocation3 + $0x28] sm:$0xf0]  ;;  %v267_v24 = vor.u32 %v307_v19, %v266_v18  ;;  %v271_v25 = vor.u32 %v306_v20, %v268_v21  ;;  %v254_v27 = vld [vmem:[#allocation3] sm:$0xf]  ;;  %v303_v29 = vld [vmem:[#allocation3 + $0x4] sm:$0xf] }
  0x12   :  { %156 = vmatpush.bf16.msra.mxu0 %v279_v12  ;;  %v275_v26 = vor.u32 %v308_v23, %v274_v22  ;;  %v304_v28 = vld [vmem:[#allocation3 + $0x8] sm:$0xf0]  ;;  %v256_v30 = vld [vmem:[#allocation3 + $0xc] sm:$0xf0]  ;;  %v262_v31 = vld [vmem:[#allocation3 + $0x8] sm:$0xf] }
  0x13   :  { %170 = vmatpush.bf16.msra.mxu1 %v283_v16  ;;  %v305_v32 = vld [vmem:[#allocation3 + $0x10] sm:$0xf0]  ;;  %v255_v33 = vor.u32 %v304_v28, %v254_v27  ;;  %v64_v34 = vld [vmem:[%s448_s0] sm:$0xff]  ;;  %v65_v35 = vld [vmem:[%s448_s0 + $0x8] sm:$0xff]  ;;  %v259_v36 = vor.u32 %v303_v29, %v256_v30  ;;  %vm147_vm0 = vcmask 523264  }
  0x14   :  { %184 = vmatpush.bf16.msra.mxu2 %v287_v17  ;;  %v263_v37 = vor.u32 %v305_v32, %v262_v31  ;;  %v66_v38 = vpack.c.bf16 %v65_v35, %v64_v34  ;;  %v214_v39 = vld [vmem:[#allocation5] sm:$0x7]  ;;  %v229_v46 = vld [vmem:[%s451_s3 + $0x8] sm:$0xff]  ;;  %v230_v52 = vld [vmem:[%s451_s3 + $0x10] sm:$0xff] }
  0x15   :  { %v216_v40 = vperm.slane %v214_v39, 0  ;;  %v217_v41 = vperm.slane %v214_v39, 1  ;;  %v228_v43 = vld [vmem:[%s451_s3] sm:$0xff]  ;;  %v218_v50 = vperm.slane %v214_v39, 2  ;;  %v231_v55 = vld [vmem:[%s451_s3 + $0x18] sm:$0xff]  ;;  %v233_v0 = vld [vmem:[%s451_s3 + $0x28] sm:$0xff] }
  0x16   :  { %157 = vmatpush.bf16.msra.mxu0 %v267_v24  ;;  %v232_v58 = vld [vmem:[%s451_s3 + $0x20] sm:$0xff] }
  0x17   :  { %171 = vmatpush.bf16.msra.mxu1 %v271_v25 }
  0x18   :  { %185 = vmatpush.bf16.msra.mxu2 %v275_v26 }
  0x1a   :  { %158 = vmatpush.bf16.msra.mxu0 %v255_v33 }
  0x1b   :  { %172 = vmatpush.bf16.msra.mxu1 %v259_v36 }
  0x1c   :  { %186 = vmatpush.bf16.msra.mxu2 %v263_v37 }
  0x1d   :  { %300 = vmatmul.msk.bf16.vlgmr.msra.gmra.mxu0 %vm147_vm0, %v66_v38 }
  0x1e   :  { %301 = vmatmul.msk.bf16.vlgmr.msra.gmra.mxu1 %vm147_vm0, %v66_v38 }
  0x1f   :  { %302 = vmatmul.msk.bf16.vlgmr.msra.gmra.mxu2 %vm147_vm0, %v66_v38 }
  0x9a   :  { %v160_v42 = vpop.f32.mrf.mxu0 }
  0x9b   :  { %v222_v44 = vadd.f32 %v216_v40, %v160_v42  ;;  %v174_v45 = vpop.f32.mrf.mxu1 }
  0x9c   :  { %v223_v47 = vadd.f32 %v217_v41, %v174_v45 }
  0x9d   :  { %v234_v48 = vadd.f32 %v228_v43, %v222_v44 }
  0x9e   :  { %v235_v49 = vadd.f32 %v229_v46, %v223_v47 }
  0x9f   :  { %240 = vst [vmem:[%s452_s4] sm:$0xff] %v234_v48 }
  0xa0   :  { %241 = vst [vmem:[%s452_s4 + $0x8] sm:$0xff] %v235_v49 }
  0xa2   :  { %v188_v51 = vpop.f32.mrf.mxu2  ;;  %v162_v54 = vpop.f32.mrf.mxu0 }
  0xa3   :  { %v224_v53 = vadd.f32 %v218_v50, %v188_v51  ;;  %v225_v56 = vadd.f32 %v216_v40, %v162_v54  ;;  %v176_v57 = vpop.f32.mrf.mxu1 }
  0xa4   :  { %v226_v60 = vadd.f32 %v217_v41, %v176_v57 }
  0xa5   :  { %v236_v59 = vadd.f32 %v230_v52, %v224_v53  ;;  %v237_v61 = vadd.f32 %v231_v55, %v225_v56 }
  0xa6   :  { %v238_v62 = vadd.f32 %v232_v58, %v226_v60 }
  0xa7   :  { %242 = vst [vmem:[%s452_s4 + $0x10] sm:$0xff] %v236_v59 }
  0xa8   :  { %243 = vst [vmem:[%s452_s4 + $0x18] sm:$0xff] %v237_v61 }
  0xa9   :  { %244 = vst [vmem:[%s452_s4 + $0x20] sm:$0xff] %v238_v62 }
  0xaa   :  { %v190_v63 = vpop.f32.mrf.mxu2 }
  0xab   :  { %v227_v1 = vadd.f32 %v218_v50, %v190_v63 }
  0xad   :  { %v239_v2 = vadd.f32 %v233_v0, %v227_v1 }
  0xaf   :  { %245 = vst [vmem:[%s452_s4 + $0x28] sm:$0xff] %v239_v2 }
  0xb0   :  { %250 = vsyncpa [#allocation4], 1 }
  0xb1   :  { %251 = vsyncpa [#allocation6], 1 }

// kernel: cnn_perceiver_forward.18
= control target key start
LH: loop header
LB: loop body
LE: loop exit
PB: predicated region body
PF: predicated region fallthrough
CT: control target
= control target key end

     0   :  { %s2654_s0 = inlined_call_operand.vmem [shape: f32[16,384], index: 0, kind: input, shape index: {}]   ;;  %s2655_s1 = inlined_call_operand.hbm [shape: f32[1,384], index: 1, kind: input, shape index: {}]   ;;  %s2656_s2 = inlined_call_operand.hbm [shape: f32[1,384], index: 2, kind: input, shape index: {}]   ;;  %s2657_s3 = inlined_call_operand.hbm [shape: bf16[384,1536], index: 3, kind: input, shape index: {}]   ;;  %s2658_s4 = inlined_call_operand.hbm [shape: f32[1,1536], index: 4, kind: input, shape index: {}]   ;;  %s2659_s5 = inlined_call_operand.vmem [shape: f32[16,1536], index: 5, kind: output, shape index: {}]  }
   0x1   :  { %2663 = sst [smem:[#allocation17_spill]] %s2655_s1 }
   0x2   :  { %2664 = sst [smem:[#allocation18_spill]] %s2657_s3 }
   0x3   :  { %2665 = sst [smem:[#allocation19_spill]] %s2659_s5 }
   0x4   :  { %10 = vsyncpa [#allocation3], 0 }
   0x5   :  { %11 = vsyncpa [#allocation5], 0  ;;  %s2196_s18 = smov 0   ;;  %s2198_s19 = smov 0  }
   0x6   :  { %s2200_s20 = smov 0   ;;  %s2202_s21 = smov 0  }
   0x7   :  { %s2204_s22 = smov 0   ;;  %s2206_s23 = smov 0  }
   0x8 LB: > { %2666 = sst [smem:[#allocation12_spill]] %s2146_s20  ;;  %s2225_s24 = sadd.s32 4294967295, %s2158_s23   ;;  %s2158_s23 = sphi %s2206_s23, %s17_s23   ;;  %s2154_s22 = sphi %s2204_s22, %s2688_s22   ;;  %s2150_s21 = sphi %s2202_s21, %s2687_s21   ;;  %s2146_s20 = sphi %s2200_s20, %s2683_s20   ;;  %s2142_s19 = sphi %s2198_s19, %s2686_s19   ;;  %s2138_s18 = sphi %s2196_s18, %s2685_s18  }
   0x9   : > { %2667 = sst [smem:[#allocation13_spill]] %s2150_s21  ;;  %s26_s25 = sadd.s32 1, %s2154_s22 }
   0xa   : > { %2668 = sst [smem:[#allocation14_spill]] %s2158_s23  ;;  %p27_p0 = scmp.ge.s32.totalorder %s26_s25, 3 }
   0xb   : > { %s104_s26 = sadd.s32 1, %s2146_s20  ;;  %p111_p1 = scmp.ne.s32.totalorder %s2146_s20, %s2142_s19 }
   0xc   : > { %p112_p2 = scmp.eq.s32.totalorder %s2158_s23, 0  ;;  %s2690_s25 = smov (%p27_p0, %s26_s25), 0 }
   0xd   : > { %2669 = sst [smem:[#allocation15_spill]] %s2690_s25  ;;  %p117_p4 = scmp.ne.s32.totalorder %s2142_s19, %s2138_s18 }
   0xe   : > { %p2234_p3 = por %p112_p2, %p111_p1  ;;  %s101_s28 = ssub.s32 %s2154_s22, %s2690_s25 }
   0xf   : > { %p118_p5 = scmp.eq.s32.totalorder %s2225_s24, 0  ;;  %p102_p6 = scmp.eq.s32.totalorder %s101_s28, 0 }
  0x10   : > { %p169_p7 = scmp.eq.s32.totalorder %s2225_s24, 2  ;;  %p1386_p9 = scmp.ge.s32.totalorder %s2158_s23, 1 }
  0x11   : > { %p2245_p8 = por %p118_p5, %p117_p4  ;;  %p182_p11 = scmp.lt.s32.totalorder %s2158_s23, 4 }
  0x12   : > { %s2251_s30 = scalar_select %p102_p6, %s2146_s20, %s104_s26  }
  0x13   : > { %p2253_p10 = por %p169_p7, %p111_p1  ;;  %s2674_s1 = sld [smem:[#allocation17_spill]] }
  0x14   : > { %2672 = sst [smem:[#allocation16_spill]] %s2251_s30  ;;  %p2261_p12 = pnand %p1386_p9, %p182_p11 }
  0x15   : > { %s2160_s11 = smov [#allocation2]   ;;  %p1917_p0 = scmp.lt.s32.totalorder %s2158_s23, 3 }
  0x16   : > { %p1901_p13 = pneg %p2261_p12  ;;  %s206_s12 = sshll.u32 %s2160_s11, 4  ;;  %s207_s12 = int_to_ptr.vmem [resolvable:$true] %s206_s12 }
  0x17   : > { %s229_s14 = sand.u32 1, %s2158_s23   ;;  %p2277_p2 = pnand %p1917_p0, %p2234_p3 }
  0x18   : > { %p2270_p1 = pnand %p1901_p13, %p118_p5  ;;  %s231_s16 = sand.u32 1, %s2146_s20  }
  0x19   : > { %s204_s9 = sshll.u32 %s2674_s1, 4  ;;  %s1887_s17 = smul.u32 768, %s231_s16  ;;  %s205_s9 = int_to_ptr.hbm [resolvable:$true] %s204_s9 }
  0x1a   : > { %1904 = dma.hbm_to_vmem [thread:$0]  (!%p2270_p1), %s205_s9, 48, %s207_s12, [#allocation3]  }
  0x1b   : > { %s1789_s18 = sshll.u32 %s2154_s22, 4  ;;  %s2678_s3 = sld [smem:[#allocation18_spill]] }
  0x1c   : > { %s233_s11 = scalar_lea.vmem [#allocation6], %s1887_s17  ;;  %s230_s27 = scalar_lea.sflag [#allocation3], %s229_s14 }
  0x1d   : > { %s241_s1 = sshll.u32 %s233_s11, 4  ;;  %s2161_s25 = smov 768   ;;  %s242_s1 = int_to_ptr.vmem [resolvable:$true] %s241_s1 }
  0x1e   : > { %s2162_s30 = smov 256   ;;  %s2163_s23 = smov 16  }
  0x1f   : > { %s216_s20 = sshll.u32 %s2656_s2, 4  ;;  %s1393_s17 = sshll.u32 %s231_s16, 2  ;;  %s217_s20 = int_to_ptr.hbm [resolvable:$true] %s216_s20 }
  0x20   : > { %s1394_s28 = sshll.u32 %s2154_s22, 2 }
  0x21   : > { %s238_s7 = scalar_lea.hbm %s2678_s3, %s1789_s18  ;;  %s2164_s18 = smov [#allocation4]  }
  0x22   : > { %s239_s8 = sshll.u32 %s238_s7, 4  ;;  %s218_s26 = sshll.u32 %s2164_s18, 4  ;;  %s240_s8 = int_to_ptr.hbm [resolvable:$true] %s239_s8  ;;  %s219_s26 = int_to_ptr.vmem [resolvable:$true] %s218_s26 }
  0x23   : > { %1911 = dma.hbm_to_vmem [thread:$0]  (!%p2277_p2), %s240_s8, 12288, %s242_s1, %s230_s27, %s2161_s25, %s2162_s30, %s2163_s23  }
  0x24   : > { %1907 = dma.hbm_to_vmem [thread:$0]  (!%p2270_p1), %s217_s20, 48, %s219_s26, [#allocation5]  }
  0x25   : > { %s259_s11 = scalar_lea.hbm %s2658_s4, %s1394_s28  ;;  %s255_s3 = scalar_lea.vmem [#allocation7], %s1393_s17 }
  0x26   : > { %s263_s5 = sshll.u32 %s255_s3, 4  ;;  %s261_s21 = sshll.u32 %s259_s11, 4  ;;  %s264_s5 = int_to_ptr.vmem [resolvable:$true] %s263_s5  ;;  %s262_s21 = int_to_ptr.hbm [resolvable:$true] %s261_s21 }
  0x27   : > { %1914 = dma.hbm_to_vmem [thread:$0]  (!%p2277_p2), %s262_s21, 64, %s264_s5, %s230_s27  }
  0x28   : > { %272 = sbr.rel (%p2261_p12) target bundleno = 525 (0x20d), region = 40 }
  0x2d   : > { %2125 = dma.done.wait (%p118_p5), [#allocation3], 48  }
  0x2e   : > { %2127 = vsyncadd (%p118_p5), [#allocation3], 4294967248 }
  0x2f   : > { %2129 = dma.done.wait (%p118_p5), [#allocation5], 48  }
  0x30   : > { %2131 = vsyncadd (%p118_p5), [#allocation5], 4294967248  ;;  %s284_s1 = sand.u32 1, %s2225_s24   ;;  %s2313_s3 = sand.u32 1, %s2142_s19  }
  0x31   : > { %s1888_s5 = smul.u32 768, %s2313_s3  ;;  %s285_s20 = scalar_lea.sflag [#allocation3], %s284_s1 }
  0x33   : > { %s2316_s21 = scalar_lea.vmem [#allocation6], %s1888_s5 }
  0x34   : > { %2133 = dma.done.wait (%p2245_p8), %s285_s20, 12352  }
  0x35   : > { %2135 = vsyncadd (%p2245_p8), %s285_s20, 4294954944  ;;  %v2325_v0 = vld [vmem:[%s2654_s0] sm:$0xff]  ;;  %v2330_v1 = vld [vmem:[%s2654_s0 + $0x8] sm:$0xff]  ;;  %v2165_v10 = vmov 384.0   ;;  %s1398_s12 = sshll.u32 %s2313_s3, 2  ;;  %s1399_s26 = sshll.u32 %s2313_s3, 6 }
  0x36   : > { %v2335_v2 = vld [vmem:[%s2654_s0 + $0x10] sm:$0xff]  ;;  %v353_v3 = vadd.f32 %v2330_v1, %v2325_v0  ;;  %v2342_v4 = vld [vmem:[%s2654_s0 + $0x18] sm:$0xff]  ;;  %v2347_v5 = vld [vmem:[%s2654_s0 + $0x20] sm:$0xff]  ;;  %1974 = vrcp.f32 %v2165_v10  ;;  %s298_s18 = scalar_lea.vmem [#allocation7], %s1398_s12  ;;  %s2612_s17 = scalar_lea.vmem [#allocation8], %s1399_s26 }
  0x37   : > { %v357_v7 = vadd.f32 %v2347_v5, %v2342_v4  ;;  %v2355_v8 = vld [vmem:[%s2654_s0 + $0x28] sm:$0xff]  ;;  %v1820_v15 = vld [vmem:[%s2316_s21 + $0xec] sm:$0xf0]  ;;  %v1516_v24 = vld [vmem:[%s2316_s21 + $0xf0] sm:$0xf0]  ;;  %s2679_s28 = sld [smem:[#allocation13_spill]] (%p2253_p10) }
  0x38   : > { %v354_v6 = vadd.f32 %v353_v3, %v2335_v2  ;;  %v1514_v14 = vld [vmem:[%s2316_s21 + $0xe0] sm:$0xf]  ;;  %v1852_v18 = vld [vmem:[%s2316_s21 + $0x1ec] sm:$0xf0]  ;;  %v1818_v23 = vld [vmem:[%s2316_s21 + $0xe4] sm:$0xf] }
  0x39   : > { %v358_v9 = vadd.f32 %v357_v7, %v2355_v8  ;;  %v1642_v16 = vld [vmem:[%s2316_s21 + $0x1e0] sm:$0xf]  ;;  %v1515_v17 = vor.u32 %v1820_v15, %v1514_v14  ;;  %v1884_v20 = vld [vmem:[%s2316_s21 + $0x2ec] sm:$0xf0]  ;;  %v1519_v27 = vor.u32 %v1818_v23, %v1516_v24  ;;  %v1814_v35 = vld [vmem:[%s2316_s21 + $0xc4] sm:$0xf] }
  0x3a   : > { %355 = vadd.xlane.f32.xlu0 %v354_v6  ;;  %v1770_v19 = vld [vmem:[%s2316_s21 + $0x2e0] sm:$0xf]  ;;  %v1643_v21 = vor.u32 %v1852_v18, %v1642_v16  ;;  %v1816_v28 = vld [vmem:[%s2316_s21 + $0xcc] sm:$0xf0]  ;;  %v1500_v37 = vld [vmem:[%s2316_s21 + $0xd0] sm:$0xf0] }
  0x3b   : > { %v1771_v22 = vor.u32 %v1884_v20, %v1770_v19  ;;  %v1498_v25 = vld [vmem:[%s2316_s21 + $0xc0] sm:$0xf]  ;;  %1037 = vmatpush.bf16.msra.mxu0 %v1515_v17  ;;  %v1848_v30 = vld [vmem:[%s2316_s21 + $0x1cc] sm:$0xf0]  ;;  %1079 = vmatpush.bf16.msra.mxu3 %v1519_v27  ;;  %v1503_v40 = vor.u32 %v1814_v35, %v1500_v37  ;;  %v1810_v47 = vld [vmem:[%s2316_s21 + $0xa4] sm:$0xf] }
  0x3c   : > { %v1975_v11 = vpop.eup %1974  ;;  %v1626_v29 = vld [vmem:[%s2316_s21 + $0x1c0] sm:$0xf]  ;;  %1051 = vmatpush.bf16.msra.mxu1 %v1643_v21  ;;  %v1499_v31 = vor.u32 %v1816_v28, %v1498_v25  ;;  %v1880_v34 = vld [vmem:[%s2316_s21 + $0x2cc] sm:$0xf0]  ;;  %v1484_v48 = vld [vmem:[%s2316_s21 + $0xb0] sm:$0xf0] }
  0x3d   : > { %v362_v12 = vmul.f32 384.0, %v1975_v11  ;;  %1065 = vmatpush.bf16.msra.mxu2 %v1771_v22  ;;  %v1627_v32 = vor.u32 %v1848_v30, %v1626_v29  ;;  %v1754_v33 = vld [vmem:[%s2316_s21 + $0x2c0] sm:$0xf]  ;;  %v1812_v39 = vld [vmem:[%s2316_s21 + $0xac] sm:$0xf0]  ;;  %vm366_vm0 = vweird.f32 %v1975_v11  ;;  %v1487_v54 = vor.u32 %v1810_v47, %v1484_v48  ;;  %s1886_s7 = sshll.u32 (%p2253_p10), %s2679_s28, 5 }
  0x3e   : > { %v1755_v36 = vor.u32 %v1880_v34, %v1754_v33  ;;  %v1482_v38 = vld [vmem:[%s2316_s21 + $0xa0] sm:$0xf]  ;;  %v1844_v42 = vld [vmem:[%s2316_s21 + $0x1ac] sm:$0xf0]  ;;  %v1806_v58 = vld [vmem:[%s2316_s21 + $0x84] sm:$0xf] }
  0x3f   : > { %v363_v13 = vsub.f32 1.0, %v362_v12  ;;  %v1610_v41 = vld [vmem:[%s2316_s21 + $0x1a0] sm:$0xf]  ;;  %1038 = vmatpush.bf16.msra.mxu0 %v1499_v31  ;;  %v1483_v45 = vor.u32 %v1812_v39, %v1482_v38  ;;  %v1876_v46 = vld [vmem:[%s2316_s21 + $0x2ac] sm:$0xf0]  ;;  %1080 = vmatpush.bf16.msra.mxu3 %v1503_v40  ;;  %s2680_s1 = sld [smem:[#allocation19_spill]] (%p2253_p10) }
  0x40   : > { %v1738_v43 = vld [vmem:[%s2316_s21 + $0x2a0] sm:$0xf]  ;;  %1052 = vmatpush.bf16.msra.mxu1 %v1627_v32  ;;  %v1611_v49 = vor.u32 %v1844_v42, %v1610_v41  ;;  %v1808_v52 = vld [vmem:[%s2316_s21 + $0x8c] sm:$0xf0]  ;;  %v1468_v59 = vld [vmem:[%s2316_s21 + $0x90] sm:$0xf0] }
  0x41   : > { %v364_v26 = vmul.f32 %v1975_v11, %v363_v13  ;;  %1066 = vmatpush.bf16.msra.mxu2 %v1755_v36  ;;  %v1739_v50 = vor.u32 %v1876_v46, %v1738_v43  ;;  %v1466_v51 = vld [vmem:[%s2316_s21 + $0x80] sm:$0xf]  ;;  %v1840_v55 = vld [vmem:[%s2316_s21 + $0x18c] sm:$0xf0]  ;;  %v1471_v14 = vor.u32 %v1806_v58, %v1468_v59  ;;  %v1802_v15 = vld [vmem:[%s2316_s21 + $0x64] sm:$0xf] }
  0x42   : > { %359 = vadd.xlane.f32.xlu0 %v358_v9  ;;  %v1594_v53 = vld [vmem:[%s2316_s21 + $0x180] sm:$0xf]  ;;  %v1872_v57 = vld [vmem:[%s2316_s21 + $0x28c] sm:$0xf0]  ;;  %v1467_v61 = vor.u32 %v1808_v52, %v1466_v51  ;;  %v1452_v16 = vld [vmem:[%s2316_s21 + $0x70] sm:$0xf0] }
  0x43   : > { %v365_v44 = vadd.f32 %v1975_v11, %v364_v26  ;;  %v1722_v56 = vld [vmem:[%s2316_s21 + $0x280] sm:$0xf]  ;;  %1039 = vmatpush.bf16.msra.mxu0 %v1483_v45  ;;  %v1804_v63 = vld [vmem:[%s2316_s21 + $0x6c] sm:$0xf0]  ;;  %v1595_v6 = vor.u32 %v1840_v55, %v1594_v53  ;;  %1081 = vmatpush.bf16.msra.mxu3 %v1487_v54  ;;  %v1455_v23 = vor.u32 %v1802_v15, %v1452_v16  ;;  %v1798_v42 = vld [vmem:[%s2316_s21 + $0x44] sm:$0xf] }
  0x44   : > { %v1450_v62 = vld [vmem:[%s2316_s21 + $0x60] sm:$0xf]  ;;  %1053 = vmatpush.bf16.msra.mxu1 %v1611_v49  ;;  %v1723_v7 = vor.u32 %v1872_v57, %v1722_v56  ;;  %v1836_v9 = vld [vmem:[%s2316_s21 + $0x16c] sm:$0xf0]  ;;  %v1436_v43 = vld [vmem:[%s2316_s21 + $0x50] sm:$0xf0] }
  0x45   : > { %v2390_v60 = vsel %vm366_vm0, %v1975_v11, %v365_v44  ;;  %v1578_v3 = vld [vmem:[%s2316_s21 + $0x160] sm:$0xf]  ;;  %1067 = vmatpush.bf16.msra.mxu2 %v1739_v50  ;;  %v1868_v12 = vld [vmem:[%s2316_s21 + $0x26c] sm:$0xf0]  ;;  %v1451_v17 = vor.u32 %v1804_v63, %v1450_v62  ;;  %v1439_v44 = vor.u32 %v1798_v42, %v1436_v43  ;;  %v1794_v54 = vld [vmem:[%s2316_s21 + $0x24] sm:$0xf]  ;;  %s1225_s3 = scalar_lea.vmem (%p2253_p10), %s2680_s1, %s1886_s7 }
  0x46   : > { %v1706_v10 = vld [vmem:[%s2316_s21 + $0x260] sm:$0xf]  ;;  %v1579_v18 = vor.u32 %v1836_v9, %v1578_v3  ;;  %v1832_v37 = vld [vmem:[%s2316_s21 + $0x14c] sm:$0xf0]  ;;  %v1420_v55 = vld [vmem:[%s2316_s21 + $0x30] sm:$0xf0] }
  0x47   : > { %1040 = vmatpush.bf16.msra.mxu0 %v1467_v61  ;;  %v1707_v19 = vor.u32 %v1868_v12, %v1706_v10  ;;  %1082 = vmatpush.bf16.msra.mxu3 %v1471_v14  ;;  %v1562_v35 = vld [vmem:[%s2316_s21 + $0x140] sm:$0xf]  ;;  %v1864_v39 = vld [vmem:[%s2316_s21 + $0x24c] sm:$0xf0]  ;;  %v1423_v56 = vor.u32 %v1794_v54, %v1420_v55  ;;  %v1790_v9 = vld [vmem:[%s2316_s21 + $0x4] sm:$0xf] }
  0x48   : > { %1054 = vmatpush.bf16.msra.mxu1 %v1595_v6  ;;  %v1690_v38 = vld [vmem:[%s2316_s21 + $0x240] sm:$0xf]  ;;  %v1563_v40 = vor.u32 %v1832_v37, %v1562_v35  ;;  %v1796_v46 = vld [vmem:[%s2316_s21 + $0x2c] sm:$0xf0]  ;;  %v1404_v10 = vld [vmem:[%s2316_s21 + $0x10] sm:$0xf0] }
  0x49   : > { %1068 = vmatpush.bf16.msra.mxu2 %v1723_v7  ;;  %v1691_v41 = vor.u32 %v1864_v39, %v1690_v38  ;;  %v1418_v45 = vld [vmem:[%s2316_s21 + $0x20] sm:$0xf]  ;;  %v1828_v49 = vld [vmem:[%s2316_s21 + $0x12c] sm:$0xf0]  ;;  %v1850_v12 = vld [vmem:[%s2316_s21 + $0x1e4] sm:$0xf] }
  0x4a   : > { %v1546_v47 = vld [vmem:[%s2316_s21 + $0x120] sm:$0xf]  ;;  %v1419_v48 = vor.u32 %v1796_v46, %v1418_v45  ;;  %v1860_v51 = vld [vmem:[%s2316_s21 + $0x22c] sm:$0xf0]  ;;  %v1644_v14 = vld [vmem:[%s2316_s21 + $0x1f0] sm:$0xf0] }
  0x4b   : > { %1041 = vmatpush.bf16.msra.mxu0 %v1451_v17  ;;  %1083 = vmatpush.bf16.msra.mxu3 %v1455_v23  ;;  %v1674_v50 = vld [vmem:[%s2316_s21 + $0x220] sm:$0xf]  ;;  %v1547_v52 = vor.u32 %v1828_v49, %v1546_v47  ;;  %v1792_v58 = vld [vmem:[%s2316_s21 + $0xc] sm:$0xf0]  ;;  %v1772_v15 = vld [vmem:[%s2316_s21 + $0x2f0] sm:$0xf0]  ;;  %v1647_v16 = vor.u32 %v1850_v12, %v1644_v14 }
  0x4c   : > { %1055 = vmatpush.bf16.msra.mxu1 %v1579_v18  ;;  %v1675_v53 = vor.u32 %v1860_v51, %v1674_v50  ;;  %v1402_v57 = vld [vmem:[%s2316_s21] sm:$0xf]  ;;  %v1824_v62 = vld [vmem:[%s2316_s21 + $0x10c] sm:$0xf0]  ;;  %v1522_v18 = vld [vmem:[%s2316_s21 + $0xe8] sm:$0xf] }
  0x4d   : > { %1069 = vmatpush.bf16.msra.mxu2 %v1707_v19  ;;  %v1530_v59 = vld [vmem:[%s2316_s21 + $0x100] sm:$0xf]  ;;  %v1403_v61 = vor.u32 %v1792_v58, %v1402_v57  ;;  %v1856_v3 = vld [vmem:[%s2316_s21 + $0x20c] sm:$0xf0]  ;;  %v1821_v19 = vld [vmem:[%s2316_s21 + $0xf4] sm:$0xf0] }
  0x4e   : > { %v1658_v63 = vld [vmem:[%s2316_s21 + $0x200] sm:$0xf]  ;;  %v1531_v6 = vor.u32 %v1824_v62, %v1530_v59  ;;  %v1650_v23 = vld [vmem:[%s2316_s21 + $0x1e8] sm:$0xf]  ;;  %v1612_v37 = vld [vmem:[%s2316_s21 + $0x1b0] sm:$0xf0] }
  0x4f   : > { %1084 = vmatpush.bf16.msra.mxu3 %v1439_v44  ;;  %v1659_v7 = vor.u32 %v1856_v3, %v1658_v63  ;;  %v1874_v38 = vld [vmem:[%s2316_s21 + $0x2a4] sm:$0xf]  ;;  %v1813_v42 = vld [vmem:[%s2316_s21 + $0xb4] sm:$0xf0]  ;;  %v1618_v45 = vld [vmem:[%s2316_s21 + $0x1a8] sm:$0xf] }
  0x50   : > { %1056 = vmatpush.bf16.msra.mxu1 %v1563_v40  ;;  %v1740_v40 = vld [vmem:[%s2316_s21 + $0x2b0] sm:$0xf0]  ;;  %v1845_v46 = vld [vmem:[%s2316_s21 + $0x1b4] sm:$0xf0]  ;;  %v1870_v50 = vld [vmem:[%s2316_s21 + $0x284] sm:$0xf] }
  0x51   : > { %1070 = vmatpush.bf16.msra.mxu2 %v1691_v41  ;;  %v1490_v41 = vld [vmem:[%s2316_s21 + $0xa8] sm:$0xf]  ;;  %v1743_v43 = vor.u32 %v1874_v38, %v1740_v40  ;;  %v1619_v47 = vor.u32 %v1845_v46, %v1618_v45  ;;  %v1596_v49 = vld [vmem:[%s2316_s21 + $0x190] sm:$0xf0]  ;;  %v1809_v54 = vld [vmem:[%s2316_s21 + $0x94] sm:$0xf0] }
  0x52   : > { %v1491_v44 = vor.u32 %v1813_v42, %v1490_v41  ;;  %v1602_v57 = vld [vmem:[%s2316_s21 + $0x188] sm:$0xf]  ;;  %v1841_v58 = vld [vmem:[%s2316_s21 + $0x194] sm:$0xf0]  ;;  %v1580_v62 = vld [vmem:[%s2316_s21 + $0x170] sm:$0xf0] }
  0x53   : > { %1085 = vmatpush.bf16.msra.mxu3 %v1423_v56  ;;  %v1603_v59 = vor.u32 %v1841_v58, %v1602_v57  ;;  %v1866_v63 = vld [vmem:[%s2316_s21 + $0x264] sm:$0xf]  ;;  %v1837_v14 = vld [vmem:[%s2316_s21 + $0x174] sm:$0xf0]  ;;  %v1660_v46 = vld [vmem:[%s2316_s21 + $0x210] sm:$0xf0] }
  0x54   : > { %1057 = vmatpush.bf16.msra.mxu1 %v1547_v52  ;;  %v1724_v52 = vld [vmem:[%s2316_s21 + $0x290] sm:$0xf0]  ;;  %v1829_v38 = vld [vmem:[%s2316_s21 + $0x134] sm:$0xf0]  ;;  %v1822_v42 = vld [vmem:[%s2316_s21 + $0x104] sm:$0xf] }
  0x55   : > { %1071 = vmatpush.bf16.msra.mxu2 %v1675_v53  ;;  %v1474_v53 = vld [vmem:[%s2316_s21 + $0x88] sm:$0xf]  ;;  %v1727_v55 = vor.u32 %v1870_v50, %v1724_v52  ;;  %v1825_v52 = vld [vmem:[%s2316_s21 + $0x114] sm:$0xf0] }
  0x56   : > { %v1475_v56 = vor.u32 %v1809_v54, %v1474_v53 }
  0x58   : > { %1058 = vmatpush.bf16.msra.mxu1 %v1531_v6  ;;  %v1708_v6 = vld [vmem:[%s2316_s21 + $0x270] sm:$0xf0] }
  0x59   : > { %1072 = vmatpush.bf16.msra.mxu2 %v1659_v7  ;;  %v1458_v7 = vld [vmem:[%s2316_s21 + $0x68] sm:$0xf] }
  0xad   : > { %v356_v13 = vpop.xlane.xlu0 %355 }
  0xae   : > { %v368_v11 = vmul.f32 %v2390_v60, %v356_v13  ;;  %v1407_v13 = vor.u32 %v1790_v9, %v1404_v10  ;;  %v1805_v9 = vld [vmem:[%s2316_s21 + $0x74] sm:$0xf0]  ;;  %v1711_v10 = vor.u32 %v1866_v63, %v1708_v6 }
  0xaf   : > { %v1459_v12 = vor.u32 %v1805_v9, %v1458_v7  ;;  %v420_v9 = vld [vmem:[#allocation2] sm:$0x7] }
  0xb0   : > { %v2402_v20 = vsub.f32 %v2325_v0, %v368_v11  ;;  %v2405_v21 = vsub.f32 %v2330_v1, %v368_v11  ;;  %v2408_v22 = vsub.f32 %v2335_v2, %v368_v11  ;;  %v1882_v11 = vld [vmem:[%s2316_s21 + $0x2e4] sm:$0xf]  ;;  %1086 = vmatpush.bf16.msra.mxu3 %v1407_v13  ;;  %v1586_v13 = vld [vmem:[%s2316_s21 + $0x168] sm:$0xf] }
  0xb1   : > { %v1775_v17 = vor.u32 %v1882_v11, %v1772_v15  ;;  %v1587_v11 = vor.u32 %v1837_v14, %v1586_v13  ;;  %v1830_v15 = vld [vmem:[%s2316_s21 + $0x144] sm:$0xf]  ;;  %v423_v13 = vperm.slane %v420_v9, 1 }
  0xb2   : > { %v376_v24 = vmul.f32 %v2402_v20, %v2402_v20  ;;  %v377_v25 = vmul.f32 %v2405_v21, %v2405_v21  ;;  %v378_v0 = vmul.f32 %v2408_v22, %v2408_v22 }
  0xb3   : > { %1107 = vmatpush.bf16.msrb.mxu1 %v1775_v17  ;;  %v1862_v17 = vld [vmem:[%s2316_s21 + $0x244] sm:$0xf] }
  0xb4   : > { %v382_v26 = vadd.f32 %v377_v25, %v376_v24  ;;  %v1523_v24 = vor.u32 %v1821_v19, %v1522_v18  ;;  %v1853_v25 = vld [vmem:[%s2316_s21 + $0x1f4] sm:$0xf0]  ;;  %v1692_v19 = vld [vmem:[%s2316_s21 + $0x250] sm:$0xf0] }
  0xb5   : > { %v360_v1 = vpop.xlane.xlu0 %359 }
  0xb6   : > { %v369_v2 = vmul.f32 %v2390_v60, %v360_v1  ;;  %v383_v27 = vadd.f32 %v382_v26, %v378_v0  ;;  %v1846_v0 = vld [vmem:[%s2316_s21 + $0x1c4] sm:$0xf]  ;;  %v1628_v26 = vld [vmem:[%s2316_s21 + $0x1d0] sm:$0xf0]  ;;  %v1651_v1 = vor.u32 %v1853_v25, %v1650_v23  ;;  %1121 = vmatpush.bf16.msrb.mxu2 %v1523_v24  ;;  %v1442_v23 = vld [vmem:[%s2316_s21 + $0x48] sm:$0xf]  ;;  %v1695_v25 = vor.u32 %v1862_v17, %v1692_v19 }
  0xb7   : > { %v1801_v24 = vld [vmem:[%s2316_s21 + $0x54] sm:$0xf0] }
  0xb8   : > { %v2418_v28 = vsub.f32 %v2342_v4, %v369_v2  ;;  %v2421_v29 = vsub.f32 %v2347_v5, %v369_v2  ;;  %v2424_v30 = vsub.f32 %v2355_v8, %v369_v2  ;;  %384 = vadd.xlane.f32.xlu1 %v383_v27  ;;  %v1434_v5 = vld [vmem:[%s2316_s21 + $0x40] sm:$0xf]  ;;  %v1800_v8 = vld [vmem:[%s2316_s21 + $0x4c] sm:$0xf0]  ;;  %v1631_v2 = vor.u32 %v1846_v0, %v1628_v26  ;;  %v1878_v27 = vld [vmem:[%s2316_s21 + $0x2c4] sm:$0xf] }
  0xb9   : > { %v1435_v36 = vor.u32 %v1800_v8, %v1434_v5  ;;  %v1849_v5 = vld [vmem:[%s2316_s21 + $0x1d4] sm:$0xf0]  ;;  %1135 = vmatpush.bf16.msrb.mxu3 %v1651_v1  ;;  %v1443_v0 = vor.u32 %v1801_v24, %v1442_v23  ;;  %v1570_v26 = vld [vmem:[%s2316_s21 + $0x148] sm:$0xf] }
  0xba   : > { %v379_v31 = vmul.f32 %v2418_v28, %v2418_v28  ;;  %v380_v32 = vmul.f32 %v2421_v29, %v2421_v29  ;;  %v381_v4 = vmul.f32 %v2424_v30, %v2424_v30  ;;  %v1833_v1 = vld [vmem:[%s2316_s21 + $0x154] sm:$0xf0] }
  0xbb   : > { %1042 = vmatpush.bf16.msra.mxu0 %v1435_v36  ;;  %v1842_v36 = vld [vmem:[%s2316_s21 + $0x1a4] sm:$0xf] }
  0xbc   : > { %v386_v33 = vadd.f32 %v380_v32, %v379_v31  ;;  %v1756_v31 = vld [vmem:[%s2316_s21 + $0x2d0] sm:$0xf0]  ;;  %v1506_v32 = vld [vmem:[%s2316_s21 + $0xc8] sm:$0xf]  ;;  %v1615_v39 = vor.u32 %v1842_v36, %v1612_v37 }
  0xbd   : > { %v1554_v37 = vld [vmem:[%s2316_s21 + $0x128] sm:$0xf] }
  0xbe   : > { %v387_v34 = vadd.f32 %v386_v33, %v381_v4  ;;  %v1759_v4 = vor.u32 %v1878_v27, %v1756_v31  ;;  %v1817_v33 = vld [vmem:[%s2316_s21 + $0xd4] sm:$0xf0]  ;;  %v1826_v27 = vld [vmem:[%s2316_s21 + $0x124] sm:$0xf]  ;;  %v1548_v31 = vld [vmem:[%s2316_s21 + $0x130] sm:$0xf0]  ;;  %v1555_v41 = vor.u32 %v1829_v38, %v1554_v37 }
  0xbf   : > { %1043 = vmatpush.bf16.msra.mxu0 %v1419_v48  ;;  %v1507_v8 = vor.u32 %v1817_v33, %v1506_v32  ;;  %v1838_v48 = vld [vmem:[%s2316_s21 + $0x184] sm:$0xf]  ;;  %v1676_v33 = vld [vmem:[%s2316_s21 + $0x230] sm:$0xf0]  ;;  %v1652_v38 = vld [vmem:[%s2316_s21 + $0x1f8] sm:$0xf0] }
  0xc0   : > { %388 = vadd.xlane.f32.xlu1 %v387_v34  ;;  %v1634_v34 = vld [vmem:[%s2316_s21 + $0x1c8] sm:$0xf]  ;;  %1108 = vmatpush.bf16.msrb.mxu1 %v1759_v4  ;;  %v1599_v51 = vor.u32 %v1838_v48, %v1596_v49  ;;  %v1858_v32 = vld [vmem:[%s2316_s21 + $0x224] sm:$0xf]  ;;  %v1793_v48 = vld [vmem:[%s2316_s21 + $0x14] sm:$0xf0] }
  0xc1   : > { %v1635_v35 = vor.u32 %v1849_v5, %v1634_v34  ;;  %1122 = vmatpush.bf16.msrb.mxu2 %v1507_v8  ;;  %v1426_v34 = vld [vmem:[%s2316_s21 + $0x28] sm:$0xf]  ;;  %v1797_v5 = vld [vmem:[%s2316_s21 + $0x34] sm:$0xf0]  ;;  %v1679_v36 = vor.u32 %v1858_v32, %v1676_v33 }
  0xc2   : > { %v1885_v33 = vld [vmem:[%s2316_s21 + $0x2f4] sm:$0xf0] }
  0xc3   : > { %1044 = vmatpush.bf16.msra.mxu0 %v1403_v61  ;;  %1136 = vmatpush.bf16.msrb.mxu3 %v1635_v35  ;;  %v1834_v61 = vld [vmem:[%s2316_s21 + $0x164] sm:$0xf]  ;;  %v1551_v35 = vor.u32 %v1826_v27, %v1548_v31 }
  0xc4   : > { %1109 = vmatpush.bf16.msrb.mxu1 %v1743_v43  ;;  %v1583_v3 = vor.u32 %v1834_v61, %v1580_v62  ;;  %v1532_v43 = vld [vmem:[%s2316_s21 + $0x110] sm:$0xf0] }
  0xc5   : > { %1123 = vmatpush.bf16.msrb.mxu2 %v1491_v44  ;;  %v1854_v44 = vld [vmem:[%s2316_s21 + $0x204] sm:$0xf]  ;;  %v1535_v45 = vor.u32 %v1822_v42, %v1532_v43 }
  0xc6   : > { %v1663_v49 = vor.u32 %v1854_v44, %v1660_v46  ;;  %v1762_v46 = vld [vmem:[%s2316_s21 + $0x2c8] sm:$0xf] }
  0xc7   : > { %1093 = vmatpush.bf16.msrb.mxu0 %v1647_v16  ;;  %1137 = vmatpush.bf16.msrb.mxu3 %v1619_v47  ;;  %v1564_v16 = vld [vmem:[%s2316_s21 + $0x150] sm:$0xf0]  ;;  %v1410_v47 = vld [vmem:[%s2316_s21 + $0x8] sm:$0xf] }
  0xc8   : > { %1110 = vmatpush.bf16.msrb.mxu1 %v1727_v55  ;;  %v1567_v18 = vor.u32 %v1830_v15, %v1564_v16  ;;  %v1411_v50 = vor.u32 %v1793_v48, %v1410_v47  ;;  %v434_v16 = vld [vmem:[#allocation4] sm:$0x7]  ;;  %v1881_v47 = vld [vmem:[%s2316_s21 + $0x2d4] sm:$0xf0] }
  0xc9   : > { %1124 = vmatpush.bf16.msrb.mxu2 %v1475_v56  ;;  %v436_v23 = vperm.slane %v434_v16, 0  ;;  %v437_v24 = vperm.slane %v434_v16, 1 }
  0xcb   : > { %1094 = vmatpush.bf16.msrb.mxu0 %v1631_v2  ;;  %1138 = vmatpush.bf16.msrb.mxu3 %v1603_v59  ;;  %v1571_v2 = vor.u32 %v1833_v1, %v1570_v26 }
  0xcc   : > { %1111 = vmatpush.bf16.msrb.mxu1 %v1711_v10 }
  0xcd   : > { %1125 = vmatpush.bf16.msrb.mxu2 %v1459_v12  ;;  %v422_v12 = vperm.slane %v420_v9, 0 }
  0xcf   : > { %1095 = vmatpush.bf16.msrb.mxu0 %v1615_v39  ;;  %1139 = vmatpush.bf16.msrb.mxu3 %v1587_v11  ;;  %v1427_v39 = vor.u32 %v1797_v5, %v1426_v34 }
  0xd0   : > { %1112 = vmatpush.bf16.msrb.mxu1 %v1695_v25 }
  0xd1   : > { %1126 = vmatpush.bf16.msrb.mxu2 %v1443_v0 }
  0xd3   : > { %1096 = vmatpush.bf16.msrb.mxu0 %v1599_v51  ;;  %1140 = vmatpush.bf16.msrb.mxu3 %v1571_v2  ;;  %v1538_v51 = vld [vmem:[%s2316_s21 + $0x108] sm:$0xf] }
  0xd4   : > { %1113 = vmatpush.bf16.msrb.mxu1 %v1679_v36  ;;  %v1539_v54 = vor.u32 %v1825_v52, %v1538_v51  ;;  %v1508_v51 = vld [vmem:[%s2316_s21 + $0xd8] sm:$0xf0]  ;;  %v1847_v52 = vld [vmem:[%s2316_s21 + $0x1cc] sm:$0xf] }
  0xd5   : > { %1127 = vmatpush.bf16.msrb.mxu2 %v1427_v39  ;;  %v1883_v39 = vld [vmem:[%s2316_s21 + $0x2ec] sm:$0xf] }
  0xd7   : > { %1097 = vmatpush.bf16.msrb.mxu0 %v1583_v3  ;;  %1141 = vmatpush.bf16.msrb.mxu3 %v1555_v41 }
  0xd8   : > { %1114 = vmatpush.bf16.msrb.mxu1 %v1663_v49 }
  0xd9   : > { %1128 = vmatpush.bf16.msrb.mxu2 %v1411_v50  ;;  %v1815_v50 = vld [vmem:[%s2316_s21 + $0xcc] sm:$0xf] }
  0xdb   : > { %1098 = vmatpush.bf16.msrb.mxu0 %v1567_v18  ;;  %1142 = vmatpush.bf16.msrb.mxu3 %v1539_v54  ;;  %v424_v18 = vperm.slane %v420_v9, 2  ;;  %v1879_v54 = vld [vmem:[%s2316_s21 + $0x2cc] sm:$0xf] }
  0xdc   : > { %v1875_v9 = vld [vmem:[%s2316_s21 + $0x2ac] sm:$0xf] }
  0xdf   : > { %1099 = vmatpush.bf16.msrb.mxu0 %v1551_v35  ;;  %v1524_v35 = vld [vmem:[%s2316_s21 + $0xf8] sm:$0xf0] }
  0xe3   : > { %1100 = vmatpush.bf16.msrb.mxu0 %v1535_v45 }
 0x12b   : > { %v385_v4 = vpop.xlane.xlu1 %384 }
 0x12c   : > { %v390_v8 = vmul.f32 %v385_v4, %v2390_v60  ;;  %v1778_v4 = vld [vmem:[%s2316_s21 + $0x2e8] sm:$0xf] }
 0x12d   : > { %v1779_v41 = vor.u32 %v1885_v33, %v1778_v4  ;;  %v1716_v4 = vld [vmem:[%s2316_s21 + $0x278] sm:$0xf0] }
 0x12e   : > { %v392_v40 = vadd.f32 1e-05, %v390_v8  ;;  %v1819_v8 = vld [vmem:[%s2316_s21 + $0xec] sm:$0xf] }
 0x12f   : > { %v1527_v45 = vor.u32 %v1819_v8, %v1524_v35  ;;  %v1865_v8 = vld [vmem:[%s2316_s21 + $0x254] sm:$0xf0] }
 0x130   : > { %1976 = vrsqrt.f32 %v392_v40  ;;  %vm400_vm2 = vweird.f32 %v392_v40 }
 0x133   : > { %v389_v53 = vpop.xlane.xlu1 %388 }
 0x134   : > { %v391_v55 = vmul.f32 %v389_v53, %v2390_v60  ;;  %v1636_v53 = vld [vmem:[%s2316_s21 + $0x1d8] sm:$0xf0] }
 0x136   : > { %v1977_v56 = vpop.eup %1976  ;;  %v393_v57 = vadd.f32 1e-05, %v391_v55  ;;  %v1764_v55 = vld [vmem:[%s2316_s21 + $0x2d8] sm:$0xf0] }
 0x137   : > { %v395_v58 = vmul.f32 %v1977_v56, %v392_v40  ;;  %vm401_vm1 = vweird.f32 %v1977_v56  ;;  %v1780_v40 = vld [vmem:[%s2316_s21 + $0x2f8] sm:$0xf0] }
 0x138   : > { %1978 = vrsqrt.f32 %v393_v57  ;;  %vm402_vm3 = vmor %vm400_vm2, %vm401_vm1  ;;  %vm410_vm5 = vweird.f32 %v393_v57  ;;  %v1783_v49 = vor.u32 %v1883_v39, %v1780_v40  ;;  %v1700_v39 = vld [vmem:[%s2316_s21 + $0x258] sm:$0xf0] }
 0x139   : > { %v396_v59 = vmul.f32 %v1977_v56, %v395_v58  ;;  %v1746_v58 = vld [vmem:[%s2316_s21 + $0x2a8] sm:$0xf] }
 0x13b   : > { %v397_v61 = vmul.f32 0.5, %v396_v59  ;;  %v1877_v59 = vld [vmem:[%s2316_s21 + $0x2b4] sm:$0xf0] }
 0x13d   : > { %v398_v62 = vsub.f32 1.5, %v397_v61  ;;  %v1639_v61 = vor.u32 %v1847_v52, %v1636_v53  ;;  %v1556_v52 = vld [vmem:[%s2316_s21 + $0x138] sm:$0xf0]  ;;  %v1859_v53 = vld [vmem:[%s2316_s21 + $0x22c] sm:$0xf] }
 0x13e   : > { %v1979_v63 = vpop.eup %1978 }
 0x13f   : > { %v399_v3 = vmul.f32 %v1977_v56, %v398_v62  ;;  %v405_v6 = vmul.f32 %v1979_v63, %v393_v57  ;;  %vm411_vm4 = vweird.f32 %v1979_v63  ;;  %v1511_v57 = vor.u32 %v1815_v50, %v1508_v51  ;;  %v1428_v50 = vld [vmem:[%s2316_s21 + $0x38] sm:$0xf0]  ;;  %v1827_v51 = vld [vmem:[%s2316_s21 + $0x12c] sm:$0xf] }
 0x140   : > { %vm412_vm6 = vmor %vm410_vm5, %vm411_vm4  ;;  %v1767_v62 = vor.u32 %v1879_v54, %v1764_v55  ;;  %v1684_v54 = vld [vmem:[%s2316_s21 + $0x238] sm:$0xf0] }
 0x141   : > { %v406_v7 = vmul.f32 %v1979_v63, %v405_v6  ;;  %v403_v60 = vsel %vm402_vm3, %v1977_v56, %v399_v3  ;;  %v1763_v56 = vor.u32 %v1881_v47, %v1762_v46  ;;  %v1492_v3 = vld [vmem:[%s2316_s21 + $0xb8] sm:$0xf0]  ;;  %v1843_v6 = vld [vmem:[%s2316_s21 + $0x1ac] sm:$0xf]  ;;  %v1861_v46 = vld [vmem:[%s2316_s21 + $0x234] sm:$0xf0] }
 0x142   : > { %v414_v14 = vmul.f32 %v403_v60, %v2402_v20  ;;  %v415_v11 = vmul.f32 %v403_v60, %v2405_v21  ;;  %v416_v17 = vmul.f32 %v403_v60, %v2408_v22  ;;  %v438_v21 = vperm.slane %v434_v16, 2  ;;  %v1748_v60 = vld [vmem:[%s2316_s21 + $0x2b8] sm:$0xf0]  ;;  %v1807_v16 = vld [vmem:[%s2316_s21 + $0x8c] sm:$0xf] }
 0x143   : > { %v407_v10 = vmul.f32 0.5, %v406_v7  ;;  %v1620_v7 = vld [vmem:[%s2316_s21 + $0x1b8] sm:$0xf0] }
 0x144   : > { %v428_v0 = vmul.f32 %v422_v12, %v414_v14  ;;  %v429_v20 = vmul.f32 %v423_v13, %v415_v11  ;;  %v430_v2 = vmul.f32 %v424_v18, %v416_v17  ;;  %v1873_v14 = vld [vmem:[%s2316_s21 + $0x294] sm:$0xf0]  ;;  %v1623_v11 = vor.u32 %v1843_v6, %v1620_v7  ;;  %v1476_v17 = vld [vmem:[%s2316_s21 + $0x98] sm:$0xf0]  ;;  %v1855_v7 = vld [vmem:[%s2316_s21 + $0x20c] sm:$0xf] }
 0x145   : > { %v408_v15 = vsub.f32 1.5, %v407_v10  ;;  %v1747_v10 = vor.u32 %v1877_v59, %v1746_v58  ;;  %v1857_v58 = vld [vmem:[%s2316_s21 + $0x214] sm:$0xf0]  ;;  %v1559_v59 = vor.u32 %v1827_v51, %v1556_v52  ;;  %v1540_v6 = vld [vmem:[%s2316_s21 + $0x118] sm:$0xf0] }
 0x146   : > { %v442_v34 = vadd.f32 %v436_v23, %v428_v0  ;;  %v443_v5 = vadd.f32 %v437_v24, %v429_v20  ;;  %v1479_v0 = vor.u32 %v1807_v16, %v1476_v17  ;;  %v1714_v20 = vld [vmem:[%s2316_s21 + $0x268] sm:$0xf] }
 0x147   : > { %v409_v19 = vmul.f32 %v1979_v63, %v408_v15  ;;  %v1751_v15 = vor.u32 %v1875_v9, %v1748_v60  ;;  %v1668_v9 = vld [vmem:[%s2316_s21 + $0x218] sm:$0xf0] }
 0x149   : > { %v413_v25 = vsel %vm412_vm6, %v1979_v63, %v409_v19  ;;  %v1811_v63 = vld [vmem:[%s2316_s21 + $0xac] sm:$0xf]  ;;  %v1604_v19 = vld [vmem:[%s2316_s21 + $0x198] sm:$0xf0] }
 0x14a   : > { %v417_v26 = vmul.f32 %v413_v25, %v2418_v28  ;;  %v418_v1 = vmul.f32 %v413_v25, %v2421_v29  ;;  %v419_v22 = vmul.f32 %v413_v25, %v2424_v30  ;;  %v1851_v28 = vld [vmem:[%s2316_s21 + $0x1ec] sm:$0xf]  ;;  %v444_v30 = vadd.f32 %v438_v21, %v430_v2  ;;  %v1460_v2 = vld [vmem:[%s2316_s21 + $0x78] sm:$0xf0] }
 0x14b   : > { %v1655_v48 = vor.u32 %v1851_v28, %v1652_v38  ;;  %v1863_v38 = vld [vmem:[%s2316_s21 + $0x24c] sm:$0xf] }
 0x14c   : > { %v431_v27 = vmul.f32 %v422_v12, %v417_v26  ;;  %v432_v31 = vmul.f32 %v423_v13, %v418_v1  ;;  %v433_v32 = vmul.f32 %v424_v18, %v419_v22  ;;  %v1495_v12 = vor.u32 %v1811_v63, %v1492_v3  ;;  %v1730_v13 = vld [vmem:[%s2316_s21 + $0x288] sm:$0xf]  ;;  %v1839_v18 = vld [vmem:[%s2316_s21 + $0x18c] sm:$0xf]  ;;  %v1412_v63 = vld [vmem:[%s2316_s21 + $0x18] sm:$0xf0] }
 0x14d   : > { %v1731_v25 = vor.u32 %v1873_v14, %v1730_v13  ;;  %v1607_v26 = vor.u32 %v1839_v18, %v1604_v19  ;;  %v1803_v22 = vld [vmem:[%s2316_s21 + $0x6c] sm:$0xf]  ;;  %v1671_v13 = vor.u32 %v1855_v7, %v1668_v9  ;;  %v547_v14 = vld [vmem:[%s298_s18] sm:$0xf] }
 0x14e   : > { %v445_v36 = vadd.f32 %v436_v23, %v431_v27  ;;  %v446_v29 = vadd.f32 %v437_v24, %v432_v31  ;;  %v447_v37 = vadd.f32 %v438_v21, %v433_v32  ;;  %v1871_v23 = vld [vmem:[%s2316_s21 + $0x28c] sm:$0xf]  ;;  %v1732_v24 = vld [vmem:[%s2316_s21 + $0x298] sm:$0xf0]  ;;  %v1869_v21 = vld [vmem:[%s2316_s21 + $0x274] sm:$0xf0] }
 0x14f   : > { %v1735_v1 = vor.u32 %v1871_v23, %v1732_v24  ;;  %v1835_v27 = vld [vmem:[%s2316_s21 + $0x16c] sm:$0xf]  ;;  %v1588_v31 = vld [vmem:[%s2316_s21 + $0x178] sm:$0xf0]  ;;  %v1715_v33 = vor.u32 %v1869_v21, %v1714_v20 }
 0x150   : > { %v2536_v42 = vpack.c.bf16 %v445_v36, %v442_v34  ;;  %v2538_v43 = vpack.c.bf16 %v446_v29, %v443_v5  ;;  %v2540_v44 = vpack.c.bf16 %v447_v37, %v444_v30  ;;  %v1867_v32 = vld [vmem:[%s2316_s21 + $0x26c] sm:$0xf]  ;;  %v1463_v34 = vor.u32 %v1803_v22, %v1460_v2  ;;  %v1698_v5 = vld [vmem:[%s2316_s21 + $0x248] sm:$0xf]  ;;  %v1444_v29 = vld [vmem:[%s2316_s21 + $0x58] sm:$0xf0] }
 0x151   : > { %v1591_v35 = vor.u32 %v1835_v27, %v1588_v31  ;;  %v1719_v28 = vor.u32 %v1867_v32, %v1716_v4  ;;  %v1799_v36 = vld [vmem:[%s2316_s21 + $0x4c] sm:$0xf]  ;;  %v1572_v37 = vld [vmem:[%s2316_s21 + $0x158] sm:$0xf0]  ;;  %v1699_v40 = vor.u32 %v1865_v8, %v1698_v5 }
 0x152   : > { %1045 = vmatmul.bf16.vlgmr.msra.gmra.mxu0 %v2536_v42  ;;  %1059 = vmatmul.bf16.vlgmr.msra.gmra.mxu1 %v2538_v43  ;;  %v1831_v30 = vld [vmem:[%s2316_s21 + $0x14c] sm:$0xf] }
 0x153   : > { %1073 = vmatmul.bf16.vlgmr.msra.gmra.mxu2 %v2540_v44  ;;  %1087 = vmatmul.bf16.vlgmr.msra.gmra.mxu3 %v2536_v42  ;;  %v1575_v47 = vor.u32 %v1831_v30, %v1572_v37  ;;  %v1823_v3 = vld [vmem:[%s2316_s21 + $0x10c] sm:$0xf] }
 0x154   : > { %1149 = vmatpush.bf16.msra.mxu0 %v1779_v41  ;;  %1163 = vmatpush.bf16.msra.mxu1 %v1527_v45  ;;  %v1447_v41 = vor.u32 %v1799_v36, %v1444_v29  ;;  %v1682_v45 = vld [vmem:[%s2316_s21 + $0x228] sm:$0xf] }
 0x155   : > { %1177 = vmatpush.bf16.msra.mxu2 %v1655_v48  ;;  %1191 = vmatpush.bf16.msra.mxu3 %v1783_v49  ;;  %v1703_v48 = vor.u32 %v1863_v38, %v1700_v39  ;;  %v1795_v49 = vld [vmem:[%s2316_s21 + $0x2c] sm:$0xf]  ;;  %v1683_v55 = vor.u32 %v1861_v46, %v1682_v45 }
 0x158   : > { %1150 = vmatpush.bf16.msra.mxu0 %v1763_v56  ;;  %1164 = vmatpush.bf16.msra.mxu1 %v1511_v57  ;;  %v1431_v56 = vor.u32 %v1795_v49, %v1428_v50  ;;  %v1666_v57 = vld [vmem:[%s2316_s21 + $0x208] sm:$0xf] }
 0x159   : > { %1178 = vmatpush.bf16.msra.mxu2 %v1639_v61  ;;  %1192 = vmatpush.bf16.msra.mxu3 %v1767_v62  ;;  %v1687_v61 = vor.u32 %v1859_v53, %v1684_v54  ;;  %v1791_v62 = vld [vmem:[%s2316_s21 + $0xc] sm:$0xf]  ;;  %v1667_v60 = vor.u32 %v1857_v58, %v1666_v57 }
 0x15c   : > { %1151 = vmatpush.bf16.msra.mxu0 %v1747_v10  ;;  %1165 = vmatpush.bf16.msra.mxu1 %v1495_v12  ;;  %v1415_v10 = vor.u32 %v1791_v62, %v1412_v63  ;;  %v1543_v12 = vor.u32 %v1823_v3, %v1540_v6 }
 0x15d   : > { %1179 = vmatpush.bf16.msra.mxu2 %v1623_v11  ;;  %1193 = vmatpush.bf16.msra.mxu3 %v1751_v15  ;;  %v549_v11 = vperm.slane %v547_v14, 0 }
 0x160   : > { %1152 = vmatpush.bf16.msra.mxu0 %v1731_v25  ;;  %1166 = vmatpush.bf16.msra.mxu1 %v1479_v0 }
 0x161   : > { %1180 = vmatpush.bf16.msra.mxu2 %v1607_v26  ;;  %1194 = vmatpush.bf16.msra.mxu3 %v1735_v1 }
 0x162   : > { %1101 = vmatmul.bf16.vlgmr.msrb.gmra.mxu0 %v2538_v43  ;;  %1115 = vmatmul.bf16.vlgmr.msrb.gmra.mxu1 %v2540_v44 }
 0x163   : > { %1129 = vmatmul.bf16.vlgmr.msrb.gmra.mxu2 %v2536_v42  ;;  %1143 = vmatmul.bf16.vlgmr.msrb.gmra.mxu3 %v2538_v43 }
 0x164   : > { %1153 = vmatpush.bf16.msra.mxu0 %v1715_v33  ;;  %1167 = vmatpush.bf16.msra.mxu1 %v1463_v34  ;;  %v551_v34 = vperm.slane %v547_v14, 2 }
 0x165   : > { %1181 = vmatpush.bf16.msra.mxu2 %v1591_v35  ;;  %1195 = vmatpush.bf16.msra.mxu3 %v1719_v28 }
 0x168   : > { %1154 = vmatpush.bf16.msra.mxu0 %v1699_v40  ;;  %1168 = vmatpush.bf16.msra.mxu1 %v1447_v41  ;;  %v552_v41 = vperm.slane %v547_v14, 3 }
 0x169   : > { %1182 = vmatpush.bf16.msra.mxu2 %v1575_v47  ;;  %1196 = vmatpush.bf16.msra.mxu3 %v1703_v48 }
 0x16c   : > { %1155 = vmatpush.bf16.msra.mxu0 %v1683_v55  ;;  %1169 = vmatpush.bf16.msra.mxu1 %v1431_v56 }
 0x16d   : > { %1183 = vmatpush.bf16.msra.mxu2 %v1559_v59  ;;  %1197 = vmatpush.bf16.msra.mxu3 %v1687_v61 }
 0x170   : > { %1156 = vmatpush.bf16.msra.mxu0 %v1667_v60  ;;  %1170 = vmatpush.bf16.msra.mxu1 %v1415_v10 }
 0x171   : > { %1184 = vmatpush.bf16.msra.mxu2 %v1543_v12  ;;  %1198 = vmatpush.bf16.msra.mxu3 %v1671_v13 }
 0x173   : > { %1157 = vmatmul.bf16.vlgmr.msra.gmra.mxu0 %v2540_v44  ;;  %1171 = vmatmul.bf16.vlgmr.msra.gmra.mxu1 %v2536_v42 }
 0x174   : > { %1185 = vmatmul.bf16.vlgmr.msra.gmra.mxu2 %v2538_v43  ;;  %1199 = vmatmul.bf16.vlgmr.msra.gmra.mxu3 %v2540_v44  ;;  %v550_v43 = vperm.slane %v547_v14, 1 }
 0x1cf   : > { %v1046_v15 = vpop.f32.mrf.mxu0  ;;  %v1060_v16 = vpop.f32.mrf.mxu1 }
 0x1d0   : > { %v1047_v17 = vadd.f32 %v1046_v15, %v549_v11 }
 0x1d2   : > { %v1061_v18 = vadd.f32 %v1060_v16, %v1047_v17 }
 0x1d6   : > { %v1074_v19 = vpop.f32.mrf.mxu2  ;;  %v1088_v23 = vpop.f32.mrf.mxu3 }
 0x1d7   : > { %v1075_v24 = vadd.f32 %v1074_v19, %v1061_v18  ;;  %v1048_v25 = vpop.f32.mrf.mxu0  ;;  %v1062_v0 = vpop.f32.mrf.mxu1  ;;  %v1089_v20 = vadd.f32 %v1088_v23, %v550_v43 }
 0x1d8   : > { %v1049_v42 = vadd.f32 %v1048_v25, %v549_v11 }
 0x1d9   : > { %1205 = vst [vmem:[%s2612_s17] sm:$0xff] %v1075_v24 }
 0x1da   : > { %v1063_v44 = vadd.f32 %v1062_v0, %v1049_v42 }
 0x1de   : > { %v1076_v21 = vpop.f32.mrf.mxu2  ;;  %v1090_v26 = vpop.f32.mrf.mxu3 }
 0x1df   : > { %v1077_v1 = vadd.f32 %v1076_v21, %v1063_v44  ;;  %v1102_v22 = vpop.f32.mrf.mxu0  ;;  %v1116_v2 = vpop.f32.mrf.mxu1  ;;  %v1091_v32 = vadd.f32 %v1090_v26, %v550_v43 }
 0x1e0   : > { %v1103_v27 = vadd.f32 %v1102_v22, %v1089_v20  ;;  %v1238_v61 = vld [vmem:[%s2612_s17] sm:$0xff] (%p2253_p10) }
 0x1e1   : > { %1209 = vst [vmem:[%s2612_s17 + $0x20] sm:$0xff] %v1077_v1 }
 0x1e2   : > { %v1117_v31 = vadd.f32 %v1116_v2, %v1103_v27  ;;  %1239 = vst [vmem:[%s1225_s3] sm:$0xff] (%p2253_p10), %v1238_v61 }
 0x1e4   : > { %1206 = vst [vmem:[%s2612_s17 + $0x8] sm:$0xff] %v1117_v31 }
 0x1e6   : > { %v1130_v4 = vpop.f32.mrf.mxu2  ;;  %v1144_v33 = vpop.f32.mrf.mxu3 }
 0x1e7   : > { %v1104_v5 = vpop.f32.mrf.mxu0  ;;  %v1118_v8 = vpop.f32.mrf.mxu1  ;;  %v1131_v36 = vadd.f32 %v1130_v4, %v551_v34 }
 0x1e8   : > { %v1105_v35 = vadd.f32 %v1104_v5, %v1091_v32  ;;  %v1246_v6 = vld [vmem:[%s2612_s17 + $0x20] sm:$0xff] (%p2253_p10) }
 0x1e9   : > { %v1145_v37 = vadd.f32 %v1144_v33, %v1131_v36  ;;  %1247 = vst [vmem:[%s1225_s3 + $0x60] sm:$0xff] (%p2253_p10), %v1246_v6 }
 0x1ea   : > { %v1119_v28 = vadd.f32 %v1118_v8, %v1105_v35 }
 0x1eb   : > { %v1240_v62 = vld [vmem:[%s2612_s17 + $0x8] sm:$0xff] (%p2253_p10) }
 0x1ec   : > { %1210 = vst [vmem:[%s2612_s17 + $0x28] sm:$0xff] %v1119_v28 }
 0x1ed   : > { %1241 = vst [vmem:[%s1225_s3 + $0x8] sm:$0xff] (%p2253_p10), %v1240_v62 }
 0x1ee   : > { %v1132_v29 = vpop.f32.mrf.mxu2  ;;  %v1146_v30 = vpop.f32.mrf.mxu3 }
 0x1ef   : > { %v1133_v45 = vadd.f32 %v1132_v29, %v551_v34 }
 0x1f0   : > { %v1158_v38 = vpop.f32.mrf.mxu0  ;;  %v1172_v40 = vpop.f32.mrf.mxu1 }
 0x1f1   : > { %v1159_v39 = vadd.f32 %v1158_v38, %v1145_v37  ;;  %v1173_v46 = vadd.f32 %v1172_v40, %v552_v41  ;;  %v1147_v47 = vadd.f32 %v1146_v30, %v1133_v45 }
 0x1f3   : > { %1207 = vst [vmem:[%s2612_s17 + $0x10] sm:$0xff] %v1159_v39  ;;  %v1248_v7 = vld [vmem:[%s2612_s17 + $0x28] sm:$0xff] (%p2253_p10) }
 0x1f4   : > { %1249 = vst [vmem:[%s1225_s3 + $0x68] sm:$0xff] (%p2253_p10), %v1248_v7 }
 0x1f7   : > { %v1186_v48 = vpop.f32.mrf.mxu2  ;;  %v1200_v49 = vpop.f32.mrf.mxu3 }
 0x1f8   : > { %v1187_v50 = vadd.f32 %v1186_v48, %v1173_v46  ;;  %v1160_v51 = vpop.f32.mrf.mxu0  ;;  %v1174_v54 = vpop.f32.mrf.mxu1 }
 0x1f9   : > { %v1161_v52 = vadd.f32 %v1160_v51, %v1147_v47  ;;  %v1175_v55 = vadd.f32 %v1174_v54, %v552_v41 }
 0x1fa   : > { %v1201_v53 = vadd.f32 %v1200_v49, %v1187_v50  ;;  %v1242_v63 = vld [vmem:[%s2612_s17 + $0x10] sm:$0xff] (%p2253_p10) }
 0x1fb   : > { %1211 = vst [vmem:[%s2612_s17 + $0x30] sm:$0xff] %v1161_v52 }
 0x1fc   : > { %1208 = vst [vmem:[%s2612_s17 + $0x18] sm:$0xff] %v1201_v53 }
 0x1fd   : > { %1243 = vst [vmem:[%s1225_s3 + $0x10] sm:$0xff] (%p2253_p10), %v1242_v63 }
 0x1ff   : > { %v1188_v56 = vpop.f32.mrf.mxu2  ;;  %v1202_v58 = vpop.f32.mrf.mxu3 }
 0x200   : > { %v1189_v57 = vadd.f32 %v1188_v56, %v1175_v55  ;;  %1219 = sbr.rel (!%p2253_p10) target bundleno = 525 (0x20d), region = 60 }
 0x202   : > { %v1203_v59 = vadd.f32 %v1202_v58, %v1189_v57  ;;  %v1250_v9 = vld [vmem:[%s2612_s17 + $0x30] sm:$0xff] (%p2253_p10) }
 0x203   : > { %v1244_v3 = vld [vmem:[%s2612_s17 + $0x18] sm:$0xff] (%p2253_p10)  ;;  %1251 = vst [vmem:[%s1225_s3 + $0x70] sm:$0xff] (%p2253_p10), %v1250_v9 }
 0x204   : > { %1212 = vst [vmem:[%s2612_s17 + $0x38] sm:$0xff] %v1203_v59 }
 0x205   : > { %1245 = vst [vmem:[%s1225_s3 + $0x18] sm:$0xff] %v1244_v3 }
 0x20b   : > { %v1252_v60 = vld [vmem:[%s2612_s17 + $0x38] sm:$0xff] }
 0x20c   : > { %1253 = vst [vmem:[%s1225_s3 + $0x78] sm:$0xff] %v1252_v60 }
 0x20d PF: > { %s2681_s6 = sld [smem:[#allocation14_spill]]  ;;  %s2685_s18 = smov %s2142_s19 }
 0x20e   : > { %s2682_s5 = sld [smem:[#allocation12_spill]]  ;;  %s2687_s21 = smov %s2154_s22 }
 0x20f   : > { %s2683_s20 = sld [smem:[#allocation16_spill]] }
 0x210   : > { %s2684_s25 = sld [smem:[#allocation15_spill]] }
 0x213   : > { %s17_s23 = sadd.s32 1, %s2681_s6  }
 0x214   : > { %p14_p3 = scmp.ge.s32.totalorder %s17_s23, 5   ;;  %s2686_s19 = smov %s2682_s5 }
 0x216   : > { %s2688_s22 = smov %s2684_s25  ;;  %16 = sbr.rel (!%p14_p3) target bundleno = 8 (0x8), region = 124 }
 0x21b   :  { %1269 = vsyncpa [#allocation3], 1 }
 0x21c   :  { %1271 = vsyncpa [#allocation3 + $0x1], 1 }
 0x21d   :  { %1272 = vsyncpa [#allocation5], 1 }

// kernel: cnn_perceiver_forward.20
= control target key start
LH: loop header
LB: loop body
LE: loop exit
PB: predicated region body
PF: predicated region fallthrough
CT: control target
= control target key end

     0   :  { %v758_v10 = vmov 384.0   ;;  %vm503_vm7 = vcmask 523264   ;;  %s1152_s0 = inlined_call_operand.vmem [shape: f32[16,384], index: 0, kind: input, shape index: {}]   ;;  %s1153_s3 = inlined_call_operand.vmem [shape: bf16[384,192], index: 3, kind: input, shape index: {}]   ;;  %s1154_s1 = inlined_call_operand.vmem [shape: f32[1,384], index: 1, kind: input, shape index: {}]   ;;  %s1155_s2 = inlined_call_operand.vmem [shape: f32[1,384], index: 2, kind: input, shape index: {}]   ;;  %s1156_s4 = inlined_call_operand.vmem [shape: f32[1,192], index: 4, kind: input, shape index: {}]   ;;  %s1157_s5 = inlined_call_operand.vmem [shape: f32[16,192], index: 5, kind: output, shape index: {}]  }
   0x1   :  { %v20_v0 = vld [vmem:[%s1152_s0] sm:$0xff]  ;;  %v21_v1 = vld [vmem:[%s1152_s0 + $0x8] sm:$0xff]  ;;  %v22_v2 = vld [vmem:[%s1152_s0 + $0x10] sm:$0xff]  ;;  %752 = vrcp.f32 %v758_v10 }
   0x2   :  { %v26_v3 = vadd.f32 %v21_v1, %v20_v0  ;;  %v23_v4 = vld [vmem:[%s1152_s0 + $0x18] sm:$0xff]  ;;  %v24_v5 = vld [vmem:[%s1152_s0 + $0x20] sm:$0xff]  ;;  %v25_v8 = vld [vmem:[%s1152_s0 + $0x28] sm:$0xff] }
   0x3   :  { %v30_v7 = vadd.f32 %v24_v5, %v23_v4  ;;  %v569_v14 = vld [vmem:[%s1153_s3 + $0x70] sm:$0xf]  ;;  %v718_v15 = vld [vmem:[%s1153_s3 + $0x74] sm:$0xf0]  ;;  %v561_v19 = vld [vmem:[%s1153_s3 + $0x60] sm:$0xf] }
   0x4   :  { %v27_v6 = vadd.f32 %v26_v3, %v22_v2  ;;  %v633_v16 = vld [vmem:[%s1153_s3 + $0xf0] sm:$0xf]  ;;  %v570_v17 = vor.u32 %v718_v15, %v569_v14  ;;  %v734_v18 = vld [vmem:[%s1153_s3 + $0xf4] sm:$0xf0]  ;;  %v716_v20 = vld [vmem:[%s1153_s3 + $0x64] sm:$0xf0] }
   0x5   :  { %v31_v9 = vadd.f32 %v30_v7, %v25_v8  ;;  %v634_v21 = vor.u32 %v734_v18, %v633_v16  ;;  %v625_v22 = vld [vmem:[%s1153_s3 + $0xe0] sm:$0xf]  ;;  %v732_v23 = vld [vmem:[%s1153_s3 + $0xe4] sm:$0xf0]  ;;  %v562_v25 = vor.u32 %v716_v20, %v561_v19  ;;  %v553_v49 = vld [vmem:[%s1153_s3 + $0x50] sm:$0xf] }
   0x6   :  { %28 = vadd.xlane.f32.xlu0 %v27_v6  ;;  %418 = vmatpush.bf16.msra.mxu0 %v570_v17  ;;  %v626_v26 = vor.u32 %v732_v23, %v625_v22  ;;  %v714_v50 = vld [vmem:[%s1153_s3 + $0x54] sm:$0xf0]  ;;  %v617_v51 = vld [vmem:[%s1153_s3 + $0xd0] sm:$0xf]  ;;  %v545_v55 = vld [vmem:[%s1153_s3 + $0x40] sm:$0xf] }
   0x7   :  { %v753_v11 = vpop.eup %752  ;;  %432 = vmatpush.bf16.msra.mxu1 %v634_v21  ;;  %v554_v52 = vor.u32 %v714_v50, %v553_v49  ;;  %v730_v53 = vld [vmem:[%s1153_s3 + $0xd4] sm:$0xf0]  ;;  %v712_v56 = vld [vmem:[%s1153_s3 + $0x44] sm:$0xf0]  ;;  %v609_v57 = vld [vmem:[%s1153_s3 + $0xc0] sm:$0xf] }
   0x8   :  { %v35_v12 = vmul.f32 384.0, %v753_v11  ;;  %vm39_vm0 = vweird.f32 %v753_v11  ;;  %v618_v54 = vor.u32 %v730_v53, %v617_v51  ;;  %v546_v58 = vor.u32 %v712_v56, %v545_v55  ;;  %v728_v59 = vld [vmem:[%s1153_s3 + $0xc4] sm:$0xf0]  ;;  %v697_v60 = vld [vmem:[%s1153_s3 + $0x170] sm:$0xf] }
   0x9   :  { %v750_v61 = vld [vmem:[%s1153_s3 + $0x174] sm:$0xf0]  ;;  %v610_v62 = vor.u32 %v728_v59, %v609_v57  ;;  %v537_v3 = vld [vmem:[%s1153_s3 + $0x30] sm:$0xf]  ;;  %v529_v15 = vld [vmem:[%s1153_s3 + $0x20] sm:$0xf] }
   0xa   :  { %v36_v13 = vsub.f32 1.0, %v35_v12  ;;  %419 = vmatpush.bf16.msra.mxu0 %v562_v25  ;;  %v698_v63 = vor.u32 %v750_v61, %v697_v60  ;;  %v726_v7 = vld [vmem:[%s1153_s3 + $0xb4] sm:$0xf0]  ;;  %v715_v12 = vld [vmem:[%s1153_s3 + $0x64] sm:$0xf] }
   0xb   :  { %433 = vmatpush.bf16.msra.mxu1 %v626_v26  ;;  %v708_v16 = vld [vmem:[%s1153_s3 + $0x24] sm:$0xf0]  ;;  %v593_v17 = vld [vmem:[%s1153_s3 + $0xa0] sm:$0xf]  ;;  %v681_v20 = vld [vmem:[%s1153_s3 + $0x150] sm:$0xf] }
   0xc   :  { %v37_v24 = vmul.f32 %v753_v11, %v36_v13  ;;  %446 = vmatpush.bf16.msra.mxu2 %v698_v63  ;;  %v563_v13 = vld [vmem:[%s1153_s3 + $0x68] sm:$0xf0]  ;;  %v530_v18 = vor.u32 %v708_v16, %v529_v15  ;;  %v724_v19 = vld [vmem:[%s1153_s3 + $0xa4] sm:$0xf0]  ;;  %v746_v21 = vld [vmem:[%s1153_s3 + $0x154] sm:$0xf0] }
   0xd   :  { %v566_v14 = vor.u32 %v715_v12, %v563_v13  ;;  %v594_v22 = vor.u32 %v724_v19, %v593_v17  ;;  %v682_v23 = vor.u32 %v746_v21, %v681_v20  ;;  %v555_v25 = vld [vmem:[%s1153_s3 + $0x58] sm:$0xf0]  ;;  %v720_v50 = vld [vmem:[%s1153_s3 + $0x84] sm:$0xf0]  ;;  %v665_v51 = vld [vmem:[%s1153_s3 + $0x130] sm:$0xf] }
   0xe   :  { %32 = vadd.xlane.f32.xlu0 %v31_v9  ;;  %v38_v27 = vadd.f32 %v753_v11, %v37_v24  ;;  %420 = vmatpush.bf16.msra.mxu0 %v554_v52  ;;  %v748_v9 = vld [vmem:[%s1153_s3 + $0x164] sm:$0xf0]  ;;  %v713_v24 = vld [vmem:[%s1153_s3 + $0x54] sm:$0xf]  ;;  %v742_v52 = vld [vmem:[%s1153_s3 + $0x134] sm:$0xf0] }
   0xf   :  { %434 = vmatpush.bf16.msra.mxu1 %v618_v54  ;;  %v558_v26 = vor.u32 %v713_v24, %v555_v25  ;;  %v666_v54 = vor.u32 %v742_v52, %v665_v51  ;;  %v709_v55 = vld [vmem:[%s1153_s3 + $0x34] sm:$0xf]  ;;  %v539_v56 = vld [vmem:[%s1153_s3 + $0x38] sm:$0xf0]  ;;  %v649_v12 = vld [vmem:[%s1153_s3 + $0x110] sm:$0xf] }
  0x10   :  { %v831_v28 = vsel %vm39_vm0, %v753_v11, %v38_v27  ;;  %v521_v27 = vld [vmem:[%s1153_s3 + $0x10] sm:$0xf]  ;;  %v733_v57 = vld [vmem:[%s1153_s3 + $0xf4] sm:$0xf]  ;;  %v635_v59 = vld [vmem:[%s1153_s3 + $0xf8] sm:$0xf0] }
  0x11   :  { %v749_v60 = vld [vmem:[%s1153_s3 + $0x174] sm:$0xf]  ;;  %v699_v61 = vld [vmem:[%s1153_s3 + $0x178] sm:$0xf0]  ;;  %v738_v13 = vld [vmem:[%s1153_s3 + $0x114] sm:$0xf0] }
  0x12   :  { %421 = vmatpush.bf16.msra.mxu0 %v546_v58  ;;  %v542_v58 = vor.u32 %v709_v55, %v539_v56  ;;  %v702_v63 = vor.u32 %v749_v60, %v699_v61  ;;  %v650_v15 = vor.u32 %v738_v13, %v649_v12  ;;  %v523_v16 = vld [vmem:[%s1153_s3 + $0x18] sm:$0xf0]  ;;  %v729_v17 = vld [vmem:[%s1153_s3 + $0xd4] sm:$0xf]  ;;  %v739_v55 = vld [vmem:[%s1153_s3 + $0x124] sm:$0xf] }
  0x13   :  { %435 = vmatpush.bf16.msra.mxu1 %v610_v62  ;;  %v638_v62 = vor.u32 %v733_v57, %v635_v59  ;;  %v745_v21 = vld [vmem:[%s1153_s3 + $0x154] sm:$0xf]  ;;  %v659_v57 = vld [vmem:[%s1153_s3 + $0x128] sm:$0xf0]  ;;  %v587_v61 = vld [vmem:[%s1153_s3 + $0x98] sm:$0xf0] }
  0x14   :  { %v662_v59 = vor.u32 %v739_v55, %v659_v57  ;;  %v721_v60 = vld [vmem:[%s1153_s3 + $0x94] sm:$0xf] }
  0x79   :  { %v29_v29 = vpop.xlane.xlu0 %28 }
  0x7a   :  { %v41_v30 = vmul.f32 %v831_v28, %v29_v29  ;;  %v706_v29 = vld [vmem:[%s1153_s3 + $0x14] sm:$0xf0] }
  0x7c   :  { %v834_v31 = vsub.f32 %v20_v0, %v41_v30  ;;  %v836_v32 = vsub.f32 %v21_v1, %v41_v30  ;;  %v838_v33 = vsub.f32 %v22_v2, %v41_v30  ;;  %v717_v0 = vld [vmem:[%s1153_s3 + $0x74] sm:$0xf]  ;;  %v571_v1 = vld [vmem:[%s1153_s3 + $0x78] sm:$0xf0]  ;;  %v585_v30 = vld [vmem:[%s1153_s3 + $0x90] sm:$0xf] }
  0x7d   :  { %v574_v2 = vor.u32 %v717_v0, %v571_v1  ;;  %v657_v0 = vld [vmem:[%s1153_s3 + $0x120] sm:$0xf]  ;;  %v740_v1 = vld [vmem:[%s1153_s3 + $0x124] sm:$0xf0] }
  0x7e   :  { %v49_v34 = vmul.f32 %v834_v31, %v834_v31  ;;  %v50_v35 = vmul.f32 %v836_v32, %v836_v32  ;;  %v51_v36 = vmul.f32 %v838_v33, %v838_v33 }
  0x7f   :  { %460 = vmatpush.bf16.msra.mxu3 %v574_v2  ;;  %v707_v2 = vld [vmem:[%s1153_s3 + $0x24] sm:$0xf] }
  0x80   :  { %v55_v37 = vadd.f32 %v50_v35, %v49_v34  ;;  %v522_v34 = vor.u32 %v706_v29, %v521_v27  ;;  %v722_v35 = vld [vmem:[%s1153_s3 + $0x94] sm:$0xf0]  ;;  %v703_v27 = vld [vmem:[%s1153_s3 + $0x4] sm:$0xf]  ;;  %v515_v29 = vld [vmem:[%s1153_s3 + $0x8] sm:$0xf0] }
  0x81   :  { %v33_v38 = vpop.xlane.xlu0 %32 }
  0x82   :  { %v42_v39 = vmul.f32 %v831_v28, %v33_v38  ;;  %v56_v40 = vadd.f32 %v55_v37, %v51_v36  ;;  %v673_v36 = vld [vmem:[%s1153_s3 + $0x140] sm:$0xf]  ;;  %v744_v37 = vld [vmem:[%s1153_s3 + $0x144] sm:$0xf0]  ;;  %v586_v38 = vor.u32 %v722_v35, %v585_v30  ;;  %v518_v35 = vor.u32 %v703_v27, %v515_v29 }
  0x83   :  { %461 = vmatpush.bf16.msra.mxu3 %v566_v14  ;;  %v705_v14 = vld [vmem:[%s1153_s3 + $0x14] sm:$0xf] }
  0x84   :  { %v847_v41 = vsub.f32 %v23_v4, %v42_v39  ;;  %v849_v42 = vsub.f32 %v24_v5, %v42_v39  ;;  %v851_v43 = vsub.f32 %v25_v8, %v42_v39  ;;  %57 = vadd.xlane.f32.xlu1 %v56_v40  ;;  %v710_v4 = vld [vmem:[%s1153_s3 + $0x34] sm:$0xf0]  ;;  %v601_v5 = vld [vmem:[%s1153_s3 + $0xb0] sm:$0xf]  ;;  %v689_v8 = vld [vmem:[%s1153_s3 + $0x160] sm:$0xf]  ;;  %v674_v39 = vor.u32 %v744_v37, %v673_v36 }
  0x85   :  { %v538_v6 = vor.u32 %v710_v4, %v537_v3  ;;  %v602_v10 = vor.u32 %v726_v7, %v601_v5  ;;  %v690_v11 = vor.u32 %v748_v9, %v689_v8  ;;  %v711_v40 = vld [vmem:[%s1153_s3 + $0x44] sm:$0xf]  ;;  %v658_v3 = vor.u32 %v740_v1, %v657_v0  ;;  %v531_v4 = vld [vmem:[%s1153_s3 + $0x28] sm:$0xf0]  ;;  %v651_v0 = vld [vmem:[%s1153_s3 + $0x118] sm:$0xf0] }
  0x86   :  { %v52_v44 = vmul.f32 %v847_v41, %v847_v41  ;;  %v53_v45 = vmul.f32 %v849_v42, %v849_v42  ;;  %v54_v46 = vmul.f32 %v851_v43, %v851_v43  ;;  %v731_v5 = vld [vmem:[%s1153_s3 + $0xe4] sm:$0xf]  ;;  %v534_v7 = vor.u32 %v707_v2, %v531_v4  ;;  %v611_v37 = vld [vmem:[%s1153_s3 + $0xc8] sm:$0xf0] }
  0x87   :  { %422 = vmatpush.bf16.msra.mxu0 %v538_v6  ;;  %436 = vmatpush.bf16.msra.mxu1 %v602_v10  ;;  %v627_v6 = vld [vmem:[%s1153_s3 + $0xe8] sm:$0xf0]  ;;  %v747_v9 = vld [vmem:[%s1153_s3 + $0x164] sm:$0xf]  ;;  %v526_v19 = vor.u32 %v705_v14, %v523_v16 }
  0x88   :  { %v59_v47 = vadd.f32 %v53_v45, %v52_v44  ;;  %447 = vmatpush.bf16.msra.mxu2 %v690_v11  ;;  %462 = vmatpush.bf16.msra.mxu3 %v558_v26  ;;  %v547_v44 = vld [vmem:[%s1153_s3 + $0x48] sm:$0xf0]  ;;  %v630_v8 = vor.u32 %v731_v5, %v627_v6  ;;  %v736_v26 = vld [vmem:[%s1153_s3 + $0x104] sm:$0xf0]  ;;  %v727_v36 = vld [vmem:[%s1153_s3 + $0xc4] sm:$0xf] }
  0x89   :  { %v550_v45 = vor.u32 %v711_v40, %v547_v44  ;;  %v691_v10 = vld [vmem:[%s1153_s3 + $0x168] sm:$0xf0]  ;;  %v719_v5 = vld [vmem:[%s1153_s3 + $0x84] sm:$0xf] }
  0x8a   :  { %v60_v48 = vadd.f32 %v59_v47, %v54_v46  ;;  %v513_v46 = vld [vmem:[%s1153_s3] sm:$0xf]  ;;  %v704_v47 = vld [vmem:[%s1153_s3 + $0x4] sm:$0xf0]  ;;  %v694_v11 = vor.u32 %v747_v9, %v691_v10  ;;  %v675_v40 = vld [vmem:[%s1153_s3 + $0x148] sm:$0xf0] }
  0x8b   :  { %423 = vmatpush.bf16.msra.mxu0 %v530_v18  ;;  %437 = vmatpush.bf16.msra.mxu1 %v594_v22  ;;  %v514_v49 = vor.u32 %v704_v47, %v513_v46  ;;  %v619_v18 = vld [vmem:[%s1153_s3 + $0xd8] sm:$0xf0]  ;;  %v725_v46 = vld [vmem:[%s1153_s3 + $0xb4] sm:$0xf]  ;;  %v579_v6 = vld [vmem:[%s1153_s3 + $0x88] sm:$0xf0] }
  0x8c   :  { %61 = vadd.xlane.f32.xlu1 %v60_v48  ;;  %448 = vmatpush.bf16.msra.mxu2 %v682_v23  ;;  %v577_v48 = vld [vmem:[%s1153_s3 + $0x80] sm:$0xf]  ;;  %v622_v20 = vor.u32 %v729_v17, %v619_v18  ;;  %v683_v22 = vld [vmem:[%s1153_s3 + $0x158] sm:$0xf0] }
  0x8d   :  { %463 = vmatpush.bf16.msra.mxu3 %v550_v45  ;;  %v578_v53 = vor.u32 %v720_v50, %v577_v48  ;;  %v641_v23 = vld [vmem:[%s1153_s3 + $0x100] sm:$0xf]  ;;  %v686_v25 = vor.u32 %v745_v21, %v683_v22  ;;  %v603_v47 = vld [vmem:[%s1153_s3 + $0xb8] sm:$0xf0]  ;;  %v741_v48 = vld [vmem:[%s1153_s3 + $0x134] sm:$0xf] }
  0x8e   :  { %v667_v50 = vld [vmem:[%s1153_s3 + $0x138] sm:$0xf0]  ;;  %v93_v17 = vld [vmem:[%s1154_s1] sm:$0x7] }
  0x8f   :  { %424 = vmatpush.bf16.msra.mxu0 %v522_v34  ;;  %438 = vmatpush.bf16.msra.mxu1 %v586_v38  ;;  %v642_v34 = vor.u32 %v736_v26, %v641_v23  ;;  %v743_v38 = vld [vmem:[%s1153_s3 + $0x144] sm:$0xf]  ;;  %v670_v52 = vor.u32 %v741_v48, %v667_v50  ;;  %v96_v21 = vperm.slane %v93_v17, 1  ;;  %v97_v27 = vperm.slane %v93_v17, 2 }
  0x90   :  { %449 = vmatpush.bf16.msra.mxu2 %v674_v39  ;;  %v614_v39 = vor.u32 %v727_v36, %v611_v37  ;;  %v678_v45 = vor.u32 %v743_v38, %v675_v40 }
  0x91   :  { %464 = vmatpush.bf16.msra.mxu3 %v542_v58 }
  0x93   :  { %425 = vmatpush.bf16.msra.mxu0 %v514_v49  ;;  %439 = vmatpush.bf16.msra.mxu1 %v578_v53  ;;  %v606_v49 = vor.u32 %v725_v46, %v603_v47  ;;  %v723_v53 = vld [vmem:[%s1153_s3 + $0xa4] sm:$0xf] }
  0x94   :  { %450 = vmatpush.bf16.msra.mxu2 %v666_v54  ;;  %v595_v54 = vld [vmem:[%s1153_s3 + $0xa8] sm:$0xf0] }
  0x95   :  { %465 = vmatpush.bf16.msra.mxu3 %v534_v7  ;;  %v598_v58 = vor.u32 %v723_v53, %v595_v54  ;;  %v735_v7 = vld [vmem:[%s1153_s3 + $0x104] sm:$0xf] }
  0x97   :  { %474 = vmatpush.bf16.msrb.mxu0 %v638_v62  ;;  %488 = vmatpush.bf16.msrb.mxu1 %v702_v63 }
  0x98   :  { %451 = vmatpush.bf16.msra.mxu2 %v658_v3  ;;  %v590_v3 = vor.u32 %v721_v60, %v587_v61 }
  0x99   :  { %466 = vmatpush.bf16.msra.mxu3 %v526_v19 }
  0x9b   :  { %475 = vmatpush.bf16.msrb.mxu0 %v630_v8  ;;  %489 = vmatpush.bf16.msrb.mxu1 %v694_v11  ;;  %v643_v8 = vld [vmem:[%s1153_s3 + $0x108] sm:$0xf0]  ;;  %v582_v11 = vor.u32 %v719_v5, %v579_v6 }
  0x9c   :  { %452 = vmatpush.bf16.msra.mxu2 %v650_v15  ;;  %v646_v12 = vor.u32 %v735_v7, %v643_v8 }
  0x9d   :  { %467 = vmatpush.bf16.msra.mxu3 %v518_v35 }
  0x9f   :  { %476 = vmatpush.bf16.msrb.mxu0 %v622_v20  ;;  %490 = vmatpush.bf16.msrb.mxu1 %v686_v25  ;;  %v95_v20 = vperm.slane %v93_v17, 0 }
  0xa0   :  { %453 = vmatpush.bf16.msra.mxu2 %v642_v34 }
  0xa3   :  { %477 = vmatpush.bf16.msrb.mxu0 %v614_v39  ;;  %491 = vmatpush.bf16.msrb.mxu1 %v678_v45 }
  0xa7   :  { %478 = vmatpush.bf16.msrb.mxu0 %v606_v49  ;;  %492 = vmatpush.bf16.msrb.mxu1 %v670_v52 }
  0xab   :  { %479 = vmatpush.bf16.msrb.mxu0 %v598_v58  ;;  %493 = vmatpush.bf16.msrb.mxu1 %v662_v59 }
  0xaf   :  { %480 = vmatpush.bf16.msrb.mxu0 %v590_v3 }
  0xb3   :  { %481 = vmatpush.bf16.msrb.mxu0 %v582_v11 }
  0xf7   :  { %v58_v24 = vpop.xlane.xlu1 %57 }
  0xf8   :  { %v63_v30 = vmul.f32 %v58_v24, %v831_v28  ;;  %v107_v24 = vld [vmem:[%s1155_s2] sm:$0x7] }
  0xf9   :  { %v110_v34 = vperm.slane %v107_v24, 1  ;;  %v111_v38 = vperm.slane %v107_v24, 2 }
  0xfa   :  { %v65_v44 = vadd.f32 1e-05, %v63_v30  ;;  %v109_v30 = vperm.slane %v107_v24, 0 }
  0xfc   :  { %754 = vrsqrt.f32 %v65_v44  ;;  %vm73_vm2 = vweird.f32 %v65_v44 }
  0xff   :  { %v62_v51 = vpop.xlane.xlu1 %61 }
 0x100   :  { %v64_v56 = vmul.f32 %v62_v51, %v831_v28  ;;  %v737_v28 = vld [vmem:[%s1153_s3 + $0x114] sm:$0xf] }
 0x101   :  { %v654_v4 = vor.u32 %v737_v28, %v651_v0 }
 0x102   :  { %v755_v62 = vpop.eup %754  ;;  %v66_v63 = vadd.f32 1e-05, %v64_v56 }
 0x103   :  { %v68_v1 = vmul.f32 %v755_v62, %v65_v44  ;;  %494 = vmatpush.bf16.msrb.mxu1 %v654_v4  ;;  %vm74_vm1 = vweird.f32 %v755_v62 }
 0x104   :  { %756 = vrsqrt.f32 %v66_v63  ;;  %vm75_vm3 = vmor %vm73_vm2, %vm74_vm1  ;;  %vm83_vm5 = vweird.f32 %v66_v63 }
 0x105   :  { %v69_v2 = vmul.f32 %v755_v62, %v68_v1 }
 0x107   :  { %v70_v9 = vmul.f32 0.5, %v69_v2  ;;  %495 = vmatpush.bf16.msrb.mxu1 %v646_v12 }
 0x109   :  { %v71_v10 = vsub.f32 1.5, %v70_v9 }
 0x10a   :  { %v757_v13 = vpop.eup %756 }
 0x10b   :  { %v72_v14 = vmul.f32 %v755_v62, %v71_v10  ;;  %v78_v15 = vmul.f32 %v757_v13, %v66_v63  ;;  %vm84_vm4 = vweird.f32 %v757_v13 }
 0x10c   :  { %vm85_vm6 = vmor %vm83_vm5, %vm84_vm4 }
 0x10d   :  { %v79_v16 = vmul.f32 %v757_v13, %v78_v15  ;;  %v76_v18 = vsel %vm75_vm3, %v755_v62, %v72_v14 }
 0x10e   :  { %v87_v23 = vmul.f32 %v76_v18, %v834_v31  ;;  %v88_v25 = vmul.f32 %v76_v18, %v836_v32  ;;  %v89_v26 = vmul.f32 %v76_v18, %v838_v33 }
 0x10f   :  { %v80_v19 = vmul.f32 0.5, %v79_v16 }
 0x110   :  { %v101_v36 = vmul.f32 %v95_v20, %v87_v23  ;;  %v102_v37 = vmul.f32 %v96_v21, %v88_v25  ;;  %v103_v44 = vmul.f32 %v97_v27, %v89_v26 }
 0x111   :  { %v81_v22 = vsub.f32 1.5, %v80_v19 }
 0x112   :  { %v115_v46 = vadd.f32 %v109_v30, %v101_v36  ;;  %v116_v47 = vadd.f32 %v110_v34, %v102_v37  ;;  %v117_v50 = vadd.f32 %v111_v38, %v103_v44 }
 0x113   :  { %v82_v29 = vmul.f32 %v757_v13, %v81_v22 }
 0x115   :  { %v86_v35 = vsel %vm85_vm6, %v757_v13, %v82_v29 }
 0x116   :  { %v90_v31 = vmul.f32 %v86_v35, %v847_v41  ;;  %v91_v39 = vmul.f32 %v86_v35, %v849_v42  ;;  %v92_v40 = vmul.f32 %v86_v35, %v851_v43  ;;  %v172_v41 = vld [vmem:[%s1156_s4] sm:$0x3] }
 0x117   :  { %v174_v42 = vperm.slane %v172_v41, 0  ;;  %v175_v28 = vperm.slane %v172_v41, 1 }
 0x118   :  { %v104_v32 = vmul.f32 %v95_v20, %v90_v31  ;;  %v105_v45 = vmul.f32 %v96_v21, %v91_v39  ;;  %v106_v33 = vmul.f32 %v97_v27, %v92_v40 }
 0x11a   :  { %v118_v48 = vadd.f32 %v109_v30, %v104_v32  ;;  %v119_v49 = vadd.f32 %v110_v34, %v105_v45  ;;  %v120_v51 = vadd.f32 %v111_v38, %v106_v33 }
 0x11c   :  { %v121_v52 = vpack.c.bf16 %v118_v48, %v115_v46  ;;  %v122_v53 = vpack.c.bf16 %v119_v49, %v116_v47  ;;  %v123_v54 = vpack.c.bf16 %v120_v51, %v117_v50 }
 0x11e   :  { %426 = vmatmul.bf16.vlgmr.msra.gmra.mxu0 %v121_v52  ;;  %440 = vmatmul.bf16.vlgmr.msra.gmra.mxu1 %v122_v53 }
 0x11f   :  { %454 = vmatmul.bf16.vlgmr.msra.gmra.mxu2 %v123_v54  ;;  %468 = vmatmul.bf16.vlgmr.msra.gmra.mxu3 %v121_v52 }
 0x12e   :  { %482 = vmatmul.bf16.vlgmr.msrb.gmra.mxu0 %v122_v53  ;;  %496 = vmatmul.bf16.vlgmr.msrb.gmra.mxu1 %v123_v54 }
 0x19b   :  { %v427_v43 = vpop.f32.mrf.mxu0  ;;  %v441_v55 = vpop.f32.mrf.mxu1 }
 0x19c   :  { %v428_v56 = vadd.f32 %v427_v43, %v174_v42 }
 0x19e   :  { %v442_v57 = vadd.f32 %v441_v55, %v428_v56 }
 0x1a2   :  { %v455_v58 = vpop.f32.mrf.mxu2  ;;  %v469_v62 = vpop.f32.mrf.mxu3 }
 0x1a3   :  { %v456_v59 = vadd.f32 %v455_v58, %v442_v57  ;;  %v429_v60 = vpop.f32.mrf.mxu0  ;;  %v443_v61 = vpop.f32.mrf.mxu1  ;;  %v470_v1 = vadd.f32 %v469_v62, %v175_v28 }
 0x1a4   :  { %v430_v63 = vadd.f32 %v429_v60, %v174_v42 }
 0x1a5   :  { %502 = vst [vmem:[%s1157_s5] sm:$0xff] %v456_v59 }
 0x1a6   :  { %v444_v0 = vadd.f32 %v443_v61, %v430_v63 }
 0x1aa   :  { %v457_v2 = vpop.f32.mrf.mxu2  ;;  %v471_v8 = vpop.f32.mrf.mxu3 }
 0x1ab   :  { %v458_v3 = vadd.f32 %v457_v2, %v444_v0  ;;  %v483_v4 = vpop.f32.mrf.mxu0  ;;  %v497_v5 = vpop.f32.mrf.mxu1  ;;  %v472_v9 = vadd.f32 %v471_v8, %v175_v28 }
 0x1ac   :  { %v484_v6 = vadd.f32 %v483_v4, %v470_v1 }
 0x1ad   :  { %505 = vst [vmem:[%s1157_s5 + $0x10] sm:$0xff] %v458_v3 }
 0x1ae   :  { %v498_v7 = vadd.f32 %v497_v5, %v484_v6 }
 0x1b0   :  { %504 = vst.msk [vmem:[%s1157_s5 + $0x8] sm:$0xff] %vm503_vm7, %v498_v7 }
 0x1b3   :  { %v485_v10 = vpop.f32.mrf.mxu0  ;;  %v499_v12 = vpop.f32.mrf.mxu1 }
 0x1b4   :  { %v486_v11 = vadd.f32 %v485_v10, %v472_v9 }
 0x1b6   :  { %v500_v13 = vadd.f32 %v499_v12, %v486_v11 }
 0x1b8   :  { %506 = vst.msk [vmem:[%s1157_s5 + $0x18] sm:$0xff] %vm503_vm7, %v500_v13 }

// kernel: cnn_perceiver_forward.19
= control target key start
LH: loop header
LB: loop body
LE: loop exit
PB: predicated region body
PF: predicated region fallthrough
CT: control target
= control target key end

     0   :  { %9 = vsyncpa [#allocation5], 0  ;;  %s2513_s0 = inlined_call_operand.vmem [shape: f32[16,1536], index: 0, kind: input, shape index: {}]   ;;  %s2514_s1 = inlined_call_operand.hbm [shape: bf16[1536,384], index: 1, kind: input, shape index: {}]   ;;  %s2515_s2 = inlined_call_operand.hbm [shape: f32[1,384], index: 2, kind: input, shape index: {}]   ;;  %s2516_s3 = inlined_call_operand.vmem [shape: f32[16,384], index: 3, kind: input, shape index: {}]   ;;  %s2517_s4 = inlined_call_operand.vmem [shape: f32[16,384], index: 4, kind: output, shape index: {}]  }
   0x1   :  { %11 = vsyncpa [#allocation5 + $0x1], 0 }
   0x2   :  { %12 = vsyncpa [#allocation7], 0  ;;  %s2138_s15 = smov 0   ;;  %s2140_s16 = smov 0  }
   0x3   :  { %s2142_s17 = smov 0   ;;  %s2144_s18 = smov 0  }
   0x4   :  { %s2146_s19 = smov 0   ;;  %s2148_s20 = smov 0  }
   0x5 LB: > { %s1427_s21 = sadd.s32 4294967295, %s2107_s20   ;;  %s30_s22 = sadd.s32 1, %s2103_s19  ;;  %s2107_s20 = sphi %s2148_s20, %s18_s20   ;;  %s2103_s19 = sphi %s2146_s19, %s2526_s19   ;;  %s2099_s18 = sphi %s2144_s18, %s2525_s18   ;;  %s2095_s17 = sphi %s2142_s17, %s2524_s17   ;;  %s2091_s16 = sphi %s2140_s16, %s2523_s16   ;;  %s2087_s15 = sphi %s2138_s15, %s2522_s15  }
   0x6   : > { %p31_p0 = scmp.ge.s32.totalorder %s30_s22, 3  ;;  %s46_s23 = sadd.s32 1, %s2095_s17 }
   0x7   : > { %p53_p1 = scmp.ne.s32.totalorder %s2095_s17, %s2091_s16  ;;  %p54_p2 = scmp.eq.s32.totalorder %s2107_s20, 0 }
   0x8   : > { %s2528_s22 = smov (%p31_p0, %s30_s22), 0  ;;  %p87_p4 = scmp.ne.s32.totalorder %s2091_s16, %s2087_s15 }
   0x9   : > { %p2174_p3 = por %p54_p2, %p53_p1  ;;  %s42_s25 = ssub.s32 %s2103_s19, %s2528_s22 }
   0xa   : > { %p2181_p5 = scmp.eq.s32.totalorder %s1427_s21, 0  ;;  %p44_p6 = scmp.eq.s32.totalorder %s42_s25, 0 }
   0xb   : > { %p1428_p7 = scmp.ge.s32.totalorder %s2107_s20, 1  ;;  %p180_p9 = scmp.lt.s32.totalorder %s2107_s20, 4 }
   0xc   : > { %p2188_p8 = por %p2181_p5, %p87_p4  ;;  %s194_s6 = sshll.u32 %s2515_s2, 4  ;;  %s195_s6 = int_to_ptr.hbm [resolvable:$true] %s194_s6 }
   0xd   : > { %s2194_s28 = scalar_select %p44_p6, %s2095_s17, %s46_s23  }
   0xe   : > { %p2196_p10 = pnand %p1428_p7, %p180_p9  ;;  %s2109_s7 = smov [#allocation6]  }
   0xf   : > { %s196_s8 = sshll.u32 %s2109_s7, 4  ;;  %p1431_p13 = scmp.ge.s32.totalorder %s2107_s20, 3  ;;  %s197_s8 = int_to_ptr.vmem [resolvable:$true] %s196_s8 }
  0x10   : > { %p1937_p11 = pneg %p2196_p10 }
  0x11   : > { %218 = sbr.rel (%p1431_p13) target bundleno = 40 (0x28), region = 24 }
  0x12   : > { %p1938_p12 = pnand %p1937_p11, %p2181_p5 }
  0x14   : > { %1940 = dma.hbm_to_vmem [thread:$0]  (!%p1938_p12), %s195_s6, 48, %s197_s8, [#allocation7]  }
  0x16   : > { %221 = sbr.rel (!%p2174_p3) target bundleno = 34 (0x22), region = 28  ;;  %s223_s9 = sand.u32 (%p2174_p3), 1, %s2095_s17  }
  0x17   : > { %s1831_s10 = sshll.u32 (%p2174_p3), %s2103_s19, 5  ;;  %s1432_s11 = sshll.u32 (%p2174_p3), %s223_s9, 6 }
  0x18   : > { %s231_s14 = scalar_lea.vmem (%p2174_p3), %s2513_s0, %s1831_s10  ;;  %s225_s15 = scalar_lea.vmem (%p2174_p3), [#allocation3], %s1432_s11 }
  0x19   : > { %v244_v0 = vld [vmem:[%s231_s14] sm:$0xff] (%p2174_p3)  ;;  %v246_v1 = vld [vmem:[%s231_s14 + $0x8] sm:$0xff] (%p2174_p3)  ;;  %v248_v2 = vld [vmem:[%s231_s14 + $0x10] sm:$0xff] (%p2174_p3) }
  0x1a   : > { %245 = vst [vmem:[%s225_s15] sm:$0xff] (%p2174_p3), %v244_v0  ;;  %v250_v3 = vld [vmem:[%s231_s14 + $0x18] sm:$0xff] (%p2174_p3)  ;;  %v252_v4 = vld [vmem:[%s231_s14 + $0x60] sm:$0xff] (%p2174_p3)  ;;  %v254_v5 = vld [vmem:[%s231_s14 + $0x68] sm:$0xff] (%p2174_p3) }
  0x1b   : > { %247 = vst [vmem:[%s225_s15 + $0x8] sm:$0xff] %v246_v1  ;;  %v256_v6 = vld [vmem:[%s231_s14 + $0x70] sm:$0xff]  ;;  %v258_v7 = vld [vmem:[%s231_s14 + $0x78] sm:$0xff] }
  0x1c   : > { %249 = vst [vmem:[%s225_s15 + $0x10] sm:$0xff] %v248_v2 }
  0x1d   : > { %251 = vst [vmem:[%s225_s15 + $0x18] sm:$0xff] %v250_v3 }
  0x1e   : > { %253 = vst [vmem:[%s225_s15 + $0x20] sm:$0xff] %v252_v4 }
  0x1f   : > { %255 = vst [vmem:[%s225_s15 + $0x28] sm:$0xff] %v254_v5 }
  0x20   : > { %257 = vst [vmem:[%s225_s15 + $0x30] sm:$0xff] %v256_v6 }
  0x21   : > { %259 = vst [vmem:[%s225_s15 + $0x38] sm:$0xff] %v258_v7 }
  0x22 PF: > { %s266_s21 = sand.u32 1, %s2095_s17   ;;  %s1929_s23 = smul.u32 768, %s2103_s19 }
  0x23   : > { %s1928_s25 = smul.u32 768, %s266_s21  ;;  %s267_s10 = scalar_lea.sflag [#allocation5], %s266_s21 }
  0x24   : > { %s278_s6 = scalar_lea.hbm %s2514_s1, %s1929_s23  ;;  %s2110_s11 = smov 192  }
  0x25   : > { %s279_s7 = sshll.u32 %s278_s6, 4  ;;  %s270_s8 = scalar_lea.vmem [#allocation4], %s1928_s25  ;;  %s280_s7 = int_to_ptr.hbm [resolvable:$true] %s279_s7 }
  0x26   : > { %s281_s9 = sshll.u32 %s270_s8, 4  ;;  %s2111_s12 = smov 12   ;;  %s282_s9 = int_to_ptr.vmem [resolvable:$true] %s281_s9 }
  0x27   : > { %1933 = dma.hbm_to_vmem [thread:$0]  (%p2174_p3), %s280_s7, 12288, %s282_s9, %s267_s10, %s2110_s11, %s2110_s11, %s2111_s12  }
  0x28 PF: > { %293 = sbr.rel (%p2196_p10) target bundleno = 322 (0x142), region = 55  ;;  %s296_s13 = sand.u32 (!%p2196_p10), 1, %s2091_s16  }
  0x29   : > { %s1439_s14 = sshll.u32 (!%p2196_p10), %s296_s13, 6  ;;  %s1930_s15 = smul.u32 (!%p2196_p10), 768, %s296_s13 }
  0x2a   : > { %s2225_s23 = scalar_lea.vmem (!%p2196_p10), [#allocation3], %s1439_s14  ;;  %s303_s30 = scalar_lea.sflag (!%p2196_p10), [#allocation5], %s296_s13 }
  0x2b   : > { %s2227_s25 = scalar_lea.vmem (!%p2196_p10), [#allocation4], %s1930_s15 }
  0x2d   : > { %2078 = dma.done.wait (%p2188_p8), %s303_s30, 12288  }
  0x2e   : > { %2080 = vsyncadd (%p2188_p8), %s303_s30, 4294955008 }
  0x2f   : > { %2082 = dma.done.wait (%p2181_p5), [#allocation7], 48  }
  0x30   : > { %2084 = vsyncadd (%p2181_p5), [#allocation7], 4294967248  ;;  %p1441_p0 = scmp.ne.s32.totalorder %s2099_s18, 0 }
  0x32   : > { %388 = sbr.rel (%p1441_p0) target bundleno = 62 (0x3e), region = 71 }
  0x37   : > { %v2112_v8 = vmov 0.0  }
  0x38   : > { %389 = vst [vmem:[#allocation2 + $0x28] sm:$0xff] %v2112_v8 }
  0x39   : > { %390 = vst [vmem:[#allocation2 + $0x10] sm:$0xff] %v2112_v8 }
  0x3a   : > { %391 = vst [vmem:[#allocation2 + $0x8] sm:$0xff] %v2112_v8 }
  0x3b   : > { %392 = vst [vmem:[#allocation2] sm:$0xff] %v2112_v8 }
  0x3c   : > { %393 = vst [vmem:[#allocation2 + $0x18] sm:$0xff] %v2112_v8 }
  0x3d   : > { %394 = vst [vmem:[#allocation2 + $0x20] sm:$0xff] %v2112_v8 }
  0x3e PF: > { %v1528_v9 = vld [vmem:[%s2227_s25 + $0xa8] sm:$0xf]  ;;  %v1854_v10 = vld [vmem:[%s2227_s25 + $0xb0] sm:$0xf0]  ;;  %v1516_v20 = vld [vmem:[%s2227_s25 + $0x90] sm:$0xf] }
  0x3f   : > { %v1624_v11 = vld [vmem:[%s2227_s25 + $0x168] sm:$0xf]  ;;  %v1529_v12 = vor.u32 %v1854_v10, %v1528_v9  ;;  %v1878_v13 = vld [vmem:[%s2227_s25 + $0x170] sm:$0xf0]  ;;  %v1851_v22 = vld [vmem:[%s2227_s25 + $0x98] sm:$0xf0] }
  0x40   : > { %v1720_v14 = vld [vmem:[%s2227_s25 + $0x228] sm:$0xf]  ;;  %v1902_v15 = vld [vmem:[%s2227_s25 + $0x230] sm:$0xf0]  ;;  %v1625_v16 = vor.u32 %v1878_v13, %v1624_v11  ;;  %v1612_v23 = vld [vmem:[%s2227_s25 + $0x150] sm:$0xf]  ;;  %v1517_v25 = vor.u32 %v1851_v22, %v1516_v20 }
  0x41   : > { %v1721_v17 = vor.u32 %v1902_v15, %v1720_v14  ;;  %v1816_v18 = vld [vmem:[%s2227_s25 + $0x2e8] sm:$0xf]  ;;  %v1926_v19 = vld [vmem:[%s2227_s25 + $0x2f0] sm:$0xf0]  ;;  %1053 = vmatpush.bf16.msra.mxu0 %v1529_v12  ;;  %v1875_v24 = vld [vmem:[%s2227_s25 + $0x158] sm:$0xf0] }
  0x42   : > { %v1817_v21 = vor.u32 %v1926_v19, %v1816_v18  ;;  %1067 = vmatpush.bf16.msra.mxu1 %v1625_v16  ;;  %v1613_v26 = vor.u32 %v1875_v24, %v1612_v23  ;;  %v1708_v27 = vld [vmem:[%s2227_s25 + $0x210] sm:$0xf]  ;;  %v1899_v28 = vld [vmem:[%s2227_s25 + $0x218] sm:$0xf0]  ;;  %v1504_v32 = vld [vmem:[%s2227_s25 + $0x78] sm:$0xf] }
  0x43   : > { %1081 = vmatpush.bf16.msra.mxu2 %v1721_v17  ;;  %v1804_v29 = vld [vmem:[%s2227_s25 + $0x2d0] sm:$0xf]  ;;  %v1709_v30 = vor.u32 %v1899_v28, %v1708_v27  ;;  %v1923_v31 = vld [vmem:[%s2227_s25 + $0x2d8] sm:$0xf0]  ;;  %v1848_v33 = vld [vmem:[%s2227_s25 + $0x80] sm:$0xf0] }
  0x44   : > { %1095 = vmatpush.bf16.msra.mxu3 %v1817_v21  ;;  %v1805_v34 = vor.u32 %v1923_v31, %v1804_v29  ;;  %v1600_v35 = vld [vmem:[%s2227_s25 + $0x138] sm:$0xf]  ;;  %v1872_v36 = vld [vmem:[%s2227_s25 + $0x140] sm:$0xf0]  ;;  %v1505_v38 = vor.u32 %v1848_v33, %v1504_v32  ;;  %v1492_v44 = vld [vmem:[%s2227_s25 + $0x60] sm:$0xf] }
  0x45   : > { %v1696_v37 = vld [vmem:[%s2227_s25 + $0x1f8] sm:$0xf]  ;;  %1054 = vmatpush.bf16.msra.mxu0 %v1517_v25  ;;  %v1896_v39 = vld [vmem:[%s2227_s25 + $0x200] sm:$0xf0]  ;;  %v1601_v42 = vor.u32 %v1872_v36, %v1600_v35  ;;  %v1845_v45 = vld [vmem:[%s2227_s25 + $0x68] sm:$0xf0] }
  0x46   : > { %v1792_v40 = vld [vmem:[%s2227_s25 + $0x2b8] sm:$0xf]  ;;  %v1920_v41 = vld [vmem:[%s2227_s25 + $0x2c0] sm:$0xf0]  ;;  %1068 = vmatpush.bf16.msra.mxu1 %v1613_v26  ;;  %v1697_v43 = vor.u32 %v1896_v39, %v1696_v37  ;;  %v1588_v46 = vld [vmem:[%s2227_s25 + $0x120] sm:$0xf]  ;;  %v1493_v53 = vor.u32 %v1845_v45, %v1492_v44 }
  0x47   : > { %1082 = vmatpush.bf16.msra.mxu2 %v1709_v30  ;;  %v1793_v47 = vor.u32 %v1920_v41, %v1792_v40  ;;  %v1869_v48 = vld [vmem:[%s2227_s25 + $0x128] sm:$0xf0]  ;;  %v1684_v49 = vld [vmem:[%s2227_s25 + $0x1e0] sm:$0xf]  ;;  %v1480_v56 = vld [vmem:[%s2227_s25 + $0x48] sm:$0xf] }
  0x48   : > { %1096 = vmatpush.bf16.msra.mxu3 %v1805_v34  ;;  %v1893_v50 = vld [vmem:[%s2227_s25 + $0x1e8] sm:$0xf0]  ;;  %v1780_v51 = vld [vmem:[%s2227_s25 + $0x2a0] sm:$0xf]  ;;  %v1589_v54 = vor.u32 %v1869_v48, %v1588_v46  ;;  %v1842_v57 = vld [vmem:[%s2227_s25 + $0x50] sm:$0xf0] }
  0x49   : > { %v1917_v52 = vld [vmem:[%s2227_s25 + $0x2a8] sm:$0xf0]  ;;  %1055 = vmatpush.bf16.msra.mxu0 %v1505_v38  ;;  %v1685_v55 = vor.u32 %v1893_v50, %v1684_v49  ;;  %v1576_v58 = vld [vmem:[%s2227_s25 + $0x108] sm:$0xf]  ;;  %v1866_v60 = vld [vmem:[%s2227_s25 + $0x110] sm:$0xf0]  ;;  %v1481_v1 = vor.u32 %v1842_v57, %v1480_v56 }
  0x4a   : > { %1069 = vmatpush.bf16.msra.mxu1 %v1601_v42  ;;  %v1781_v59 = vor.u32 %v1917_v52, %v1780_v51  ;;  %v1672_v61 = vld [vmem:[%s2227_s25 + $0x1c8] sm:$0xf]  ;;  %v1890_v62 = vld [vmem:[%s2227_s25 + $0x1d0] sm:$0xf0]  ;;  %v1577_v2 = vor.u32 %v1866_v60, %v1576_v58  ;;  %v1468_v4 = vld [vmem:[%s2227_s25 + $0x30] sm:$0xf] }
  0x4b   : > { %1083 = vmatpush.bf16.msra.mxu2 %v1697_v43  ;;  %v1768_v63 = vld [vmem:[%s2227_s25 + $0x288] sm:$0xf]  ;;  %v1914_v0 = vld [vmem:[%s2227_s25 + $0x290] sm:$0xf0]  ;;  %v1673_v3 = vor.u32 %v1890_v62, %v1672_v61  ;;  %v1839_v5 = vld [vmem:[%s2227_s25 + $0x38] sm:$0xf0] }
  0x4c   : > { %1097 = vmatpush.bf16.msra.mxu3 %v1793_v47  ;;  %v1564_v6 = vld [vmem:[%s2227_s25 + $0xf0] sm:$0xf]  ;;  %v1769_v7 = vor.u32 %v1914_v0, %v1768_v63  ;;  %v1863_v8 = vld [vmem:[%s2227_s25 + $0xf8] sm:$0xf0]  ;;  %v1469_v13 = vor.u32 %v1839_v5, %v1468_v4  ;;  %v1456_v16 = vld [vmem:[%s2227_s25 + $0x18] sm:$0xf] }
  0x4d   : > { %1056 = vmatpush.bf16.msra.mxu0 %v1493_v53  ;;  %v1660_v9 = vld [vmem:[%s2227_s25 + $0x1b0] sm:$0xf]  ;;  %v1887_v10 = vld [vmem:[%s2227_s25 + $0x1b8] sm:$0xf0]  ;;  %v1565_v14 = vor.u32 %v1863_v8, %v1564_v6  ;;  %v1836_v17 = vld [vmem:[%s2227_s25 + $0x20] sm:$0xf0] }
  0x4e   : > { %1070 = vmatpush.bf16.msra.mxu1 %v1589_v54  ;;  %v1756_v11 = vld [vmem:[%s2227_s25 + $0x270] sm:$0xf]  ;;  %v1911_v12 = vld [vmem:[%s2227_s25 + $0x278] sm:$0xf0]  ;;  %v1661_v15 = vor.u32 %v1887_v10, %v1660_v9  ;;  %v1552_v18 = vld [vmem:[%s2227_s25 + $0xd8] sm:$0xf]  ;;  %v1457_v25 = vor.u32 %v1836_v17, %v1456_v16 }
  0x4f   : > { %1084 = vmatpush.bf16.msra.mxu2 %v1685_v55  ;;  %v1757_v19 = vor.u32 %v1911_v12, %v1756_v11  ;;  %v1860_v20 = vld [vmem:[%s2227_s25 + $0xe0] sm:$0xf0]  ;;  %v1648_v21 = vld [vmem:[%s2227_s25 + $0x198] sm:$0xf]  ;;  %v1444_v26 = vld [vmem:[%s2227_s25] sm:$0xf] }
  0x50   : > { %1098 = vmatpush.bf16.msra.mxu3 %v1781_v59  ;;  %v1884_v22 = vld [vmem:[%s2227_s25 + $0x1a0] sm:$0xf0]  ;;  %v1744_v23 = vld [vmem:[%s2227_s25 + $0x258] sm:$0xf]  ;;  %v1833_v27 = vld [vmem:[%s2227_s25 + $0x8] sm:$0xf0]  ;;  %v1553_v28 = vor.u32 %v1860_v20, %v1552_v18 }
  0x51   : > { %1057 = vmatpush.bf16.msra.mxu0 %v1481_v1  ;;  %v1908_v24 = vld [vmem:[%s2227_s25 + $0x260] sm:$0xf0]  ;;  %v1649_v29 = vor.u32 %v1884_v22, %v1648_v21  ;;  %v1540_v30 = vld [vmem:[%s2227_s25 + $0xc0] sm:$0xf]  ;;  %v1857_v31 = vld [vmem:[%s2227_s25 + $0xc8] sm:$0xf0]  ;;  %v1445_v40 = vor.u32 %v1833_v27, %v1444_v26 }
  0x52   : > { %1071 = vmatpush.bf16.msra.mxu1 %v1577_v2  ;;  %v1636_v32 = vld [vmem:[%s2227_s25 + $0x180] sm:$0xf]  ;;  %v1745_v33 = vor.u32 %v1908_v24, %v1744_v23  ;;  %v1881_v34 = vld [vmem:[%s2227_s25 + $0x188] sm:$0xf0]  ;;  %v1530_v38 = vld [vmem:[%s2227_s25 + $0xb4] sm:$0xf0]  ;;  %v1541_v44 = vor.u32 %v1857_v31, %v1540_v30 }
  0x53   : > { %1085 = vmatpush.bf16.msra.mxu2 %v1673_v3  ;;  %v1732_v35 = vld [vmem:[%s2227_s25 + $0x240] sm:$0xf]  ;;  %v1905_v36 = vld [vmem:[%s2227_s25 + $0x248] sm:$0xf0]  ;;  %v1626_v41 = vld [vmem:[%s2227_s25 + $0x174] sm:$0xf0]  ;;  %v1637_v45 = vor.u32 %v1881_v34, %v1636_v32 }
  0x54   : > { %1099 = vmatpush.bf16.msra.mxu3 %v1769_v7  ;;  %v1853_v37 = vld [vmem:[%s2227_s25 + $0xac] sm:$0xf]  ;;  %v1722_v43 = vld [vmem:[%s2227_s25 + $0x234] sm:$0xf0]  ;;  %v1733_v48 = vor.u32 %v1905_v36, %v1732_v35  ;;  %v1850_v52 = vld [vmem:[%s2227_s25 + $0x94] sm:$0xf] }
  0x55   : > { %1058 = vmatpush.bf16.msra.mxu0 %v1469_v13  ;;  %v1877_v39 = vld [vmem:[%s2227_s25 + $0x16c] sm:$0xf]  ;;  %v1818_v47 = vld [vmem:[%s2227_s25 + $0x2f4] sm:$0xf0]  ;;  %v1533_v49 = vor.u32 %v1853_v37, %v1530_v38  ;;  %v1518_v53 = vld [vmem:[%s2227_s25 + $0x9c] sm:$0xf0] }
  0x56   : > { %1072 = vmatpush.bf16.msra.mxu1 %v1565_v14  ;;  %v1901_v42 = vld [vmem:[%s2227_s25 + $0x22c] sm:$0xf]  ;;  %v1629_v50 = vor.u32 %v1877_v39, %v1626_v41  ;;  %v1874_v54 = vld [vmem:[%s2227_s25 + $0x154] sm:$0xf]  ;;  %v1614_v56 = vld [vmem:[%s2227_s25 + $0x15c] sm:$0xf0]  ;;  %v1521_v61 = vor.u32 %v1850_v52, %v1518_v53 }
  0x57   : > { %1086 = vmatpush.bf16.msra.mxu2 %v1661_v15  ;;  %v1925_v46 = vld [vmem:[%s2227_s25 + $0x2ec] sm:$0xf]  ;;  %v1725_v51 = vor.u32 %v1901_v42, %v1722_v43  ;;  %v1898_v57 = vld [vmem:[%s2227_s25 + $0x214] sm:$0xf]  ;;  %v1710_v58 = vld [vmem:[%s2227_s25 + $0x21c] sm:$0xf0]  ;;  %v1617_v1 = vor.u32 %v1874_v54, %v1614_v56 }
  0x58   : > { %1100 = vmatpush.bf16.msra.mxu3 %v1757_v19  ;;  %v1821_v55 = vor.u32 %v1925_v46, %v1818_v47  ;;  %v1922_v59 = vld [vmem:[%s2227_s25 + $0x2d4] sm:$0xf]  ;;  %v1806_v60 = vld [vmem:[%s2227_s25 + $0x2dc] sm:$0xf0]  ;;  %v1847_v62 = vld [vmem:[%s2227_s25 + $0x7c] sm:$0xf]  ;;  %v1713_v2 = vor.u32 %v1898_v57, %v1710_v58 }
  0x59   : > { %1059 = vmatpush.bf16.msra.mxu0 %v1457_v25  ;;  %v1506_v63 = vld [vmem:[%s2227_s25 + $0x84] sm:$0xf0]  ;;  %v1871_v0 = vld [vmem:[%s2227_s25 + $0x13c] sm:$0xf]  ;;  %v403_v5 = vld [vmem:[%s2225_s23 + $0x10] sm:$0xff]  ;;  %v1809_v6 = vor.u32 %v1922_v59, %v1806_v60  ;;  %p1826_p1 = scmp.ne.s32.totalorder %s2099_s18, 2 }
  0x5a   : > { %1073 = vmatpush.bf16.msra.mxu1 %v1553_v28  ;;  %v1602_v3 = vld [vmem:[%s2227_s25 + $0x144] sm:$0xf0]  ;;  %v1895_v4 = vld [vmem:[%s2227_s25 + $0x1fc] sm:$0xf]  ;;  %v407_v9 = vld [vmem:[%s2225_s23 + $0x30] sm:$0xff]  ;;  %v1509_v14 = vor.u32 %v1847_v62, %v1506_v63 }
  0x5b   : > { %1087 = vmatpush.bf16.msra.mxu2 %v1649_v29  ;;  %v1698_v7 = vld [vmem:[%s2227_s25 + $0x204] sm:$0xf0]  ;;  %v1919_v8 = vld [vmem:[%s2227_s25 + $0x2bc] sm:$0xf]  ;;  %v1844_v11 = vld [vmem:[%s2227_s25 + $0x64] sm:$0xf]  ;;  %v2330_v13 = vpack.c.bf16 %v407_v9, %v403_v5  ;;  %v1605_v19 = vor.u32 %v1871_v0, %v1602_v3 }
  0x5c   : > { %1101 = vmatpush.bf16.msra.mxu3 %v1745_v33  ;;  %v1794_v10 = vld [vmem:[%s2227_s25 + $0x2c4] sm:$0xf0]  ;;  %v1494_v12 = vld [vmem:[%s2227_s25 + $0x6c] sm:$0xf0]  ;;  %v1868_v15 = vld [vmem:[%s2227_s25 + $0x124] sm:$0xf]  ;;  %v1701_v20 = vor.u32 %v1895_v4, %v1698_v7 }
  0x5d   : > { %1060 = vmatpush.bf16.msra.mxu0 %v1445_v40  ;;  %v1590_v16 = vld [vmem:[%s2227_s25 + $0x12c] sm:$0xf0]  ;;  %v1892_v17 = vld [vmem:[%s2227_s25 + $0x1e4] sm:$0xf]  ;;  %v404_v21 = vld [vmem:[%s2225_s23 + $0x18] sm:$0xff]  ;;  %v1797_v24 = vor.u32 %v1919_v8, %v1794_v10  ;;  %v1497_v33 = vor.u32 %v1844_v11, %v1494_v12 }
  0x5e   : > { %1074 = vmatpush.bf16.msra.mxu1 %v1541_v44  ;;  %v1686_v18 = vld [vmem:[%s2227_s25 + $0x1ec] sm:$0xf0]  ;;  %v408_v22 = vld [vmem:[%s2225_s23 + $0x38] sm:$0xff]  ;;  %v401_v23 = vld [vmem:[%s2225_s23] sm:$0xff]  ;;  %v1593_v34 = vor.u32 %v1868_v15, %v1590_v16 }
  0x5f   : > { %1088 = vmatpush.bf16.msra.mxu2 %v1637_v45  ;;  %v2340_v25 = vpack.c.bf16 %v408_v22, %v404_v21  ;;  %v405_v26 = vld [vmem:[%s2225_s23 + $0x20] sm:$0xff]  ;;  %v402_v27 = vld [vmem:[%s2225_s23 + $0x8] sm:$0xff]  ;;  %v1782_v30 = vld [vmem:[%s2227_s25 + $0x2ac] sm:$0xf0]  ;;  %v1689_v35 = vor.u32 %v1892_v17, %v1686_v18 }
  0x60   : > { %1102 = vmatpush.bf16.msra.mxu3 %v1733_v48  ;;  %v406_v28 = vld [vmem:[%s2225_s23 + $0x28] sm:$0xff]  ;;  %v1916_v29 = vld [vmem:[%s2227_s25 + $0x2a4] sm:$0xf]  ;;  %v2347_v31 = vpack.c.bf16 %v405_v26, %v401_v23  ;;  %v1482_v37 = vld [vmem:[%s2227_s25 + $0x54] sm:$0xf0] }
  0x61   : > { %1109 = vmatpush.bf16.msrb.mxu0 %v1533_v49  ;;  %v2349_v32 = vpack.c.bf16 %v406_v28, %v402_v27  ;;  %v1841_v36 = vld [vmem:[%s2227_s25 + $0x4c] sm:$0xf]  ;;  %v1785_v39 = vor.u32 %v1916_v29, %v1782_v30  ;;  %v1578_v40 = vld [vmem:[%s2227_s25 + $0x114] sm:$0xf0]  ;;  %v1838_v48 = vld [vmem:[%s2227_s25 + $0x34] sm:$0xf] }
  0x62   : > { %1123 = vmatpush.bf16.msrb.mxu1 %v1629_v50  ;;  %1089 = vmatmul.bf16.vlgmr.msra.gmra.mxu2 %v2330_v13  ;;  %v1865_v38 = vld [vmem:[%s2227_s25 + $0x10c] sm:$0xf]  ;;  %v1674_v42 = vld [vmem:[%s2227_s25 + $0x1d4] sm:$0xf0]  ;;  %v1485_v45 = vor.u32 %v1841_v36, %v1482_v37  ;;  %v1470_v49 = vld [vmem:[%s2227_s25 + $0x3c] sm:$0xf0] }
  0x63   : > { %1137 = vmatpush.bf16.msrb.mxu2 %v1725_v51  ;;  %1103 = vmatmul.bf16.vlgmr.msra.gmra.mxu3 %v2340_v25  ;;  %v1889_v41 = vld [vmem:[%s2227_s25 + $0x1cc] sm:$0xf]  ;;  %v1770_v44 = vld [vmem:[%s2227_s25 + $0x294] sm:$0xf0]  ;;  %v1581_v46 = vor.u32 %v1865_v38, %v1578_v40  ;;  %v1862_v50 = vld [vmem:[%s2227_s25 + $0xf4] sm:$0xf]  ;;  %v1473_v57 = vor.u32 %v1838_v48, %v1470_v49 }
  0x64   : > { %1151 = vmatpush.bf16.msrb.mxu3 %v1821_v55  ;;  %1061 = vmatmul.bf16.vlgmr.msra.gmra.mxu0 %v2347_v31  ;;  %v1913_v43 = vld [vmem:[%s2227_s25 + $0x28c] sm:$0xf]  ;;  %v1677_v47 = vor.u32 %v1889_v41, %v1674_v42  ;;  %v1566_v52 = vld [vmem:[%s2227_s25 + $0xfc] sm:$0xf0]  ;;  %v1886_v53 = vld [vmem:[%s2227_s25 + $0x1b4] sm:$0xf] }
  0x65   : > { %1110 = vmatpush.bf16.msrb.mxu0 %v1521_v61  ;;  %1075 = vmatmul.bf16.vlgmr.msra.gmra.mxu1 %v2349_v32  ;;  %v1773_v51 = vor.u32 %v1913_v43, %v1770_v44  ;;  %v1662_v54 = vld [vmem:[%s2227_s25 + $0x1bc] sm:$0xf0]  ;;  %v1910_v55 = vld [vmem:[%s2227_s25 + $0x274] sm:$0xf]  ;;  %v1569_v58 = vor.u32 %v1862_v50, %v1566_v52  ;;  %v1835_v60 = vld [vmem:[%s2227_s25 + $0x1c] sm:$0xf] }
  0x66   : > { %1124 = vmatpush.bf16.msrb.mxu1 %v1617_v1  ;;  %v1758_v56 = vld [vmem:[%s2227_s25 + $0x27c] sm:$0xf0]  ;;  %v1665_v59 = vor.u32 %v1886_v53, %v1662_v54  ;;  %v1458_v61 = vld [vmem:[%s2227_s25 + $0x24] sm:$0xf0]  ;;  %v1859_v62 = vld [vmem:[%s2227_s25 + $0xdc] sm:$0xf] }
  0x67   : > { %1138 = vmatpush.bf16.msrb.mxu2 %v1713_v2  ;;  %v1761_v63 = vor.u32 %v1910_v55, %v1758_v56  ;;  %v1554_v0 = vld [vmem:[%s2227_s25 + $0xe4] sm:$0xf0]  ;;  %v1883_v1 = vld [vmem:[%s2227_s25 + $0x19c] sm:$0xf]  ;;  %v1461_v5 = vor.u32 %v1835_v60, %v1458_v61  ;;  %v1446_v7 = vld [vmem:[%s2227_s25 + $0xc] sm:$0xf0] }
  0x68   : > { %1152 = vmatpush.bf16.msrb.mxu3 %v1809_v6  ;;  %v1650_v2 = vld [vmem:[%s2227_s25 + $0x1a4] sm:$0xf0]  ;;  %v1907_v3 = vld [vmem:[%s2227_s25 + $0x25c] sm:$0xf]  ;;  %v1832_v6 = vld [vmem:[%s2227_s25 + $0x4] sm:$0xf]  ;;  %v1557_v8 = vor.u32 %v1859_v62, %v1554_v0 }
  0x69   : > { %1111 = vmatpush.bf16.msrb.mxu0 %v1509_v14  ;;  %v1746_v4 = vld [vmem:[%s2227_s25 + $0x264] sm:$0xf0]  ;;  %v1653_v9 = vor.u32 %v1883_v1, %v1650_v2  ;;  %v1856_v10 = vld [vmem:[%s2227_s25 + $0xc4] sm:$0xf]  ;;  %v1542_v11 = vld [vmem:[%s2227_s25 + $0xcc] sm:$0xf0]  ;;  %v1449_v21 = vor.u32 %v1832_v6, %v1446_v7 }
  0x6a   : > { %1125 = vmatpush.bf16.msrb.mxu1 %v1605_v19  ;;  %v1880_v12 = vld [vmem:[%s2227_s25 + $0x184] sm:$0xf]  ;;  %v1749_v14 = vor.u32 %v1907_v3, %v1746_v4  ;;  %v1638_v15 = vld [vmem:[%s2227_s25 + $0x18c] sm:$0xf0]  ;;  %v1855_v19 = vld [vmem:[%s2227_s25 + $0xb8] sm:$0xf0]  ;;  %v1545_v26 = vor.u32 %v1856_v10, %v1542_v11 }
  0x6b   : > { %1139 = vmatpush.bf16.msrb.mxu2 %v1701_v20  ;;  %v1904_v16 = vld [vmem:[%s2227_s25 + $0x244] sm:$0xf]  ;;  %v1734_v17 = vld [vmem:[%s2227_s25 + $0x24c] sm:$0xf0]  ;;  %v1879_v22 = vld [vmem:[%s2227_s25 + $0x178] sm:$0xf0]  ;;  %v1641_v27 = vor.u32 %v1880_v12, %v1638_v15 }
  0x6c   : > { %1153 = vmatpush.bf16.msrb.mxu3 %v1797_v24  ;;  %v1536_v18 = vld [vmem:[%s2227_s25 + $0xb0] sm:$0xf]  ;;  %v1903_v24 = vld [vmem:[%s2227_s25 + $0x238] sm:$0xf0]  ;;  %v1737_v30 = vor.u32 %v1904_v16, %v1734_v17  ;;  %v1524_v36 = vld [vmem:[%s2227_s25 + $0x98] sm:$0xf] }
  0x6d   : > { %1112 = vmatpush.bf16.msrb.mxu0 %v1497_v33  ;;  %v1632_v20 = vld [vmem:[%s2227_s25 + $0x170] sm:$0xf]  ;;  %v1927_v29 = vld [vmem:[%s2227_s25 + $0x2f8] sm:$0xf0]  ;;  %v1537_v33 = vor.u32 %v1855_v19, %v1536_v18  ;;  %v1852_v37 = vld [vmem:[%s2227_s25 + $0xa0] sm:$0xf0] }
  0x6e   : > { %1126 = vmatpush.bf16.msrb.mxu1 %v1593_v34  ;;  %v1728_v23 = vld [vmem:[%s2227_s25 + $0x230] sm:$0xf]  ;;  %v1633_v34 = vor.u32 %v1879_v22, %v1632_v20  ;;  %v1620_v38 = vld [vmem:[%s2227_s25 + $0x158] sm:$0xf]  ;;  %v1876_v40 = vld [vmem:[%s2227_s25 + $0x160] sm:$0xf0] }
  0x6f   : > { %1140 = vmatpush.bf16.msrb.mxu2 %v1689_v35  ;;  %v1824_v28 = vld [vmem:[%s2227_s25 + $0x2f0] sm:$0xf]  ;;  %v1729_v35 = vor.u32 %v1903_v24, %v1728_v23  ;;  %v1716_v41 = vld [vmem:[%s2227_s25 + $0x218] sm:$0xf]  ;;  %v1900_v42 = vld [vmem:[%s2227_s25 + $0x220] sm:$0xf0] }
  0x70   : > { %1154 = vmatpush.bf16.msrb.mxu3 %v1785_v39  ;;  %v1825_v39 = vor.u32 %v1927_v29, %v1824_v28  ;;  %v1812_v43 = vld [vmem:[%s2227_s25 + $0x2d8] sm:$0xf]  ;;  %v1924_v44 = vld [vmem:[%s2227_s25 + $0x2e0] sm:$0xf0]  ;;  %v1512_v48 = vld [vmem:[%s2227_s25 + $0x80] sm:$0xf] }
  0x71   : > { %1113 = vmatpush.bf16.msrb.mxu0 %v1485_v45  ;;  %v1525_v45 = vor.u32 %v1852_v37, %v1524_v36  ;;  %v1849_v49 = vld [vmem:[%s2227_s25 + $0x88] sm:$0xf0]  ;;  %v1608_v50 = vld [vmem:[%s2227_s25 + $0x140] sm:$0xf]  ;;  %v1500_v60 = vld [vmem:[%s2227_s25 + $0x68] sm:$0xf] }
  0x72   : > { %1127 = vmatpush.bf16.msrb.mxu1 %v1581_v46  ;;  %v1621_v46 = vor.u32 %v1876_v40, %v1620_v38  ;;  %v1873_v52 = vld [vmem:[%s2227_s25 + $0x148] sm:$0xf0]  ;;  %v1704_v53 = vld [vmem:[%s2227_s25 + $0x200] sm:$0xf]  ;;  %v1846_v61 = vld [vmem:[%s2227_s25 + $0x70] sm:$0xf0] }
  0x73   : > { %1141 = vmatpush.bf16.msrb.mxu2 %v1677_v47  ;;  %v1717_v47 = vor.u32 %v1900_v42, %v1716_v41  ;;  %v1897_v54 = vld [vmem:[%s2227_s25 + $0x208] sm:$0xf0]  ;;  %v1800_v55 = vld [vmem:[%s2227_s25 + $0x2c0] sm:$0xf]  ;;  %v1596_v62 = vld [vmem:[%s2227_s25 + $0x128] sm:$0xf] }
  0x74   : > { %1155 = vmatpush.bf16.msrb.mxu3 %v1773_v51  ;;  %v1813_v51 = vor.u32 %v1924_v44, %v1812_v43  ;;  %v1921_v56 = vld [vmem:[%s2227_s25 + $0x2c8] sm:$0xf0]  ;;  %v1870_v0 = vld [vmem:[%s2227_s25 + $0x130] sm:$0xf0]  ;;  %v1692_v1 = vld [vmem:[%s2227_s25 + $0x1e8] sm:$0xf] }
  0x75   : > { %1114 = vmatpush.bf16.msrb.mxu0 %v1473_v57  ;;  %v1513_v57 = vor.u32 %v1849_v49, %v1512_v48  ;;  %v1894_v2 = vld [vmem:[%s2227_s25 + $0x1f0] sm:$0xf0]  ;;  %v1788_v3 = vld [vmem:[%s2227_s25 + $0x2a8] sm:$0xf]  ;;  %v1597_v6 = vor.u32 %v1870_v0, %v1596_v62  ;;  %v1584_v10 = vld [vmem:[%s2227_s25 + $0x110] sm:$0xf] }
  0x76   : > { %1128 = vmatpush.bf16.msrb.mxu1 %v1569_v58  ;;  %v1609_v58 = vor.u32 %v1873_v52, %v1608_v50  ;;  %v1918_v4 = vld [vmem:[%s2227_s25 + $0x2b0] sm:$0xf0]  ;;  %v1693_v7 = vor.u32 %v1894_v2, %v1692_v1  ;;  %v1867_v12 = vld [vmem:[%s2227_s25 + $0x118] sm:$0xf0]  ;;  %v1776_v16 = vld [vmem:[%s2227_s25 + $0x290] sm:$0xf] }
  0x77   : > { %1142 = vmatpush.bf16.msrb.mxu2 %v1665_v59  ;;  %v1705_v59 = vor.u32 %v1897_v54, %v1704_v53  ;;  %v1789_v11 = vor.u32 %v1918_v4, %v1788_v3  ;;  %v1891_v15 = vld [vmem:[%s2227_s25 + $0x1d8] sm:$0xf0]  ;;  %v1585_v19 = vor.u32 %v1867_v12, %v1584_v10  ;;  %v1840_v22 = vld [vmem:[%s2227_s25 + $0x40] sm:$0xf0]  ;;  %v1572_v23 = vld [vmem:[%s2227_s25 + $0xf8] sm:$0xf] }
  0x78   : > { %1156 = vmatpush.bf16.msrb.mxu3 %v1761_v63  ;;  %v1801_v63 = vor.u32 %v1921_v56, %v1800_v55  ;;  %v1915_v17 = vld [vmem:[%s2227_s25 + $0x298] sm:$0xf0]  ;;  %v1888_v28 = vld [vmem:[%s2227_s25 + $0x1c0] sm:$0xf0]  ;;  %v1764_v29 = vld [vmem:[%s2227_s25 + $0x278] sm:$0xf] }
  0x79   : > { %1115 = vmatpush.bf16.msrb.mxu0 %v1461_v5  ;;  %v1501_v5 = vor.u32 %v1846_v61, %v1500_v60  ;;  %v1777_v24 = vor.u32 %v1915_v17, %v1776_v16  ;;  %v1464_v36 = vld [vmem:[%s2227_s25 + $0x20] sm:$0xf]  ;;  %v1837_v37 = vld [vmem:[%s2227_s25 + $0x28] sm:$0xf0]  ;;  %v1452_v48 = vld [vmem:[%s2227_s25 + $0x8] sm:$0xf] }
  0x7a   : > { %1129 = vmatpush.bf16.msrb.mxu1 %v1557_v8  ;;  %v1488_v8 = vld [vmem:[%s2227_s25 + $0x50] sm:$0xf]  ;;  %v1560_v38 = vld [vmem:[%s2227_s25 + $0xe0] sm:$0xf]  ;;  %v1861_v40 = vld [vmem:[%s2227_s25 + $0xe8] sm:$0xf0] }
  0x7b   : > { %1143 = vmatpush.bf16.msrb.mxu2 %v1653_v9  ;;  %v1843_v9 = vld [vmem:[%s2227_s25 + $0x58] sm:$0xf0]  ;;  %v1656_v41 = vld [vmem:[%s2227_s25 + $0x1a0] sm:$0xf]  ;;  %v1885_v42 = vld [vmem:[%s2227_s25 + $0x1a8] sm:$0xf0] }
  0x7c   : > { %1157 = vmatpush.bf16.msrb.mxu3 %v1749_v14  ;;  %v1680_v14 = vld [vmem:[%s2227_s25 + $0x1d0] sm:$0xf]  ;;  %v1489_v18 = vor.u32 %v1843_v9, %v1488_v8  ;;  %v1752_v43 = vld [vmem:[%s2227_s25 + $0x260] sm:$0xf]  ;;  %v1909_v44 = vld [vmem:[%s2227_s25 + $0x268] sm:$0xf0] }
  0x7d   : > { %1116 = vmatpush.bf16.msrb.mxu0 %v1449_v21  ;;  %v1681_v20 = vor.u32 %v1891_v15, %v1680_v14  ;;  %v1476_v21 = vld [vmem:[%s2227_s25 + $0x38] sm:$0xf]  ;;  %v1834_v49 = vld [vmem:[%s2227_s25 + $0x10] sm:$0xf0]  ;;  %v1548_v50 = vld [vmem:[%s2227_s25 + $0xc8] sm:$0xf] }
  0x7e   : > { %1130 = vmatpush.bf16.msrb.mxu1 %v1545_v26  ;;  %v1864_v26 = vld [vmem:[%s2227_s25 + $0x100] sm:$0xf0]  ;;  %v1858_v52 = vld [vmem:[%s2227_s25 + $0xd0] sm:$0xf0]  ;;  %v1644_v53 = vld [vmem:[%s2227_s25 + $0x188] sm:$0xf] }
  0x7f   : > { %1144 = vmatpush.bf16.msrb.mxu2 %v1641_v27  ;;  %v1668_v27 = vld [vmem:[%s2227_s25 + $0x1b8] sm:$0xf]  ;;  %v1882_v54 = vld [vmem:[%s2227_s25 + $0x190] sm:$0xf0]  ;;  %v1740_v55 = vld [vmem:[%s2227_s25 + $0x248] sm:$0xf] }
  0x80   : > { %1158 = vmatpush.bf16.msrb.mxu3 %v1737_v30  ;;  %1117 = vmatmul.bf16.vlgmr.msrb.gmra.mxu0 %v2347_v31  ;;  %v1912_v30 = vld [vmem:[%s2227_s25 + $0x280] sm:$0xf0]  ;;  %v1906_v56 = vld [vmem:[%s2227_s25 + $0x250] sm:$0xf0]  ;;  %v395_v3 = vld [vmem:[#allocation2 + $0x28] sm:$0xff] }
  0x81   : > { %1165 = vmatpush.bf16.msra.mxu0 %v1537_v33  ;;  %1131 = vmatmul.bf16.vlgmr.msrb.gmra.mxu1 %v2349_v32  ;;  %v1477_v33 = vor.u32 %v1840_v22, %v1476_v21  ;;  %v1741_v60 = vor.u32 %v1906_v56, %v1740_v55  ;;  %v398_v10 = vld [vmem:[#allocation2] sm:$0xff] }
  0x82   : > { %1179 = vmatpush.bf16.msra.mxu1 %v1633_v34  ;;  %1145 = vmatmul.bf16.vlgmr.msrb.gmra.mxu2 %v2330_v13  ;;  %v1573_v34 = vor.u32 %v1864_v26, %v1572_v23 }
  0x83   : > { %1193 = vmatpush.bf16.msra.mxu2 %v1729_v35  ;;  %1159 = vmatmul.bf16.vlgmr.msrb.gmra.mxu3 %v2340_v25  ;;  %v1669_v35 = vor.u32 %v1888_v28, %v1668_v27  ;;  %v399_v28 = vld [vmem:[#allocation2 + $0x18] sm:$0xff] }
  0x84   : > { %1207 = vmatpush.bf16.msra.mxu3 %v1825_v39  ;;  %v1765_v39 = vor.u32 %v1912_v30, %v1764_v29 }
  0x85   : > { %1166 = vmatpush.bf16.msra.mxu0 %v1525_v45  ;;  %v1465_v45 = vor.u32 %v1837_v37, %v1464_v36 }
  0x86   : > { %1180 = vmatpush.bf16.msra.mxu1 %v1621_v46  ;;  %v1561_v46 = vor.u32 %v1861_v40, %v1560_v38 }
  0x87   : > { %1194 = vmatpush.bf16.msra.mxu2 %v1717_v47  ;;  %v1657_v47 = vor.u32 %v1885_v42, %v1656_v41 }
  0x88   : > { %1208 = vmatpush.bf16.msra.mxu3 %v1813_v51  ;;  %v1753_v51 = vor.u32 %v1909_v44, %v1752_v43 }
  0x89   : > { %1167 = vmatpush.bf16.msra.mxu0 %v1513_v57  ;;  %v1453_v57 = vor.u32 %v1834_v49, %v1452_v48 }
  0x8a   : > { %1181 = vmatpush.bf16.msra.mxu1 %v1609_v58  ;;  %v1549_v58 = vor.u32 %v1858_v52, %v1548_v50 }
  0x8b   : > { %1195 = vmatpush.bf16.msra.mxu2 %v1705_v59  ;;  %v1645_v59 = vor.u32 %v1882_v54, %v1644_v53 }
  0x8c   : > { %1209 = vmatpush.bf16.msra.mxu3 %v1801_v63 }
  0x8d   : > { %1168 = vmatpush.bf16.msra.mxu0 %v1501_v5 }
  0x8e   : > { %1182 = vmatpush.bf16.msra.mxu1 %v1597_v6 }
  0x8f   : > { %1196 = vmatpush.bf16.msra.mxu2 %v1693_v7 }
  0x90   : > { %1210 = vmatpush.bf16.msra.mxu3 %v1789_v11 }
  0x91   : > { %1169 = vmatpush.bf16.msra.mxu0 %v1489_v18  ;;  %v396_v18 = vld [vmem:[#allocation2 + $0x10] sm:$0xff] }
  0x92   : > { %1183 = vmatpush.bf16.msra.mxu1 %v1585_v19 }
  0x93   : > { %1197 = vmatpush.bf16.msra.mxu2 %v1681_v20 }
  0x94   : > { %1211 = vmatpush.bf16.msra.mxu3 %v1777_v24 }
  0x95   : > { %1170 = vmatpush.bf16.msra.mxu0 %v1477_v33 }
  0x96   : > { %1184 = vmatpush.bf16.msra.mxu1 %v1573_v34 }
  0x97   : > { %1198 = vmatpush.bf16.msra.mxu2 %v1669_v35 }
  0x98   : > { %1212 = vmatpush.bf16.msra.mxu3 %v1765_v39  ;;  %v397_v39 = vld [vmem:[#allocation2 + $0x8] sm:$0xff] }
  0x99   : > { %1171 = vmatpush.bf16.msra.mxu0 %v1465_v45 }
  0x9a   : > { %1185 = vmatpush.bf16.msra.mxu1 %v1561_v46 }
  0x9b   : > { %1199 = vmatpush.bf16.msra.mxu2 %v1657_v47  ;;  %v400_v47 = vld [vmem:[#allocation2 + $0x20] sm:$0xff] }
  0x9c   : > { %1213 = vmatpush.bf16.msra.mxu3 %v1753_v51 }
  0x9d   : > { %1172 = vmatpush.bf16.msra.mxu0 %v1453_v57 }
  0x9e   : > { %1186 = vmatpush.bf16.msra.mxu1 %v1549_v58 }
  0x9f   : > { %1200 = vmatpush.bf16.msra.mxu2 %v1645_v59 }
  0xa0   : > { %1214 = vmatpush.bf16.msra.mxu3 %v1741_v60  ;;  %1173 = vmatmul.bf16.vlgmr.msra.gmra.mxu0 %v2347_v31 }
  0xa1   : > { %1187 = vmatmul.bf16.vlgmr.msra.gmra.mxu1 %v2349_v32 }
  0xa2   : > { %1201 = vmatmul.bf16.vlgmr.msra.gmra.mxu2 %v2330_v13 }
  0xa3   : > { %1215 = vmatmul.bf16.vlgmr.msra.gmra.mxu3 %v2340_v25 }
  0xe1   : > { %v1062_v61 = vpop.f32.mrf.mxu0 }
  0xe2   : > { %v1076_v62 = vpop.f32.mrf.mxu1 }
  0xe3   : > { %v1077_v63 = vadd.f32 %v1076_v62, %v1062_v61 }
  0xe5   : > { %v1090_v0 = vpop.f32.mrf.mxu2 }
  0xe6   : > { %v1091_v1 = vadd.f32 %v1090_v0, %v1077_v63  ;;  %v1104_v2 = vpop.f32.mrf.mxu3 }
  0xe8   : > { %v1105_v4 = vadd.f32 %v1104_v2, %v1091_v1 }
  0xe9   : > { %v1064_v6 = vpop.f32.mrf.mxu0 }
  0xea   : > { %v1221_v5 = vadd.f32 %v1105_v4, %v395_v3  ;;  %v1078_v7 = vpop.f32.mrf.mxu1 }
  0xeb   : > { %v1079_v8 = vadd.f32 %v1078_v7, %v1064_v6 }
  0xec   : > { %1227 = vst [vmem:[#allocation2 + $0x28] sm:$0xff] %v1221_v5 }
  0xed   : > { %v1092_v31 = vpop.f32.mrf.mxu2 }
  0xee   : > { %v1093_v9 = vadd.f32 %v1092_v31, %v1079_v8  ;;  %v1106_v32 = vpop.f32.mrf.mxu3 }
  0xf0   : > { %v1107_v13 = vadd.f32 %v1106_v32, %v1093_v9 }
  0xf2   : > { %v1224_v11 = vadd.f32 %v1107_v13, %v398_v10 }
  0xf4   : > { %1230 = vst [vmem:[#allocation2] sm:$0xff] %v1224_v11 }
  0xfd   : > { %v1118_v25 = vpop.f32.mrf.mxu0 }
  0xfe   : > { %v1132_v12 = vpop.f32.mrf.mxu1 }
  0xff   : > { %v1133_v14 = vadd.f32 %v1132_v12, %v1118_v25 }
 0x105   : > { %v1146_v15 = vpop.f32.mrf.mxu2  ;;  %v1120_v20 = vpop.f32.mrf.mxu0 }
 0x106   : > { %v1147_v16 = vadd.f32 %v1146_v15, %v1133_v14  ;;  %v1160_v17 = vpop.f32.mrf.mxu3  ;;  %v1134_v21 = vpop.f32.mrf.mxu1 }
 0x107   : > { %v1135_v23 = vadd.f32 %v1134_v21, %v1120_v20 }
 0x108   : > { %v1161_v19 = vadd.f32 %v1160_v17, %v1147_v16 }
 0x10a   : > { %v1222_v22 = vadd.f32 %v1161_v19, %v396_v18 }
 0x10c   : > { %1228 = vst [vmem:[#allocation2 + $0x10] sm:$0xff] %v1222_v22 }
 0x10d   : > { %v1148_v24 = vpop.f32.mrf.mxu2 }
 0x10e   : > { %v1149_v26 = vadd.f32 %v1148_v24, %v1135_v23  ;;  %v1162_v27 = vpop.f32.mrf.mxu3 }
 0x110   : > { %v1163_v29 = vadd.f32 %v1162_v27, %v1149_v26 }
 0x112   : > { %v1225_v30 = vadd.f32 %v1163_v29, %v399_v28 }
 0x114   : > { %1231 = vst [vmem:[#allocation2 + $0x18] sm:$0xff] %v1225_v30 }
 0x11d   : > { %v1174_v33 = vpop.f32.mrf.mxu0 }
 0x11e   : > { %v1188_v34 = vpop.f32.mrf.mxu1 }
 0x11f   : > { %v1189_v35 = vadd.f32 %v1188_v34, %v1174_v33 }
 0x125   : > { %v1202_v36 = vpop.f32.mrf.mxu2  ;;  %v1176_v41 = vpop.f32.mrf.mxu0 }
 0x126   : > { %v1203_v37 = vadd.f32 %v1202_v36, %v1189_v35  ;;  %v1216_v38 = vpop.f32.mrf.mxu3  ;;  %v1190_v42 = vpop.f32.mrf.mxu1 }
 0x127   : > { %v1191_v44 = vadd.f32 %v1190_v42, %v1176_v41 }
 0x128   : > { %v1217_v40 = vadd.f32 %v1216_v38, %v1203_v37 }
 0x12a   : > { %v1223_v43 = vadd.f32 %v1217_v40, %v397_v39 }
 0x12c   : > { %1229 = vst [vmem:[#allocation2 + $0x8] sm:$0xff] %v1223_v43 }
 0x12d   : > { %v1204_v45 = vpop.f32.mrf.mxu2 }
 0x12e   : > { %v1205_v46 = vadd.f32 %v1204_v45, %v1191_v44  ;;  %v1218_v48 = vpop.f32.mrf.mxu3 }
 0x130   : > { %v1219_v49 = vadd.f32 %v1218_v48, %v1205_v46  ;;  %1236 = sbr.rel (%p1826_p1) target bundleno = 322 (0x142), region = 75 }
 0x132   : > { %v1226_v50 = vadd.f32 %v1219_v49, %v400_v47 }
 0x134   : > { %1232 = vst [vmem:[#allocation2 + $0x20] sm:$0xff] %v1226_v50 }
 0x135   : > { %v1237_v51 = vld [vmem:[#allocation2 + $0x28] sm:$0xff]  ;;  %v1243_v52 = vld [vmem:[#allocation6] sm:$0x7]  ;;  %v1257_v54 = vld [vmem:[%s2516_s3] sm:$0xff] }
 0x136   : > { %v1245_v53 = vperm.slane %v1243_v52, 0  ;;  %v1238_v55 = vld [vmem:[#allocation2 + $0x10] sm:$0xff]  ;;  %v1246_v56 = vperm.slane %v1243_v52, 1  ;;  %v1239_v57 = vld [vmem:[#allocation2 + $0x8] sm:$0xff]  ;;  %v1247_v58 = vperm.slane %v1243_v52, 2  ;;  %v1240_v61 = vld [vmem:[#allocation2] sm:$0xff] }
 0x137   : > { %v1258_v59 = vld [vmem:[%s2516_s3 + $0x8] sm:$0xff]  ;;  %v1259_v60 = vld [vmem:[%s2516_s3 + $0x10] sm:$0xff]  ;;  %v1260_v2 = vld [vmem:[%s2516_s3 + $0x18] sm:$0xff] }
 0x138   : > { %v1251_v62 = vadd.f32 %v1245_v53, %v1237_v51  ;;  %v1252_v63 = vadd.f32 %v1246_v56, %v1238_v55  ;;  %v1253_v0 = vadd.f32 %v1247_v58, %v1239_v57  ;;  %v1254_v1 = vadd.f32 %v1245_v53, %v1240_v61  ;;  %v1241_v3 = vld [vmem:[#allocation2 + $0x18] sm:$0xff]  ;;  %v1261_v6 = vld [vmem:[%s2516_s3 + $0x20] sm:$0xff]  ;;  %v1262_v32 = vld [vmem:[%s2516_s3 + $0x28] sm:$0xff] }
 0x139   : > { %v1255_v5 = vadd.f32 %v1246_v56, %v1241_v3 }
 0x13a   : > { %v1263_v8 = vadd.f32 %v1257_v54, %v1251_v62  ;;  %v1264_v31 = vadd.f32 %v1258_v59, %v1252_v63  ;;  %v1265_v9 = vadd.f32 %v1259_v60, %v1253_v0  ;;  %v1266_v10 = vadd.f32 %v1260_v2, %v1254_v1 }
 0x13b   : > { %v1242_v4 = vld [vmem:[#allocation2 + $0x20] sm:$0xff]  ;;  %v1267_v13 = vadd.f32 %v1261_v6, %v1255_v5 }
 0x13c   : > { %v1256_v7 = vadd.f32 %v1247_v58, %v1242_v4  ;;  %1269 = vst [vmem:[%s2517_s4] sm:$0xff] %v1263_v8 }
 0x13d   : > { %1270 = vst [vmem:[%s2517_s4 + $0x8] sm:$0xff] %v1264_v31 }
 0x13e   : > { %v1268_v11 = vadd.f32 %v1262_v32, %v1256_v7  ;;  %1271 = vst [vmem:[%s2517_s4 + $0x10] sm:$0xff] %v1265_v9 }
 0x13f   : > { %1272 = vst [vmem:[%s2517_s4 + $0x18] sm:$0xff] %v1266_v10 }
 0x140   : > { %1273 = vst [vmem:[%s2517_s4 + $0x20] sm:$0xff] %v1267_v13 }
 0x141   : > { %1274 = vst [vmem:[%s2517_s4 + $0x28] sm:$0xff] %v1268_v11 }
 0x142 PF: > { %s18_s20 = sadd.s32 1, %s2107_s20   ;;  %s2522_s15 = smov %s2091_s16 }
 0x143   : > { %p15_p2 = scmp.ge.s32.totalorder %s18_s20, 5   ;;  %s2523_s16 = smov %s2095_s17 }
 0x144   : > { %s2524_s17 = smov %s2194_s28  ;;  %s2525_s18 = smov %s2103_s19 }
 0x145   : > { %s2526_s19 = smov %s2528_s22  ;;  %17 = sbr.rel (!%p15_p2) target bundleno = 5 (0x5), region = 123 }
 0x14a   :  { %1308 = vsyncpa [#allocation5], 1 }
 0x14b   :  { %1310 = vsyncpa [#allocation5 + $0x1], 1 }
 0x14c   :  { %1311 = vsyncpa [#allocation7], 1 }

// kernel: cnn_perceiver_forward.21
= control target key start
LH: loop header
LB: loop body
LE: loop exit
PB: predicated region body
PF: predicated region fallthrough
CT: control target
= control target key end

     0   :  { %s407_s9 = smov 0   ;;  %s443_s0 = inlined_call_operand.vmem [shape: f32[2,8,64], index: 0, kind: input, shape index: {}]   ;;  %s444_s1 = inlined_call_operand.vmem [shape: f32[2,8,128], index: 1, kind: input, shape index: {}]   ;;  %s445_s2 = inlined_call_operand.vmem [shape: f32[2,8,64], index: 2, kind: output, shape index: {}]  }
   0x1 LB: > { %s348_s10 = sadd.s32 4294967295, %s387_s9   ;;  %p352_p0 = scmp.ge.s32.totalorder %s387_s9, 1  ;;  %s387_s9 = sphi %s407_s9, %s12_s9  }
   0x2   : > { %p120_p1 = scmp.lt.s32.totalorder %s387_s9, 3 }
   0x4   : > { %p121_p2 = pnand %p352_p0, %p120_p1 }
   0x5   : > { %p144_p3 = scmp.lt.s32.totalorder (!%p121_p2), %s348_s10, 1  ;;  %s389_s18 = smov (!%p121_p2), 96  }
   0x6   : > { %124 = sbr.rel (%p121_p2) target bundleno = 756 (0x2f4), region = 28  ;;  %s390_s19 = smov (!%p121_p2), 64  }
   0x7   : > { %s391_s20 = smov (!%p121_p2), 32  }
   0xb   : > { %s447_s10 = smov (!%p144_p3, %s348_s10), 1  ;;  %vm161_vm0 = vcmask 261120   ;;  %vm182_vm1 = vcmask 64512   ;;  %vm201_vm2 = vcmask 1043456   ;;  %vm281_vm3 = vcmask 523264  }
   0xc   : > { %s415_s11 = sshll.u32 %s447_s10, 3 }
   0xd   : > { %s151_s14 = scalar_lea.vmem %s444_s1, %s415_s11  ;;  %s147_s17 = scalar_lea.vmem %s443_s0, %s415_s11 }
   0xe   : > { %v158_v0 = vld [vmem:[%s151_s14] sm:$0xff]  ;;  %s155_s23 = scalar_lea.vmem %s445_s2, %s415_s11 }
   0xf   : > { %v160_v1 = vpack.c.bf16 %v158_v0, %v158_v0  ;;  %v157_v2 = vld [vmem:[%s147_s17] sm:$0xff] }
  0x10   : > { %v159_v3 = vpack.c.bf16 %v157_v2, %v157_v2 }
  0x11   : > { %221 = vrot.lane.b32.xlu0 %v160_v1, %s389_s18  ;;  %v166_v4 = vsel %vm161_vm0, %v160_v1, 0 }
  0x12   : > { %175 = vmatpush.bf16.xpose.msra.mxu0 %v166_v4 }
  0x19   : > { %219 = vrot.lane.b32.xlu0 %v159_v3, %s389_s18  ;;  %356 = vmatmul.msk.bf16.vlgmr.msra.gmra.mxu0 %vm161_vm0, %v159_v3 }
  0x83   : > { %v222_v5 = vpop.permute.xlu0 %221 }
  0x84   : > { %v227_v6 = vsel %vm161_vm0, %v222_v5, 0 }
  0x85   : > { %236 = vmatpush.bf16.xpose.msra.mxu2 %v227_v6 }
  0x8b   : > { %v220_v7 = vpop.permute.xlu0 %219 }
  0x8c   : > { %358 = vmatmul.msk.bf16.vlgmr.msra.gmra.mxu2 %vm161_vm0, %v220_v7 }
  0x96   : > { %v177_v8 = vpop.f32.mrf.mxu0 }
  0x97   : > { %v181_v13 = vmul.f32 0.17677669, %v177_v8 }
  0x99   : > { %v183_v15 = vsel %vm182_vm1, %v181_v13, -inf }
  0x9e   : > { %v179_v9 = vpop.f32.mrf.mxu0 }
 0x10f   : > { %v238_v10 = vpop.f32.mrf.mxu2 }
 0x110   : > { %v242_v11 = vmul.f32 0.17677669, %v238_v10 }
 0x112   : > { %v243_v12 = vsel %vm182_vm1, %v242_v11, -inf }
 0x113   : > { %244 = vmax.xlane.f32.xlu1 %v243_v12 }
 0x117   : > { %v240_v14 = vpop.f32.mrf.mxu2 }
 0x11b   : > { %184 = vmax.xlane.f32.xlu1 %v183_v15 }
 0x134   : > { %196 = vrot.lane.b32.xlu1 %v160_v1, %s390_s19 }
 0x186   : > { %v245_v16 = vpop.xlane.xlu1 %244 }
 0x187   : > { %v246_v17 = vsub.f32 %v242_v11, %v245_v16 }
 0x189   : > { %v247_v18 = vmul.f32 1.442695, %v246_v17 }
 0x18b   : > { %373 = vpow2.f32 %v247_v18 }
 0x18e   : > { %v185_v19 = vpop.xlane.xlu1 %184 }
 0x18f   : > { %v186_v20 = vsub.f32 %v181_v13, %v185_v19 }
 0x191   : > { %v374_v21 = vpop.eup %373  ;;  %v187_v22 = vmul.f32 1.442695, %v186_v20 }
 0x192   : > { %v249_v23 = vsel %vm182_vm1, %v374_v21, 0.0 }
 0x193   : > { %375 = vpow2.f32 %v187_v22  ;;  %250 = vadd.xlane.f32.xlu2 %v249_v23 }
 0x199   : > { %v376_v24 = vpop.eup %375 }
 0x19a   : > { %v189_v25 = vsel %vm182_vm1, %v376_v24, 0.0 }
 0x19b   : > { %190 = vadd.xlane.f32.xlu0 %v189_v25 }
 0x1a6   : > { %v197_v26 = vpop.permute.xlu1 %196 }
 0x1a7   : > { %v203_v27 = vsel %vm201_vm2, %v197_v26, 0 }
 0x1a8   : > { %212 = vmatpush.bf16.msra.mxu1 %v203_v27 }
 0x1ab   : > { %255 = vrot.lane.b32.xlu2 %v160_v1, %s391_s20 }
 0x206   : > { %v251_v28 = vpop.xlane.xlu2 %250 }
 0x207   : > { %377 = vrcp.f32 %v251_v28 }
 0x20d   : > { %v378_v29 = vpop.eup %377 }
 0x20e   : > { %v256_v30 = vpop.permute.xlu2 %255  ;;  %v191_v31 = vpop.xlane.xlu0 %190  ;;  %v253_v32 = vmul.f32 %v378_v29, %v374_v21 }
 0x20f   : > { %379 = vrcp.f32 %v191_v31  ;;  %v261_v33 = vsel %vm201_vm2, %v256_v30, 0 }
 0x210   : > { %270 = vmatpush.bf16.msra.mxu3 %v261_v33  ;;  %v254_v34 = vpack.c.bf16 %v253_v32, %v253_v32 }
 0x213   : > { %359 = vmatmul.msk.bf16.vlgmr.msra.gmra.mxu3 %vm182_vm1, %v254_v34 }
 0x215   : > { %v380_v35 = vpop.eup %379 }
 0x216   : > { %v193_v36 = vmul.f32 %v380_v35, %v376_v24 }
 0x218   : > { %v194_v37 = vpack.c.bf16 %v193_v36, %v193_v36 }
 0x21a   : > { %357 = vmatmul.msk.bf16.vlgmr.msra.gmra.mxu1 %vm182_vm1, %v194_v37 }
 0x296   : > { %v272_v38 = vpop.f32.mrf.mxu3 }
 0x297   : > { %277 = vrot.lane.b32.xlu2 %v272_v38, %s391_s20  ;;  %v214_v39 = vpop.f32.mrf.mxu1 }
 0x29e   : > { %v274_v40 = vpop.f32.mrf.mxu3 }
 0x29f   : > { %v216_v41 = vpop.f32.mrf.mxu1 }
 0x2f1   : > { %v278_v42 = vpop.permute.xlu2 %277 }
 0x2f2   : > { %v280_v43 = vsel %vm161_vm0, %v214_v39, %v278_v42 }
 0x2f3   : > { %282 = vst.msk [vmem:[%s155_s23] sm:$0xff] %vm281_vm3, %v280_v43 }
 0x2f4 PF: > { %s12_s9 = sadd.s32 1, %s387_s9  }
 0x2f5   : > { %p9_p4 = scmp.ge.s32.totalorder %s12_s9, 4  }
 0x2f7   :  { %11 = sbr.rel (!%p9_p4) target bundleno = 1 (0x1), region = 61 }

// kernel: cnn_perceiver_forward.25
= control target key start
LH: loop header
LB: loop body
LE: loop exit
PB: predicated region body
PF: predicated region fallthrough
CT: control target
= control target key end

     0   :  { %v631_v9 = vmov 8.0   ;;  %s815_s0 = inlined_call_operand.vmem [shape: f32[2,8,384], index: 0, kind: input, shape index: {}]   ;;  %s816_s1 = inlined_call_operand.vmem [shape: f32[1,384], index: 1, kind: input, shape index: {}]   ;;  %s817_s2 = inlined_call_operand.vmem [shape: f32[1,384], index: 2, kind: input, shape index: {}]   ;;  %s818_s3 = inlined_call_operand.vmem [shape: bf16[384,128], index: 3, kind: input, shape index: {}]   ;;  %s819_s4 = inlined_call_operand.vmem [shape: f32[1,128], index: 4, kind: input, shape index: {}]   ;;  %s820_s5 = inlined_call_operand.hbm [shape: f32[2,128], index: 5, kind: output, shape index: {}]  }
   0x1   :  { %v21_v0 = vld [vmem:[%s815_s0] sm:$0xff]  ;;  %v22_v1 = vld [vmem:[%s815_s0 + $0x8] sm:$0xff]  ;;  %v23_v2 = vld [vmem:[%s815_s0 + $0x10] sm:$0xff]  ;;  %599 = vrcp.f32 %v631_v9 }
   0x2   :  { %v24_v3 = vld [vmem:[%s815_s0 + $0x18] sm:$0xff]  ;;  %v25_v4 = vld [vmem:[%s815_s0 + $0x20] sm:$0xff]  ;;  %v26_v5 = vld [vmem:[%s815_s0 + $0x28] sm:$0xff]  ;;  %v27_v6 = vrot.slane %v21_v0, 4  ;;  %v33_v7 = vrot.slane %v22_v1, 4  ;;  %v39_v8 = vrot.slane %v23_v2, 4 }
   0x3   :  { %v45_v10 = vrot.slane %v24_v3, 4  ;;  %v51_v11 = vrot.slane %v25_v4, 4  ;;  %v57_v12 = vrot.slane %v26_v5, 4 }
   0x4   :  { %v28_v13 = vadd.f32 %v27_v6, %v21_v0  ;;  %v34_v14 = vadd.f32 %v33_v7, %v22_v1  ;;  %v40_v15 = vadd.f32 %v39_v8, %v23_v2 }
   0x5   :  { %10 = vsyncpa [#allocation3], 0  ;;  %v46_v16 = vadd.f32 %v45_v10, %v24_v3  ;;  %v52_v17 = vadd.f32 %v51_v11, %v25_v4  ;;  %v58_v18 = vadd.f32 %v57_v12, %v26_v5  ;;  %vm82_vm1 = vcmask 1041409   ;;  %s466_s7 = sshll.u32 %s820_s5, 4  ;;  %s467_s7 = int_to_ptr.hbm [resolvable:$true] %s466_s7 }
   0x6   :  { %v29_v19 = vrot.slane %v28_v13, 2  ;;  %v35_v20 = vrot.slane %v34_v14, 2  ;;  %v41_v21 = vrot.slane %v40_v15, 2  ;;  %vm89_vm2 = vcmask 1041408  }
   0x7   :  { %v47_v22 = vrot.slane %v46_v16, 2  ;;  %v53_v23 = vrot.slane %v52_v17, 2  ;;  %v59_v24 = vrot.slane %v58_v18, 2  ;;  %v600_v25 = vpop.eup %599  ;;  %v632_v63 = vmov 384.0  }
   0x8   :  { %v30_v26 = vadd.f32 %v29_v19, %v28_v13  ;;  %v36_v27 = vadd.f32 %v35_v20, %v34_v14  ;;  %v42_v28 = vadd.f32 %v41_v21, %v40_v15  ;;  %v64_v32 = vmul.f32 8.0, %v600_v25 }
   0x9   :  { %v48_v29 = vadd.f32 %v47_v22, %v46_v16  ;;  %v54_v30 = vadd.f32 %v53_v23, %v52_v17  ;;  %v60_v31 = vadd.f32 %v59_v24, %v58_v18  ;;  %vm68_vm0 = vweird.f32 %v600_v25 }
   0xa   :  { %v31_v33 = vrot.slane %v30_v26, 1  ;;  %v37_v34 = vrot.slane %v36_v27, 1  ;;  %v43_v35 = vrot.slane %v42_v28, 1  ;;  %v65_v39 = vsub.f32 1.0, %v64_v32  ;;  %v578_v32 = vld [vmem:[%s818_s3 + $0x38] sm:$0xff] }
   0xb   :  { %v49_v36 = vrot.slane %v48_v29, 1  ;;  %v55_v37 = vrot.slane %v54_v30, 1  ;;  %v61_v38 = vrot.slane %v60_v31, 1  ;;  %601 = vrcp.f32 %v632_v63  ;;  %419 = vmatpush.bf16.msra.mxu0 %v578_v32 }
   0xc   :  { %v66_v40 = vmul.f32 %v600_v25, %v65_v39  ;;  %v32_v41 = vadd.f32 %v31_v33, %v30_v26  ;;  %v38_v42 = vadd.f32 %v37_v34, %v36_v27  ;;  %v44_v43 = vadd.f32 %v43_v35, %v42_v28  ;;  %v586_v33 = vld [vmem:[%s818_s3 + $0x78] sm:$0xff]  ;;  %v577_v35 = vld [vmem:[%s818_s3 + $0x30] sm:$0xff]  ;;  %v584_v39 = vld [vmem:[%s818_s3 + $0x68] sm:$0xff] }
   0xd   :  { %v50_v44 = vadd.f32 %v49_v36, %v48_v29  ;;  %v56_v45 = vadd.f32 %v55_v37, %v54_v30  ;;  %v62_v46 = vadd.f32 %v61_v38, %v60_v31  ;;  %v594_v34 = vld [vmem:[%s818_s3 + $0xb8] sm:$0xff]  ;;  %432 = vmatpush.bf16.msra.mxu1 %v586_v33  ;;  %v585_v36 = vld [vmem:[%s818_s3 + $0x70] sm:$0xff]  ;;  %v576_v38 = vld [vmem:[%s818_s3 + $0x28] sm:$0xff] }
   0xe   :  { %v67_v47 = vadd.f32 %v600_v25, %v66_v40  ;;  %445 = vmatpush.bf16.msra.mxu2 %v594_v34  ;;  %v593_v37 = vld [vmem:[%s818_s3 + $0xb0] sm:$0xff]  ;;  %v592_v40 = vld [vmem:[%s818_s3 + $0xa8] sm:$0xff] }
   0xf   :  { %420 = vmatpush.bf16.msra.mxu0 %v577_v35 }
  0x10   :  { %v69_v48 = vsel %vm68_vm0, %v600_v25, %v67_v47  ;;  %v573_v47 = vld [vmem:[%s818_s3 + $0x10] sm:$0xff] }
  0x11   :  { %v70_v49 = vmul.f32 %v69_v48, %v32_v41  ;;  %v71_v50 = vmul.f32 %v69_v48, %v38_v42  ;;  %v72_v51 = vmul.f32 %v69_v48, %v44_v43  ;;  %v73_v52 = vmul.f32 %v69_v48, %v50_v44  ;;  %v602_v0 = vpop.eup %601  ;;  %433 = vmatpush.bf16.msra.mxu1 %v585_v36  ;;  %v575_v41 = vld [vmem:[%s818_s3 + $0x20] sm:$0xff]  ;;  %v574_v44 = vld [vmem:[%s818_s3 + $0x18] sm:$0xff] }
  0x12   :  { %v74_v53 = vmul.f32 %v69_v48, %v56_v45  ;;  %v75_v54 = vmul.f32 %v69_v48, %v62_v46  ;;  %v98_v1 = vmul.f32 384.0, %v602_v0  ;;  %vm102_vm3 = vweird.f32 %v602_v0  ;;  %446 = vmatpush.bf16.msra.mxu2 %v593_v37  ;;  %v583_v42 = vld [vmem:[%s818_s3 + $0x60] sm:$0xff]  ;;  %v582_v45 = vld [vmem:[%s818_s3 + $0x58] sm:$0xff]  ;;  %v581_v48 = vld [vmem:[%s818_s3 + $0x50] sm:$0xff] }
  0x13   :  { %v83_v55 = vsel %vm82_vm1, %v73_v52, %v70_v49  ;;  %421 = vmatpush.bf16.msra.mxu0 %v576_v38  ;;  %v591_v43 = vld [vmem:[%s818_s3 + $0xa0] sm:$0xff]  ;;  %v590_v46 = vld [vmem:[%s818_s3 + $0x98] sm:$0xff] }
  0x14   :  { %v84_v56 = vsel %vm82_vm1, %v74_v53, %v71_v50  ;;  %v85_v57 = vsel %vm82_vm1, %v75_v54, %v72_v51  ;;  %v90_v58 = vsel %vm89_vm2, %v83_v55, 0.0  ;;  %v99_v2 = vsub.f32 1.0, %v98_v1  ;;  %v571_v55 = vld [vmem:[%s818_s3] sm:$0xff] }
  0x15   :  { %v91_v59 = vsel %vm89_vm2, %v84_v56, 0.0  ;;  %v93_v60 = vsel %vm89_vm2, %v85_v57, 0.0  ;;  %434 = vmatpush.bf16.msra.mxu1 %v584_v39  ;;  %v579_v56 = vld [vmem:[%s818_s3 + $0x40] sm:$0xff] }
  0x16   :  { %v92_v61 = vadd.f32 %v91_v59, %v90_v58  ;;  %v100_v3 = vmul.f32 %v602_v0, %v99_v2  ;;  %447 = vmatpush.bf16.msra.mxu2 %v592_v40  ;;  %v587_v58 = vld [vmem:[%s818_s3 + $0x80] sm:$0xff] }
  0x17   :  { %422 = vmatpush.bf16.msra.mxu0 %v575_v41  ;;  %v179_v1 = vld [vmem:[%s817_s2] sm:$0x7] }
  0x18   :  { %v94_v62 = vadd.f32 %v93_v60, %v92_v61  ;;  %v101_v4 = vadd.f32 %v602_v0, %v100_v3 }
  0x19   :  { %435 = vmatpush.bf16.msra.mxu1 %v583_v42 }
  0x1a   :  { %95 = vadd.xlane.f32.xlu0 %v94_v62  ;;  %v688_v5 = vsel %vm102_vm3, %v602_v0, %v101_v4  ;;  %448 = vmatpush.bf16.msra.mxu2 %v591_v43  ;;  %v165_v0 = vld [vmem:[%s816_s1] sm:$0x7] }
  0x1b   :  { %423 = vmatpush.bf16.msra.mxu0 %v574_v44  ;;  %v167_v3 = vperm.slane %v165_v0, 0  ;;  %v168_v4 = vperm.slane %v165_v0, 1 }
  0x1d   :  { %436 = vmatpush.bf16.msra.mxu1 %v582_v45 }
  0x1e   :  { %449 = vmatpush.bf16.msra.mxu2 %v590_v46 }
  0x1f   :  { %424 = vmatpush.bf16.msra.mxu0 %v573_v47 }
  0x21   :  { %437 = vmatpush.bf16.msra.mxu1 %v581_v48 }
  0x8d   :  { %v96_v6 = vpop.xlane.xlu0 %95 }
  0x8e   :  { %v104_v7 = vmul.f32 %v688_v5, %v96_v6  ;;  %v181_v6 = vperm.slane %v179_v1, 0 }
  0x90   :  { %v106_v8 = vrot.slane %v104_v7, 1  ;;  %v691_v9 = vsub.f32 %v70_v49, %v104_v7  ;;  %v693_v10 = vsub.f32 %v71_v50, %v104_v7  ;;  %v695_v11 = vsub.f32 %v72_v51, %v104_v7  ;;  %v589_v49 = vld [vmem:[%s818_s3 + $0x90] sm:$0xff]  ;;  %v572_v50 = vld [vmem:[%s818_s3 + $0x8] sm:$0xff] }
  0x91   :  { %v580_v51 = vld [vmem:[%s818_s3 + $0x48] sm:$0xff]  ;;  %450 = vmatpush.bf16.msra.mxu2 %v589_v49  ;;  %425 = vmatpush.bf16.msra.mxu0 %v572_v50  ;;  %v182_v7 = vperm.slane %v179_v1, 1  ;;  %v598_v50 = vld [vmem:[%s819_s4] ss:$0 sm:$0xff] }
  0x92   :  { %v697_v12 = vsub.f32 %v73_v52, %v106_v8  ;;  %v699_v13 = vsub.f32 %v74_v53, %v106_v8  ;;  %v701_v14 = vsub.f32 %v75_v54, %v106_v8  ;;  %v115_v18 = vmul.f32 %v691_v9, %v691_v9  ;;  %v588_v52 = vld [vmem:[%s818_s3 + $0x88] sm:$0xff]  ;;  %438 = vmatpush.bf16.msra.mxu1 %v580_v51  ;;  %s633_s3 = smov [#allocation2]  }
  0x93   :  { %v116_v19 = vmul.f32 %v693_v10, %v693_v10  ;;  %v117_v20 = vmul.f32 %v695_v11, %v695_v11  ;;  %v169_v8 = vperm.slane %v165_v0, 2  ;;  %s464_s0 = sshll.u32 %s633_s3, 4  ;;  %s465_s0 = int_to_ptr.vmem [resolvable:$true] %s464_s0 }
  0x94   :  { %v118_v15 = vmul.f32 %v697_v12, %v697_v12  ;;  %v119_v16 = vmul.f32 %v699_v13, %v699_v13  ;;  %v120_v17 = vmul.f32 %v701_v14, %v701_v14 }
  0x95   :  { %451 = vmatpush.bf16.msra.mxu2 %v588_v52  ;;  %426 = vmatpush.bf16.msra.mxu0 %v571_v55 }
  0x96   :  { %v127_v21 = vrot.slane %v118_v15, 7  ;;  %v129_v22 = vrot.slane %v119_v16, 7  ;;  %v131_v23 = vrot.slane %v120_v17, 7  ;;  %439 = vmatpush.bf16.msra.mxu1 %v579_v56 }
  0x98   :  { %v128_v24 = vsel %vm82_vm1, %v127_v21, %v115_v18  ;;  %v130_v25 = vsel %vm82_vm1, %v129_v22, %v116_v19  ;;  %v132_v26 = vsel %vm82_vm1, %v131_v23, %v117_v20  ;;  %v183_v19 = vperm.slane %v179_v1, 2 }
  0x99   :  { %v136_v27 = vsel %vm89_vm2, %v128_v24, 0.0  ;;  %v137_v28 = vsel %vm89_vm2, %v130_v25, 0.0  ;;  %v139_v30 = vsel %vm89_vm2, %v132_v26, 0.0  ;;  %452 = vmatpush.bf16.msra.mxu2 %v587_v58 }
  0x9a   :  { %v138_v29 = vadd.f32 %v137_v28, %v136_v27 }
  0x9c   :  { %v140_v31 = vadd.f32 %v139_v30, %v138_v29 }
  0x9e   :  { %141 = vadd.xlane.f32.xlu0 %v140_v31 }
 0x111   :  { %v142_v53 = vpop.xlane.xlu0 %141 }
 0x112   :  { %v143_v54 = vmul.f32 %v142_v53, %v688_v5 }
 0x114   :  { %v144_v57 = vadd.f32 1e-05, %v143_v54 }
 0x116   :  { %603 = vrsqrt.f32 %v144_v57  ;;  %vm151_vm5 = vweird.f32 %v144_v57 }
 0x11c   :  { %v604_v59 = vpop.eup %603 }
 0x11d   :  { %v146_v60 = vmul.f32 %v604_v59, %v144_v57  ;;  %vm152_vm4 = vweird.f32 %v604_v59 }
 0x11e   :  { %vm153_vm6 = vmor %vm151_vm5, %vm152_vm4 }
 0x11f   :  { %v147_v61 = vmul.f32 %v604_v59, %v146_v60 }
 0x121   :  { %v148_v62 = vmul.f32 0.5, %v147_v61 }
 0x123   :  { %v149_v63 = vsub.f32 1.5, %v148_v62 }
 0x125   :  { %v150_v2 = vmul.f32 %v604_v59, %v149_v63 }
 0x127   :  { %v154_v5 = vsel %vm153_vm6, %v604_v59, %v150_v2 }
 0x128   :  { %v156_v15 = vrot.slane %v154_v5, 1  ;;  %v159_v16 = vmul.f32 %v154_v5, %v691_v9  ;;  %v160_v17 = vmul.f32 %v154_v5, %v693_v10  ;;  %v161_v18 = vmul.f32 %v154_v5, %v695_v11 }
 0x12a   :  { %v162_v20 = vmul.f32 %v156_v15, %v697_v12  ;;  %v173_v21 = vmul.f32 %v167_v3, %v159_v16  ;;  %v163_v22 = vmul.f32 %v156_v15, %v699_v13  ;;  %v174_v23 = vmul.f32 %v168_v4, %v160_v17 }
 0x12b   :  { %v164_v24 = vmul.f32 %v156_v15, %v701_v14  ;;  %v175_v25 = vmul.f32 %v169_v8, %v161_v18 }
 0x12c   :  { %v176_v26 = vmul.f32 %v167_v3, %v162_v20  ;;  %v187_v27 = vadd.f32 %v181_v6, %v173_v21  ;;  %v177_v28 = vmul.f32 %v168_v4, %v163_v22  ;;  %v188_v29 = vadd.f32 %v182_v7, %v174_v23 }
 0x12d   :  { %v178_v30 = vmul.f32 %v169_v8, %v164_v24  ;;  %v189_v9 = vadd.f32 %v183_v19, %v175_v25 }
 0x12e   :  { %v190_v31 = vadd.f32 %v181_v6, %v176_v26  ;;  %v191_v10 = vadd.f32 %v182_v7, %v177_v28  ;;  %v193_v11 = vpack.c.bf16 %v187_v27, %v187_v27  ;;  %v194_v34 = vpack.c.bf16 %v188_v29, %v188_v29 }
 0x12f   :  { %v192_v32 = vadd.f32 %v183_v19, %v178_v30  ;;  %v195_v35 = vpack.c.bf16 %v189_v9, %v189_v9 }
 0x130   :  { %v196_v33 = vpack.c.bf16 %v190_v31, %v190_v31  ;;  %v197_v12 = vpack.c.bf16 %v191_v10, %v191_v10  ;;  %v257_v14 = vunpack.c.l.b16 %v193_v11  ;;  %v258_v40 = vunpack.c.l.b16 %v194_v34 }
 0x131   :  { %v198_v36 = vpack.c.bf16 %v192_v32, %v192_v32  ;;  %v259_v42 = vunpack.c.l.b16 %v195_v35 }
 0x132   :  { %v260_v13 = vunpack.c.l.b16 %v196_v33  ;;  %v261_v37 = vunpack.c.l.b16 %v197_v12 }
 0x133   :  { %v262_v38 = vunpack.c.l.b16 %v198_v36 }
 0x134   :  { %v263_v39 = vrot.slane %v260_v13, 7  ;;  %v265_v41 = vrot.slane %v261_v37, 7 }
 0x135   :  { %v267_v43 = vrot.slane %v262_v38, 7 }
 0x136   :  { %v264_v44 = vsel %vm82_vm1, %v263_v39, %v257_v14  ;;  %v266_v45 = vsel %vm82_vm1, %v265_v41, %v258_v40 }
 0x137   :  { %v269_v46 = vpack.c.b16 %v264_v44, %v264_v44  ;;  %v270_v47 = vpack.c.b16 %v266_v45, %v266_v45  ;;  %v268_v48 = vsel %vm82_vm1, %v267_v43, %v259_v42 }
 0x138   :  { %v271_v49 = vpack.c.b16 %v268_v48, %v268_v48 }
 0x139   :  { %427 = vmatmul.bf16.vlgmr.msra.gmra.mxu0 %v269_v46  ;;  %440 = vmatmul.bf16.vlgmr.msra.gmra.mxu1 %v270_v47 }
 0x13a   :  { %453 = vmatmul.bf16.vlgmr.msra.gmra.mxu2 %v271_v49 }
 0x1b6   :  { %v428_v51 = vpop.f32.mrf.mxu0  ;;  %v441_v52 = vpop.f32.mrf.mxu1 }
 0x1b7   :  { %v429_v53 = vadd.f32 %v598_v50, %v428_v51 }
 0x1b9   :  { %v442_v54 = vadd.f32 %v441_v52, %v429_v53 }
 0x1bd   :  { %v454_v55 = vpop.f32.mrf.mxu2 }
 0x1be   :  { %v455_v56 = vadd.f32 %v454_v55, %v442_v54  ;;  %v430_v57 = vpop.f32.mrf.mxu0  ;;  %v443_v58 = vpop.f32.mrf.mxu1 }
 0x1c0   :  { %458 = vst [vmem:[#allocation2] sm:$0x3] %v455_v56 }
 0x1c1   :  { %469 = dma.vmem_to_hbm [thread:$0]  %s465_s0, 32, %s467_s7, [#allocation3]  }
 0x1c5   :  { %v456_v59 = vpop.f32.mrf.mxu2 }
 0x1c6   :  { %629 = dma.done.wait [#allocation3], 32  }
 0x1c7   :  { %630 = vsyncadd [#allocation3], 4294967264 }
 0x1c8   :  { %474 = vsyncpa [#allocation3], 1 }

// kernel: cnn_perceiver_forward.22
= control target key start
LH: loop header
LB: loop body
LE: loop exit
PB: predicated region body
PF: predicated region fallthrough
CT: control target
= control target key end

     0   :  { %vm117_vm0 = vcmask 523264   ;;  %s425_s1 = inlined_call_operand.vmem [shape: bf16[64,384], index: 1, kind: input, shape index: {}]   ;;  %s426_s0 = inlined_call_operand.vmem [shape: f32[16,64], index: 0, kind: input, shape index: {}]   ;;  %s427_s2 = inlined_call_operand.vmem [shape: f32[1,384], index: 2, kind: input, shape index: {}]   ;;  %s428_s3 = inlined_call_operand.vmem [shape: f32[16,384], index: 3, kind: input, shape index: {}]   ;;  %s429_s4 = inlined_call_operand.vmem [shape: f32[16,384], index: 4, kind: output, shape index: {}]  }
   0x1   :  { %v258_v0 = vld [vmem:[%s425_s1 + $0x48] sm:$0xf]  ;;  %v281_v1 = vld [vmem:[%s425_s1 + $0x50] sm:$0xf0]  ;;  %v280_v2 = vld [vmem:[%s425_s1 + $0x4c] sm:$0xf] }
   0x2   :  { %v259_v3 = vor.u32 %v281_v1, %v258_v0  ;;  %v260_v4 = vld [vmem:[%s425_s1 + $0x54] sm:$0xf0]  ;;  %v266_v5 = vld [vmem:[%s425_s1 + $0x50] sm:$0xf]  ;;  %v282_v6 = vld [vmem:[%s425_s1 + $0x58] sm:$0xf0] }
   0x3   :  { %v263_v7 = vor.u32 %v280_v2, %v260_v4  ;;  %v267_v8 = vor.u32 %v282_v6, %v266_v5  ;;  %v246_v9 = vld [vmem:[%s425_s1 + $0x30] sm:$0xf]  ;;  %v278_v10 = vld [vmem:[%s425_s1 + $0x38] sm:$0xf0]  ;;  %v277_v11 = vld [vmem:[%s425_s1 + $0x34] sm:$0xf] }
   0x4   :  { %125 = vmatpush.bf16.msra.mxu0 %v259_v3  ;;  %v247_v12 = vor.u32 %v278_v10, %v246_v9  ;;  %v248_v13 = vld [vmem:[%s425_s1 + $0x3c] sm:$0xf0]  ;;  %v254_v14 = vld [vmem:[%s425_s1 + $0x38] sm:$0xf]  ;;  %v279_v15 = vld [vmem:[%s425_s1 + $0x40] sm:$0xf0] }
   0x5   :  { %139 = vmatpush.bf16.msra.mxu1 %v263_v7  ;;  %153 = vmatpush.bf16.msra.mxu2 %v267_v8  ;;  %v251_v16 = vor.u32 %v277_v11, %v248_v13  ;;  %v255_v17 = vor.u32 %v279_v15, %v254_v14  ;;  %v234_v18 = vld [vmem:[%s425_s1 + $0x18] sm:$0xf]  ;;  %v275_v19 = vld [vmem:[%s425_s1 + $0x20] sm:$0xf0]  ;;  %v274_v20 = vld [vmem:[%s425_s1 + $0x1c] sm:$0xf] }
   0x6   :  { %v236_v21 = vld [vmem:[%s425_s1 + $0x24] sm:$0xf0]  ;;  %v242_v22 = vld [vmem:[%s425_s1 + $0x20] sm:$0xf]  ;;  %v276_v23 = vld [vmem:[%s425_s1 + $0x28] sm:$0xf0]  ;;  %v235_v24 = vor.u32 %v275_v19, %v234_v18 }
   0x7   :  { %v239_v25 = vor.u32 %v274_v20, %v236_v21  ;;  %v243_v26 = vor.u32 %v276_v23, %v242_v22  ;;  %v222_v27 = vld [vmem:[%s425_s1] sm:$0xf]  ;;  %v272_v28 = vld [vmem:[%s425_s1 + $0x8] sm:$0xf0]  ;;  %v271_v29 = vld [vmem:[%s425_s1 + $0x4] sm:$0xf] }
   0x8   :  { %126 = vmatpush.bf16.msra.mxu0 %v247_v12  ;;  %v224_v30 = vld [vmem:[%s425_s1 + $0xc] sm:$0xf0]  ;;  %v230_v31 = vld [vmem:[%s425_s1 + $0x8] sm:$0xf]  ;;  %v273_v32 = vld [vmem:[%s425_s1 + $0x10] sm:$0xf0]  ;;  %v223_v33 = vor.u32 %v272_v28, %v222_v27 }
   0x9   :  { %140 = vmatpush.bf16.msra.mxu1 %v251_v16  ;;  %154 = vmatpush.bf16.msra.mxu2 %v255_v17  ;;  %v34_v34 = vld [vmem:[%s426_s0] sm:$0xff]  ;;  %v35_v35 = vld [vmem:[%s426_s0 + $0x8] sm:$0xff]  ;;  %v227_v36 = vor.u32 %v271_v29, %v224_v30  ;;  %v231_v37 = vor.u32 %v273_v32, %v230_v31  ;;  %v200_v52 = vld [vmem:[%s428_s3 + $0x10] sm:$0xff] }
   0xa   :  { %v36_v38 = vpack.c.bf16 %v35_v35, %v34_v34  ;;  %v184_v39 = vld [vmem:[%s427_s2] sm:$0x7]  ;;  %v199_v46 = vld [vmem:[%s428_s3 + $0x8] sm:$0xff]  ;;  %v201_v55 = vld [vmem:[%s428_s3 + $0x18] sm:$0xff] }
   0xb   :  { %v186_v40 = vperm.slane %v184_v39, 0  ;;  %v187_v41 = vperm.slane %v184_v39, 1  ;;  %v198_v43 = vld [vmem:[%s428_s3] sm:$0xff]  ;;  %v188_v50 = vperm.slane %v184_v39, 2  ;;  %v203_v0 = vld [vmem:[%s428_s3 + $0x28] sm:$0xff] }
   0xc   :  { %127 = vmatpush.bf16.msra.mxu0 %v235_v24  ;;  %v202_v58 = vld [vmem:[%s428_s3 + $0x20] sm:$0xff] }
   0xd   :  { %141 = vmatpush.bf16.msra.mxu1 %v239_v25  ;;  %155 = vmatpush.bf16.msra.mxu2 %v243_v26 }
  0x10   :  { %128 = vmatpush.bf16.msra.mxu0 %v223_v33 }
  0x11   :  { %142 = vmatpush.bf16.msra.mxu1 %v227_v36  ;;  %156 = vmatpush.bf16.msra.mxu2 %v231_v37 }
  0x13   :  { %268 = vmatmul.msk.bf16.vlgmr.msra.gmra.mxu0 %vm117_vm0, %v36_v38 }
  0x14   :  { %269 = vmatmul.msk.bf16.vlgmr.msra.gmra.mxu1 %vm117_vm0, %v36_v38  ;;  %270 = vmatmul.msk.bf16.vlgmr.msra.gmra.mxu2 %vm117_vm0, %v36_v38 }
  0x90   :  { %v130_v42 = vpop.f32.mrf.mxu0 }
  0x91   :  { %v192_v44 = vadd.f32 %v186_v40, %v130_v42  ;;  %v144_v45 = vpop.f32.mrf.mxu1 }
  0x92   :  { %v193_v47 = vadd.f32 %v187_v41, %v144_v45 }
  0x93   :  { %v204_v48 = vadd.f32 %v198_v43, %v192_v44 }
  0x94   :  { %v205_v49 = vadd.f32 %v199_v46, %v193_v47 }
  0x95   :  { %210 = vst [vmem:[%s429_s4] sm:$0xff] %v204_v48 }
  0x96   :  { %211 = vst [vmem:[%s429_s4 + $0x8] sm:$0xff] %v205_v49 }
  0x97   :  { %v158_v51 = vpop.f32.mrf.mxu2 }
  0x98   :  { %v194_v53 = vadd.f32 %v188_v50, %v158_v51  ;;  %v132_v54 = vpop.f32.mrf.mxu0 }
  0x99   :  { %v195_v56 = vadd.f32 %v186_v40, %v132_v54  ;;  %v146_v57 = vpop.f32.mrf.mxu1 }
  0x9a   :  { %v206_v59 = vadd.f32 %v200_v52, %v194_v53  ;;  %v196_v60 = vadd.f32 %v187_v41, %v146_v57 }
  0x9b   :  { %v207_v61 = vadd.f32 %v201_v55, %v195_v56 }
  0x9c   :  { %212 = vst [vmem:[%s429_s4 + $0x10] sm:$0xff] %v206_v59  ;;  %v208_v62 = vadd.f32 %v202_v58, %v196_v60 }
  0x9d   :  { %213 = vst [vmem:[%s429_s4 + $0x18] sm:$0xff] %v207_v61 }
  0x9e   :  { %214 = vst [vmem:[%s429_s4 + $0x20] sm:$0xff] %v208_v62 }
  0x9f   :  { %v160_v63 = vpop.f32.mrf.mxu2 }
  0xa0   :  { %v197_v1 = vadd.f32 %v188_v50, %v160_v63 }
  0xa2   :  { %v209_v2 = vadd.f32 %v203_v0, %v197_v1 }
  0xa4   :  { %215 = vst [vmem:[%s429_s4 + $0x28] sm:$0xff] %v209_v2 }

// kernel: cnn_perceiver_forward.23
= control target key start
LH: loop header
LB: loop body
LE: loop exit
PB: predicated region body
PF: predicated region fallthrough
CT: control target
= control target key end

     0   :  { %s2109_s18 = smov 0   ;;  %s2111_s19 = smov 0   ;;  %s2699_s0 = inlined_call_operand.vmem [shape: f32[16,384], index: 0, kind: input, shape index: {}]   ;;  %s2700_s1 = inlined_call_operand.vmem [shape: f32[1,384], index: 1, kind: input, shape index: {}]   ;;  %s2701_s2 = inlined_call_operand.vmem [shape: f32[1,384], index: 2, kind: input, shape index: {}]   ;;  %s2702_s3 = inlined_call_operand.vmem [shape: bf16[384,1536], index: 3, kind: input, shape index: {}]   ;;  %s2703_s4 = inlined_call_operand.vmem [shape: f32[1,1536], index: 4, kind: input, shape index: {}]   ;;  %s2704_s5 = inlined_call_operand.vmem [shape: f32[16,1536], index: 5, kind: output, shape index: {}]  }
   0x1   :  { %s2113_s20 = smov 0   ;;  %s2115_s21 = smov 0  }
   0x2   :  { %s2117_s22 = smov 0  }
   0x3 LB: > { %s24_s23 = sadd.s32 1, %s2072_s21  ;;  %s1492_s24 = sadd.s32 4294967295, %s2076_s22   ;;  %s2076_s22 = sphi %s2117_s22, %s15_s22   ;;  %s2072_s21 = sphi %s2115_s21, %s2709_s21   ;;  %s2068_s20 = sphi %s2113_s20, %s2708_s20   ;;  %s2064_s19 = sphi %s2111_s19, %s2707_s19   ;;  %s2060_s18 = sphi %s2109_s18, %s2706_s18  }
   0x4   : > { %p25_p0 = scmp.ge.s32.totalorder %s24_s23, 3  ;;  %p109_p1 = scmp.ne.s32.totalorder %s2064_s19, %s2060_s18 }
   0x5   : > { %p110_p2 = scmp.eq.s32.totalorder %s2076_s22, 0  ;;  %p167_p4 = scmp.eq.s32.totalorder %s1492_s24, 2 }
   0x6   : > { %s2711_s23 = smov (%p25_p0, %s24_s23), 0  ;;  %s102_s26 = sadd.s32 1, %s2064_s19 }
   0x7   : > { %p111_p3 = por %p110_p2, %p109_p1  ;;  %s99_s25 = ssub.s32 %s2072_s21, %s2711_s23 }
   0x8   : > { %p100_p5 = scmp.eq.s32.totalorder %s99_s25, 0  ;;  %p2144_p6 = por %p167_p4, %p109_p1 }
   0x9   : > { %p1496_p7 = scmp.ge.s32.totalorder %s2076_s22, 3 }
   0xa   : > { %s2149_s28 = scalar_select %p100_p5, %s2064_s19, %s102_s26  }
   0xb   : > { %205 = sbr.rel (%p1496_p7) target bundleno = 116 (0x74), region = 28 }
  0x10   : > { %208 = sbr.rel (!%p111_p3) target bundleno = 116 (0x74), region = 32  ;;  %s210_s29 = sand.u32 (%p111_p3), 1, %s2064_s19  }
  0x11   : > { %s1891_s30 = sshll.u32 (%p111_p3), %s2072_s21, 4  ;;  %s1989_s6 = smul.u32 (%p111_p3), 768, %s210_s29 }
  0x12   : > { %s2157_s9 = scalar_lea.vmem (%p111_p3), %s2702_s3, %s1891_s30 }
  0x13   : > { %v228_v0 = vld [vmem:[%s2157_s9] sm:$0xff] (%p111_p3)  ;;  %v230_v1 = vld [vmem:[%s2157_s9 + $0x8] sm:$0xff] (%p111_p3)  ;;  %v232_v2 = vld [vmem:[%s2157_s9 + $0x30] sm:$0xff] (%p111_p3)  ;;  %s2162_s10 = scalar_lea.vmem (%p111_p3), [#allocation2], %s1989_s6 }
  0x14   : > { %229 = vst [vmem:[%s2162_s10] sm:$0xff] (%p111_p3), %v228_v0  ;;  %v234_v3 = vld [vmem:[%s2157_s9 + $0x38] sm:$0xff] (%p111_p3)  ;;  %v236_v4 = vld [vmem:[%s2157_s9 + $0x60] sm:$0xff] (%p111_p3)  ;;  %v238_v5 = vld [vmem:[%s2157_s9 + $0x68] sm:$0xff] (%p111_p3) }
  0x15   : > { %231 = vst [vmem:[%s2162_s10 + $0x8] sm:$0xff] %v230_v1  ;;  %v240_v6 = vld [vmem:[%s2157_s9 + $0x90] sm:$0xff]  ;;  %v242_v7 = vld [vmem:[%s2157_s9 + $0x98] sm:$0xff]  ;;  %v244_v8 = vld [vmem:[%s2157_s9 + $0xc0] sm:$0xff] }
  0x16   : > { %233 = vst [vmem:[%s2162_s10 + $0x10] sm:$0xff] %v232_v2  ;;  %v246_v9 = vld [vmem:[%s2157_s9 + $0xc8] sm:$0xff]  ;;  %v248_v10 = vld [vmem:[%s2157_s9 + $0xf0] sm:$0xff]  ;;  %v250_v11 = vld [vmem:[%s2157_s9 + $0xf8] sm:$0xff] }
  0x17   : > { %235 = vst [vmem:[%s2162_s10 + $0x18] sm:$0xff] %v234_v3  ;;  %v252_v12 = vld [vmem:[%s2157_s9 + $0x120] sm:$0xff]  ;;  %v254_v13 = vld [vmem:[%s2157_s9 + $0x128] sm:$0xff]  ;;  %v256_v14 = vld [vmem:[%s2157_s9 + $0x150] sm:$0xff] }
  0x18   : > { %237 = vst [vmem:[%s2162_s10 + $0x20] sm:$0xff] %v236_v4  ;;  %v258_v15 = vld [vmem:[%s2157_s9 + $0x158] sm:$0xff]  ;;  %v260_v16 = vld [vmem:[%s2157_s9 + $0x180] sm:$0xff]  ;;  %v262_v17 = vld [vmem:[%s2157_s9 + $0x188] sm:$0xff] }
  0x19   : > { %239 = vst [vmem:[%s2162_s10 + $0x28] sm:$0xff] %v238_v5  ;;  %v264_v18 = vld [vmem:[%s2157_s9 + $0x1b0] sm:$0xff]  ;;  %v266_v19 = vld [vmem:[%s2157_s9 + $0x1b8] sm:$0xff]  ;;  %v268_v20 = vld [vmem:[%s2157_s9 + $0x1e0] sm:$0xff] }
  0x1a   : > { %241 = vst [vmem:[%s2162_s10 + $0x30] sm:$0xff] %v240_v6  ;;  %v270_v21 = vld [vmem:[%s2157_s9 + $0x1e8] sm:$0xff]  ;;  %v272_v22 = vld [vmem:[%s2157_s9 + $0x210] sm:$0xff]  ;;  %v274_v23 = vld [vmem:[%s2157_s9 + $0x218] sm:$0xff] }
  0x1b   : > { %243 = vst [vmem:[%s2162_s10 + $0x38] sm:$0xff] %v242_v7  ;;  %v276_v24 = vld [vmem:[%s2157_s9 + $0x240] sm:$0xff]  ;;  %v278_v25 = vld [vmem:[%s2157_s9 + $0x248] sm:$0xff]  ;;  %v280_v26 = vld [vmem:[%s2157_s9 + $0x270] sm:$0xff] }
  0x1c   : > { %245 = vst [vmem:[%s2162_s10 + $0x40] sm:$0xff] %v244_v8  ;;  %v282_v27 = vld [vmem:[%s2157_s9 + $0x278] sm:$0xff]  ;;  %v284_v28 = vld [vmem:[%s2157_s9 + $0x2a0] sm:$0xff]  ;;  %v286_v29 = vld [vmem:[%s2157_s9 + $0x2a8] sm:$0xff] }
  0x1d   : > { %247 = vst [vmem:[%s2162_s10 + $0x48] sm:$0xff] %v246_v9  ;;  %v288_v30 = vld [vmem:[%s2157_s9 + $0x2d0] sm:$0xff]  ;;  %v290_v31 = vld [vmem:[%s2157_s9 + $0x2d8] sm:$0xff]  ;;  %v292_v32 = vld [vmem:[%s2157_s9 + $0x300] sm:$0xff] }
  0x1e   : > { %249 = vst [vmem:[%s2162_s10 + $0x50] sm:$0xff] %v248_v10  ;;  %v294_v33 = vld [vmem:[%s2157_s9 + $0x308] sm:$0xff]  ;;  %v296_v34 = vld [vmem:[%s2157_s9 + $0x330] sm:$0xff]  ;;  %v298_v35 = vld [vmem:[%s2157_s9 + $0x338] sm:$0xff] }
  0x1f   : > { %251 = vst [vmem:[%s2162_s10 + $0x58] sm:$0xff] %v250_v11  ;;  %v300_v36 = vld [vmem:[%s2157_s9 + $0x360] sm:$0xff]  ;;  %v302_v37 = vld [vmem:[%s2157_s9 + $0x368] sm:$0xff]  ;;  %v304_v38 = vld [vmem:[%s2157_s9 + $0x390] sm:$0xff] }
  0x20   : > { %253 = vst [vmem:[%s2162_s10 + $0x60] sm:$0xff] %v252_v12  ;;  %v306_v39 = vld [vmem:[%s2157_s9 + $0x398] sm:$0xff]  ;;  %v308_v40 = vld [vmem:[%s2157_s9 + $0x3c0] sm:$0xff]  ;;  %v310_v41 = vld [vmem:[%s2157_s9 + $0x3c8] sm:$0xff] }
  0x21   : > { %255 = vst [vmem:[%s2162_s10 + $0x68] sm:$0xff] %v254_v13  ;;  %v312_v42 = vld [vmem:[%s2157_s9 + $0x3f0] sm:$0xff]  ;;  %v314_v43 = vld [vmem:[%s2157_s9 + $0x3f8] sm:$0xff]  ;;  %v316_v44 = vld [vmem:[%s2157_s9 + $0x420] sm:$0xff] }
  0x22   : > { %257 = vst [vmem:[%s2162_s10 + $0x70] sm:$0xff] %v256_v14  ;;  %v318_v45 = vld [vmem:[%s2157_s9 + $0x428] sm:$0xff]  ;;  %v320_v46 = vld [vmem:[%s2157_s9 + $0x450] sm:$0xff]  ;;  %v322_v47 = vld [vmem:[%s2157_s9 + $0x458] sm:$0xff] }
  0x23   : > { %259 = vst [vmem:[%s2162_s10 + $0x78] sm:$0xff] %v258_v15  ;;  %v324_v48 = vld [vmem:[%s2157_s9 + $0x480] sm:$0xff]  ;;  %v326_v49 = vld [vmem:[%s2157_s9 + $0x488] sm:$0xff]  ;;  %v328_v50 = vld [vmem:[%s2157_s9 + $0x4b0] sm:$0xff] }
  0x24   : > { %261 = vst [vmem:[%s2162_s10 + $0x80] sm:$0xff] %v260_v16  ;;  %v330_v51 = vld [vmem:[%s2157_s9 + $0x4b8] sm:$0xff]  ;;  %v332_v52 = vld [vmem:[%s2157_s9 + $0x4e0] sm:$0xff]  ;;  %v334_v53 = vld [vmem:[%s2157_s9 + $0x4e8] sm:$0xff] }
  0x25   : > { %263 = vst [vmem:[%s2162_s10 + $0x88] sm:$0xff] %v262_v17  ;;  %v336_v54 = vld [vmem:[%s2157_s9 + $0x510] sm:$0xff]  ;;  %v338_v55 = vld [vmem:[%s2157_s9 + $0x518] sm:$0xff]  ;;  %v340_v56 = vld [vmem:[%s2157_s9 + $0x540] sm:$0xff] }
  0x26   : > { %265 = vst [vmem:[%s2162_s10 + $0x90] sm:$0xff] %v264_v18  ;;  %v342_v57 = vld [vmem:[%s2157_s9 + $0x548] sm:$0xff]  ;;  %v344_v58 = vld [vmem:[%s2157_s9 + $0x570] sm:$0xff]  ;;  %v346_v59 = vld [vmem:[%s2157_s9 + $0x578] sm:$0xff] }
  0x27   : > { %267 = vst [vmem:[%s2162_s10 + $0x98] sm:$0xff] %v266_v19  ;;  %v348_v60 = vld [vmem:[%s2157_s9 + $0x5a0] sm:$0xff]  ;;  %v350_v61 = vld [vmem:[%s2157_s9 + $0x5a8] sm:$0xff]  ;;  %v352_v62 = vld [vmem:[%s2157_s9 + $0x5d0] sm:$0xff] }
  0x28   : > { %269 = vst [vmem:[%s2162_s10 + $0xa0] sm:$0xff] %v268_v20  ;;  %v354_v63 = vld [vmem:[%s2157_s9 + $0x5d8] sm:$0xff]  ;;  %v356_v0 = vld [vmem:[%s2157_s9 + $0x600] sm:$0xff]  ;;  %v358_v1 = vld [vmem:[%s2157_s9 + $0x608] sm:$0xff] }
  0x29   : > { %271 = vst [vmem:[%s2162_s10 + $0xa8] sm:$0xff] %v270_v21  ;;  %v360_v2 = vld [vmem:[%s2157_s9 + $0x630] sm:$0xff]  ;;  %v362_v3 = vld [vmem:[%s2157_s9 + $0x638] sm:$0xff]  ;;  %v364_v4 = vld [vmem:[%s2157_s9 + $0x660] sm:$0xff] }
  0x2a   : > { %273 = vst [vmem:[%s2162_s10 + $0xb0] sm:$0xff] %v272_v22  ;;  %v366_v5 = vld [vmem:[%s2157_s9 + $0x668] sm:$0xff]  ;;  %v368_v6 = vld [vmem:[%s2157_s9 + $0x690] sm:$0xff]  ;;  %v370_v7 = vld [vmem:[%s2157_s9 + $0x698] sm:$0xff] }
  0x2b   : > { %275 = vst [vmem:[%s2162_s10 + $0xb8] sm:$0xff] %v274_v23  ;;  %v372_v8 = vld [vmem:[%s2157_s9 + $0x6c0] sm:$0xff]  ;;  %v374_v9 = vld [vmem:[%s2157_s9 + $0x6c8] sm:$0xff]  ;;  %v376_v10 = vld [vmem:[%s2157_s9 + $0x6f0] sm:$0xff] }
  0x2c   : > { %277 = vst [vmem:[%s2162_s10 + $0xc0] sm:$0xff] %v276_v24  ;;  %v378_v11 = vld [vmem:[%s2157_s9 + $0x6f8] sm:$0xff]  ;;  %v380_v12 = vld [vmem:[%s2157_s9 + $0x720] sm:$0xff]  ;;  %v382_v13 = vld [vmem:[%s2157_s9 + $0x728] sm:$0xff] }
  0x2d   : > { %279 = vst [vmem:[%s2162_s10 + $0xc8] sm:$0xff] %v278_v25  ;;  %v384_v14 = vld [vmem:[%s2157_s9 + $0x750] sm:$0xff]  ;;  %v386_v15 = vld [vmem:[%s2157_s9 + $0x758] sm:$0xff]  ;;  %v388_v16 = vld [vmem:[%s2157_s9 + $0x780] sm:$0xff] }
  0x2e   : > { %281 = vst [vmem:[%s2162_s10 + $0xd0] sm:$0xff] %v280_v26  ;;  %v390_v17 = vld [vmem:[%s2157_s9 + $0x788] sm:$0xff]  ;;  %v392_v18 = vld [vmem:[%s2157_s9 + $0x7b0] sm:$0xff]  ;;  %v394_v19 = vld [vmem:[%s2157_s9 + $0x7b8] sm:$0xff] }
  0x2f   : > { %283 = vst [vmem:[%s2162_s10 + $0xd8] sm:$0xff] %v282_v27  ;;  %v396_v20 = vld [vmem:[%s2157_s9 + $0x7e0] sm:$0xff]  ;;  %v398_v21 = vld [vmem:[%s2157_s9 + $0x7e8] sm:$0xff]  ;;  %v400_v22 = vld [vmem:[%s2157_s9 + $0x810] sm:$0xff] }
  0x30   : > { %285 = vst [vmem:[%s2162_s10 + $0xe0] sm:$0xff] %v284_v28  ;;  %v402_v23 = vld [vmem:[%s2157_s9 + $0x818] sm:$0xff]  ;;  %v404_v24 = vld [vmem:[%s2157_s9 + $0x840] sm:$0xff]  ;;  %v406_v25 = vld [vmem:[%s2157_s9 + $0x848] sm:$0xff] }
  0x31   : > { %287 = vst [vmem:[%s2162_s10 + $0xe8] sm:$0xff] %v286_v29  ;;  %v408_v26 = vld [vmem:[%s2157_s9 + $0x870] sm:$0xff]  ;;  %v410_v27 = vld [vmem:[%s2157_s9 + $0x878] sm:$0xff]  ;;  %v412_v28 = vld [vmem:[%s2157_s9 + $0x8a0] sm:$0xff] }
  0x32   : > { %289 = vst [vmem:[%s2162_s10 + $0xf0] sm:$0xff] %v288_v30  ;;  %v414_v29 = vld [vmem:[%s2157_s9 + $0x8a8] sm:$0xff]  ;;  %v416_v30 = vld [vmem:[%s2157_s9 + $0x8d0] sm:$0xff] }
  0x33   : > { %291 = vst [vmem:[%s2162_s10 + $0xf8] sm:$0xff] %v290_v31  ;;  %v418_v31 = vld [vmem:[%s2157_s9 + $0x8d8] sm:$0xff] }
  0x34   : > { %293 = vst [vmem:[%s2162_s10 + $0x100] sm:$0xff] %v292_v32 }
  0x35   : > { %295 = vst [vmem:[%s2162_s10 + $0x108] sm:$0xff] %v294_v33 }
  0x36   : > { %297 = vst [vmem:[%s2162_s10 + $0x110] sm:$0xff] %v296_v34 }
  0x37   : > { %299 = vst [vmem:[%s2162_s10 + $0x118] sm:$0xff] %v298_v35 }
  0x38   : > { %301 = vst [vmem:[%s2162_s10 + $0x120] sm:$0xff] %v300_v36 }
  0x39   : > { %303 = vst [vmem:[%s2162_s10 + $0x128] sm:$0xff] %v302_v37 }
  0x3a   : > { %305 = vst [vmem:[%s2162_s10 + $0x130] sm:$0xff] %v304_v38 }
  0x3b   : > { %307 = vst [vmem:[%s2162_s10 + $0x138] sm:$0xff] %v306_v39 }
  0x3c   : > { %309 = vst [vmem:[%s2162_s10 + $0x140] sm:$0xff] %v308_v40 }
  0x3d   : > { %311 = vst [vmem:[%s2162_s10 + $0x148] sm:$0xff] %v310_v41 }
  0x3e   : > { %313 = vst [vmem:[%s2162_s10 + $0x150] sm:$0xff] %v312_v42 }
  0x3f   : > { %315 = vst [vmem:[%s2162_s10 + $0x158] sm:$0xff] %v314_v43 }
  0x40   : > { %317 = vst [vmem:[%s2162_s10 + $0x160] sm:$0xff] %v316_v44 }
  0x41   : > { %319 = vst [vmem:[%s2162_s10 + $0x168] sm:$0xff] %v318_v45 }
  0x42   : > { %321 = vst [vmem:[%s2162_s10 + $0x170] sm:$0xff] %v320_v46 }
  0x43   : > { %323 = vst [vmem:[%s2162_s10 + $0x178] sm:$0xff] %v322_v47 }
  0x44   : > { %325 = vst [vmem:[%s2162_s10 + $0x180] sm:$0xff] %v324_v48 }
  0x45   : > { %327 = vst [vmem:[%s2162_s10 + $0x188] sm:$0xff] %v326_v49 }
  0x46   : > { %329 = vst [vmem:[%s2162_s10 + $0x190] sm:$0xff] %v328_v50 }
  0x47   : > { %331 = vst [vmem:[%s2162_s10 + $0x198] sm:$0xff] %v330_v51 }
  0x48   : > { %333 = vst [vmem:[%s2162_s10 + $0x1a0] sm:$0xff] %v332_v52 }
  0x49   : > { %335 = vst [vmem:[%s2162_s10 + $0x1a8] sm:$0xff] %v334_v53 }
  0x4a   : > { %337 = vst [vmem:[%s2162_s10 + $0x1b0] sm:$0xff] %v336_v54 }
  0x4b   : > { %339 = vst [vmem:[%s2162_s10 + $0x1b8] sm:$0xff] %v338_v55 }
  0x4c   : > { %341 = vst [vmem:[%s2162_s10 + $0x1c0] sm:$0xff] %v340_v56 }
  0x4d   : > { %343 = vst [vmem:[%s2162_s10 + $0x1c8] sm:$0xff] %v342_v57 }
  0x4e   : > { %345 = vst [vmem:[%s2162_s10 + $0x1d0] sm:$0xff] %v344_v58 }
  0x4f   : > { %347 = vst [vmem:[%s2162_s10 + $0x1d8] sm:$0xff] %v346_v59 }
  0x50   : > { %349 = vst [vmem:[%s2162_s10 + $0x1e0] sm:$0xff] %v348_v60 }
  0x51   : > { %351 = vst [vmem:[%s2162_s10 + $0x1e8] sm:$0xff] %v350_v61 }
  0x52   : > { %353 = vst [vmem:[%s2162_s10 + $0x1f0] sm:$0xff] %v352_v62 }
  0x53   : > { %355 = vst [vmem:[%s2162_s10 + $0x1f8] sm:$0xff] %v354_v63 }
  0x54   : > { %357 = vst [vmem:[%s2162_s10 + $0x200] sm:$0xff] %v356_v0 }
  0x55   : > { %359 = vst [vmem:[%s2162_s10 + $0x208] sm:$0xff] %v358_v1 }
  0x56   : > { %361 = vst [vmem:[%s2162_s10 + $0x210] sm:$0xff] %v360_v2 }
  0x57   : > { %363 = vst [vmem:[%s2162_s10 + $0x218] sm:$0xff] %v362_v3 }
  0x58   : > { %365 = vst [vmem:[%s2162_s10 + $0x220] sm:$0xff] %v364_v4 }
  0x59   : > { %367 = vst [vmem:[%s2162_s10 + $0x228] sm:$0xff] %v366_v5 }
  0x5a   : > { %369 = vst [vmem:[%s2162_s10 + $0x230] sm:$0xff] %v368_v6 }
  0x5b   : > { %371 = vst [vmem:[%s2162_s10 + $0x238] sm:$0xff] %v370_v7 }
  0x5c   : > { %373 = vst [vmem:[%s2162_s10 + $0x240] sm:$0xff] %v372_v8 }
  0x5d   : > { %375 = vst [vmem:[%s2162_s10 + $0x248] sm:$0xff] %v374_v9 }
  0x5e   : > { %377 = vst [vmem:[%s2162_s10 + $0x250] sm:$0xff] %v376_v10 }
  0x5f   : > { %379 = vst [vmem:[%s2162_s10 + $0x258] sm:$0xff] %v378_v11 }
  0x60   : > { %381 = vst [vmem:[%s2162_s10 + $0x260] sm:$0xff] %v380_v12 }
  0x61   : > { %383 = vst [vmem:[%s2162_s10 + $0x268] sm:$0xff] %v382_v13 }
  0x62   : > { %385 = vst [vmem:[%s2162_s10 + $0x270] sm:$0xff] %v384_v14 }
  0x63   : > { %387 = vst [vmem:[%s2162_s10 + $0x278] sm:$0xff] %v386_v15 }
  0x64   : > { %389 = vst [vmem:[%s2162_s10 + $0x280] sm:$0xff] %v388_v16 }
  0x65   : > { %391 = vst [vmem:[%s2162_s10 + $0x288] sm:$0xff] %v390_v17 }
  0x66   : > { %393 = vst [vmem:[%s2162_s10 + $0x290] sm:$0xff] %v392_v18 }
  0x67   : > { %395 = vst [vmem:[%s2162_s10 + $0x298] sm:$0xff] %v394_v19 }
  0x68   : > { %397 = vst [vmem:[%s2162_s10 + $0x2a0] sm:$0xff] %v396_v20 }
  0x69   : > { %399 = vst [vmem:[%s2162_s10 + $0x2a8] sm:$0xff] %v398_v21 }
  0x6a   : > { %401 = vst [vmem:[%s2162_s10 + $0x2b0] sm:$0xff] %v400_v22 }
  0x6b   : > { %403 = vst [vmem:[%s2162_s10 + $0x2b8] sm:$0xff] %v402_v23 }
  0x6c   : > { %405 = vst [vmem:[%s2162_s10 + $0x2c0] sm:$0xff] %v404_v24 }
  0x6d   : > { %407 = vst [vmem:[%s2162_s10 + $0x2c8] sm:$0xff] %v406_v25 }
  0x6e   : > { %409 = vst [vmem:[%s2162_s10 + $0x2d0] sm:$0xff] %v408_v26 }
  0x6f   : > { %411 = vst [vmem:[%s2162_s10 + $0x2d8] sm:$0xff] %v410_v27 }
  0x70   : > { %413 = vst [vmem:[%s2162_s10 + $0x2e0] sm:$0xff] %v412_v28 }
  0x71   : > { %415 = vst [vmem:[%s2162_s10 + $0x2e8] sm:$0xff] %v414_v29 }
  0x72   : > { %417 = vst [vmem:[%s2162_s10 + $0x2f0] sm:$0xff] %v416_v30 }
  0x73   : > { %419 = vst [vmem:[%s2162_s10 + $0x2f8] sm:$0xff] %v418_v31 }
  0x74 PF: > { %p1499_p8 = scmp.ge.s32.totalorder %s2076_s22, 1  ;;  %p432_p9 = scmp.lt.s32.totalorder %s2076_s22, 4 }
  0x76   : > { %p433_p10 = pnand %p1499_p8, %p432_p9 }
  0x77   : > { %s439_s6 = sand.u32 (!%p433_p10), 1, %s2060_s18   ;;  %s1501_s13 = sshll.u32 (!%p433_p10), %s2068_s20, 2 }
  0x78   : > { %436 = sbr.rel (%p433_p10) target bundleno = 597 (0x255), region = 59  ;;  %p484_p11 = scmp.lt.s32.totalorder (!%p433_p10), %s1501_s13, 11 }
  0x79   : > { %s1990_s7 = smul.u32 (!%p433_p10), 768, %s439_s6  ;;  %s1500_s17 = sshll.u32 (!%p433_p10), %s439_s6, 6 }
  0x7a   : > { %s2660_s24 = scalar_lea.vmem (!%p433_p10), [#allocation3], %s1500_s17 }
  0x7b   : > { %s2394_s8 = scalar_lea.vmem (!%p433_p10), [#allocation2], %s1990_s7 }
  0x7d   : > { %v2358_v32 = vld [vmem:[%s2699_s0] sm:$0xff]  ;;  %v2363_v33 = vld [vmem:[%s2699_s0 + $0x8] sm:$0xff]  ;;  %v2368_v34 = vld [vmem:[%s2699_s0 + $0x10] sm:$0xff]  ;;  %v2078_v42 = vmov 384.0   ;;  %s2713_s13 = smov (!%p484_p11, %s1501_s13), 11  ;;  %s1988_s18 = sshll.u32 (%p2144_p6), %s2068_s20, 5 }
  0x7e   : > { %v496_v35 = vadd.f32 %v2363_v33, %v2358_v32  ;;  %v2375_v36 = vld [vmem:[%s2699_s0 + $0x18] sm:$0xff]  ;;  %v2380_v37 = vld [vmem:[%s2699_s0 + $0x20] sm:$0xff]  ;;  %v2388_v40 = vld [vmem:[%s2699_s0 + $0x28] sm:$0xff]  ;;  %2032 = vrcp.f32 %v2078_v42  ;;  %s486_s16 = scalar_lea.vmem %s2703_s4, %s2713_s13  ;;  %s1368_s29 = scalar_lea.vmem (%p2144_p6), %s2704_s5, %s1988_s18 }
  0x7f   : > { %v500_v39 = vadd.f32 %v2380_v37, %v2375_v36  ;;  %v1616_v46 = vld [vmem:[%s2394_s8 + $0xe0] sm:$0xf]  ;;  %v1922_v47 = vld [vmem:[%s2394_s8 + $0xec] sm:$0xf0]  ;;  %v1920_v55 = vld [vmem:[%s2394_s8 + $0xe4] sm:$0xf] }
  0x80   : > { %v497_v38 = vadd.f32 %v496_v35, %v2368_v34  ;;  %v1744_v48 = vld [vmem:[%s2394_s8 + $0x1e0] sm:$0xf]  ;;  %v1617_v49 = vor.u32 %v1922_v47, %v1616_v46  ;;  %v1954_v50 = vld [vmem:[%s2394_s8 + $0x1ec] sm:$0xf0]  ;;  %v1618_v56 = vld [vmem:[%s2394_s8 + $0xf0] sm:$0xf0] }
  0x81   : > { %v501_v41 = vadd.f32 %v500_v39, %v2388_v40  ;;  %v1872_v51 = vld [vmem:[%s2394_s8 + $0x2e0] sm:$0xf]  ;;  %v1986_v52 = vld [vmem:[%s2394_s8 + $0x2ec] sm:$0xf0]  ;;  %v1745_v53 = vor.u32 %v1954_v50, %v1744_v48  ;;  %v1621_v59 = vor.u32 %v1920_v55, %v1618_v56  ;;  %v1916_v3 = vld [vmem:[%s2394_s8 + $0xc4] sm:$0xf] }
  0x82   : > { %498 = vadd.xlane.f32.xlu0 %v497_v38  ;;  %v1873_v54 = vor.u32 %v1986_v52, %v1872_v51  ;;  %v1600_v57 = vld [vmem:[%s2394_s8 + $0xc0] sm:$0xf]  ;;  %1180 = vmatpush.bf16.msra.mxu0 %v1617_v49  ;;  %v1918_v60 = vld [vmem:[%s2394_s8 + $0xcc] sm:$0xf0]  ;;  %v1602_v5 = vld [vmem:[%s2394_s8 + $0xd0] sm:$0xf0] }
  0x83   : > { %v1728_v61 = vld [vmem:[%s2394_s8 + $0x1c0] sm:$0xf]  ;;  %v1950_v62 = vld [vmem:[%s2394_s8 + $0x1cc] sm:$0xf0]  ;;  %1194 = vmatpush.bf16.msra.mxu1 %v1745_v53  ;;  %v1601_v63 = vor.u32 %v1918_v60, %v1600_v57  ;;  %1222 = vmatpush.bf16.msra.mxu3 %v1621_v59  ;;  %v1605_v8 = vor.u32 %v1916_v3, %v1602_v5  ;;  %v1912_v15 = vld [vmem:[%s2394_s8 + $0xa4] sm:$0xf] }
  0x84   : > { %v2033_v43 = vpop.eup %2032  ;;  %1208 = vmatpush.bf16.msra.mxu2 %v1873_v54  ;;  %v1729_v0 = vor.u32 %v1950_v62, %v1728_v61  ;;  %v1856_v1 = vld [vmem:[%s2394_s8 + $0x2c0] sm:$0xf]  ;;  %v1982_v2 = vld [vmem:[%s2394_s8 + $0x2cc] sm:$0xf0]  ;;  %v1586_v16 = vld [vmem:[%s2394_s8 + $0xb0] sm:$0xf0] }
  0x85   : > { %v505_v44 = vmul.f32 384.0, %v2033_v43  ;;  %v1857_v4 = vor.u32 %v1982_v2, %v1856_v1  ;;  %v1584_v6 = vld [vmem:[%s2394_s8 + $0xa0] sm:$0xf]  ;;  %v1914_v7 = vld [vmem:[%s2394_s8 + $0xac] sm:$0xf0]  ;;  %vm509_vm0 = vweird.f32 %v2033_v43  ;;  %v1589_v22 = vor.u32 %v1912_v15, %v1586_v16 }
  0x86   : > { %v1712_v9 = vld [vmem:[%s2394_s8 + $0x1a0] sm:$0xf]  ;;  %v1946_v10 = vld [vmem:[%s2394_s8 + $0x1ac] sm:$0xf0]  ;;  %1181 = vmatpush.bf16.msra.mxu0 %v1601_v63  ;;  %v1585_v13 = vor.u32 %v1914_v7, %v1584_v6  ;;  %v1908_v26 = vld [vmem:[%s2394_s8 + $0x84] sm:$0xf] }
  0x87   : > { %v506_v45 = vsub.f32 1.0, %v505_v44  ;;  %v1840_v11 = vld [vmem:[%s2394_s8 + $0x2a0] sm:$0xf]  ;;  %v1978_v14 = vld [vmem:[%s2394_s8 + $0x2ac] sm:$0xf0]  ;;  %1195 = vmatpush.bf16.msra.mxu1 %v1729_v0  ;;  %v1713_v17 = vor.u32 %v1946_v10, %v1712_v9  ;;  %1223 = vmatpush.bf16.msra.mxu3 %v1605_v8 }
  0x88   : > { %1209 = vmatpush.bf16.msra.mxu2 %v1857_v4  ;;  %v1841_v18 = vor.u32 %v1978_v14, %v1840_v11  ;;  %v1568_v19 = vld [vmem:[%s2394_s8 + $0x80] sm:$0xf]  ;;  %v1910_v20 = vld [vmem:[%s2394_s8 + $0x8c] sm:$0xf0]  ;;  %v1570_v27 = vld [vmem:[%s2394_s8 + $0x90] sm:$0xf0] }
  0x89   : > { %v507_v58 = vmul.f32 %v2033_v43, %v506_v45  ;;  %v1696_v21 = vld [vmem:[%s2394_s8 + $0x180] sm:$0xf]  ;;  %v1942_v23 = vld [vmem:[%s2394_s8 + $0x18c] sm:$0xf0]  ;;  %v1569_v29 = vor.u32 %v1910_v20, %v1568_v19  ;;  %v1573_v46 = vor.u32 %v1908_v26, %v1570_v27  ;;  %v1904_v47 = vld [vmem:[%s2394_s8 + $0x64] sm:$0xf] }
  0x8a   : > { %502 = vadd.xlane.f32.xlu0 %v501_v41  ;;  %v1824_v24 = vld [vmem:[%s2394_s8 + $0x280] sm:$0xf]  ;;  %v1974_v25 = vld [vmem:[%s2394_s8 + $0x28c] sm:$0xf0]  ;;  %1182 = vmatpush.bf16.msra.mxu0 %v1585_v13  ;;  %v1697_v38 = vor.u32 %v1942_v23, %v1696_v21  ;;  %v1554_v48 = vld [vmem:[%s2394_s8 + $0x70] sm:$0xf0] }
  0x8b   : > { %v508_v12 = vadd.f32 %v2033_v43, %v507_v58  ;;  %v1552_v30 = vld [vmem:[%s2394_s8 + $0x60] sm:$0xf]  ;;  %v1906_v31 = vld [vmem:[%s2394_s8 + $0x6c] sm:$0xf0]  ;;  %1196 = vmatpush.bf16.msra.mxu1 %v1713_v17  ;;  %v1825_v39 = vor.u32 %v1974_v25, %v1824_v24  ;;  %1224 = vmatpush.bf16.msra.mxu3 %v1589_v22  ;;  %v1557_v55 = vor.u32 %v1904_v47, %v1554_v48  ;;  %v1900_v10 = vld [vmem:[%s2394_s8 + $0x44] sm:$0xf] }
  0x8c   : > { %v1680_v35 = vld [vmem:[%s2394_s8 + $0x160] sm:$0xf]  ;;  %1210 = vmatpush.bf16.msra.mxu2 %v1841_v18  ;;  %v1938_v41 = vld [vmem:[%s2394_s8 + $0x16c] sm:$0xf0]  ;;  %v1553_v49 = vor.u32 %v1906_v31, %v1552_v30  ;;  %v1538_v11 = vld [vmem:[%s2394_s8 + $0x50] sm:$0xf0] }
  0x8d   : > { %v2428_v28 = vsel %vm509_vm0, %v2033_v43, %v508_v12  ;;  %v1808_v42 = vld [vmem:[%s2394_s8 + $0x260] sm:$0xf]  ;;  %v1970_v44 = vld [vmem:[%s2394_s8 + $0x26c] sm:$0xf0]  ;;  %v1681_v50 = vor.u32 %v1938_v41, %v1680_v35  ;;  %v1541_v12 = vor.u32 %v1900_v10, %v1538_v11  ;;  %v1896_v22 = vld [vmem:[%s2394_s8 + $0x24] sm:$0xf] }
  0x8e   : > { %1183 = vmatpush.bf16.msra.mxu0 %v1569_v29  ;;  %v1809_v51 = vor.u32 %v1970_v44, %v1808_v42  ;;  %v1664_v3 = vld [vmem:[%s2394_s8 + $0x140] sm:$0xf]  ;;  %v1934_v5 = vld [vmem:[%s2394_s8 + $0x14c] sm:$0xf0]  ;;  %v1522_v23 = vld [vmem:[%s2394_s8 + $0x30] sm:$0xf0] }
  0x8f   : > { %1197 = vmatpush.bf16.msra.mxu1 %v1697_v38  ;;  %1225 = vmatpush.bf16.msra.mxu3 %v1573_v46  ;;  %v1792_v6 = vld [vmem:[%s2394_s8 + $0x240] sm:$0xf]  ;;  %v1966_v7 = vld [vmem:[%s2394_s8 + $0x24c] sm:$0xf0]  ;;  %v1665_v8 = vor.u32 %v1934_v5, %v1664_v3  ;;  %v1525_v24 = vor.u32 %v1896_v22, %v1522_v23  ;;  %v1892_v41 = vld [vmem:[%s2394_s8 + $0x4] sm:$0xf] }
  0x90   : > { %1211 = vmatpush.bf16.msra.mxu2 %v1825_v39  ;;  %v1793_v9 = vor.u32 %v1966_v7, %v1792_v6  ;;  %v1520_v13 = vld [vmem:[%s2394_s8 + $0x20] sm:$0xf]  ;;  %v1898_v14 = vld [vmem:[%s2394_s8 + $0x2c] sm:$0xf0]  ;;  %v1506_v42 = vld [vmem:[%s2394_s8 + $0x10] sm:$0xf0] }
  0x91   : > { %v1648_v15 = vld [vmem:[%s2394_s8 + $0x120] sm:$0xf]  ;;  %v1521_v16 = vor.u32 %v1898_v14, %v1520_v13  ;;  %v1930_v17 = vld [vmem:[%s2394_s8 + $0x12c] sm:$0xf0]  ;;  %v1952_v44 = vld [vmem:[%s2394_s8 + $0x1e4] sm:$0xf] }
  0x92   : > { %1184 = vmatpush.bf16.msra.mxu0 %v1553_v49  ;;  %v1776_v18 = vld [vmem:[%s2394_s8 + $0x220] sm:$0xf]  ;;  %v1962_v19 = vld [vmem:[%s2394_s8 + $0x22c] sm:$0xf0]  ;;  %v1649_v20 = vor.u32 %v1930_v17, %v1648_v15  ;;  %v1746_v46 = vld [vmem:[%s2394_s8 + $0x1f0] sm:$0xf0] }
  0x93   : > { %1198 = vmatpush.bf16.msra.mxu1 %v1681_v50  ;;  %1226 = vmatpush.bf16.msra.mxu3 %v1557_v55  ;;  %v1777_v21 = vor.u32 %v1962_v19, %v1776_v18  ;;  %v1504_v25 = vld [vmem:[%s2394_s8] sm:$0xf]  ;;  %v1894_v26 = vld [vmem:[%s2394_s8 + $0xc] sm:$0xf0]  ;;  %v1874_v47 = vld [vmem:[%s2394_s8 + $0x2f0] sm:$0xf0]  ;;  %v1749_v48 = vor.u32 %v1952_v44, %v1746_v46 }
  0x94   : > { %1212 = vmatpush.bf16.msra.mxu2 %v1809_v51  ;;  %v1632_v27 = vld [vmem:[%s2394_s8 + $0x100] sm:$0xf]  ;;  %v1505_v29 = vor.u32 %v1894_v26, %v1504_v25  ;;  %v1926_v30 = vld [vmem:[%s2394_s8 + $0x10c] sm:$0xf0]  ;;  %v1624_v50 = vld [vmem:[%s2394_s8 + $0xe8] sm:$0xf] }
  0x95   : > { %v1760_v31 = vld [vmem:[%s2394_s8 + $0x200] sm:$0xf]  ;;  %v1958_v35 = vld [vmem:[%s2394_s8 + $0x20c] sm:$0xf0]  ;;  %v1633_v38 = vor.u32 %v1926_v30, %v1632_v27  ;;  %v1923_v51 = vld [vmem:[%s2394_s8 + $0xf4] sm:$0xf0] }
  0x96   : > { %v1761_v39 = vor.u32 %v1958_v35, %v1760_v31  ;;  %v1752_v55 = vld [vmem:[%s2394_s8 + $0x1e8] sm:$0xf]  ;;  %v1714_v5 = vld [vmem:[%s2394_s8 + $0x1b0] sm:$0xf0]  ;;  %v1976_v6 = vld [vmem:[%s2394_s8 + $0x2a4] sm:$0xf] }
  0x97   : > { %1199 = vmatpush.bf16.msra.mxu1 %v1665_v8  ;;  %1227 = vmatpush.bf16.msra.mxu3 %v1541_v12  ;;  %v1842_v8 = vld [vmem:[%s2394_s8 + $0x2b0] sm:$0xf0]  ;;  %v1915_v10 = vld [vmem:[%s2394_s8 + $0xb4] sm:$0xf0]  ;;  %v1720_v13 = vld [vmem:[%s2394_s8 + $0x1a8] sm:$0xf] }
  0x98   : > { %1213 = vmatpush.bf16.msra.mxu2 %v1793_v9  ;;  %v1592_v9 = vld [vmem:[%s2394_s8 + $0xa8] sm:$0xf]  ;;  %v1845_v11 = vor.u32 %v1976_v6, %v1842_v8  ;;  %v1947_v14 = vld [vmem:[%s2394_s8 + $0x1b4] sm:$0xf0]  ;;  %v1698_v17 = vld [vmem:[%s2394_s8 + $0x190] sm:$0xf0] }
  0x99   : > { %v1593_v12 = vor.u32 %v1915_v10, %v1592_v9  ;;  %v1721_v15 = vor.u32 %v1947_v14, %v1720_v13  ;;  %v1972_v18 = vld [vmem:[%s2394_s8 + $0x284] sm:$0xf]  ;;  %v1911_v22 = vld [vmem:[%s2394_s8 + $0x94] sm:$0xf0]  ;;  %v1704_v25 = vld [vmem:[%s2394_s8 + $0x188] sm:$0xf] }
  0x9a   : > { %v1943_v26 = vld [vmem:[%s2394_s8 + $0x194] sm:$0xf0]  ;;  %v1682_v30 = vld [vmem:[%s2394_s8 + $0x170] sm:$0xf0]  ;;  %v1968_v31 = vld [vmem:[%s2394_s8 + $0x264] sm:$0xf] }
  0x9b   : > { %1200 = vmatpush.bf16.msra.mxu1 %v1649_v20  ;;  %1228 = vmatpush.bf16.msra.mxu3 %v1525_v24  ;;  %v1826_v20 = vld [vmem:[%s2394_s8 + $0x290] sm:$0xf0]  ;;  %v1705_v27 = vor.u32 %v1943_v26, %v1704_v25  ;;  %v1939_v46 = vld [vmem:[%s2394_s8 + $0x174] sm:$0xf0]  ;;  %v1924_v10 = vld [vmem:[%s2394_s8 + $0x104] sm:$0xf] }
  0x9c   : > { %1214 = vmatpush.bf16.msra.mxu2 %v1777_v21  ;;  %v1576_v21 = vld [vmem:[%s2394_s8 + $0x88] sm:$0xf]  ;;  %v1829_v23 = vor.u32 %v1972_v18, %v1826_v20  ;;  %v1931_v6 = vld [vmem:[%s2394_s8 + $0x134] sm:$0xf0]  ;;  %v1762_v14 = vld [vmem:[%s2394_s8 + $0x210] sm:$0xf0] }
  0x9d   : > { %v1577_v24 = vor.u32 %v1911_v22, %v1576_v21  ;;  %v1927_v20 = vld [vmem:[%s2394_s8 + $0x114] sm:$0xf0] }
  0x9f   : > { %1201 = vmatpush.bf16.msra.mxu1 %v1633_v38  ;;  %v1810_v38 = vld [vmem:[%s2394_s8 + $0x270] sm:$0xf0] }
  0xa0   : > { %1215 = vmatpush.bf16.msra.mxu2 %v1761_v39  ;;  %v1560_v39 = vld [vmem:[%s2394_s8 + $0x68] sm:$0xf] }
  0xf5   : > { %v499_v45 = vpop.xlane.xlu0 %498 }
  0xf6   : > { %v511_v43 = vmul.f32 %v2428_v28, %v499_v45  ;;  %v1509_v45 = vor.u32 %v1892_v41, %v1506_v42  ;;  %v1907_v41 = vld [vmem:[%s2394_s8 + $0x74] sm:$0xf0]  ;;  %v1813_v42 = vor.u32 %v1968_v31, %v1810_v38 }
  0xf7   : > { %v1561_v44 = vor.u32 %v1907_v41, %v1560_v39 }
  0xf8   : > { %v2440_v52 = vsub.f32 %v2358_v32, %v511_v43  ;;  %v2443_v53 = vsub.f32 %v2363_v33, %v511_v43  ;;  %v2446_v54 = vsub.f32 %v2368_v34, %v511_v43  ;;  %v1984_v43 = vld [vmem:[%s2394_s8 + $0x2e4] sm:$0xf]  ;;  %1229 = vmatpush.bf16.msra.mxu3 %v1509_v45  ;;  %v1688_v45 = vld [vmem:[%s2394_s8 + $0x168] sm:$0xf] }
  0xf9   : > { %v1877_v49 = vor.u32 %v1984_v43, %v1874_v47  ;;  %v1689_v43 = vor.u32 %v1939_v46, %v1688_v45  ;;  %v1932_v47 = vld [vmem:[%s2394_s8 + $0x144] sm:$0xf] }
  0xfa   : > { %v519_v56 = vmul.f32 %v2440_v52, %v2440_v52  ;;  %v520_v57 = vmul.f32 %v2443_v53, %v2443_v53  ;;  %v521_v32 = vmul.f32 %v2446_v54, %v2446_v54 }
  0xfb   : > { %1250 = vmatpush.bf16.msrb.mxu1 %v1877_v49  ;;  %v1964_v49 = vld [vmem:[%s2394_s8 + $0x244] sm:$0xf] }
  0xfc   : > { %v525_v58 = vadd.f32 %v520_v57, %v519_v56  ;;  %v1625_v56 = vor.u32 %v1923_v51, %v1624_v50  ;;  %v1955_v57 = vld [vmem:[%s2394_s8 + $0x1f4] sm:$0xf0]  ;;  %v1794_v51 = vld [vmem:[%s2394_s8 + $0x250] sm:$0xf0] }
  0xfd   : > { %v503_v33 = vpop.xlane.xlu0 %502 }
  0xfe   : > { %v512_v34 = vmul.f32 %v2428_v28, %v503_v33  ;;  %v526_v59 = vadd.f32 %v525_v58, %v521_v32  ;;  %v1948_v32 = vld [vmem:[%s2394_s8 + $0x1c4] sm:$0xf]  ;;  %v1730_v58 = vld [vmem:[%s2394_s8 + $0x1d0] sm:$0xf0]  ;;  %v1753_v33 = vor.u32 %v1955_v57, %v1752_v55  ;;  %1264 = vmatpush.bf16.msrb.mxu2 %v1625_v56  ;;  %v1544_v55 = vld [vmem:[%s2394_s8 + $0x48] sm:$0xf]  ;;  %v1797_v57 = vor.u32 %v1964_v49, %v1794_v51 }
  0xff   : > { %v1903_v56 = vld [vmem:[%s2394_s8 + $0x54] sm:$0xf0] }
 0x100   : > { %v2456_v60 = vsub.f32 %v2375_v36, %v512_v34  ;;  %v2459_v61 = vsub.f32 %v2380_v37, %v512_v34  ;;  %v2462_v62 = vsub.f32 %v2388_v40, %v512_v34  ;;  %527 = vadd.xlane.f32.xlu1 %v526_v59  ;;  %v1536_v37 = vld [vmem:[%s2394_s8 + $0x40] sm:$0xf]  ;;  %v1902_v40 = vld [vmem:[%s2394_s8 + $0x4c] sm:$0xf0]  ;;  %v1733_v34 = vor.u32 %v1948_v32, %v1730_v58  ;;  %v1980_v59 = vld [vmem:[%s2394_s8 + $0x2c4] sm:$0xf] }
 0x101   : > { %v1537_v4 = vor.u32 %v1902_v40, %v1536_v37  ;;  %v1951_v37 = vld [vmem:[%s2394_s8 + $0x1d4] sm:$0xf0]  ;;  %1278 = vmatpush.bf16.msrb.mxu3 %v1753_v33  ;;  %v1545_v32 = vor.u32 %v1903_v56, %v1544_v55  ;;  %v1672_v58 = vld [vmem:[%s2394_s8 + $0x148] sm:$0xf] }
 0x102   : > { %v522_v63 = vmul.f32 %v2456_v60, %v2456_v60  ;;  %v523_v0 = vmul.f32 %v2459_v61, %v2459_v61  ;;  %v524_v36 = vmul.f32 %v2462_v62, %v2462_v62  ;;  %v1935_v33 = vld [vmem:[%s2394_s8 + $0x154] sm:$0xf0] }
 0x103   : > { %1185 = vmatpush.bf16.msra.mxu0 %v1537_v4  ;;  %v1944_v4 = vld [vmem:[%s2394_s8 + $0x1a4] sm:$0xf] }
 0x104   : > { %v529_v1 = vadd.f32 %v523_v0, %v522_v63  ;;  %v1858_v63 = vld [vmem:[%s2394_s8 + $0x2d0] sm:$0xf0]  ;;  %v1608_v0 = vld [vmem:[%s2394_s8 + $0xc8] sm:$0xf]  ;;  %v1717_v7 = vor.u32 %v1944_v4, %v1714_v5 }
 0x105   : > { %v1656_v5 = vld [vmem:[%s2394_s8 + $0x128] sm:$0xf] }
 0x106   : > { %v530_v2 = vadd.f32 %v529_v1, %v524_v36  ;;  %v1861_v36 = vor.u32 %v1980_v59, %v1858_v63  ;;  %v1919_v1 = vld [vmem:[%s2394_s8 + $0xd4] sm:$0xf0]  ;;  %v1928_v59 = vld [vmem:[%s2394_s8 + $0x124] sm:$0xf]  ;;  %v1650_v63 = vld [vmem:[%s2394_s8 + $0x130] sm:$0xf0]  ;;  %v1657_v9 = vor.u32 %v1931_v6, %v1656_v5 }
 0x107   : > { %1186 = vmatpush.bf16.msra.mxu0 %v1521_v16  ;;  %v1609_v40 = vor.u32 %v1919_v1, %v1608_v0  ;;  %v1940_v16 = vld [vmem:[%s2394_s8 + $0x184] sm:$0xf]  ;;  %v1778_v1 = vld [vmem:[%s2394_s8 + $0x230] sm:$0xf0]  ;;  %v1754_v6 = vld [vmem:[%s2394_s8 + $0x1f8] sm:$0xf0] }
 0x108   : > { %531 = vadd.xlane.f32.xlu1 %v530_v2  ;;  %v1736_v2 = vld [vmem:[%s2394_s8 + $0x1c8] sm:$0xf]  ;;  %1251 = vmatpush.bf16.msrb.mxu1 %v1861_v36  ;;  %v1701_v19 = vor.u32 %v1940_v16, %v1698_v17  ;;  %v1960_v0 = vld [vmem:[%s2394_s8 + $0x224] sm:$0xf]  ;;  %v1895_v16 = vld [vmem:[%s2394_s8 + $0x14] sm:$0xf0] }
 0x109   : > { %v1737_v3 = vor.u32 %v1951_v37, %v1736_v2  ;;  %1265 = vmatpush.bf16.msrb.mxu2 %v1609_v40  ;;  %v1528_v2 = vld [vmem:[%s2394_s8 + $0x28] sm:$0xf]  ;;  %v1899_v37 = vld [vmem:[%s2394_s8 + $0x34] sm:$0xf0]  ;;  %v1781_v4 = vor.u32 %v1960_v0, %v1778_v1 }
 0x10a   : > { %v1987_v1 = vld [vmem:[%s2394_s8 + $0x2f4] sm:$0xf0] }
 0x10b   : > { %1187 = vmatpush.bf16.msra.mxu0 %v1505_v29  ;;  %1279 = vmatpush.bf16.msrb.mxu3 %v1737_v3  ;;  %v1936_v29 = vld [vmem:[%s2394_s8 + $0x164] sm:$0xf]  ;;  %v1653_v3 = vor.u32 %v1928_v59, %v1650_v63 }
 0x10c   : > { %1252 = vmatpush.bf16.msrb.mxu1 %v1845_v11  ;;  %v1685_v35 = vor.u32 %v1936_v29, %v1682_v30  ;;  %v1634_v11 = vld [vmem:[%s2394_s8 + $0x110] sm:$0xf0] }
 0x10d   : > { %1266 = vmatpush.bf16.msrb.mxu2 %v1593_v12  ;;  %v1956_v12 = vld [vmem:[%s2394_s8 + $0x204] sm:$0xf]  ;;  %v1637_v13 = vor.u32 %v1924_v10, %v1634_v11 }
 0x10e   : > { %v1765_v17 = vor.u32 %v1956_v12, %v1762_v14  ;;  %v1864_v14 = vld [vmem:[%s2394_s8 + $0x2c8] sm:$0xf] }
 0x10f   : > { %1236 = vmatpush.bf16.msrb.mxu0 %v1749_v48  ;;  %1280 = vmatpush.bf16.msrb.mxu3 %v1721_v15  ;;  %v1666_v48 = vld [vmem:[%s2394_s8 + $0x150] sm:$0xf0]  ;;  %v1512_v15 = vld [vmem:[%s2394_s8 + $0x8] sm:$0xf] }
 0x110   : > { %1253 = vmatpush.bf16.msrb.mxu1 %v1829_v23  ;;  %v1669_v50 = vor.u32 %v1932_v47, %v1666_v48  ;;  %v1513_v18 = vor.u32 %v1895_v16, %v1512_v15  ;;  %v577_v48 = vld [vmem:[%s2701_s2] sm:$0x7]  ;;  %v1983_v15 = vld [vmem:[%s2394_s8 + $0x2d4] sm:$0xf0] }
 0x111   : > { %1267 = vmatpush.bf16.msrb.mxu2 %v1577_v24  ;;  %v579_v55 = vperm.slane %v577_v48, 0  ;;  %v580_v56 = vperm.slane %v577_v48, 1 }
 0x113   : > { %1237 = vmatpush.bf16.msrb.mxu0 %v1733_v34  ;;  %1281 = vmatpush.bf16.msrb.mxu3 %v1705_v27  ;;  %v1673_v34 = vor.u32 %v1935_v33, %v1672_v58 }
 0x114   : > { %1254 = vmatpush.bf16.msrb.mxu1 %v1813_v42 }
 0x115   : > { %1268 = vmatpush.bf16.msrb.mxu2 %v1561_v44 }
 0x117   : > { %1238 = vmatpush.bf16.msrb.mxu0 %v1717_v7  ;;  %1282 = vmatpush.bf16.msrb.mxu3 %v1689_v43  ;;  %v1529_v7 = vor.u32 %v1899_v37, %v1528_v2 }
 0x118   : > { %1255 = vmatpush.bf16.msrb.mxu1 %v1797_v57 }
 0x119   : > { %1269 = vmatpush.bf16.msrb.mxu2 %v1545_v32  ;;  %v581_v32 = vperm.slane %v577_v48, 2  ;;  %v1909_v48 = vld [vmem:[%s2394_s8 + $0x8c] sm:$0xf] }
 0x11b   : > { %1239 = vmatpush.bf16.msrb.mxu0 %v1701_v19  ;;  %1283 = vmatpush.bf16.msrb.mxu3 %v1673_v34  ;;  %v1640_v19 = vld [vmem:[%s2394_s8 + $0x108] sm:$0xf] }
 0x11c   : > { %1256 = vmatpush.bf16.msrb.mxu1 %v1781_v4  ;;  %v1641_v22 = vor.u32 %v1927_v20, %v1640_v19  ;;  %v1610_v19 = vld [vmem:[%s2394_s8 + $0xd8] sm:$0xf0]  ;;  %v1949_v20 = vld [vmem:[%s2394_s8 + $0x1cc] sm:$0xf] }
 0x11d   : > { %1270 = vmatpush.bf16.msrb.mxu2 %v1529_v7  ;;  %v1985_v7 = vld [vmem:[%s2394_s8 + $0x2ec] sm:$0xf] }
 0x11f   : > { %1240 = vmatpush.bf16.msrb.mxu0 %v1685_v35  ;;  %1284 = vmatpush.bf16.msrb.mxu3 %v1657_v9 }
 0x120   : > { %1257 = vmatpush.bf16.msrb.mxu1 %v1765_v17 }
 0x121   : > { %1271 = vmatpush.bf16.msrb.mxu2 %v1513_v18  ;;  %v1917_v18 = vld [vmem:[%s2394_s8 + $0xcc] sm:$0xf] }
 0x123   : > { %1241 = vmatpush.bf16.msrb.mxu0 %v1669_v50  ;;  %1285 = vmatpush.bf16.msrb.mxu3 %v1641_v22  ;;  %v1981_v22 = vld [vmem:[%s2394_s8 + $0x2cc] sm:$0xf] }
 0x127   : > { %1242 = vmatpush.bf16.msrb.mxu0 %v1653_v3  ;;  %v1626_v3 = vld [vmem:[%s2394_s8 + $0xf8] sm:$0xf0] }
 0x12b   : > { %1243 = vmatpush.bf16.msrb.mxu0 %v1637_v13 }
 0x173   : > { %v528_v36 = vpop.xlane.xlu1 %527 }
 0x174   : > { %v533_v40 = vmul.f32 %v528_v36, %v2428_v28  ;;  %v1880_v36 = vld [vmem:[%s2394_s8 + $0x2e8] sm:$0xf] }
 0x175   : > { %v1881_v9 = vor.u32 %v1987_v1, %v1880_v36  ;;  %v1818_v36 = vld [vmem:[%s2394_s8 + $0x278] sm:$0xf0] }
 0x176   : > { %v535_v8 = vadd.f32 1e-05, %v533_v40  ;;  %v1921_v40 = vld [vmem:[%s2394_s8 + $0xec] sm:$0xf] }
 0x177   : > { %v1629_v13 = vor.u32 %v1921_v40, %v1626_v3  ;;  %v1967_v40 = vld [vmem:[%s2394_s8 + $0x254] sm:$0xf0] }
 0x178   : > { %2034 = vrsqrt.f32 %v535_v8  ;;  %vm543_vm2 = vweird.f32 %v535_v8 }
 0x17b   : > { %v532_v21 = vpop.xlane.xlu1 %531 }
 0x17c   : > { %v534_v23 = vmul.f32 %v532_v21, %v2428_v28  ;;  %v563_v28 = vld [vmem:[%s2700_s1] sm:$0x7]  ;;  %v1738_v21 = vld [vmem:[%s2394_s8 + $0x1d8] sm:$0xf0] }
 0x17d   : > { %v565_v44 = vperm.slane %v563_v28, 0  ;;  %v566_v45 = vperm.slane %v563_v28, 1  ;;  %v567_v50 = vperm.slane %v563_v28, 2  ;;  %v1977_v28 = vld [vmem:[%s2394_s8 + $0x2ac] sm:$0xf] }
 0x17e   : > { %v2035_v24 = vpop.eup %2034  ;;  %v536_v25 = vadd.f32 1e-05, %v534_v23  ;;  %v1866_v23 = vld [vmem:[%s2394_s8 + $0x2d8] sm:$0xf0] }
 0x17f   : > { %v538_v26 = vmul.f32 %v2035_v24, %v535_v8  ;;  %vm544_vm1 = vweird.f32 %v2035_v24  ;;  %v1882_v8 = vld [vmem:[%s2394_s8 + $0x2f8] sm:$0xf0] }
 0x180   : > { %2036 = vrsqrt.f32 %v536_v25  ;;  %vm545_vm3 = vmor %vm543_vm2, %vm544_vm1  ;;  %vm553_vm5 = vweird.f32 %v536_v25  ;;  %v1885_v17 = vor.u32 %v1985_v7, %v1882_v8  ;;  %v1802_v7 = vld [vmem:[%s2394_s8 + $0x258] sm:$0xf0] }
 0x181   : > { %v539_v27 = vmul.f32 %v2035_v24, %v538_v26  ;;  %v1848_v26 = vld [vmem:[%s2394_s8 + $0x2a8] sm:$0xf] }
 0x183   : > { %v540_v29 = vmul.f32 0.5, %v539_v27  ;;  %v1979_v27 = vld [vmem:[%s2394_s8 + $0x2b4] sm:$0xf0] }
 0x185   : > { %v541_v30 = vsub.f32 1.5, %v540_v29  ;;  %v1741_v29 = vor.u32 %v1949_v20, %v1738_v21  ;;  %v1658_v20 = vld [vmem:[%s2394_s8 + $0x138] sm:$0xf0]  ;;  %v1961_v21 = vld [vmem:[%s2394_s8 + $0x22c] sm:$0xf] }
 0x186   : > { %v2037_v31 = vpop.eup %2036 }
 0x187   : > { %v542_v35 = vmul.f32 %v2035_v24, %v541_v30  ;;  %v548_v38 = vmul.f32 %v2037_v31, %v536_v25  ;;  %vm554_vm4 = vweird.f32 %v2037_v31  ;;  %v1613_v25 = vor.u32 %v1917_v18, %v1610_v19  ;;  %v1530_v18 = vld [vmem:[%s2394_s8 + $0x38] sm:$0xf0]  ;;  %v1929_v19 = vld [vmem:[%s2394_s8 + $0x12c] sm:$0xf] }
 0x188   : > { %vm555_vm6 = vmor %vm553_vm5, %vm554_vm4  ;;  %v1869_v30 = vor.u32 %v1981_v22, %v1866_v23  ;;  %v1786_v22 = vld [vmem:[%s2394_s8 + $0x238] sm:$0xf0] }
 0x189   : > { %v549_v39 = vmul.f32 %v2037_v31, %v548_v38  ;;  %v546_v41 = vsel %vm545_vm3, %v2035_v24, %v542_v35  ;;  %v1865_v24 = vor.u32 %v1983_v15, %v1864_v14  ;;  %v1594_v35 = vld [vmem:[%s2394_s8 + $0xb8] sm:$0xf0]  ;;  %v1945_v38 = vld [vmem:[%s2394_s8 + $0x1ac] sm:$0xf]  ;;  %v1963_v14 = vld [vmem:[%s2394_s8 + $0x234] sm:$0xf0] }
 0x18a   : > { %v557_v46 = vmul.f32 %v546_v41, %v2440_v52  ;;  %v558_v43 = vmul.f32 %v546_v41, %v2443_v53  ;;  %v559_v49 = vmul.f32 %v546_v41, %v2446_v54  ;;  %v1850_v41 = vld [vmem:[%s2394_s8 + $0x2b8] sm:$0xf0] }
 0x18b   : > { %v550_v42 = vmul.f32 0.5, %v549_v39  ;;  %v1722_v39 = vld [vmem:[%s2394_s8 + $0x1b8] sm:$0xf0] }
 0x18c   : > { %v571_v53 = vmul.f32 %v565_v44, %v557_v46  ;;  %v572_v57 = vmul.f32 %v566_v45, %v558_v43  ;;  %v573_v34 = vmul.f32 %v567_v50, %v559_v49  ;;  %v1975_v46 = vld [vmem:[%s2394_s8 + $0x294] sm:$0xf0]  ;;  %v1725_v43 = vor.u32 %v1945_v38, %v1722_v39  ;;  %v1578_v49 = vld [vmem:[%s2394_s8 + $0x98] sm:$0xf0]  ;;  %v1957_v39 = vld [vmem:[%s2394_s8 + $0x20c] sm:$0xf] }
 0x18d   : > { %v551_v47 = vsub.f32 1.5, %v550_v42  ;;  %v1849_v42 = vor.u32 %v1979_v27, %v1848_v26  ;;  %v1959_v26 = vld [vmem:[%s2394_s8 + $0x214] sm:$0xf0]  ;;  %v1661_v27 = vor.u32 %v1929_v19, %v1658_v20  ;;  %v1642_v38 = vld [vmem:[%s2394_s8 + $0x118] sm:$0xf0] }
 0x18e   : > { %v585_v2 = vadd.f32 %v579_v55, %v571_v53  ;;  %v586_v37 = vadd.f32 %v580_v56, %v572_v57  ;;  %v1581_v53 = vor.u32 %v1909_v48, %v1578_v49  ;;  %v1816_v57 = vld [vmem:[%s2394_s8 + $0x268] sm:$0xf] }
 0x18f   : > { %v552_v51 = vmul.f32 %v2037_v31, %v551_v47  ;;  %v1853_v47 = vor.u32 %v1977_v28, %v1850_v41  ;;  %v1770_v28 = vld [vmem:[%s2394_s8 + $0x218] sm:$0xf0] }
 0x191   : > { %v556_v52 = vsel %vm555_vm6, %v2037_v31, %v552_v51  ;;  %v1913_v31 = vld [vmem:[%s2394_s8 + $0xac] sm:$0xf]  ;;  %v1706_v51 = vld [vmem:[%s2394_s8 + $0x198] sm:$0xf0] }
 0x192   : > { %v560_v58 = vmul.f32 %v556_v52, %v2456_v60  ;;  %v561_v33 = vmul.f32 %v556_v52, %v2459_v61  ;;  %v562_v54 = vmul.f32 %v556_v52, %v2462_v62  ;;  %v1953_v60 = vld [vmem:[%s2394_s8 + $0x1ec] sm:$0xf]  ;;  %v587_v62 = vadd.f32 %v581_v32, %v573_v34  ;;  %v1562_v34 = vld [vmem:[%s2394_s8 + $0x78] sm:$0xf0] }
 0x193   : > { %v1757_v16 = vor.u32 %v1953_v60, %v1754_v6  ;;  %v1965_v6 = vld [vmem:[%s2394_s8 + $0x24c] sm:$0xf] }
 0x194   : > { %v574_v59 = vmul.f32 %v565_v44, %v560_v58  ;;  %v575_v63 = vmul.f32 %v566_v45, %v561_v33  ;;  %v576_v0 = vmul.f32 %v567_v50, %v562_v54  ;;  %v1597_v44 = vor.u32 %v1913_v31, %v1594_v35  ;;  %v1832_v45 = vld [vmem:[%s2394_s8 + $0x288] sm:$0xf]  ;;  %v1941_v50 = vld [vmem:[%s2394_s8 + $0x18c] sm:$0xf]  ;;  %v1514_v31 = vld [vmem:[%s2394_s8 + $0x18] sm:$0xf0] }
 0x195   : > { %v1833_v52 = vor.u32 %v1975_v46, %v1832_v45  ;;  %v1709_v58 = vor.u32 %v1941_v50, %v1706_v51  ;;  %v1905_v54 = vld [vmem:[%s2394_s8 + $0x6c] sm:$0xf]  ;;  %v1773_v45 = vor.u32 %v1957_v39, %v1770_v28  ;;  %v690_v46 = vld [vmem:[%s486_s16] sm:$0xf] }
 0x196   : > { %v588_v4 = vadd.f32 %v579_v55, %v574_v59  ;;  %v589_v61 = vadd.f32 %v580_v56, %v575_v63  ;;  %v590_v5 = vadd.f32 %v581_v32, %v576_v0  ;;  %v1973_v55 = vld [vmem:[%s2394_s8 + $0x28c] sm:$0xf]  ;;  %v1834_v56 = vld [vmem:[%s2394_s8 + $0x298] sm:$0xf0]  ;;  %v1971_v32 = vld [vmem:[%s2394_s8 + $0x274] sm:$0xf0] }
 0x197   : > { %v1837_v33 = vor.u32 %v1973_v55, %v1834_v56  ;;  %v1937_v59 = vld [vmem:[%s2394_s8 + $0x16c] sm:$0xf]  ;;  %v1690_v63 = vld [vmem:[%s2394_s8 + $0x178] sm:$0xf0]  ;;  %v1817_v1 = vor.u32 %v1971_v32, %v1816_v57 }
 0x198   : > { %v2580_v10 = vpack.c.bf16 %v588_v4, %v585_v2  ;;  %v2582_v11 = vpack.c.bf16 %v589_v61, %v586_v37  ;;  %v2584_v12 = vpack.c.bf16 %v590_v5, %v587_v62  ;;  %v1969_v0 = vld [vmem:[%s2394_s8 + $0x26c] sm:$0xf]  ;;  %v1565_v2 = vor.u32 %v1905_v54, %v1562_v34  ;;  %v1800_v37 = vld [vmem:[%s2394_s8 + $0x248] sm:$0xf]  ;;  %v1546_v61 = vld [vmem:[%s2394_s8 + $0x58] sm:$0xf0] }
 0x199   : > { %v1693_v3 = vor.u32 %v1937_v59, %v1690_v63  ;;  %v1821_v60 = vor.u32 %v1969_v0, %v1818_v36  ;;  %v1901_v4 = vld [vmem:[%s2394_s8 + $0x4c] sm:$0xf]  ;;  %v1674_v5 = vld [vmem:[%s2394_s8 + $0x158] sm:$0xf0]  ;;  %v1801_v8 = vor.u32 %v1967_v40, %v1800_v37 }
 0x19a   : > { %1188 = vmatmul.bf16.vlgmr.msra.gmra.mxu0 %v2580_v10  ;;  %1202 = vmatmul.bf16.vlgmr.msra.gmra.mxu1 %v2582_v11  ;;  %v1933_v62 = vld [vmem:[%s2394_s8 + $0x14c] sm:$0xf] }
 0x19b   : > { %1216 = vmatmul.bf16.vlgmr.msra.gmra.mxu2 %v2584_v12  ;;  %1230 = vmatmul.bf16.vlgmr.msra.gmra.mxu3 %v2580_v10  ;;  %v1677_v15 = vor.u32 %v1933_v62, %v1674_v5  ;;  %v1925_v35 = vld [vmem:[%s2394_s8 + $0x10c] sm:$0xf] }
 0x19c   : > { %1292 = vmatpush.bf16.msra.mxu0 %v1881_v9  ;;  %1306 = vmatpush.bf16.msra.mxu1 %v1629_v13  ;;  %v1549_v9 = vor.u32 %v1901_v4, %v1546_v61  ;;  %v1784_v13 = vld [vmem:[%s2394_s8 + $0x228] sm:$0xf] }
 0x19d   : > { %1320 = vmatpush.bf16.msra.mxu2 %v1757_v16  ;;  %1334 = vmatpush.bf16.msra.mxu3 %v1885_v17  ;;  %v1805_v16 = vor.u32 %v1965_v6, %v1802_v7  ;;  %v1897_v17 = vld [vmem:[%s2394_s8 + $0x2c] sm:$0xf]  ;;  %v1785_v23 = vor.u32 %v1963_v14, %v1784_v13 }
 0x1a0   : > { %1293 = vmatpush.bf16.msra.mxu0 %v1865_v24  ;;  %1307 = vmatpush.bf16.msra.mxu1 %v1613_v25  ;;  %v1533_v24 = vor.u32 %v1897_v17, %v1530_v18  ;;  %v1768_v25 = vld [vmem:[%s2394_s8 + $0x208] sm:$0xf] }
 0x1a1   : > { %1321 = vmatpush.bf16.msra.mxu2 %v1741_v29  ;;  %1335 = vmatpush.bf16.msra.mxu3 %v1869_v30  ;;  %v1789_v29 = vor.u32 %v1961_v21, %v1786_v22  ;;  %v1893_v30 = vld [vmem:[%s2394_s8 + $0xc] sm:$0xf]  ;;  %v1769_v41 = vor.u32 %v1959_v26, %v1768_v25 }
 0x1a4   : > { %1294 = vmatpush.bf16.msra.mxu0 %v1849_v42  ;;  %1308 = vmatpush.bf16.msra.mxu1 %v1597_v44  ;;  %v1517_v42 = vor.u32 %v1893_v30, %v1514_v31  ;;  %v1645_v44 = vor.u32 %v1925_v35, %v1642_v38 }
 0x1a5   : > { %1322 = vmatpush.bf16.msra.mxu2 %v1725_v43  ;;  %1336 = vmatpush.bf16.msra.mxu3 %v1853_v47  ;;  %v692_v43 = vperm.slane %v690_v46, 0 }
 0x1a8   : > { %1295 = vmatpush.bf16.msra.mxu0 %v1833_v52  ;;  %1309 = vmatpush.bf16.msra.mxu1 %v1581_v53  ;;  %v693_v52 = vperm.slane %v690_v46, 1 }
 0x1a9   : > { %1323 = vmatpush.bf16.msra.mxu2 %v1709_v58  ;;  %1337 = vmatpush.bf16.msra.mxu3 %v1837_v33 }
 0x1aa   : > { %1244 = vmatmul.bf16.vlgmr.msrb.gmra.mxu0 %v2582_v11  ;;  %1258 = vmatmul.bf16.vlgmr.msrb.gmra.mxu1 %v2584_v12 }
 0x1ab   : > { %1272 = vmatmul.bf16.vlgmr.msrb.gmra.mxu2 %v2580_v10  ;;  %1286 = vmatmul.bf16.vlgmr.msrb.gmra.mxu3 %v2582_v11 }
 0x1ac   : > { %1296 = vmatpush.bf16.msra.mxu0 %v1817_v1  ;;  %1310 = vmatpush.bf16.msra.mxu1 %v1565_v2  ;;  %v694_v2 = vperm.slane %v690_v46, 2 }
 0x1ad   : > { %1324 = vmatpush.bf16.msra.mxu2 %v1693_v3  ;;  %1338 = vmatpush.bf16.msra.mxu3 %v1821_v60 }
 0x1b0   : > { %1297 = vmatpush.bf16.msra.mxu0 %v1801_v8  ;;  %1311 = vmatpush.bf16.msra.mxu1 %v1549_v9  ;;  %v695_v9 = vperm.slane %v690_v46, 3 }
 0x1b1   : > { %1325 = vmatpush.bf16.msra.mxu2 %v1677_v15  ;;  %1339 = vmatpush.bf16.msra.mxu3 %v1805_v16 }
 0x1b4   : > { %1298 = vmatpush.bf16.msra.mxu0 %v1785_v23  ;;  %1312 = vmatpush.bf16.msra.mxu1 %v1533_v24 }
 0x1b5   : > { %1326 = vmatpush.bf16.msra.mxu2 %v1661_v27  ;;  %1340 = vmatpush.bf16.msra.mxu3 %v1789_v29 }
 0x1b8   : > { %1299 = vmatpush.bf16.msra.mxu0 %v1769_v41  ;;  %1313 = vmatpush.bf16.msra.mxu1 %v1517_v42 }
 0x1b9   : > { %1327 = vmatpush.bf16.msra.mxu2 %v1645_v44  ;;  %1341 = vmatpush.bf16.msra.mxu3 %v1773_v45 }
 0x1bb   : > { %1300 = vmatmul.bf16.vlgmr.msra.gmra.mxu0 %v2584_v12  ;;  %1314 = vmatmul.bf16.vlgmr.msra.gmra.mxu1 %v2580_v10 }
 0x1bc   : > { %1328 = vmatmul.bf16.vlgmr.msra.gmra.mxu2 %v2582_v11  ;;  %1342 = vmatmul.bf16.vlgmr.msra.gmra.mxu3 %v2584_v12 }
 0x217   : > { %v1189_v47 = vpop.f32.mrf.mxu0  ;;  %v1203_v48 = vpop.f32.mrf.mxu1 }
 0x218   : > { %v1190_v49 = vadd.f32 %v1189_v47, %v692_v43 }
 0x21a   : > { %v1204_v50 = vadd.f32 %v1203_v48, %v1190_v49 }
 0x21e   : > { %v1217_v10 = vpop.f32.mrf.mxu2  ;;  %v1231_v51 = vpop.f32.mrf.mxu3 }
 0x21f   : > { %v1218_v11 = vadd.f32 %v1217_v10, %v1204_v50  ;;  %v1191_v55 = vpop.f32.mrf.mxu0  ;;  %v1205_v12 = vpop.f32.mrf.mxu1  ;;  %v1232_v57 = vadd.f32 %v1231_v51, %v693_v52 }
 0x220   : > { %v1192_v56 = vadd.f32 %v1191_v55, %v692_v43 }
 0x221   : > { %1348 = vst [vmem:[%s2660_s24] sm:$0xff] %v1218_v11 }
 0x222   : > { %v1206_v53 = vadd.f32 %v1205_v12, %v1192_v56 }
 0x226   : > { %v1219_v32 = vpop.f32.mrf.mxu2  ;;  %v1233_v58 = vpop.f32.mrf.mxu3 }
 0x227   : > { %v1220_v33 = vadd.f32 %v1219_v32, %v1206_v53  ;;  %v1245_v54 = vpop.f32.mrf.mxu0  ;;  %v1259_v34 = vpop.f32.mrf.mxu1  ;;  %v1234_v0 = vadd.f32 %v1233_v58, %v693_v52 }
 0x228   : > { %v1246_v59 = vadd.f32 %v1245_v54, %v1232_v57  ;;  %v1381_v29 = vld [vmem:[%s2660_s24] sm:$0xff] (%p2144_p6) }
 0x229   : > { %1352 = vst [vmem:[%s2660_s24 + $0x20] sm:$0xff] %v1220_v33 }
 0x22a   : > { %v1260_v63 = vadd.f32 %v1259_v34, %v1246_v59  ;;  %1382 = vst [vmem:[%s1368_s29] sm:$0xff] (%p2144_p6), %v1381_v29 }
 0x22c   : > { %1349 = vst [vmem:[%s2660_s24 + $0x8] sm:$0xff] %v1260_v63 }
 0x22e   : > { %v1273_v36 = vpop.f32.mrf.mxu2  ;;  %v1287_v1 = vpop.f32.mrf.mxu3 }
 0x22f   : > { %v1247_v37 = vpop.f32.mrf.mxu0  ;;  %v1261_v40 = vpop.f32.mrf.mxu1  ;;  %v1274_v4 = vadd.f32 %v1273_v36, %v694_v2 }
 0x230   : > { %v1248_v3 = vadd.f32 %v1247_v37, %v1234_v0  ;;  %v1389_v38 = vld [vmem:[%s2660_s24 + $0x20] sm:$0xff] (%p2144_p6) }
 0x231   : > { %v1288_v5 = vadd.f32 %v1287_v1, %v1274_v4  ;;  %1390 = vst [vmem:[%s1368_s29 + $0x60] sm:$0xff] (%p2144_p6), %v1389_v38 }
 0x232   : > { %v1262_v60 = vadd.f32 %v1261_v40, %v1248_v3 }
 0x233   : > { %v1383_v30 = vld [vmem:[%s2660_s24 + $0x8] sm:$0xff] (%p2144_p6) }
 0x234   : > { %1353 = vst [vmem:[%s2660_s24 + $0x28] sm:$0xff] %v1262_v60 }
 0x235   : > { %1384 = vst [vmem:[%s1368_s29 + $0x8] sm:$0xff] (%p2144_p6), %v1383_v30 }
 0x236   : > { %v1275_v61 = vpop.f32.mrf.mxu2  ;;  %v1289_v62 = vpop.f32.mrf.mxu3 }
 0x237   : > { %v1276_v13 = vadd.f32 %v1275_v61, %v694_v2 }
 0x238   : > { %v1301_v6 = vpop.f32.mrf.mxu0  ;;  %v1315_v8 = vpop.f32.mrf.mxu1 }
 0x239   : > { %v1302_v7 = vadd.f32 %v1301_v6, %v1288_v5  ;;  %v1316_v14 = vadd.f32 %v1315_v8, %v695_v9  ;;  %v1290_v15 = vadd.f32 %v1289_v62, %v1276_v13 }
 0x23b   : > { %1350 = vst [vmem:[%s2660_s24 + $0x10] sm:$0xff] %v1302_v7  ;;  %v1391_v39 = vld [vmem:[%s2660_s24 + $0x28] sm:$0xff] (%p2144_p6) }
 0x23c   : > { %1392 = vst [vmem:[%s1368_s29 + $0x68] sm:$0xff] (%p2144_p6), %v1391_v39 }
 0x23f   : > { %v1329_v16 = vpop.f32.mrf.mxu2  ;;  %v1343_v17 = vpop.f32.mrf.mxu3 }
 0x240   : > { %v1330_v18 = vadd.f32 %v1329_v16, %v1316_v14  ;;  %v1303_v19 = vpop.f32.mrf.mxu0  ;;  %v1317_v22 = vpop.f32.mrf.mxu1 }
 0x241   : > { %v1304_v20 = vadd.f32 %v1303_v19, %v1290_v15  ;;  %v1318_v23 = vadd.f32 %v1317_v22, %v695_v9 }
 0x242   : > { %v1344_v21 = vadd.f32 %v1343_v17, %v1330_v18  ;;  %v1385_v31 = vld [vmem:[%s2660_s24 + $0x10] sm:$0xff] (%p2144_p6) }
 0x243   : > { %1354 = vst [vmem:[%s2660_s24 + $0x30] sm:$0xff] %v1304_v20 }
 0x244   : > { %1351 = vst [vmem:[%s2660_s24 + $0x18] sm:$0xff] %v1344_v21 }
 0x245   : > { %1386 = vst [vmem:[%s1368_s29 + $0x10] sm:$0xff] (%p2144_p6), %v1385_v31 }
 0x247   : > { %v1331_v24 = vpop.f32.mrf.mxu2  ;;  %v1345_v26 = vpop.f32.mrf.mxu3 }
 0x248   : > { %v1332_v25 = vadd.f32 %v1331_v24, %v1318_v23  ;;  %1362 = sbr.rel (!%p2144_p6) target bundleno = 597 (0x255), region = 67 }
 0x24a   : > { %v1346_v27 = vadd.f32 %v1345_v26, %v1332_v25  ;;  %v1393_v28 = vld [vmem:[%s2660_s24 + $0x30] sm:$0xff] (%p2144_p6) }
 0x24b   : > { %v1387_v35 = vld [vmem:[%s2660_s24 + $0x18] sm:$0xff] (%p2144_p6)  ;;  %1394 = vst [vmem:[%s1368_s29 + $0x70] sm:$0xff] (%p2144_p6), %v1393_v28 }
 0x24c   : > { %1355 = vst [vmem:[%s2660_s24 + $0x38] sm:$0xff] %v1346_v27 }
 0x24d   : > { %1388 = vst [vmem:[%s1368_s29 + $0x18] sm:$0xff] %v1387_v35 }
 0x253   : > { %v1395_v41 = vld [vmem:[%s2660_s24 + $0x38] sm:$0xff] }
 0x254   : > { %1396 = vst [vmem:[%s1368_s29 + $0x78] sm:$0xff] %v1395_v41 }
 0x255 PF: > { %s15_s22 = sadd.s32 1, %s2076_s22   ;;  %s2706_s18 = smov %s2064_s19 }
 0x256   : > { %p12_p12 = scmp.ge.s32.totalorder %s15_s22, 5   ;;  %s2707_s19 = smov %s2149_s28 }
 0x257   : > { %s2708_s20 = smov %s2072_s21  ;;  %s2709_s21 = smov %s2711_s23 }
 0x258   :  { %14 = sbr.rel (!%p12_p12) target bundleno = 3 (0x3), region = 127 }

// kernel: cnn_perceiver_forward.24
= control target key start
LH: loop header
LB: loop body
LE: loop exit
PB: predicated region body
PF: predicated region fallthrough
CT: control target
= control target key end

     0   :  { %9 = vsyncpa [#allocation5], 0  ;;  %s2442_s0 = inlined_call_operand.vmem [shape: f32[16,1536], index: 0, kind: input, shape index: {}]   ;;  %s2443_s1 = inlined_call_operand.hbm [shape: bf16[1536,384], index: 1, kind: input, shape index: {}]   ;;  %s2444_s2 = inlined_call_operand.vmem [shape: f32[1,384], index: 2, kind: input, shape index: {}]   ;;  %s2445_s3 = inlined_call_operand.vmem [shape: f32[16,384], index: 3, kind: input, shape index: {}]   ;;  %s2446_s4 = inlined_call_operand.vmem [shape: f32[16,384], index: 4, kind: output, shape index: {}]  }
   0x1   :  { %11 = vsyncpa [#allocation5 + $0x1], 0  ;;  %s2087_s15 = smov 0   ;;  %s2089_s16 = smov 0  }
   0x2   :  { %s2091_s17 = smov 0   ;;  %s2093_s18 = smov 0  }
   0x3   :  { %s2095_s19 = smov 0   ;;  %s2097_s20 = smov 0  }
   0x4 LB: > { %s1423_s21 = sadd.s32 4294967295, %s2057_s20   ;;  %s29_s22 = sadd.s32 1, %s2053_s19  ;;  %s2057_s20 = sphi %s2097_s20, %s17_s20   ;;  %s2053_s19 = sphi %s2095_s19, %s2453_s19   ;;  %s2049_s18 = sphi %s2093_s18, %s2452_s18   ;;  %s2045_s17 = sphi %s2091_s17, %s2451_s17   ;;  %s2041_s16 = sphi %s2089_s16, %s2450_s16   ;;  %s2037_s15 = sphi %s2087_s15, %s2449_s15  }
   0x5   : > { %p30_p0 = scmp.ge.s32.totalorder %s29_s22, 3  ;;  %s45_s23 = sadd.s32 1, %s2045_s17 }
   0x6   : > { %p52_p1 = scmp.ne.s32.totalorder %s2045_s17, %s2041_s16  ;;  %p53_p2 = scmp.eq.s32.totalorder %s2057_s20, 0 }
   0x7   : > { %s2455_s22 = smov (%p30_p0, %s29_s22), 0  ;;  %p86_p4 = scmp.ne.s32.totalorder %s2041_s16, %s2037_s15 }
   0x8   : > { %p2123_p3 = por %p53_p2, %p52_p1  ;;  %s41_s25 = ssub.s32 %s2053_s19, %s2455_s22 }
   0x9   : > { %p87_p5 = scmp.eq.s32.totalorder %s1423_s21, 0  ;;  %p43_p6 = scmp.eq.s32.totalorder %s41_s25, 0 }
   0xa   : > { %p1427_p8 = scmp.ge.s32.totalorder %s2057_s20, 3 }
   0xb   : > { %p2130_p7 = por %p87_p5, %p86_p4 }
   0xc   : > { %s2135_s27 = scalar_select %p43_p6, %s2045_s17, %s45_s23  }
   0xd   : > { %211 = sbr.rel (%p1427_p8) target bundleno = 36 (0x24), region = 24 }
  0x12   : > { %214 = sbr.rel (!%p2123_p3) target bundleno = 30 (0x1e), region = 28  ;;  %s216_s28 = sand.u32 (%p2123_p3), 1, %s2045_s17  }
  0x13   : > { %s1826_s29 = sshll.u32 (%p2123_p3), %s2053_s19, 5  ;;  %s1428_s30 = sshll.u32 (%p2123_p3), %s216_s28, 6 }
  0x14   : > { %s224_s7 = scalar_lea.vmem (%p2123_p3), %s2442_s0, %s1826_s29  ;;  %s218_s8 = scalar_lea.vmem (%p2123_p3), [#allocation3], %s1428_s30 }
  0x15   : > { %v237_v0 = vld [vmem:[%s224_s7] sm:$0xff] (%p2123_p3)  ;;  %v239_v1 = vld [vmem:[%s224_s7 + $0x8] sm:$0xff] (%p2123_p3)  ;;  %v241_v2 = vld [vmem:[%s224_s7 + $0x10] sm:$0xff] (%p2123_p3) }
  0x16   : > { %238 = vst [vmem:[%s218_s8] sm:$0xff] (%p2123_p3), %v237_v0  ;;  %v243_v3 = vld [vmem:[%s224_s7 + $0x18] sm:$0xff] (%p2123_p3)  ;;  %v245_v4 = vld [vmem:[%s224_s7 + $0x60] sm:$0xff] (%p2123_p3)  ;;  %v247_v5 = vld [vmem:[%s224_s7 + $0x68] sm:$0xff] (%p2123_p3) }
  0x17   : > { %240 = vst [vmem:[%s218_s8 + $0x8] sm:$0xff] %v239_v1  ;;  %v249_v6 = vld [vmem:[%s224_s7 + $0x70] sm:$0xff]  ;;  %v251_v7 = vld [vmem:[%s224_s7 + $0x78] sm:$0xff] }
  0x18   : > { %242 = vst [vmem:[%s218_s8 + $0x10] sm:$0xff] %v241_v2 }
  0x19   : > { %244 = vst [vmem:[%s218_s8 + $0x18] sm:$0xff] %v243_v3 }
  0x1a   : > { %246 = vst [vmem:[%s218_s8 + $0x20] sm:$0xff] %v245_v4 }
  0x1b   : > { %248 = vst [vmem:[%s218_s8 + $0x28] sm:$0xff] %v247_v5 }
  0x1c   : > { %250 = vst [vmem:[%s218_s8 + $0x30] sm:$0xff] %v249_v6 }
  0x1d   : > { %252 = vst [vmem:[%s218_s8 + $0x38] sm:$0xff] %v251_v7 }
  0x1e PF: > { %s259_s9 = sand.u32 1, %s2045_s17   ;;  %s1924_s10 = smul.u32 768, %s2053_s19 }
  0x1f   : > { %s1923_s11 = smul.u32 768, %s259_s9  ;;  %s260_s25 = scalar_lea.sflag [#allocation5], %s259_s9 }
  0x20   : > { %s271_s14 = scalar_lea.hbm %s2443_s1, %s1924_s10  ;;  %s2059_s28 = smov 192  }
  0x21   : > { %s272_s15 = sshll.u32 %s271_s14, 4  ;;  %s263_s21 = scalar_lea.vmem [#allocation4], %s1923_s11  ;;  %s273_s15 = int_to_ptr.hbm [resolvable:$true] %s272_s15 }
  0x22   : > { %s274_s23 = sshll.u32 %s263_s21, 4  ;;  %s2060_s29 = smov 12   ;;  %s275_s23 = int_to_ptr.vmem [resolvable:$true] %s274_s23 }
  0x23   : > { %1926 = dma.hbm_to_vmem [thread:$0]  (%p2123_p3), %s273_s15, 12288, %s275_s23, %s260_s25, %s2059_s28, %s2059_s28, %s2060_s29  }
  0x24 PF: > { %p1434_p9 = scmp.ge.s32.totalorder %s2057_s20, 1  ;;  %p282_p10 = scmp.lt.s32.totalorder %s2057_s20, 4 }
  0x26   : > { %p283_p11 = pnand %p1434_p9, %p282_p10 }
  0x27   : > { %s289_s30 = sand.u32 (!%p283_p11), 1, %s2041_s16  }
  0x28   : > { %286 = sbr.rel (%p283_p11) target bundleno = 320 (0x140), region = 55  ;;  %s1435_s5 = sshll.u32 (!%p283_p11), %s289_s30, 6 }
  0x29   : > { %s1925_s6 = smul.u32 (!%p283_p11), 768, %s289_s30  ;;  %s2155_s7 = scalar_lea.vmem (!%p283_p11), [#allocation3], %s1435_s5 }
  0x2a   : > { %s296_s8 = scalar_lea.sflag (!%p283_p11), [#allocation5], %s289_s30 }
  0x2b   : > { %s2157_s9 = scalar_lea.vmem (!%p283_p11), [#allocation4], %s1925_s6 }
  0x2d   : > { %2032 = dma.done.wait (%p2130_p7), %s296_s8, 12288  }
  0x2e   : > { %2034 = vsyncadd (%p2130_p7), %s296_s8, 4294955008  ;;  %p1436_p12 = scmp.ne.s32.totalorder %s2049_s18, 0 }
  0x30   : > { %384 = sbr.rel (%p1436_p12) target bundleno = 60 (0x3c), region = 67 }
  0x35   : > { %v2061_v8 = vmov 0.0  }
  0x36   : > { %385 = vst [vmem:[#allocation2 + $0x28] sm:$0xff] %v2061_v8 }
  0x37   : > { %386 = vst [vmem:[#allocation2 + $0x10] sm:$0xff] %v2061_v8 }
  0x38   : > { %387 = vst [vmem:[#allocation2 + $0x8] sm:$0xff] %v2061_v8 }
  0x39   : > { %388 = vst [vmem:[#allocation2] sm:$0xff] %v2061_v8 }
  0x3a   : > { %389 = vst [vmem:[#allocation2 + $0x18] sm:$0xff] %v2061_v8 }
  0x3b   : > { %390 = vst [vmem:[#allocation2 + $0x20] sm:$0xff] %v2061_v8 }
  0x3c PF: > { %v1523_v9 = vld [vmem:[%s2157_s9 + $0xa8] sm:$0xf]  ;;  %v1849_v10 = vld [vmem:[%s2157_s9 + $0xb0] sm:$0xf0]  ;;  %v1511_v20 = vld [vmem:[%s2157_s9 + $0x90] sm:$0xf] }
  0x3d   : > { %v1619_v11 = vld [vmem:[%s2157_s9 + $0x168] sm:$0xf]  ;;  %v1524_v12 = vor.u32 %v1849_v10, %v1523_v9  ;;  %v1873_v13 = vld [vmem:[%s2157_s9 + $0x170] sm:$0xf0]  ;;  %v1846_v22 = vld [vmem:[%s2157_s9 + $0x98] sm:$0xf0] }
  0x3e   : > { %v1715_v14 = vld [vmem:[%s2157_s9 + $0x228] sm:$0xf]  ;;  %v1897_v15 = vld [vmem:[%s2157_s9 + $0x230] sm:$0xf0]  ;;  %v1620_v16 = vor.u32 %v1873_v13, %v1619_v11  ;;  %v1607_v23 = vld [vmem:[%s2157_s9 + $0x150] sm:$0xf]  ;;  %v1512_v25 = vor.u32 %v1846_v22, %v1511_v20 }
  0x3f   : > { %v1716_v17 = vor.u32 %v1897_v15, %v1715_v14  ;;  %v1811_v18 = vld [vmem:[%s2157_s9 + $0x2e8] sm:$0xf]  ;;  %v1921_v19 = vld [vmem:[%s2157_s9 + $0x2f0] sm:$0xf0]  ;;  %1049 = vmatpush.bf16.msra.mxu0 %v1524_v12  ;;  %v1870_v24 = vld [vmem:[%s2157_s9 + $0x158] sm:$0xf0] }
  0x40   : > { %v1812_v21 = vor.u32 %v1921_v19, %v1811_v18  ;;  %1063 = vmatpush.bf16.msra.mxu1 %v1620_v16  ;;  %v1608_v26 = vor.u32 %v1870_v24, %v1607_v23  ;;  %v1703_v27 = vld [vmem:[%s2157_s9 + $0x210] sm:$0xf]  ;;  %v1894_v28 = vld [vmem:[%s2157_s9 + $0x218] sm:$0xf0]  ;;  %v1499_v32 = vld [vmem:[%s2157_s9 + $0x78] sm:$0xf] }
  0x41   : > { %1077 = vmatpush.bf16.msra.mxu2 %v1716_v17  ;;  %v1799_v29 = vld [vmem:[%s2157_s9 + $0x2d0] sm:$0xf]  ;;  %v1704_v30 = vor.u32 %v1894_v28, %v1703_v27  ;;  %v1918_v31 = vld [vmem:[%s2157_s9 + $0x2d8] sm:$0xf0]  ;;  %v1843_v33 = vld [vmem:[%s2157_s9 + $0x80] sm:$0xf0] }
  0x42   : > { %1091 = vmatpush.bf16.msra.mxu3 %v1812_v21  ;;  %v1800_v34 = vor.u32 %v1918_v31, %v1799_v29  ;;  %v1595_v35 = vld [vmem:[%s2157_s9 + $0x138] sm:$0xf]  ;;  %v1867_v36 = vld [vmem:[%s2157_s9 + $0x140] sm:$0xf0]  ;;  %v1500_v38 = vor.u32 %v1843_v33, %v1499_v32  ;;  %v1487_v44 = vld [vmem:[%s2157_s9 + $0x60] sm:$0xf] }
  0x43   : > { %v1691_v37 = vld [vmem:[%s2157_s9 + $0x1f8] sm:$0xf]  ;;  %1050 = vmatpush.bf16.msra.mxu0 %v1512_v25  ;;  %v1891_v39 = vld [vmem:[%s2157_s9 + $0x200] sm:$0xf0]  ;;  %v1596_v42 = vor.u32 %v1867_v36, %v1595_v35  ;;  %v1840_v45 = vld [vmem:[%s2157_s9 + $0x68] sm:$0xf0] }
  0x44   : > { %v1787_v40 = vld [vmem:[%s2157_s9 + $0x2b8] sm:$0xf]  ;;  %v1915_v41 = vld [vmem:[%s2157_s9 + $0x2c0] sm:$0xf0]  ;;  %1064 = vmatpush.bf16.msra.mxu1 %v1608_v26  ;;  %v1692_v43 = vor.u32 %v1891_v39, %v1691_v37  ;;  %v1583_v46 = vld [vmem:[%s2157_s9 + $0x120] sm:$0xf]  ;;  %v1488_v53 = vor.u32 %v1840_v45, %v1487_v44 }
  0x45   : > { %1078 = vmatpush.bf16.msra.mxu2 %v1704_v30  ;;  %v1788_v47 = vor.u32 %v1915_v41, %v1787_v40  ;;  %v1864_v48 = vld [vmem:[%s2157_s9 + $0x128] sm:$0xf0]  ;;  %v1679_v49 = vld [vmem:[%s2157_s9 + $0x1e0] sm:$0xf]  ;;  %v1475_v56 = vld [vmem:[%s2157_s9 + $0x48] sm:$0xf] }
  0x46   : > { %1092 = vmatpush.bf16.msra.mxu3 %v1800_v34  ;;  %v1888_v50 = vld [vmem:[%s2157_s9 + $0x1e8] sm:$0xf0]  ;;  %v1775_v51 = vld [vmem:[%s2157_s9 + $0x2a0] sm:$0xf]  ;;  %v1584_v54 = vor.u32 %v1864_v48, %v1583_v46  ;;  %v1837_v57 = vld [vmem:[%s2157_s9 + $0x50] sm:$0xf0] }
  0x47   : > { %v1912_v52 = vld [vmem:[%s2157_s9 + $0x2a8] sm:$0xf0]  ;;  %1051 = vmatpush.bf16.msra.mxu0 %v1500_v38  ;;  %v1680_v55 = vor.u32 %v1888_v50, %v1679_v49  ;;  %v1571_v58 = vld [vmem:[%s2157_s9 + $0x108] sm:$0xf]  ;;  %v1861_v60 = vld [vmem:[%s2157_s9 + $0x110] sm:$0xf0]  ;;  %v1476_v1 = vor.u32 %v1837_v57, %v1475_v56 }
  0x48   : > { %1065 = vmatpush.bf16.msra.mxu1 %v1596_v42  ;;  %v1776_v59 = vor.u32 %v1912_v52, %v1775_v51  ;;  %v1667_v61 = vld [vmem:[%s2157_s9 + $0x1c8] sm:$0xf]  ;;  %v1885_v62 = vld [vmem:[%s2157_s9 + $0x1d0] sm:$0xf0]  ;;  %v1572_v2 = vor.u32 %v1861_v60, %v1571_v58  ;;  %v1463_v4 = vld [vmem:[%s2157_s9 + $0x30] sm:$0xf] }
  0x49   : > { %1079 = vmatpush.bf16.msra.mxu2 %v1692_v43  ;;  %v1763_v63 = vld [vmem:[%s2157_s9 + $0x288] sm:$0xf]  ;;  %v1909_v0 = vld [vmem:[%s2157_s9 + $0x290] sm:$0xf0]  ;;  %v1668_v3 = vor.u32 %v1885_v62, %v1667_v61  ;;  %v1834_v5 = vld [vmem:[%s2157_s9 + $0x38] sm:$0xf0] }
  0x4a   : > { %1093 = vmatpush.bf16.msra.mxu3 %v1788_v47  ;;  %v1559_v6 = vld [vmem:[%s2157_s9 + $0xf0] sm:$0xf]  ;;  %v1764_v7 = vor.u32 %v1909_v0, %v1763_v63  ;;  %v1858_v8 = vld [vmem:[%s2157_s9 + $0xf8] sm:$0xf0]  ;;  %v1464_v13 = vor.u32 %v1834_v5, %v1463_v4  ;;  %v1451_v16 = vld [vmem:[%s2157_s9 + $0x18] sm:$0xf] }
  0x4b   : > { %1052 = vmatpush.bf16.msra.mxu0 %v1488_v53  ;;  %v1655_v9 = vld [vmem:[%s2157_s9 + $0x1b0] sm:$0xf]  ;;  %v1882_v10 = vld [vmem:[%s2157_s9 + $0x1b8] sm:$0xf0]  ;;  %v1560_v14 = vor.u32 %v1858_v8, %v1559_v6  ;;  %v1831_v17 = vld [vmem:[%s2157_s9 + $0x20] sm:$0xf0] }
  0x4c   : > { %1066 = vmatpush.bf16.msra.mxu1 %v1584_v54  ;;  %v1751_v11 = vld [vmem:[%s2157_s9 + $0x270] sm:$0xf]  ;;  %v1906_v12 = vld [vmem:[%s2157_s9 + $0x278] sm:$0xf0]  ;;  %v1656_v15 = vor.u32 %v1882_v10, %v1655_v9  ;;  %v1547_v18 = vld [vmem:[%s2157_s9 + $0xd8] sm:$0xf]  ;;  %v1452_v25 = vor.u32 %v1831_v17, %v1451_v16 }
  0x4d   : > { %1080 = vmatpush.bf16.msra.mxu2 %v1680_v55  ;;  %v1752_v19 = vor.u32 %v1906_v12, %v1751_v11  ;;  %v1855_v20 = vld [vmem:[%s2157_s9 + $0xe0] sm:$0xf0]  ;;  %v1643_v21 = vld [vmem:[%s2157_s9 + $0x198] sm:$0xf]  ;;  %v1439_v26 = vld [vmem:[%s2157_s9] sm:$0xf] }
  0x4e   : > { %1094 = vmatpush.bf16.msra.mxu3 %v1776_v59  ;;  %v1879_v22 = vld [vmem:[%s2157_s9 + $0x1a0] sm:$0xf0]  ;;  %v1739_v23 = vld [vmem:[%s2157_s9 + $0x258] sm:$0xf]  ;;  %v1828_v27 = vld [vmem:[%s2157_s9 + $0x8] sm:$0xf0]  ;;  %v1548_v28 = vor.u32 %v1855_v20, %v1547_v18 }
  0x4f   : > { %1053 = vmatpush.bf16.msra.mxu0 %v1476_v1  ;;  %v1903_v24 = vld [vmem:[%s2157_s9 + $0x260] sm:$0xf0]  ;;  %v1644_v29 = vor.u32 %v1879_v22, %v1643_v21  ;;  %v1535_v30 = vld [vmem:[%s2157_s9 + $0xc0] sm:$0xf]  ;;  %v1852_v31 = vld [vmem:[%s2157_s9 + $0xc8] sm:$0xf0]  ;;  %v1440_v40 = vor.u32 %v1828_v27, %v1439_v26 }
  0x50   : > { %1067 = vmatpush.bf16.msra.mxu1 %v1572_v2  ;;  %v1631_v32 = vld [vmem:[%s2157_s9 + $0x180] sm:$0xf]  ;;  %v1740_v33 = vor.u32 %v1903_v24, %v1739_v23  ;;  %v1876_v34 = vld [vmem:[%s2157_s9 + $0x188] sm:$0xf0]  ;;  %v1525_v38 = vld [vmem:[%s2157_s9 + $0xb4] sm:$0xf0]  ;;  %v1536_v44 = vor.u32 %v1852_v31, %v1535_v30 }
  0x51   : > { %1081 = vmatpush.bf16.msra.mxu2 %v1668_v3  ;;  %v1727_v35 = vld [vmem:[%s2157_s9 + $0x240] sm:$0xf]  ;;  %v1900_v36 = vld [vmem:[%s2157_s9 + $0x248] sm:$0xf0]  ;;  %v1621_v41 = vld [vmem:[%s2157_s9 + $0x174] sm:$0xf0]  ;;  %v1632_v45 = vor.u32 %v1876_v34, %v1631_v32 }
  0x52   : > { %1095 = vmatpush.bf16.msra.mxu3 %v1764_v7  ;;  %v1848_v37 = vld [vmem:[%s2157_s9 + $0xac] sm:$0xf]  ;;  %v1717_v43 = vld [vmem:[%s2157_s9 + $0x234] sm:$0xf0]  ;;  %v1728_v48 = vor.u32 %v1900_v36, %v1727_v35  ;;  %v1845_v52 = vld [vmem:[%s2157_s9 + $0x94] sm:$0xf] }
  0x53   : > { %1054 = vmatpush.bf16.msra.mxu0 %v1464_v13  ;;  %v1872_v39 = vld [vmem:[%s2157_s9 + $0x16c] sm:$0xf]  ;;  %v1813_v47 = vld [vmem:[%s2157_s9 + $0x2f4] sm:$0xf0]  ;;  %v1528_v49 = vor.u32 %v1848_v37, %v1525_v38  ;;  %v1513_v53 = vld [vmem:[%s2157_s9 + $0x9c] sm:$0xf0] }
  0x54   : > { %1068 = vmatpush.bf16.msra.mxu1 %v1560_v14  ;;  %v1896_v42 = vld [vmem:[%s2157_s9 + $0x22c] sm:$0xf]  ;;  %v1624_v50 = vor.u32 %v1872_v39, %v1621_v41  ;;  %v1869_v54 = vld [vmem:[%s2157_s9 + $0x154] sm:$0xf]  ;;  %v1609_v56 = vld [vmem:[%s2157_s9 + $0x15c] sm:$0xf0]  ;;  %v1516_v61 = vor.u32 %v1845_v52, %v1513_v53 }
  0x55   : > { %1082 = vmatpush.bf16.msra.mxu2 %v1656_v15  ;;  %v1920_v46 = vld [vmem:[%s2157_s9 + $0x2ec] sm:$0xf]  ;;  %v1720_v51 = vor.u32 %v1896_v42, %v1717_v43  ;;  %v1893_v57 = vld [vmem:[%s2157_s9 + $0x214] sm:$0xf]  ;;  %v1705_v58 = vld [vmem:[%s2157_s9 + $0x21c] sm:$0xf0]  ;;  %v1612_v1 = vor.u32 %v1869_v54, %v1609_v56 }
  0x56   : > { %1096 = vmatpush.bf16.msra.mxu3 %v1752_v19  ;;  %v1816_v55 = vor.u32 %v1920_v46, %v1813_v47  ;;  %v1917_v59 = vld [vmem:[%s2157_s9 + $0x2d4] sm:$0xf]  ;;  %v1801_v60 = vld [vmem:[%s2157_s9 + $0x2dc] sm:$0xf0]  ;;  %v1842_v62 = vld [vmem:[%s2157_s9 + $0x7c] sm:$0xf]  ;;  %v1708_v2 = vor.u32 %v1893_v57, %v1705_v58 }
  0x57   : > { %1055 = vmatpush.bf16.msra.mxu0 %v1452_v25  ;;  %v1501_v63 = vld [vmem:[%s2157_s9 + $0x84] sm:$0xf0]  ;;  %v1866_v0 = vld [vmem:[%s2157_s9 + $0x13c] sm:$0xf]  ;;  %v399_v5 = vld [vmem:[%s2155_s7 + $0x10] sm:$0xff]  ;;  %v1804_v6 = vor.u32 %v1917_v59, %v1801_v60  ;;  %p1821_p13 = scmp.ne.s32.totalorder %s2049_s18, 2 }
  0x58   : > { %1069 = vmatpush.bf16.msra.mxu1 %v1548_v28  ;;  %v1597_v3 = vld [vmem:[%s2157_s9 + $0x144] sm:$0xf0]  ;;  %v1890_v4 = vld [vmem:[%s2157_s9 + $0x1fc] sm:$0xf]  ;;  %v403_v9 = vld [vmem:[%s2155_s7 + $0x30] sm:$0xff]  ;;  %v1504_v14 = vor.u32 %v1842_v62, %v1501_v63 }
  0x59   : > { %1083 = vmatpush.bf16.msra.mxu2 %v1644_v29  ;;  %v1693_v7 = vld [vmem:[%s2157_s9 + $0x204] sm:$0xf0]  ;;  %v1914_v8 = vld [vmem:[%s2157_s9 + $0x2bc] sm:$0xf]  ;;  %v1839_v11 = vld [vmem:[%s2157_s9 + $0x64] sm:$0xf]  ;;  %v2256_v13 = vpack.c.bf16 %v403_v9, %v399_v5  ;;  %v1600_v19 = vor.u32 %v1866_v0, %v1597_v3 }
  0x5a   : > { %1097 = vmatpush.bf16.msra.mxu3 %v1740_v33  ;;  %v1789_v10 = vld [vmem:[%s2157_s9 + $0x2c4] sm:$0xf0]  ;;  %v1489_v12 = vld [vmem:[%s2157_s9 + $0x6c] sm:$0xf0]  ;;  %v1863_v15 = vld [vmem:[%s2157_s9 + $0x124] sm:$0xf]  ;;  %v1696_v20 = vor.u32 %v1890_v4, %v1693_v7 }
  0x5b   : > { %1056 = vmatpush.bf16.msra.mxu0 %v1440_v40  ;;  %v1585_v16 = vld [vmem:[%s2157_s9 + $0x12c] sm:$0xf0]  ;;  %v1887_v17 = vld [vmem:[%s2157_s9 + $0x1e4] sm:$0xf]  ;;  %v400_v21 = vld [vmem:[%s2155_s7 + $0x18] sm:$0xff]  ;;  %v1792_v24 = vor.u32 %v1914_v8, %v1789_v10  ;;  %v1492_v33 = vor.u32 %v1839_v11, %v1489_v12 }
  0x5c   : > { %1070 = vmatpush.bf16.msra.mxu1 %v1536_v44  ;;  %v1681_v18 = vld [vmem:[%s2157_s9 + $0x1ec] sm:$0xf0]  ;;  %v404_v22 = vld [vmem:[%s2155_s7 + $0x38] sm:$0xff]  ;;  %v397_v23 = vld [vmem:[%s2155_s7] sm:$0xff]  ;;  %v1588_v34 = vor.u32 %v1863_v15, %v1585_v16 }
  0x5d   : > { %1084 = vmatpush.bf16.msra.mxu2 %v1632_v45  ;;  %v2266_v25 = vpack.c.bf16 %v404_v22, %v400_v21  ;;  %v401_v26 = vld [vmem:[%s2155_s7 + $0x20] sm:$0xff]  ;;  %v398_v27 = vld [vmem:[%s2155_s7 + $0x8] sm:$0xff]  ;;  %v1777_v30 = vld [vmem:[%s2157_s9 + $0x2ac] sm:$0xf0]  ;;  %v1684_v35 = vor.u32 %v1887_v17, %v1681_v18 }
  0x5e   : > { %1098 = vmatpush.bf16.msra.mxu3 %v1728_v48  ;;  %v402_v28 = vld [vmem:[%s2155_s7 + $0x28] sm:$0xff]  ;;  %v1911_v29 = vld [vmem:[%s2157_s9 + $0x2a4] sm:$0xf]  ;;  %v2273_v31 = vpack.c.bf16 %v401_v26, %v397_v23  ;;  %v1477_v37 = vld [vmem:[%s2157_s9 + $0x54] sm:$0xf0] }
  0x5f   : > { %1105 = vmatpush.bf16.msrb.mxu0 %v1528_v49  ;;  %v2275_v32 = vpack.c.bf16 %v402_v28, %v398_v27  ;;  %v1836_v36 = vld [vmem:[%s2157_s9 + $0x4c] sm:$0xf]  ;;  %v1780_v39 = vor.u32 %v1911_v29, %v1777_v30  ;;  %v1573_v40 = vld [vmem:[%s2157_s9 + $0x114] sm:$0xf0]  ;;  %v1833_v48 = vld [vmem:[%s2157_s9 + $0x34] sm:$0xf] }
  0x60   : > { %1119 = vmatpush.bf16.msrb.mxu1 %v1624_v50  ;;  %1085 = vmatmul.bf16.vlgmr.msra.gmra.mxu2 %v2256_v13  ;;  %v1860_v38 = vld [vmem:[%s2157_s9 + $0x10c] sm:$0xf]  ;;  %v1669_v42 = vld [vmem:[%s2157_s9 + $0x1d4] sm:$0xf0]  ;;  %v1480_v45 = vor.u32 %v1836_v36, %v1477_v37  ;;  %v1465_v49 = vld [vmem:[%s2157_s9 + $0x3c] sm:$0xf0] }
  0x61   : > { %1133 = vmatpush.bf16.msrb.mxu2 %v1720_v51  ;;  %1099 = vmatmul.bf16.vlgmr.msra.gmra.mxu3 %v2266_v25  ;;  %v1884_v41 = vld [vmem:[%s2157_s9 + $0x1cc] sm:$0xf]  ;;  %v1765_v44 = vld [vmem:[%s2157_s9 + $0x294] sm:$0xf0]  ;;  %v1576_v46 = vor.u32 %v1860_v38, %v1573_v40  ;;  %v1857_v50 = vld [vmem:[%s2157_s9 + $0xf4] sm:$0xf]  ;;  %v1468_v57 = vor.u32 %v1833_v48, %v1465_v49 }
  0x62   : > { %1147 = vmatpush.bf16.msrb.mxu3 %v1816_v55  ;;  %1057 = vmatmul.bf16.vlgmr.msra.gmra.mxu0 %v2273_v31  ;;  %v1908_v43 = vld [vmem:[%s2157_s9 + $0x28c] sm:$0xf]  ;;  %v1672_v47 = vor.u32 %v1884_v41, %v1669_v42  ;;  %v1561_v52 = vld [vmem:[%s2157_s9 + $0xfc] sm:$0xf0]  ;;  %v1881_v53 = vld [vmem:[%s2157_s9 + $0x1b4] sm:$0xf] }
  0x63   : > { %1106 = vmatpush.bf16.msrb.mxu0 %v1516_v61  ;;  %1071 = vmatmul.bf16.vlgmr.msra.gmra.mxu1 %v2275_v32  ;;  %v1768_v51 = vor.u32 %v1908_v43, %v1765_v44  ;;  %v1657_v54 = vld [vmem:[%s2157_s9 + $0x1bc] sm:$0xf0]  ;;  %v1905_v55 = vld [vmem:[%s2157_s9 + $0x274] sm:$0xf]  ;;  %v1564_v58 = vor.u32 %v1857_v50, %v1561_v52  ;;  %v1830_v60 = vld [vmem:[%s2157_s9 + $0x1c] sm:$0xf] }
  0x64   : > { %1120 = vmatpush.bf16.msrb.mxu1 %v1612_v1  ;;  %v1753_v56 = vld [vmem:[%s2157_s9 + $0x27c] sm:$0xf0]  ;;  %v1660_v59 = vor.u32 %v1881_v53, %v1657_v54  ;;  %v1453_v61 = vld [vmem:[%s2157_s9 + $0x24] sm:$0xf0]  ;;  %v1854_v62 = vld [vmem:[%s2157_s9 + $0xdc] sm:$0xf] }
  0x65   : > { %1134 = vmatpush.bf16.msrb.mxu2 %v1708_v2  ;;  %v1756_v63 = vor.u32 %v1905_v55, %v1753_v56  ;;  %v1549_v0 = vld [vmem:[%s2157_s9 + $0xe4] sm:$0xf0]  ;;  %v1878_v1 = vld [vmem:[%s2157_s9 + $0x19c] sm:$0xf]  ;;  %v1456_v5 = vor.u32 %v1830_v60, %v1453_v61  ;;  %v1441_v7 = vld [vmem:[%s2157_s9 + $0xc] sm:$0xf0] }
  0x66   : > { %1148 = vmatpush.bf16.msrb.mxu3 %v1804_v6  ;;  %v1645_v2 = vld [vmem:[%s2157_s9 + $0x1a4] sm:$0xf0]  ;;  %v1902_v3 = vld [vmem:[%s2157_s9 + $0x25c] sm:$0xf]  ;;  %v1827_v6 = vld [vmem:[%s2157_s9 + $0x4] sm:$0xf]  ;;  %v1552_v8 = vor.u32 %v1854_v62, %v1549_v0 }
  0x67   : > { %1107 = vmatpush.bf16.msrb.mxu0 %v1504_v14  ;;  %v1741_v4 = vld [vmem:[%s2157_s9 + $0x264] sm:$0xf0]  ;;  %v1648_v9 = vor.u32 %v1878_v1, %v1645_v2  ;;  %v1851_v10 = vld [vmem:[%s2157_s9 + $0xc4] sm:$0xf]  ;;  %v1537_v11 = vld [vmem:[%s2157_s9 + $0xcc] sm:$0xf0]  ;;  %v1444_v21 = vor.u32 %v1827_v6, %v1441_v7 }
  0x68   : > { %1121 = vmatpush.bf16.msrb.mxu1 %v1600_v19  ;;  %v1875_v12 = vld [vmem:[%s2157_s9 + $0x184] sm:$0xf]  ;;  %v1744_v14 = vor.u32 %v1902_v3, %v1741_v4  ;;  %v1633_v15 = vld [vmem:[%s2157_s9 + $0x18c] sm:$0xf0]  ;;  %v1850_v19 = vld [vmem:[%s2157_s9 + $0xb8] sm:$0xf0]  ;;  %v1540_v26 = vor.u32 %v1851_v10, %v1537_v11 }
  0x69   : > { %1135 = vmatpush.bf16.msrb.mxu2 %v1696_v20  ;;  %v1899_v16 = vld [vmem:[%s2157_s9 + $0x244] sm:$0xf]  ;;  %v1729_v17 = vld [vmem:[%s2157_s9 + $0x24c] sm:$0xf0]  ;;  %v1874_v22 = vld [vmem:[%s2157_s9 + $0x178] sm:$0xf0]  ;;  %v1636_v27 = vor.u32 %v1875_v12, %v1633_v15 }
  0x6a   : > { %1149 = vmatpush.bf16.msrb.mxu3 %v1792_v24  ;;  %v1531_v18 = vld [vmem:[%s2157_s9 + $0xb0] sm:$0xf]  ;;  %v1898_v24 = vld [vmem:[%s2157_s9 + $0x238] sm:$0xf0]  ;;  %v1732_v30 = vor.u32 %v1899_v16, %v1729_v17  ;;  %v1519_v36 = vld [vmem:[%s2157_s9 + $0x98] sm:$0xf] }
  0x6b   : > { %1108 = vmatpush.bf16.msrb.mxu0 %v1492_v33  ;;  %v1627_v20 = vld [vmem:[%s2157_s9 + $0x170] sm:$0xf]  ;;  %v1922_v29 = vld [vmem:[%s2157_s9 + $0x2f8] sm:$0xf0]  ;;  %v1532_v33 = vor.u32 %v1850_v19, %v1531_v18  ;;  %v1847_v37 = vld [vmem:[%s2157_s9 + $0xa0] sm:$0xf0] }
  0x6c   : > { %1122 = vmatpush.bf16.msrb.mxu1 %v1588_v34  ;;  %v1723_v23 = vld [vmem:[%s2157_s9 + $0x230] sm:$0xf]  ;;  %v1628_v34 = vor.u32 %v1874_v22, %v1627_v20  ;;  %v1615_v38 = vld [vmem:[%s2157_s9 + $0x158] sm:$0xf]  ;;  %v1871_v40 = vld [vmem:[%s2157_s9 + $0x160] sm:$0xf0] }
  0x6d   : > { %1136 = vmatpush.bf16.msrb.mxu2 %v1684_v35  ;;  %v1819_v28 = vld [vmem:[%s2157_s9 + $0x2f0] sm:$0xf]  ;;  %v1724_v35 = vor.u32 %v1898_v24, %v1723_v23  ;;  %v1711_v41 = vld [vmem:[%s2157_s9 + $0x218] sm:$0xf]  ;;  %v1895_v42 = vld [vmem:[%s2157_s9 + $0x220] sm:$0xf0] }
  0x6e   : > { %1150 = vmatpush.bf16.msrb.mxu3 %v1780_v39  ;;  %v1820_v39 = vor.u32 %v1922_v29, %v1819_v28  ;;  %v1807_v43 = vld [vmem:[%s2157_s9 + $0x2d8] sm:$0xf]  ;;  %v1919_v44 = vld [vmem:[%s2157_s9 + $0x2e0] sm:$0xf0]  ;;  %v1507_v48 = vld [vmem:[%s2157_s9 + $0x80] sm:$0xf] }
  0x6f   : > { %1109 = vmatpush.bf16.msrb.mxu0 %v1480_v45  ;;  %v1520_v45 = vor.u32 %v1847_v37, %v1519_v36  ;;  %v1844_v49 = vld [vmem:[%s2157_s9 + $0x88] sm:$0xf0]  ;;  %v1603_v50 = vld [vmem:[%s2157_s9 + $0x140] sm:$0xf]  ;;  %v1495_v60 = vld [vmem:[%s2157_s9 + $0x68] sm:$0xf] }
  0x70   : > { %1123 = vmatpush.bf16.msrb.mxu1 %v1576_v46  ;;  %v1616_v46 = vor.u32 %v1871_v40, %v1615_v38  ;;  %v1868_v52 = vld [vmem:[%s2157_s9 + $0x148] sm:$0xf0]  ;;  %v1699_v53 = vld [vmem:[%s2157_s9 + $0x200] sm:$0xf]  ;;  %v1841_v61 = vld [vmem:[%s2157_s9 + $0x70] sm:$0xf0] }
  0x71   : > { %1137 = vmatpush.bf16.msrb.mxu2 %v1672_v47  ;;  %v1712_v47 = vor.u32 %v1895_v42, %v1711_v41  ;;  %v1892_v54 = vld [vmem:[%s2157_s9 + $0x208] sm:$0xf0]  ;;  %v1795_v55 = vld [vmem:[%s2157_s9 + $0x2c0] sm:$0xf]  ;;  %v1591_v62 = vld [vmem:[%s2157_s9 + $0x128] sm:$0xf] }
  0x72   : > { %1151 = vmatpush.bf16.msrb.mxu3 %v1768_v51  ;;  %v1808_v51 = vor.u32 %v1919_v44, %v1807_v43  ;;  %v1916_v56 = vld [vmem:[%s2157_s9 + $0x2c8] sm:$0xf0]  ;;  %v1865_v0 = vld [vmem:[%s2157_s9 + $0x130] sm:$0xf0]  ;;  %v1687_v1 = vld [vmem:[%s2157_s9 + $0x1e8] sm:$0xf] }
  0x73   : > { %1110 = vmatpush.bf16.msrb.mxu0 %v1468_v57  ;;  %v1508_v57 = vor.u32 %v1844_v49, %v1507_v48  ;;  %v1889_v2 = vld [vmem:[%s2157_s9 + $0x1f0] sm:$0xf0]  ;;  %v1783_v3 = vld [vmem:[%s2157_s9 + $0x2a8] sm:$0xf]  ;;  %v1592_v6 = vor.u32 %v1865_v0, %v1591_v62  ;;  %v1579_v10 = vld [vmem:[%s2157_s9 + $0x110] sm:$0xf] }
  0x74   : > { %1124 = vmatpush.bf16.msrb.mxu1 %v1564_v58  ;;  %v1604_v58 = vor.u32 %v1868_v52, %v1603_v50  ;;  %v1913_v4 = vld [vmem:[%s2157_s9 + $0x2b0] sm:$0xf0]  ;;  %v1688_v7 = vor.u32 %v1889_v2, %v1687_v1  ;;  %v1862_v12 = vld [vmem:[%s2157_s9 + $0x118] sm:$0xf0]  ;;  %v1771_v16 = vld [vmem:[%s2157_s9 + $0x290] sm:$0xf] }
  0x75   : > { %1138 = vmatpush.bf16.msrb.mxu2 %v1660_v59  ;;  %v1700_v59 = vor.u32 %v1892_v54, %v1699_v53  ;;  %v1784_v11 = vor.u32 %v1913_v4, %v1783_v3  ;;  %v1886_v15 = vld [vmem:[%s2157_s9 + $0x1d8] sm:$0xf0]  ;;  %v1580_v19 = vor.u32 %v1862_v12, %v1579_v10  ;;  %v1835_v22 = vld [vmem:[%s2157_s9 + $0x40] sm:$0xf0]  ;;  %v1567_v23 = vld [vmem:[%s2157_s9 + $0xf8] sm:$0xf] }
  0x76   : > { %1152 = vmatpush.bf16.msrb.mxu3 %v1756_v63  ;;  %v1796_v63 = vor.u32 %v1916_v56, %v1795_v55  ;;  %v1910_v17 = vld [vmem:[%s2157_s9 + $0x298] sm:$0xf0]  ;;  %v1883_v28 = vld [vmem:[%s2157_s9 + $0x1c0] sm:$0xf0]  ;;  %v1759_v29 = vld [vmem:[%s2157_s9 + $0x278] sm:$0xf] }
  0x77   : > { %1111 = vmatpush.bf16.msrb.mxu0 %v1456_v5  ;;  %v1496_v5 = vor.u32 %v1841_v61, %v1495_v60  ;;  %v1772_v24 = vor.u32 %v1910_v17, %v1771_v16  ;;  %v1459_v36 = vld [vmem:[%s2157_s9 + $0x20] sm:$0xf]  ;;  %v1832_v37 = vld [vmem:[%s2157_s9 + $0x28] sm:$0xf0]  ;;  %v1447_v48 = vld [vmem:[%s2157_s9 + $0x8] sm:$0xf] }
  0x78   : > { %1125 = vmatpush.bf16.msrb.mxu1 %v1552_v8  ;;  %v1483_v8 = vld [vmem:[%s2157_s9 + $0x50] sm:$0xf]  ;;  %v1555_v38 = vld [vmem:[%s2157_s9 + $0xe0] sm:$0xf]  ;;  %v1856_v40 = vld [vmem:[%s2157_s9 + $0xe8] sm:$0xf0] }
  0x79   : > { %1139 = vmatpush.bf16.msrb.mxu2 %v1648_v9  ;;  %v1838_v9 = vld [vmem:[%s2157_s9 + $0x58] sm:$0xf0]  ;;  %v1651_v41 = vld [vmem:[%s2157_s9 + $0x1a0] sm:$0xf]  ;;  %v1880_v42 = vld [vmem:[%s2157_s9 + $0x1a8] sm:$0xf0] }
  0x7a   : > { %1153 = vmatpush.bf16.msrb.mxu3 %v1744_v14  ;;  %v1675_v14 = vld [vmem:[%s2157_s9 + $0x1d0] sm:$0xf]  ;;  %v1484_v18 = vor.u32 %v1838_v9, %v1483_v8  ;;  %v1747_v43 = vld [vmem:[%s2157_s9 + $0x260] sm:$0xf]  ;;  %v1904_v44 = vld [vmem:[%s2157_s9 + $0x268] sm:$0xf0] }
  0x7b   : > { %1112 = vmatpush.bf16.msrb.mxu0 %v1444_v21  ;;  %v1676_v20 = vor.u32 %v1886_v15, %v1675_v14  ;;  %v1471_v21 = vld [vmem:[%s2157_s9 + $0x38] sm:$0xf]  ;;  %v1829_v49 = vld [vmem:[%s2157_s9 + $0x10] sm:$0xf0]  ;;  %v1543_v50 = vld [vmem:[%s2157_s9 + $0xc8] sm:$0xf] }
  0x7c   : > { %1126 = vmatpush.bf16.msrb.mxu1 %v1540_v26  ;;  %v1859_v26 = vld [vmem:[%s2157_s9 + $0x100] sm:$0xf0]  ;;  %v1853_v52 = vld [vmem:[%s2157_s9 + $0xd0] sm:$0xf0]  ;;  %v1639_v53 = vld [vmem:[%s2157_s9 + $0x188] sm:$0xf] }
  0x7d   : > { %1140 = vmatpush.bf16.msrb.mxu2 %v1636_v27  ;;  %v1663_v27 = vld [vmem:[%s2157_s9 + $0x1b8] sm:$0xf]  ;;  %v1877_v54 = vld [vmem:[%s2157_s9 + $0x190] sm:$0xf0]  ;;  %v1735_v55 = vld [vmem:[%s2157_s9 + $0x248] sm:$0xf] }
  0x7e   : > { %1154 = vmatpush.bf16.msrb.mxu3 %v1732_v30  ;;  %1113 = vmatmul.bf16.vlgmr.msrb.gmra.mxu0 %v2273_v31  ;;  %v1907_v30 = vld [vmem:[%s2157_s9 + $0x280] sm:$0xf0]  ;;  %v1901_v56 = vld [vmem:[%s2157_s9 + $0x250] sm:$0xf0]  ;;  %v391_v3 = vld [vmem:[#allocation2 + $0x28] sm:$0xff] }
  0x7f   : > { %1161 = vmatpush.bf16.msra.mxu0 %v1532_v33  ;;  %1127 = vmatmul.bf16.vlgmr.msrb.gmra.mxu1 %v2275_v32  ;;  %v1472_v33 = vor.u32 %v1835_v22, %v1471_v21  ;;  %v1736_v60 = vor.u32 %v1901_v56, %v1735_v55  ;;  %v394_v10 = vld [vmem:[#allocation2] sm:$0xff] }
  0x80   : > { %1175 = vmatpush.bf16.msra.mxu1 %v1628_v34  ;;  %1141 = vmatmul.bf16.vlgmr.msrb.gmra.mxu2 %v2256_v13  ;;  %v1568_v34 = vor.u32 %v1859_v26, %v1567_v23 }
  0x81   : > { %1189 = vmatpush.bf16.msra.mxu2 %v1724_v35  ;;  %1155 = vmatmul.bf16.vlgmr.msrb.gmra.mxu3 %v2266_v25  ;;  %v1664_v35 = vor.u32 %v1883_v28, %v1663_v27  ;;  %v395_v28 = vld [vmem:[#allocation2 + $0x18] sm:$0xff] }
  0x82   : > { %1203 = vmatpush.bf16.msra.mxu3 %v1820_v39  ;;  %v1760_v39 = vor.u32 %v1907_v30, %v1759_v29 }
  0x83   : > { %1162 = vmatpush.bf16.msra.mxu0 %v1520_v45  ;;  %v1460_v45 = vor.u32 %v1832_v37, %v1459_v36 }
  0x84   : > { %1176 = vmatpush.bf16.msra.mxu1 %v1616_v46  ;;  %v1556_v46 = vor.u32 %v1856_v40, %v1555_v38 }
  0x85   : > { %1190 = vmatpush.bf16.msra.mxu2 %v1712_v47  ;;  %v1652_v47 = vor.u32 %v1880_v42, %v1651_v41 }
  0x86   : > { %1204 = vmatpush.bf16.msra.mxu3 %v1808_v51  ;;  %v1748_v51 = vor.u32 %v1904_v44, %v1747_v43 }
  0x87   : > { %1163 = vmatpush.bf16.msra.mxu0 %v1508_v57  ;;  %v1448_v57 = vor.u32 %v1829_v49, %v1447_v48 }
  0x88   : > { %1177 = vmatpush.bf16.msra.mxu1 %v1604_v58  ;;  %v1544_v58 = vor.u32 %v1853_v52, %v1543_v50 }
  0x89   : > { %1191 = vmatpush.bf16.msra.mxu2 %v1700_v59  ;;  %v1640_v59 = vor.u32 %v1877_v54, %v1639_v53 }
  0x8a   : > { %1205 = vmatpush.bf16.msra.mxu3 %v1796_v63 }
  0x8b   : > { %1164 = vmatpush.bf16.msra.mxu0 %v1496_v5 }
  0x8c   : > { %1178 = vmatpush.bf16.msra.mxu1 %v1592_v6 }
  0x8d   : > { %1192 = vmatpush.bf16.msra.mxu2 %v1688_v7 }
  0x8e   : > { %1206 = vmatpush.bf16.msra.mxu3 %v1784_v11 }
  0x8f   : > { %1165 = vmatpush.bf16.msra.mxu0 %v1484_v18  ;;  %v392_v18 = vld [vmem:[#allocation2 + $0x10] sm:$0xff] }
  0x90   : > { %1179 = vmatpush.bf16.msra.mxu1 %v1580_v19 }
  0x91   : > { %1193 = vmatpush.bf16.msra.mxu2 %v1676_v20 }
  0x92   : > { %1207 = vmatpush.bf16.msra.mxu3 %v1772_v24 }
  0x93   : > { %1166 = vmatpush.bf16.msra.mxu0 %v1472_v33 }
  0x94   : > { %1180 = vmatpush.bf16.msra.mxu1 %v1568_v34 }
  0x95   : > { %1194 = vmatpush.bf16.msra.mxu2 %v1664_v35 }
  0x96   : > { %1208 = vmatpush.bf16.msra.mxu3 %v1760_v39  ;;  %v393_v39 = vld [vmem:[#allocation2 + $0x8] sm:$0xff] }
  0x97   : > { %1167 = vmatpush.bf16.msra.mxu0 %v1460_v45 }
  0x98   : > { %1181 = vmatpush.bf16.msra.mxu1 %v1556_v46 }
  0x99   : > { %1195 = vmatpush.bf16.msra.mxu2 %v1652_v47  ;;  %v396_v47 = vld [vmem:[#allocation2 + $0x20] sm:$0xff] }
  0x9a   : > { %1209 = vmatpush.bf16.msra.mxu3 %v1748_v51 }
  0x9b   : > { %1168 = vmatpush.bf16.msra.mxu0 %v1448_v57 }
  0x9c   : > { %1182 = vmatpush.bf16.msra.mxu1 %v1544_v58 }
  0x9d   : > { %1196 = vmatpush.bf16.msra.mxu2 %v1640_v59 }
  0x9e   : > { %1210 = vmatpush.bf16.msra.mxu3 %v1736_v60  ;;  %1169 = vmatmul.bf16.vlgmr.msra.gmra.mxu0 %v2273_v31 }
  0x9f   : > { %1183 = vmatmul.bf16.vlgmr.msra.gmra.mxu1 %v2275_v32 }
  0xa0   : > { %1197 = vmatmul.bf16.vlgmr.msra.gmra.mxu2 %v2256_v13 }
  0xa1   : > { %1211 = vmatmul.bf16.vlgmr.msra.gmra.mxu3 %v2266_v25 }
  0xdf   : > { %v1058_v61 = vpop.f32.mrf.mxu0 }
  0xe0   : > { %v1072_v62 = vpop.f32.mrf.mxu1 }
  0xe1   : > { %v1073_v63 = vadd.f32 %v1072_v62, %v1058_v61 }
  0xe3   : > { %v1086_v0 = vpop.f32.mrf.mxu2 }
  0xe4   : > { %v1087_v1 = vadd.f32 %v1086_v0, %v1073_v63  ;;  %v1100_v2 = vpop.f32.mrf.mxu3 }
  0xe6   : > { %v1101_v4 = vadd.f32 %v1100_v2, %v1087_v1 }
  0xe7   : > { %v1060_v6 = vpop.f32.mrf.mxu0 }
  0xe8   : > { %v1217_v5 = vadd.f32 %v1101_v4, %v391_v3  ;;  %v1074_v7 = vpop.f32.mrf.mxu1 }
  0xe9   : > { %v1075_v8 = vadd.f32 %v1074_v7, %v1060_v6 }
  0xea   : > { %1223 = vst [vmem:[#allocation2 + $0x28] sm:$0xff] %v1217_v5 }
  0xeb   : > { %v1088_v31 = vpop.f32.mrf.mxu2 }
  0xec   : > { %v1089_v9 = vadd.f32 %v1088_v31, %v1075_v8  ;;  %v1102_v32 = vpop.f32.mrf.mxu3 }
  0xee   : > { %v1103_v13 = vadd.f32 %v1102_v32, %v1089_v9 }
  0xf0   : > { %v1220_v11 = vadd.f32 %v1103_v13, %v394_v10 }
  0xf2   : > { %1226 = vst [vmem:[#allocation2] sm:$0xff] %v1220_v11 }
  0xfb   : > { %v1114_v25 = vpop.f32.mrf.mxu0 }
  0xfc   : > { %v1128_v12 = vpop.f32.mrf.mxu1 }
  0xfd   : > { %v1129_v14 = vadd.f32 %v1128_v12, %v1114_v25 }
 0x103   : > { %v1142_v15 = vpop.f32.mrf.mxu2  ;;  %v1116_v20 = vpop.f32.mrf.mxu0 }
 0x104   : > { %v1143_v16 = vadd.f32 %v1142_v15, %v1129_v14  ;;  %v1156_v17 = vpop.f32.mrf.mxu3  ;;  %v1130_v21 = vpop.f32.mrf.mxu1 }
 0x105   : > { %v1131_v23 = vadd.f32 %v1130_v21, %v1116_v20 }
 0x106   : > { %v1157_v19 = vadd.f32 %v1156_v17, %v1143_v16 }
 0x108   : > { %v1218_v22 = vadd.f32 %v1157_v19, %v392_v18 }
 0x10a   : > { %1224 = vst [vmem:[#allocation2 + $0x10] sm:$0xff] %v1218_v22 }
 0x10b   : > { %v1144_v24 = vpop.f32.mrf.mxu2 }
 0x10c   : > { %v1145_v26 = vadd.f32 %v1144_v24, %v1131_v23  ;;  %v1158_v27 = vpop.f32.mrf.mxu3 }
 0x10e   : > { %v1159_v29 = vadd.f32 %v1158_v27, %v1145_v26 }
 0x110   : > { %v1221_v30 = vadd.f32 %v1159_v29, %v395_v28 }
 0x112   : > { %1227 = vst [vmem:[#allocation2 + $0x18] sm:$0xff] %v1221_v30 }
 0x11b   : > { %v1170_v33 = vpop.f32.mrf.mxu0 }
 0x11c   : > { %v1184_v34 = vpop.f32.mrf.mxu1 }
 0x11d   : > { %v1185_v35 = vadd.f32 %v1184_v34, %v1170_v33 }
 0x123   : > { %v1198_v36 = vpop.f32.mrf.mxu2  ;;  %v1172_v41 = vpop.f32.mrf.mxu0 }
 0x124   : > { %v1199_v37 = vadd.f32 %v1198_v36, %v1185_v35  ;;  %v1212_v38 = vpop.f32.mrf.mxu3  ;;  %v1186_v42 = vpop.f32.mrf.mxu1 }
 0x125   : > { %v1187_v44 = vadd.f32 %v1186_v42, %v1172_v41 }
 0x126   : > { %v1213_v40 = vadd.f32 %v1212_v38, %v1199_v37 }
 0x128   : > { %v1219_v43 = vadd.f32 %v1213_v40, %v393_v39 }
 0x12a   : > { %1225 = vst [vmem:[#allocation2 + $0x8] sm:$0xff] %v1219_v43 }
 0x12b   : > { %v1200_v45 = vpop.f32.mrf.mxu2 }
 0x12c   : > { %v1201_v46 = vadd.f32 %v1200_v45, %v1187_v44  ;;  %v1214_v48 = vpop.f32.mrf.mxu3 }
 0x12e   : > { %v1215_v49 = vadd.f32 %v1214_v48, %v1201_v46  ;;  %1232 = sbr.rel (%p1821_p13) target bundleno = 320 (0x140), region = 71 }
 0x130   : > { %v1222_v50 = vadd.f32 %v1215_v49, %v396_v47 }
 0x132   : > { %1228 = vst [vmem:[#allocation2 + $0x20] sm:$0xff] %v1222_v50 }
 0x133   : > { %v1233_v51 = vld [vmem:[#allocation2 + $0x28] sm:$0xff]  ;;  %v1239_v52 = vld [vmem:[%s2444_s2] sm:$0x7]  ;;  %v1234_v55 = vld [vmem:[#allocation2 + $0x10] sm:$0xff] }
 0x134   : > { %v1241_v53 = vperm.slane %v1239_v52, 0  ;;  %v1253_v54 = vld [vmem:[%s2445_s3] sm:$0xff]  ;;  %v1242_v56 = vperm.slane %v1239_v52, 1  ;;  %v1235_v57 = vld [vmem:[#allocation2 + $0x8] sm:$0xff]  ;;  %v1243_v58 = vperm.slane %v1239_v52, 2  ;;  %v1255_v60 = vld [vmem:[%s2445_s3 + $0x10] sm:$0xff] }
 0x135   : > { %v1254_v59 = vld [vmem:[%s2445_s3 + $0x8] sm:$0xff]  ;;  %v1236_v61 = vld [vmem:[#allocation2] sm:$0xff]  ;;  %v1256_v2 = vld [vmem:[%s2445_s3 + $0x18] sm:$0xff] }
 0x136   : > { %v1247_v62 = vadd.f32 %v1241_v53, %v1233_v51  ;;  %v1248_v63 = vadd.f32 %v1242_v56, %v1234_v55  ;;  %v1249_v0 = vadd.f32 %v1243_v58, %v1235_v57  ;;  %v1250_v1 = vadd.f32 %v1241_v53, %v1236_v61  ;;  %v1237_v3 = vld [vmem:[#allocation2 + $0x18] sm:$0xff]  ;;  %v1257_v6 = vld [vmem:[%s2445_s3 + $0x20] sm:$0xff]  ;;  %v1258_v32 = vld [vmem:[%s2445_s3 + $0x28] sm:$0xff] }
 0x137   : > { %v1251_v5 = vadd.f32 %v1242_v56, %v1237_v3 }
 0x138   : > { %v1259_v8 = vadd.f32 %v1253_v54, %v1247_v62  ;;  %v1260_v31 = vadd.f32 %v1254_v59, %v1248_v63  ;;  %v1261_v9 = vadd.f32 %v1255_v60, %v1249_v0  ;;  %v1262_v10 = vadd.f32 %v1256_v2, %v1250_v1 }
 0x139   : > { %v1238_v4 = vld [vmem:[#allocation2 + $0x20] sm:$0xff]  ;;  %v1263_v13 = vadd.f32 %v1257_v6, %v1251_v5 }
 0x13a   : > { %v1252_v7 = vadd.f32 %v1243_v58, %v1238_v4  ;;  %1265 = vst [vmem:[%s2446_s4] sm:$0xff] %v1259_v8 }
 0x13b   : > { %1266 = vst [vmem:[%s2446_s4 + $0x8] sm:$0xff] %v1260_v31 }
 0x13c   : > { %v1264_v11 = vadd.f32 %v1258_v32, %v1252_v7  ;;  %1267 = vst [vmem:[%s2446_s4 + $0x10] sm:$0xff] %v1261_v9 }
 0x13d   : > { %1268 = vst [vmem:[%s2446_s4 + $0x18] sm:$0xff] %v1262_v10 }
 0x13e   : > { %1269 = vst [vmem:[%s2446_s4 + $0x20] sm:$0xff] %v1263_v13 }
 0x13f   : > { %1270 = vst [vmem:[%s2446_s4 + $0x28] sm:$0xff] %v1264_v11 }
 0x140 PF: > { %s17_s20 = sadd.s32 1, %s2057_s20   ;;  %s2449_s15 = smov %s2041_s16 }
 0x141   : > { %p14_p0 = scmp.ge.s32.totalorder %s17_s20, 5   ;;  %s2450_s16 = smov %s2045_s17 }
 0x142   : > { %s2451_s17 = smov %s2135_s27  ;;  %s2452_s18 = smov %s2053_s19 }
 0x143   : > { %s2453_s19 = smov %s2455_s22  ;;  %16 = sbr.rel (!%p14_p0) target bundleno = 4 (0x4), region = 121 }
 0x148   :  { %1304 = vsyncpa [#allocation5], 1 }
 0x149   :  { %1306 = vsyncpa [#allocation5 + $0x1], 1 }

</bundles_post_ra>
